<compile_context>
chip_gen: v6e
topology: v6e:2x2x1
jax: 0.10.0
libtpu: 0.0.40
codegen_flags: <defaults>
</compile_context>

<pallas_src>
import jax
import jax.numpy as jnp
import numpy as np
from jax.experimental import pallas as pl
from jax.experimental.pallas import tpu as pltpu

BN_EPS = 1e-5
LANES = 128
SUBLANE_ALIGN = 16           # bf16 native sublane tile


def _round_up(x, m):
    return (x + m - 1) // m * m


def _make_block_kernel(K, H, W, Wp, Cpad, *, has_shortcut_conv):
    pad = K // 2
    Mo = H * Wp                      # flat rows computed per stage (cols >= W are garbage)
    assert Wp % SUBLANE_ALIGN == 0 and Mo % SUBLANE_ALIGN == 0

    def shift_rows(v, k):
        """u[i] = v[i + k]; rows shifted in from outside are zero."""
        if k == 0:
            return v
        z = jnp.zeros((abs(k), v.shape[1]), v.dtype)
        if k > 0:
            return jnp.concatenate([v[k:], z], axis=0)
        return jnp.concatenate([z, v[:k]], axis=0)

    def kernel(*refs):
        if has_shortcut_conv:
            (x_ref, w1_ref, b1_ref, w2_ref, b2_ref, w3_ref, b3_ref,
             wsc_ref, bsc_ref, o_ref, t1_ref, t2_ref) = refs
        else:
            (x_ref, w1_ref, b1_ref, w2_ref, b2_ref, w3_ref, b3_ref,
             o_ref, t1_ref, t2_ref) = refs

        # (Mo, 1) validity mask: flat columns j >= W of each image row are
        # wrap-around garbage and must be zeroed before re-entering a buffer.
        col = jax.lax.broadcasted_iota(jnp.int32, (Mo, 1), 0) % Wp
        valid = col < W

        # Zero only the top/bottom halo rows of the intermediate buffers.  The
        # central store below rewrites everything else every grid step, so no
        # state leaks across images (also correct when the grid axis is split
        # across TensorCores).
        halo = jnp.zeros((pad * Wp, Cpad), jnp.bfloat16)
        for t_ref in (t1_ref, t2_ref):
            t_ref[pl.ds(0, pad * Wp), :] = halo
            t_ref[pl.ds((pad + H) * Wp, pad * Wp), :] = halo

        def conv_stage(load_row, w_ref, b_ref):
            # One aligned bf16 load per kh; accumulate per-kw partial sums in
            # f32 values and apply the kw column shift to the f32 result
            # (dot(shift(x), w) == shift(dot(x, w))).  BN bias folded into the
            # init; BN scale folded into the weights.
            s = [None] * K
            for kh in range(K):
                row = load_row(kh)                       # (Mo, Cpad) bf16, aligned
                for kw in range(K):
                    p = jnp.dot(row, w_ref[kh, kw],
                                preferred_element_type=jnp.float32)
                    s[kw] = p if s[kw] is None else s[kw] + p
            acc = jnp.broadcast_to(b_ref[...], (Mo, Cpad))
            for kw in range(K):
                acc = acc + shift_rows(s[kw], kw)
            return acc

        def store_central(t_ref, y_f32):
            # y[j] logically belongs at flat offset pad*Wp + pad + j.  Shift
            # the f32 value down by `pad` rows (zeros fill the left padding of
            # the first row) so the store base pad*Wp is sublane aligned; the
            # `pad` rows that fall off the end are masked garbage columns and
            # stay zero in the (zero-initialised) bottom halo.
            z = shift_rows(y_f32, -pad)
            t_ref[pl.ds(pad * Wp, Mo), :] = z.astype(jnp.bfloat16)

        def masked_relu(a):
            return jnp.where(valid, jnp.maximum(a, 0.0), 0.0)

        # Stage 1: relu(bn1(conv1(x)))
        a1 = conv_stage(lambda kh: x_ref[0, pl.ds(kh * Wp, Mo), :], w1_ref, b1_ref)
        store_central(t1_ref, masked_relu(a1))

        # Stage 2: relu(bn2(conv2(.)))
        a2 = conv_stage(lambda kh: t1_ref[pl.ds(kh * Wp, Mo), :], w2_ref, b2_ref)
        store_central(t2_ref, masked_relu(a2))

        # Stage 3: bn3(conv3(.)) + shortcut(x), then relu.
        a3 = conv_stage(lambda kh: t2_ref[pl.ds(kh * Wp, Mo), :], w3_ref, b3_ref)
        x0 = x_ref[0, pl.ds(pad * Wp, Mo), :]            # aligned; true centre is +pad rows
        if has_shortcut_conv:
            sc_lin = jnp.dot(x0, wsc_ref[...], preferred_element_type=jnp.float32)
            sc = shift_rows(sc_lin, pad) + bsc_ref[...]
        else:
            sc = shift_rows(x0.astype(jnp.float32), pad)
        o_ref[0] = jnp.maximum(a3 + sc, 0.0).astype(o_ref.dtype)

    return kernel, Mo


def _fold_bn(w_hwio, bn, cpad):
    """Fold inference BN into conv weight (scale) and a bias vector; pad to cpad lanes."""
    gamma, beta, mean, var = bn
    scale = gamma / jnp.sqrt(var + BN_EPS)
    bias = beta - mean * scale
    _, _, ci, co = w_hwio.shape
    wf = jnp.pad(w_hwio * scale, ((0, 0), (0, 0), (0, cpad - ci), (0, cpad - co)))
    bf = jnp.pad(bias, ((0, cpad - co),)).reshape(1, cpad)
    return wf.astype(jnp.bfloat16), bf.astype(jnp.float32)


def basic_block3_forward(x_nchw, params):
    """BasicBlock3 forward (inference: dropout == identity, BN uses running stats)."""
    N, Cin, H, W = x_nchw.shape
    K = params["w1"].shape[0]
    planes = params["w1"].shape[-1]
    pad = K // 2
    Hp = H + 2 * pad
    Wp = _round_up(W + 2 * pad, SUBLANE_ALIGN)           # aligned padded row width
    Cpad = _round_up(max(Cin, planes), LANES)
    Mbuf = Hp * Wp

    # NCHW -> NHWC, zero-pad spatially ONCE (extra right-padding makes rows
    # 16-aligned), pad channels to the lane width, cast to bf16 and flatten
    # (H, W) row-major so every conv tap is a flat, aligned sublane slice.
    x = jnp.transpose(x_nchw, (0, 2, 3, 1)).astype(jnp.float32)
    xp = jnp.pad(x, ((0, 0), (pad, pad), (pad, Wp - W - pad), (0, Cpad - Cin)))
    x_flat = xp.astype(jnp.bfloat16).reshape(N, Mbuf, Cpad)

    w1, b1 = _fold_bn(params["w1"], params["bn1"], Cpad)
    w2, b2 = _fold_bn(params["w2"], params["bn2"], Cpad)
    w3, b3 = _fold_bn(params["w3"], params["bn3"], Cpad)

    has_sc = "wsc" in params
    kernel, Mo = _make_block_kernel(K, H, W, Wp, Cpad, has_shortcut_conv=has_sc)

    def const_spec(shape):
        # TODO(synk): single-buffer these constant operands (pl.Buffered(1))
        # on v7x once large Cpad makes double-buffered weights a VMEM concern.
        return pl.BlockSpec(shape, lambda n: (0,) * len(shape))

    in_specs = [
        pl.BlockSpec((1, Mbuf, Cpad), lambda n: (n, 0, 0)),
        const_spec((K, K, Cpad, Cpad)), const_spec((1, Cpad)),
        const_spec((K, K, Cpad, Cpad)), const_spec((1, Cpad)),
        const_spec((K, K, Cpad, Cpad)), const_spec((1, Cpad)),
    ]
    args = [x_flat, w1, b1, w2, b2, w3, b3]
    if has_sc:
        wsc, bsc = _fold_bn(params["wsc"], params["bnsc"], Cpad)
        in_specs += [const_spec((Cpad, Cpad)), const_spec((1, Cpad))]
        args += [wsc[0, 0], bsc]

    # Explicit VMEM budget sized from the real working set (<= v7x 64 MiB/TC).
    bytes_in = Mbuf * Cpad * 2
    bytes_w = 3 * K * K * Cpad * Cpad * 2 + (Cpad * Cpad * 2 if has_sc else 0)
    bytes_out = Mo * Cpad * 4
    bytes_scratch = 2 * Mbuf * Cpad * 2
    bytes_work = 8 * Mo * Cpad * 4                        # live f32 value temporaries
    needed = 2 * (bytes_in + bytes_w + bytes_out) + bytes_scratch + bytes_work
    vmem_limit = int(min(60 * 2**20, max(32 * 2**20, needed + (4 << 20))))

    out_flat = pl.pallas_call(
        kernel,
        out_shape=jax.ShapeDtypeStruct((N, Mo, Cpad), jnp.float32),
        grid=(N,),
        in_specs=in_specs,
        out_specs=pl.BlockSpec((1, Mo, Cpad), lambda n: (n, 0, 0)),
        scratch_shapes=[
            pltpu.VMEM((Mbuf, Cpad), jnp.bfloat16),   # stage-1 activation (padded, flat)
            pltpu.VMEM((Mbuf, Cpad), jnp.bfloat16),   # stage-2 activation (padded, flat)
        ],
        compiler_params=pltpu.CompilerParams(
            dimension_semantics=("parallel",),
            vmem_limit_bytes=vmem_limit),
    )(*args)

    # Crop the wrap-around columns and the channel padding, back to NCHW.
    out = out_flat.reshape(N, H, Wp, Cpad)[:, :, :W, :planes]
    return jnp.transpose(out, (0, 3, 1, 2))


# ------------------------- parameter init (deterministic) -------------------------
def init_params(key, in_planes, planes, kernel=3):
    ks = jax.random.split(key, 8)

    def conv_w(k, kk, cin, cout):
        # HWIO layout.
        return (jax.random.normal(k, (kk, kk, cin, cout), jnp.float32)
                * (1.0 / np.sqrt(kk * kk * cin)))

    def bn_params(k, c):
        k1, k2, k3, k4 = jax.random.split(k, 4)
        gamma = 0.5 + jax.random.uniform(k1, (c,), jnp.float32)
        beta = 0.1 * jax.random.normal(k2, (c,), jnp.float32)
        mean = 0.1 * jax.random.normal(k3, (c,), jnp.float32)
        var = 0.5 + jax.random.uniform(k4, (c,), jnp.float32)
        return gamma, beta, mean, var

    p = {
        "w1": conv_w(ks[0], kernel, in_planes, planes),
        "bn1": bn_params(ks[1], planes),
        "w2": conv_w(ks[2], kernel, planes, planes),
        "bn2": bn_params(ks[3], planes),
        "w3": conv_w(ks[4], kernel, planes, planes),
        "bn3": bn_params(ks[5], planes),
    }
    if in_planes != planes:  # stride == 1 in this block
        p["wsc"] = conv_w(ks[6], 1, in_planes, planes)
        p["bnsc"] = bn_params(ks[7], planes)
    return p


# ------------------------ pure-JAX reference for validation ------------------------
def _conv_ref(x, w):
    pad = w.shape[0] // 2
    return jax.lax.conv_general_dilated(
        x, w, window_strides=(1, 1), padding=((pad, pad), (pad, pad)),
        dimension_numbers=("NHWC", "HWIO", "NHWC"))


def _bn_ref(x, gamma, beta, mean, var):
    return (x - mean) / jnp.sqrt(var + BN_EPS) * gamma + beta


def reference_forward(x_nchw, params):
    x = jnp.transpose(x_nchw, (0, 2, 3, 1))
    out = jax.nn.relu(_bn_ref(_conv_ref(x, params["w1"]), *params["bn1"]))
    out = jax.nn.relu(_bn_ref(_conv_ref(out, params["w2"]), *params["bn2"]))
    out = _bn_ref(_conv_ref(out, params["w3"]), *params["bn3"])
    if "wsc" in params:
        sc = _bn_ref(_conv_ref(x, params["wsc"]), *params["bnsc"])
    else:
        sc = x
    out = jax.nn.relu(out + sc)
    return jnp.transpose(out, (0, 3, 1, 2))


if __name__ == "__main__":
    key = jax.random.PRNGKey(0)
    kx, kp = jax.random.split(key)
    N, C_in, planes, H, W = 2, 4, 8, 16, 16
    x = jax.random.normal(kx, (N, C_in, H, W), jnp.float32)
    params = init_params(kp, C_in, planes, kernel=3)

    out = jax.block_until_ready(basic_block3_forward(x, params))
    ref = jax.block_until_ready(reference_forward(x, params))

    assert out.shape == (N, planes, H, W), out.shape
    # bf16 MXU inputs / bf16 intermediates vs f32 reference -> relaxed tolerance.
    np.testing.assert_allclose(np.asarray(out), np.asarray(ref), rtol=2e-2, atol=2e-2)
    print("KERNEL_OK")
</pallas_src>

<mosaic_0001>
module attributes {stable_mosaic.version = 11 : i64} {
  func.func @kernel(%arg0: i32, %arg1: memref<1x576x128xbf16, #tpu.memory_space<vmem>>, %arg2: memref<3x3x128x128xbf16, #tpu.memory_space<vmem>>, %arg3: memref<1x128xf32, #tpu.memory_space<vmem>>, %arg4: memref<3x3x128x128xbf16, #tpu.memory_space<vmem>>, %arg5: memref<1x128xf32, #tpu.memory_space<vmem>>, %arg6: memref<3x3x128x128xbf16, #tpu.memory_space<vmem>>, %arg7: memref<1x128xf32, #tpu.memory_space<vmem>>, %arg8: memref<128x128xbf16, #tpu.memory_space<vmem>>, %arg9: memref<1x128xf32, #tpu.memory_space<vmem>>, %arg10: memref<1x512x128xf32, #tpu.memory_space<vmem>>, %arg11: memref<576x128xbf16, #tpu.memory_space<vmem>>, %arg12: memref<576x128xbf16, #tpu.memory_space<vmem>>) attributes {dimension_semantics = [#tpu.dimension_semantics<parallel>], iteration_bounds = array<i64: 2>, scalar_prefetch = 0 : i64, scratch_operands = 2 : i64, tpu.core_type = #tpu.core_type<tc>, window_params = [{transform_indices = @transform_0, window_bounds = array<i64: 1, 576, 128>}, {pipeline_mode = #tpu.pipeline_mode<synchronous>, transform_indices = @transform_1, window_bounds = array<i64: 3, 3, 128, 128>}, {pipeline_mode = #tpu.pipeline_mode<synchronous>, transform_indices = @transform_2, window_bounds = array<i64: 1, 128>}, {pipeline_mode = #tpu.pipeline_mode<synchronous>, transform_indices = @transform_3, window_bounds = array<i64: 3, 3, 128, 128>}, {pipeline_mode = #tpu.pipeline_mode<synchronous>, transform_indices = @transform_4, window_bounds = array<i64: 1, 128>}, {pipeline_mode = #tpu.pipeline_mode<synchronous>, transform_indices = @transform_5, window_bounds = array<i64: 3, 3, 128, 128>}, {pipeline_mode = #tpu.pipeline_mode<synchronous>, transform_indices = @transform_6, window_bounds = array<i64: 1, 128>}, {pipeline_mode = #tpu.pipeline_mode<synchronous>, transform_indices = @transform_7, window_bounds = array<i64: 128, 128>}, {pipeline_mode = #tpu.pipeline_mode<synchronous>, transform_indices = @transform_8, window_bounds = array<i64: 1, 128>}, {transform_indices = @transform_9, window_bounds = array<i64: 1, 512, 128>}]} {
    %0 = tpu.iota {dimensions = array<i32: 0>} : vector<512x1xi32>
    %c32_i32 = arith.constant 32 : i32
    %c0_i32 = arith.constant 0 : i32
    %1 = arith.cmpi eq, %c32_i32, %c0_i32 : i32
    %c1_i32 = arith.constant 1 : i32
    %2 = arith.select %1, %c1_i32, %c32_i32 : i32
    %3 = vector.broadcast %2 : i32 to vector<512x1xi32>
    %4 = arith.remsi %0, %3 : vector<512x1xi32>
    %c0_i32_0 = arith.constant 0 : i32
    %5 = vector.broadcast %c0_i32_0 : i32 to vector<512x1xi32>
    %6 = arith.cmpi ne, %4, %5 : vector<512x1xi32>
    %c0_i32_1 = arith.constant 0 : i32
    %7 = vector.broadcast %c0_i32_1 : i32 to vector<512x1xi32>
    %8 = arith.cmpi slt, %4, %7 : vector<512x1xi32>
    %c0_i32_2 = arith.constant 0 : i32
    %9 = arith.cmpi slt, %2, %c0_i32_2 : i32
    %10 = vector.broadcast %9 : i1 to vector<512x1xi1>
    %11 = vector.broadcast %10 : vector<512x1xi1> to vector<512x1xi1>
    %12 = arith.xori %8, %11 : vector<512x1xi1>
    %13 = arith.andi %12, %6 : vector<512x1xi1>
    %14 = vector.broadcast %2 : i32 to vector<512x1xi32>
    %15 = arith.addi %4, %14 : vector<512x1xi32>
    %16 = arith.select %13, %15, %4 : vector<512x1xi1>, vector<512x1xi32>
    %c16_i32 = arith.constant 16 : i32
    %17 = vector.broadcast %c16_i32 : i32 to vector<512x1xi32>
    %18 = arith.cmpi slt, %16, %17 : vector<512x1xi32>
    %cst = arith.constant 0.000000e+00 : bf16
    %19 = vector.broadcast %cst : bf16 to vector<32x128xbf16>
    %c0 = arith.constant 0 : index
    %c0_3 = arith.constant 0 : index
    %20 = vector.load %arg11[%c0, %c0_3] : memref<576x128xbf16, #tpu.memory_space<vmem>>, vector<32x128xbf16>
    tpu.vector_store %arg11[%c0, %c0_3], %19 {strides = array<i32>} : memref<576x128xbf16, #tpu.memory_space<vmem>>, vector<32x128xbf16>,
    %c544 = arith.constant 544 : index
    %c0_4 = arith.constant 0 : index
    %21 = vector.load %arg11[%c544, %c0_4] : memref<576x128xbf16, #tpu.memory_space<vmem>>, vector<32x128xbf16>
    tpu.vector_store %arg11[%c544, %c0_4], %19 {strides = array<i32>} : memref<576x128xbf16, #tpu.memory_space<vmem>>, vector<32x128xbf16>,
    %c0_5 = arith.constant 0 : index
    %c0_6 = arith.constant 0 : index
    %22 = vector.load %arg12[%c0_5, %c0_6] : memref<576x128xbf16, #tpu.memory_space<vmem>>, vector<32x128xbf16>
    tpu.vector_store %arg12[%c0_5, %c0_6], %19 {strides = array<i32>} : memref<576x128xbf16, #tpu.memory_space<vmem>>, vector<32x128xbf16>,
    %c544_7 = arith.constant 544 : index
    %c0_8 = arith.constant 0 : index
    %23 = vector.load %arg12[%c544_7, %c0_8] : memref<576x128xbf16, #tpu.memory_space<vmem>>, vector<32x128xbf16>
    tpu.vector_store %arg12[%c544_7, %c0_8], %19 {strides = array<i32>} : memref<576x128xbf16, #tpu.memory_space<vmem>>, vector<32x128xbf16>,
    %c0_9 = arith.constant 0 : index
    %c0_10 = arith.constant 0 : index
    %c0_11 = arith.constant 0 : index
    %24 = vector.load %arg1[%c0_9, %c0_10, %c0_11] : memref<1x576x128xbf16, #tpu.memory_space<vmem>>, vector<1x512x128xbf16>
    %25 = vector.shape_cast %24 : vector<1x512x128xbf16> to vector<512x128xbf16>
    %c0_12 = arith.constant 0 : index
    %c0_13 = arith.constant 0 : index
    %c0_14 = arith.constant 0 : index
    %c0_15 = arith.constant 0 : index
    %26 = vector.load %arg2[%c0_12, %c0_13, %c0_14, %c0_15] : memref<3x3x128x128xbf16, #tpu.memory_space<vmem>>, vector<1x1x128x128xbf16>
    %27 = vector.shape_cast %26 : vector<1x1x128x128xbf16> to vector<128x128xbf16>
    %cst_16 = arith.constant dense<0.000000e+00> : vector<512x128xf32>
    %28 = tpu.matmul %25, %27, %cst_16 {dimension_numbers = #tpu.dot_dimension_numbers<[1], [0], [0], [1], [0, 0, 1, 1], [], []>} : vector<512x128xbf16>, vector<128x128xbf16>, vector<512x128xf32> -> vector<512x128xf32>
    %c0_17 = arith.constant 0 : index
    %c1 = arith.constant 1 : index
    %c0_18 = arith.constant 0 : index
    %c0_19 = arith.constant 0 : index
    %29 = vector.load %arg2[%c0_17, %c1, %c0_18, %c0_19] : memref<3x3x128x128xbf16, #tpu.memory_space<vmem>>, vector<1x1x128x128xbf16>
    %30 = vector.shape_cast %29 : vector<1x1x128x128xbf16> to vector<128x128xbf16>
    %cst_20 = arith.constant dense<0.000000e+00> : vector<512x128xf32>
    %31 = tpu.matmul %25, %30, %cst_20 {dimension_numbers = #tpu.dot_dimension_numbers<[1], [0], [0], [1], [0, 0, 1, 1], [], []>} : vector<512x128xbf16>, vector<128x128xbf16>, vector<512x128xf32> -> vector<512x128xf32>
    %c0_21 = arith.constant 0 : index
    %c2 = arith.constant 2 : index
    %c0_22 = arith.constant 0 : index
    %c0_23 = arith.constant 0 : index
    %32 = vector.load %arg2[%c0_21, %c2, %c0_22, %c0_23] : memref<3x3x128x128xbf16, #tpu.memory_space<vmem>>, vector<1x1x128x128xbf16>
    %33 = vector.shape_cast %32 : vector<1x1x128x128xbf16> to vector<128x128xbf16>
    %cst_24 = arith.constant dense<0.000000e+00> : vector<512x128xf32>
    %34 = tpu.matmul %25, %33, %cst_24 {dimension_numbers = #tpu.dot_dimension_numbers<[1], [0], [0], [1], [0, 0, 1, 1], [], []>} : vector<512x128xbf16>, vector<128x128xbf16>, vector<512x128xf32> -> vector<512x128xf32>
    %c0_25 = arith.constant 0 : index
    %c32 = arith.constant 32 : index
    %c0_26 = arith.constant 0 : index
    %35 = vector.load %arg1[%c0_25, %c32, %c0_26] : memref<1x576x128xbf16, #tpu.memory_space<vmem>>, vector<1x512x128xbf16>
    %36 = vector.shape_cast %35 : vector<1x512x128xbf16> to vector<512x128xbf16>
    %c1_27 = arith.constant 1 : index
    %c0_28 = arith.constant 0 : index
    %c0_29 = arith.constant 0 : index
    %c0_30 = arith.constant 0 : index
    %37 = vector.load %arg2[%c1_27, %c0_28, %c0_29, %c0_30] : memref<3x3x128x128xbf16, #tpu.memory_space<vmem>>, vector<1x1x128x128xbf16>
    %38 = vector.shape_cast %37 : vector<1x1x128x128xbf16> to vector<128x128xbf16>
    %cst_31 = arith.constant dense<0.000000e+00> : vector<512x128xf32>
    %39 = tpu.matmul %36, %38, %cst_31 {dimension_numbers = #tpu.dot_dimension_numbers<[1], [0], [0], [1], [0, 0, 1, 1], [], []>} : vector<512x128xbf16>, vector<128x128xbf16>, vector<512x128xf32> -> vector<512x128xf32>
    %40 = arith.addf %28, %39 : vector<512x128xf32>
    %c1_32 = arith.constant 1 : index
    %c1_33 = arith.constant 1 : index
    %c0_34 = arith.constant 0 : index
    %c0_35 = arith.constant 0 : index
    %41 = vector.load %arg2[%c1_32, %c1_33, %c0_34, %c0_35] : memref<3x3x128x128xbf16, #tpu.memory_space<vmem>>, vector<1x1x128x128xbf16>
    %42 = vector.shape_cast %41 : vector<1x1x128x128xbf16> to vector<128x128xbf16>
    %cst_36 = arith.constant dense<0.000000e+00> : vector<512x128xf32>
    %43 = tpu.matmul %36, %42, %cst_36 {dimension_numbers = #tpu.dot_dimension_numbers<[1], [0], [0], [1], [0, 0, 1, 1], [], []>} : vector<512x128xbf16>, vector<128x128xbf16>, vector<512x128xf32> -> vector<512x128xf32>
    %44 = arith.addf %31, %43 : vector<512x128xf32>
    %c1_37 = arith.constant 1 : index
    %c2_38 = arith.constant 2 : index
    %c0_39 = arith.constant 0 : index
    %c0_40 = arith.constant 0 : index
    %45 = vector.load %arg2[%c1_37, %c2_38, %c0_39, %c0_40] : memref<3x3x128x128xbf16, #tpu.memory_space<vmem>>, vector<1x1x128x128xbf16>
    %46 = vector.shape_cast %45 : vector<1x1x128x128xbf16> to vector<128x128xbf16>
    %cst_41 = arith.constant dense<0.000000e+00> : vector<512x128xf32>
    %47 = tpu.matmul %36, %46, %cst_41 {dimension_numbers = #tpu.dot_dimension_numbers<[1], [0], [0], [1], [0, 0, 1, 1], [], []>} : vector<512x128xbf16>, vector<128x128xbf16>, vector<512x128xf32> -> vector<512x128xf32>
    %48 = arith.addf %34, %47 : vector<512x128xf32>
    %c0_42 = arith.constant 0 : index
    %c64 = arith.constant 64 : index
    %c0_43 = arith.constant 0 : index
    %49 = vector.load %arg1[%c0_42, %c64, %c0_43] : memref<1x576x128xbf16, #tpu.memory_space<vmem>>, vector<1x512x128xbf16>
    %50 = vector.shape_cast %49 : vector<1x512x128xbf16> to vector<512x128xbf16>
    %c2_44 = arith.constant 2 : index
    %c0_45 = arith.constant 0 : index
    %c0_46 = arith.constant 0 : index
    %c0_47 = arith.constant 0 : index
    %51 = vector.load %arg2[%c2_44, %c0_45, %c0_46, %c0_47] : memref<3x3x128x128xbf16, #tpu.memory_space<vmem>>, vector<1x1x128x128xbf16>
    %52 = vector.shape_cast %51 : vector<1x1x128x128xbf16> to vector<128x128xbf16>
    %cst_48 = arith.constant dense<0.000000e+00> : vector<512x128xf32>
    %53 = tpu.matmul %50, %52, %cst_48 {dimension_numbers = #tpu.dot_dimension_numbers<[1], [0], [0], [1], [0, 0, 1, 1], [], []>} : vector<512x128xbf16>, vector<128x128xbf16>, vector<512x128xf32> -> vector<512x128xf32>
    %54 = arith.addf %40, %53 : vector<512x128xf32>
    %c2_49 = arith.constant 2 : index
    %c1_50 = arith.constant 1 : index
    %c0_51 = arith.constant 0 : index
    %c0_52 = arith.constant 0 : index
    %55 = vector.load %arg2[%c2_49, %c1_50, %c0_51, %c0_52] : memref<3x3x128x128xbf16, #tpu.memory_space<vmem>>, vector<1x1x128x128xbf16>
    %56 = vector.shape_cast %55 : vector<1x1x128x128xbf16> to vector<128x128xbf16>
    %cst_53 = arith.constant dense<0.000000e+00> : vector<512x128xf32>
    %57 = tpu.matmul %50, %56, %cst_53 {dimension_numbers = #tpu.dot_dimension_numbers<[1], [0], [0], [1], [0, 0, 1, 1], [], []>} : vector<512x128xbf16>, vector<128x128xbf16>, vector<512x128xf32> -> vector<512x128xf32>
    %58 = arith.addf %44, %57 : vector<512x128xf32>
    %c2_54 = arith.constant 2 : index
    %c2_55 = arith.constant 2 : index
    %c0_56 = arith.constant 0 : index
    %c0_57 = arith.constant 0 : index
    %59 = vector.load %arg2[%c2_54, %c2_55, %c0_56, %c0_57] : memref<3x3x128x128xbf16, #tpu.memory_space<vmem>>, vector<1x1x128x128xbf16>
    %60 = vector.shape_cast %59 : vector<1x1x128x128xbf16> to vector<128x128xbf16>
    %cst_58 = arith.constant dense<0.000000e+00> : vector<512x128xf32>
    %61 = tpu.matmul %50, %60, %cst_58 {dimension_numbers = #tpu.dot_dimension_numbers<[1], [0], [0], [1], [0, 0, 1, 1], [], []>} : vector<512x128xbf16>, vector<128x128xbf16>, vector<512x128xf32> -> vector<512x128xf32>
    %62 = arith.addf %48, %61 : vector<512x128xf32>
    %c0_59 = arith.constant 0 : index
    %c0_60 = arith.constant 0 : index
    %63 = vector.load %arg3[%c0_59, %c0_60] : memref<1x128xf32, #tpu.memory_space<vmem>>, vector<1x128xf32>
    %64 = vector.shape_cast %63 : vector<1x128xf32> to vector<1x128xf32>
    %65 = vector.broadcast %64 : vector<1x128xf32> to vector<512x128xf32>
    %66 = arith.addf %65, %54 : vector<512x128xf32>
    %cst_61 = arith.constant 0.000000e+00 : f32
    %67 = vector.broadcast %cst_61 : f32 to vector<1x128xf32>
    %68 = vector.extract_strided_slice %58 {offsets = [1, 0], sizes = [511, 128], strides = [1, 1]} : vector<512x128xf32> to vector<511x128xf32>
    %69 = tpu.concatenate %68, %67 in 0 : vector<511x128xf32>, vector<1x128xf32> -> vector<512x128xf32>
    %70 = arith.addf %66, %69 : vector<512x128xf32>
    %cst_62 = arith.constant 0.000000e+00 : f32
    %71 = vector.broadcast %cst_62 : f32 to vector<2x128xf32>
    %72 = vector.extract_strided_slice %62 {offsets = [2, 0], sizes = [510, 128], strides = [1, 1]} : vector<512x128xf32> to vector<510x128xf32>
    %73 = tpu.concatenate %72, %71 in 0 : vector<510x128xf32>, vector<2x128xf32> -> vector<512x128xf32>
    %74 = arith.addf %70, %73 : vector<512x128xf32>
    %cst_63 = arith.constant 0.000000e+00 : f32
    %75 = vector.broadcast %cst_63 : f32 to vector<512x128xf32>
    %76 = arith.maximumf %74, %75 : vector<512x128xf32>
    %cst_64 = arith.constant 0.000000e+00 : f32
    %77 = vector.shape_cast %18 : vector<512x1xi1> to vector<512x1xi1>
    %78 = vector.broadcast %77 : vector<512x1xi1> to vector<512x128xi1>
    %79 = vector.broadcast %cst_64 : f32 to vector<512x128xf32>
    %80 = arith.select %78, %76, %79 : vector<512x128xi1>, vector<512x128xf32>
    %cst_65 = arith.constant 0.000000e+00 : f32
    %81 = vector.broadcast %cst_65 : f32 to vector<1x128xf32>
    %82 = vector.extract_strided_slice %80 {offsets = [0, 0], sizes = [511, 128], strides = [1, 1]} : vector<512x128xf32> to vector<511x128xf32>
    %83 = tpu.concatenate %81, %82 in 0 : vector<1x128xf32>, vector<511x128xf32> -> vector<512x128xf32>
    %84 = arith.truncf %83 : vector<512x128xf32> to vector<512x128xbf16>
    %c32_66 = arith.constant 32 : index
    %c0_67 = arith.constant 0 : index
    %85 = vector.load %arg11[%c32_66, %c0_67] : memref<576x128xbf16, #tpu.memory_space<vmem>>, vector<512x128xbf16>
    tpu.vector_store %arg11[%c32_66, %c0_67], %84 {strides = array<i32>} : memref<576x128xbf16, #tpu.memory_space<vmem>>, vector<512x128xbf16>,
    %c0_68 = arith.constant 0 : index
    %c0_69 = arith.constant 0 : index
    %86 = vector.load %arg11[%c0_68, %c0_69] : memref<576x128xbf16, #tpu.memory_space<vmem>>, vector<512x128xbf16>
    %c0_70 = arith.constant 0 : index
    %c0_71 = arith.constant 0 : index
    %c0_72 = arith.constant 0 : index
    %c0_73 = arith.constant 0 : index
    %87 = vector.load %arg4[%c0_70, %c0_71, %c0_72, %c0_73] : memref<3x3x128x128xbf16, #tpu.memory_space<vmem>>, vector<1x1x128x128xbf16>
    %88 = vector.shape_cast %87 : vector<1x1x128x128xbf16> to vector<128x128xbf16>
    %cst_74 = arith.constant dense<0.000000e+00> : vector<512x128xf32>
    %89 = tpu.matmul %86, %88, %cst_74 {dimension_numbers = #tpu.dot_dimension_numbers<[1], [0], [0], [1], [0, 0, 1, 1], [], []>} : vector<512x128xbf16>, vector<128x128xbf16>, vector<512x128xf32> -> vector<512x128xf32>
    %c0_75 = arith.constant 0 : index
    %c1_76 = arith.constant 1 : index
    %c0_77 = arith.constant 0 : index
    %c0_78 = arith.constant 0 : index
    %90 = vector.load %arg4[%c0_75, %c1_76, %c0_77, %c0_78] : memref<3x3x128x128xbf16, #tpu.memory_space<vmem>>, vector<1x1x128x128xbf16>
    %91 = vector.shape_cast %90 : vector<1x1x128x128xbf16> to vector<128x128xbf16>
    %cst_79 = arith.constant dense<0.000000e+00> : vector<512x128xf32>
    %92 = tpu.matmul %86, %91, %cst_79 {dimension_numbers = #tpu.dot_dimension_numbers<[1], [0], [0], [1], [0, 0, 1, 1], [], []>} : vector<512x128xbf16>, vector<128x128xbf16>, vector<512x128xf32> -> vector<512x128xf32>
    %c0_80 = arith.constant 0 : index
    %c2_81 = arith.constant 2 : index
    %c0_82 = arith.constant 0 : index
    %c0_83 = arith.constant 0 : index
    %93 = vector.load %arg4[%c0_80, %c2_81, %c0_82, %c0_83] : memref<3x3x128x128xbf16, #tpu.memory_space<vmem>>, vector<1x1x128x128xbf16>
    %94 = vector.shape_cast %93 : vector<1x1x128x128xbf16> to vector<128x128xbf16>
    %cst_84 = arith.constant dense<0.000000e+00> : vector<512x128xf32>
    %95 = tpu.matmul %86, %94, %cst_84 {dimension_numbers = #tpu.dot_dimension_numbers<[1], [0], [0], [1], [0, 0, 1, 1], [], []>} : vector<512x128xbf16>, vector<128x128xbf16>, vector<512x128xf32> -> vector<512x128xf32>
    %c32_85 = arith.constant 32 : index
    %c0_86 = arith.constant 0 : index
    %96 = vector.load %arg11[%c32_85, %c0_86] : memref<576x128xbf16, #tpu.memory_space<vmem>>, vector<512x128xbf16>
    %c1_87 = arith.constant 1 : index
    %c0_88 = arith.constant 0 : index
    %c0_89 = arith.constant 0 : index
    %c0_90 = arith.constant 0 : index
    %97 = vector.load %arg4[%c1_87, %c0_88, %c0_89, %c0_90] : memref<3x3x128x128xbf16, #tpu.memory_space<vmem>>, vector<1x1x128x128xbf16>
    %98 = vector.shape_cast %97 : vector<1x1x128x128xbf16> to vector<128x128xbf16>
    %cst_91 = arith.constant dense<0.000000e+00> : vector<512x128xf32>
    %99 = tpu.matmul %96, %98, %cst_91 {dimension_numbers = #tpu.dot_dimension_numbers<[1], [0], [0], [1], [0, 0, 1, 1], [], []>} : vector<512x128xbf16>, vector<128x128xbf16>, vector<512x128xf32> -> vector<512x128xf32>
    %100 = arith.addf %89, %99 : vector<512x128xf32>
    %c1_92 = arith.constant 1 : index
    %c1_93 = arith.constant 1 : index
    %c0_94 = arith.constant 0 : index
    %c0_95 = arith.constant 0 : index
    %101 = vector.load %arg4[%c1_92, %c1_93, %c0_94, %c0_95] : memref<3x3x128x128xbf16, #tpu.memory_space<vmem>>, vector<1x1x128x128xbf16>
    %102 = vector.shape_cast %101 : vector<1x1x128x128xbf16> to vector<128x128xbf16>
    %cst_96 = arith.constant dense<0.000000e+00> : vector<512x128xf32>
    %103 = tpu.matmul %96, %102, %cst_96 {dimension_numbers = #tpu.dot_dimension_numbers<[1], [0], [0], [1], [0, 0, 1, 1], [], []>} : vector<512x128xbf16>, vector<128x128xbf16>, vector<512x128xf32> -> vector<512x128xf32>
    %104 = arith.addf %92, %103 : vector<512x128xf32>
    %c1_97 = arith.constant 1 : index
    %c2_98 = arith.constant 2 : index
    %c0_99 = arith.constant 0 : index
    %c0_100 = arith.constant 0 : index
    %105 = vector.load %arg4[%c1_97, %c2_98, %c0_99, %c0_100] : memref<3x3x128x128xbf16, #tpu.memory_space<vmem>>, vector<1x1x128x128xbf16>
    %106 = vector.shape_cast %105 : vector<1x1x128x128xbf16> to vector<128x128xbf16>
    %cst_101 = arith.constant dense<0.000000e+00> : vector<512x128xf32>
    %107 = tpu.matmul %96, %106, %cst_101 {dimension_numbers = #tpu.dot_dimension_numbers<[1], [0], [0], [1], [0, 0, 1, 1], [], []>} : vector<512x128xbf16>, vector<128x128xbf16>, vector<512x128xf32> -> vector<512x128xf32>
    %108 = arith.addf %95, %107 : vector<512x128xf32>
    %c64_102 = arith.constant 64 : index
    %c0_103 = arith.constant 0 : index
    %109 = vector.load %arg11[%c64_102, %c0_103] : memref<576x128xbf16, #tpu.memory_space<vmem>>, vector<512x128xbf16>
    %c2_104 = arith.constant 2 : index
    %c0_105 = arith.constant 0 : index
    %c0_106 = arith.constant 0 : index
    %c0_107 = arith.constant 0 : index
    %110 = vector.load %arg4[%c2_104, %c0_105, %c0_106, %c0_107] : memref<3x3x128x128xbf16, #tpu.memory_space<vmem>>, vector<1x1x128x128xbf16>
    %111 = vector.shape_cast %110 : vector<1x1x128x128xbf16> to vector<128x128xbf16>
    %cst_108 = arith.constant dense<0.000000e+00> : vector<512x128xf32>
    %112 = tpu.matmul %109, %111, %cst_108 {dimension_numbers = #tpu.dot_dimension_numbers<[1], [0], [0], [1], [0, 0, 1, 1], [], []>} : vector<512x128xbf16>, vector<128x128xbf16>, vector<512x128xf32> -> vector<512x128xf32>
    %113 = arith.addf %100, %112 : vector<512x128xf32>
    %c2_109 = arith.constant 2 : index
    %c1_110 = arith.constant 1 : index
    %c0_111 = arith.constant 0 : index
    %c0_112 = arith.constant 0 : index
    %114 = vector.load %arg4[%c2_109, %c1_110, %c0_111, %c0_112] : memref<3x3x128x128xbf16, #tpu.memory_space<vmem>>, vector<1x1x128x128xbf16>
    %115 = vector.shape_cast %114 : vector<1x1x128x128xbf16> to vector<128x128xbf16>
    %cst_113 = arith.constant dense<0.000000e+00> : vector<512x128xf32>
    %116 = tpu.matmul %109, %115, %cst_113 {dimension_numbers = #tpu.dot_dimension_numbers<[1], [0], [0], [1], [0, 0, 1, 1], [], []>} : vector<512x128xbf16>, vector<128x128xbf16>, vector<512x128xf32> -> vector<512x128xf32>
    %117 = arith.addf %104, %116 : vector<512x128xf32>
    %c2_114 = arith.constant 2 : index
    %c2_115 = arith.constant 2 : index
    %c0_116 = arith.constant 0 : index
    %c0_117 = arith.constant 0 : index
    %118 = vector.load %arg4[%c2_114, %c2_115, %c0_116, %c0_117] : memref<3x3x128x128xbf16, #tpu.memory_space<vmem>>, vector<1x1x128x128xbf16>
    %119 = vector.shape_cast %118 : vector<1x1x128x128xbf16> to vector<128x128xbf16>
    %cst_118 = arith.constant dense<0.000000e+00> : vector<512x128xf32>
    %120 = tpu.matmul %109, %119, %cst_118 {dimension_numbers = #tpu.dot_dimension_numbers<[1], [0], [0], [1], [0, 0, 1, 1], [], []>} : vector<512x128xbf16>, vector<128x128xbf16>, vector<512x128xf32> -> vector<512x128xf32>
    %121 = arith.addf %108, %120 : vector<512x128xf32>
    %c0_119 = arith.constant 0 : index
    %c0_120 = arith.constant 0 : index
    %122 = vector.load %arg5[%c0_119, %c0_120] : memref<1x128xf32, #tpu.memory_space<vmem>>, vector<1x128xf32>
    %123 = vector.shape_cast %122 : vector<1x128xf32> to vector<1x128xf32>
    %124 = vector.broadcast %123 : vector<1x128xf32> to vector<512x128xf32>
    %125 = arith.addf %124, %113 : vector<512x128xf32>
    %cst_121 = arith.constant 0.000000e+00 : f32
    %126 = vector.broadcast %cst_121 : f32 to vector<1x128xf32>
    %127 = vector.extract_strided_slice %117 {offsets = [1, 0], sizes = [511, 128], strides = [1, 1]} : vector<512x128xf32> to vector<511x128xf32>
    %128 = tpu.concatenate %127, %126 in 0 : vector<511x128xf32>, vector<1x128xf32> -> vector<512x128xf32>
    %129 = arith.addf %125, %128 : vector<512x128xf32>
    %cst_122 = arith.constant 0.000000e+00 : f32
    %130 = vector.broadcast %cst_122 : f32 to vector<2x128xf32>
    %131 = vector.extract_strided_slice %121 {offsets = [2, 0], sizes = [510, 128], strides = [1, 1]} : vector<512x128xf32> to vector<510x128xf32>
    %132 = tpu.concatenate %131, %130 in 0 : vector<510x128xf32>, vector<2x128xf32> -> vector<512x128xf32>
    %133 = arith.addf %129, %132 : vector<512x128xf32>
    %cst_123 = arith.constant 0.000000e+00 : f32
    %134 = vector.broadcast %cst_123 : f32 to vector<512x128xf32>
    %135 = arith.maximumf %133, %134 : vector<512x128xf32>
    %cst_124 = arith.constant 0.000000e+00 : f32
    %136 = vector.shape_cast %18 : vector<512x1xi1> to vector<512x1xi1>
    %137 = vector.broadcast %136 : vector<512x1xi1> to vector<512x128xi1>
    %138 = vector.broadcast %cst_124 : f32 to vector<512x128xf32>
    %139 = arith.select %137, %135, %138 : vector<512x128xi1>, vector<512x128xf32>
    %cst_125 = arith.constant 0.000000e+00 : f32
    %140 = vector.broadcast %cst_125 : f32 to vector<1x128xf32>
    %141 = vector.extract_strided_slice %139 {offsets = [0, 0], sizes = [511, 128], strides = [1, 1]} : vector<512x128xf32> to vector<511x128xf32>
    %142 = tpu.concatenate %140, %141 in 0 : vector<1x128xf32>, vector<511x128xf32> -> vector<512x128xf32>
    %143 = arith.truncf %142 : vector<512x128xf32> to vector<512x128xbf16>
    %c32_126 = arith.constant 32 : index
    %c0_127 = arith.constant 0 : index
    %144 = vector.load %arg12[%c32_126, %c0_127] : memref<576x128xbf16, #tpu.memory_space<vmem>>, vector<512x128xbf16>
    tpu.vector_store %arg12[%c32_126, %c0_127], %143 {strides = array<i32>} : memref<576x128xbf16, #tpu.memory_space<vmem>>, vector<512x128xbf16>,
    %c0_128 = arith.constant 0 : index
    %c0_129 = arith.constant 0 : index
    %145 = vector.load %arg12[%c0_128, %c0_129] : memref<576x128xbf16, #tpu.memory_space<vmem>>, vector<512x128xbf16>
    %c0_130 = arith.constant 0 : index
    %c0_131 = arith.constant 0 : index
    %c0_132 = arith.constant 0 : index
    %c0_133 = arith.constant 0 : index
    %146 = vector.load %arg6[%c0_130, %c0_131, %c0_132, %c0_133] : memref<3x3x128x128xbf16, #tpu.memory_space<vmem>>, vector<1x1x128x128xbf16>
    %147 = vector.shape_cast %146 : vector<1x1x128x128xbf16> to vector<128x128xbf16>
    %cst_134 = arith.constant dense<0.000000e+00> : vector<512x128xf32>
    %148 = tpu.matmul %145, %147, %cst_134 {dimension_numbers = #tpu.dot_dimension_numbers<[1], [0], [0], [1], [0, 0, 1, 1], [], []>} : vector<512x128xbf16>, vector<128x128xbf16>, vector<512x128xf32> -> vector<512x128xf32>
    %c0_135 = arith.constant 0 : index
    %c1_136 = arith.constant 1 : index
    %c0_137 = arith.constant 0 : index
    %c0_138 = arith.constant 0 : index
    %149 = vector.load %arg6[%c0_135, %c1_136, %c0_137, %c0_138] : memref<3x3x128x128xbf16, #tpu.memory_space<vmem>>, vector<1x1x128x128xbf16>
    %150 = vector.shape_cast %149 : vector<1x1x128x128xbf16> to vector<128x128xbf16>
    %cst_139 = arith.constant dense<0.000000e+00> : vector<512x128xf32>
    %151 = tpu.matmul %145, %150, %cst_139 {dimension_numbers = #tpu.dot_dimension_numbers<[1], [0], [0], [1], [0, 0, 1, 1], [], []>} : vector<512x128xbf16>, vector<128x128xbf16>, vector<512x128xf32> -> vector<512x128xf32>
    %c0_140 = arith.constant 0 : index
    %c2_141 = arith.constant 2 : index
    %c0_142 = arith.constant 0 : index
    %c0_143 = arith.constant 0 : index
    %152 = vector.load %arg6[%c0_140, %c2_141, %c0_142, %c0_143] : memref<3x3x128x128xbf16, #tpu.memory_space<vmem>>, vector<1x1x128x128xbf16>
    %153 = vector.shape_cast %152 : vector<1x1x128x128xbf16> to vector<128x128xbf16>
    %cst_144 = arith.constant dense<0.000000e+00> : vector<512x128xf32>
    %154 = tpu.matmul %145, %153, %cst_144 {dimension_numbers = #tpu.dot_dimension_numbers<[1], [0], [0], [1], [0, 0, 1, 1], [], []>} : vector<512x128xbf16>, vector<128x128xbf16>, vector<512x128xf32> -> vector<512x128xf32>
    %c32_145 = arith.constant 32 : index
    %c0_146 = arith.constant 0 : index
    %155 = vector.load %arg12[%c32_145, %c0_146] : memref<576x128xbf16, #tpu.memory_space<vmem>>, vector<512x128xbf16>
    %c1_147 = arith.constant 1 : index
    %c0_148 = arith.constant 0 : index
    %c0_149 = arith.constant 0 : index
    %c0_150 = arith.constant 0 : index
    %156 = vector.load %arg6[%c1_147, %c0_148, %c0_149, %c0_150] : memref<3x3x128x128xbf16, #tpu.memory_space<vmem>>, vector<1x1x128x128xbf16>
    %157 = vector.shape_cast %156 : vector<1x1x128x128xbf16> to vector<128x128xbf16>
    %cst_151 = arith.constant dense<0.000000e+00> : vector<512x128xf32>
    %158 = tpu.matmul %155, %157, %cst_151 {dimension_numbers = #tpu.dot_dimension_numbers<[1], [0], [0], [1], [0, 0, 1, 1], [], []>} : vector<512x128xbf16>, vector<128x128xbf16>, vector<512x128xf32> -> vector<512x128xf32>
    %159 = arith.addf %148, %158 : vector<512x128xf32>
    %c1_152 = arith.constant 1 : index
    %c1_153 = arith.constant 1 : index
    %c0_154 = arith.constant 0 : index
    %c0_155 = arith.constant 0 : index
    %160 = vector.load %arg6[%c1_152, %c1_153, %c0_154, %c0_155] : memref<3x3x128x128xbf16, #tpu.memory_space<vmem>>, vector<1x1x128x128xbf16>
    %161 = vector.shape_cast %160 : vector<1x1x128x128xbf16> to vector<128x128xbf16>
    %cst_156 = arith.constant dense<0.000000e+00> : vector<512x128xf32>
    %162 = tpu.matmul %155, %161, %cst_156 {dimension_numbers = #tpu.dot_dimension_numbers<[1], [0], [0], [1], [0, 0, 1, 1], [], []>} : vector<512x128xbf16>, vector<128x128xbf16>, vector<512x128xf32> -> vector<512x128xf32>
    %163 = arith.addf %151, %162 : vector<512x128xf32>
    %c1_157 = arith.constant 1 : index
    %c2_158 = arith.constant 2 : index
    %c0_159 = arith.constant 0 : index
    %c0_160 = arith.constant 0 : index
    %164 = vector.load %arg6[%c1_157, %c2_158, %c0_159, %c0_160] : memref<3x3x128x128xbf16, #tpu.memory_space<vmem>>, vector<1x1x128x128xbf16>
    %165 = vector.shape_cast %164 : vector<1x1x128x128xbf16> to vector<128x128xbf16>
    %cst_161 = arith.constant dense<0.000000e+00> : vector<512x128xf32>
    %166 = tpu.matmul %155, %165, %cst_161 {dimension_numbers = #tpu.dot_dimension_numbers<[1], [0], [0], [1], [0, 0, 1, 1], [], []>} : vector<512x128xbf16>, vector<128x128xbf16>, vector<512x128xf32> -> vector<512x128xf32>
    %167 = arith.addf %154, %166 : vector<512x128xf32>
    %c64_162 = arith.constant 64 : index
    %c0_163 = arith.constant 0 : index
    %168 = vector.load %arg12[%c64_162, %c0_163] : memref<576x128xbf16, #tpu.memory_space<vmem>>, vector<512x128xbf16>
    %c2_164 = arith.constant 2 : index
    %c0_165 = arith.constant 0 : index
    %c0_166 = arith.constant 0 : index
    %c0_167 = arith.constant 0 : index
    %169 = vector.load %arg6[%c2_164, %c0_165, %c0_166, %c0_167] : memref<3x3x128x128xbf16, #tpu.memory_space<vmem>>, vector<1x1x128x128xbf16>
    %170 = vector.shape_cast %169 : vector<1x1x128x128xbf16> to vector<128x128xbf16>
    %cst_168 = arith.constant dense<0.000000e+00> : vector<512x128xf32>
    %171 = tpu.matmul %168, %170, %cst_168 {dimension_numbers = #tpu.dot_dimension_numbers<[1], [0], [0], [1], [0, 0, 1, 1], [], []>} : vector<512x128xbf16>, vector<128x128xbf16>, vector<512x128xf32> -> vector<512x128xf32>
    %172 = arith.addf %159, %171 : vector<512x128xf32>
    %c2_169 = arith.constant 2 : index
    %c1_170 = arith.constant 1 : index
    %c0_171 = arith.constant 0 : index
    %c0_172 = arith.constant 0 : index
    %173 = vector.load %arg6[%c2_169, %c1_170, %c0_171, %c0_172] : memref<3x3x128x128xbf16, #tpu.memory_space<vmem>>, vector<1x1x128x128xbf16>
    %174 = vector.shape_cast %173 : vector<1x1x128x128xbf16> to vector<128x128xbf16>
    %cst_173 = arith.constant dense<0.000000e+00> : vector<512x128xf32>
    %175 = tpu.matmul %168, %174, %cst_173 {dimension_numbers = #tpu.dot_dimension_numbers<[1], [0], [0], [1], [0, 0, 1, 1], [], []>} : vector<512x128xbf16>, vector<128x128xbf16>, vector<512x128xf32> -> vector<512x128xf32>
    %176 = arith.addf %163, %175 : vector<512x128xf32>
    %c2_174 = arith.constant 2 : index
    %c2_175 = arith.constant 2 : index
    %c0_176 = arith.constant 0 : index
    %c0_177 = arith.constant 0 : index
    %177 = vector.load %arg6[%c2_174, %c2_175, %c0_176, %c0_177] : memref<3x3x128x128xbf16, #tpu.memory_space<vmem>>, vector<1x1x128x128xbf16>
    %178 = vector.shape_cast %177 : vector<1x1x128x128xbf16> to vector<128x128xbf16>
    %cst_178 = arith.constant dense<0.000000e+00> : vector<512x128xf32>
    %179 = tpu.matmul %168, %178, %cst_178 {dimension_numbers = #tpu.dot_dimension_numbers<[1], [0], [0], [1], [0, 0, 1, 1], [], []>} : vector<512x128xbf16>, vector<128x128xbf16>, vector<512x128xf32> -> vector<512x128xf32>
    %180 = arith.addf %167, %179 : vector<512x128xf32>
    %c0_179 = arith.constant 0 : index
    %c0_180 = arith.constant 0 : index
    %181 = vector.load %arg7[%c0_179, %c0_180] : memref<1x128xf32, #tpu.memory_space<vmem>>, vector<1x128xf32>
    %182 = vector.shape_cast %181 : vector<1x128xf32> to vector<1x128xf32>
    %183 = vector.broadcast %182 : vector<1x128xf32> to vector<512x128xf32>
    %184 = arith.addf %183, %172 : vector<512x128xf32>
    %cst_181 = arith.constant 0.000000e+00 : f32
    %185 = vector.broadcast %cst_181 : f32 to vector<1x128xf32>
    %186 = vector.extract_strided_slice %176 {offsets = [1, 0], sizes = [511, 128], strides = [1, 1]} : vector<512x128xf32> to vector<511x128xf32>
    %187 = tpu.concatenate %186, %185 in 0 : vector<511x128xf32>, vector<1x128xf32> -> vector<512x128xf32>
    %188 = arith.addf %184, %187 : vector<512x128xf32>
    %cst_182 = arith.constant 0.000000e+00 : f32
    %189 = vector.broadcast %cst_182 : f32 to vector<2x128xf32>
    %190 = vector.extract_strided_slice %180 {offsets = [2, 0], sizes = [510, 128], strides = [1, 1]} : vector<512x128xf32> to vector<510x128xf32>
    %191 = tpu.concatenate %190, %189 in 0 : vector<510x128xf32>, vector<2x128xf32> -> vector<512x128xf32>
    %192 = arith.addf %188, %191 : vector<512x128xf32>
    %c0_183 = arith.constant 0 : index
    %c32_184 = arith.constant 32 : index
    %c0_185 = arith.constant 0 : index
    %193 = vector.load %arg1[%c0_183, %c32_184, %c0_185] : memref<1x576x128xbf16, #tpu.memory_space<vmem>>, vector<1x512x128xbf16>
    %194 = vector.shape_cast %193 : vector<1x512x128xbf16> to vector<512x128xbf16>
    %c0_186 = arith.constant 0 : index
    %c0_187 = arith.constant 0 : index
    %195 = vector.load %arg8[%c0_186, %c0_187] : memref<128x128xbf16, #tpu.memory_space<vmem>>, vector<128x128xbf16>
    %cst_188 = arith.constant dense<0.000000e+00> : vector<512x128xf32>
    %196 = tpu.matmul %194, %195, %cst_188 {dimension_numbers = #tpu.dot_dimension_numbers<[1], [0], [0], [1], [0, 0, 1, 1], [], []>} : vector<512x128xbf16>, vector<128x128xbf16>, vector<512x128xf32> -> vector<512x128xf32>
    %cst_189 = arith.constant 0.000000e+00 : f32
    %197 = vector.broadcast %cst_189 : f32 to vector<1x128xf32>
    %198 = vector.extract_strided_slice %196 {offsets = [1, 0], sizes = [511, 128], strides = [1, 1]} : vector<512x128xf32> to vector<511x128xf32>
    %199 = tpu.concatenate %198, %197 in 0 : vector<511x128xf32>, vector<1x128xf32> -> vector<512x128xf32>
    %c0_190 = arith.constant 0 : index
    %c0_191 = arith.constant 0 : index
    %200 = vector.load %arg9[%c0_190, %c0_191] : memref<1x128xf32, #tpu.memory_space<vmem>>, vector<1x128xf32>
    %201 = vector.broadcast %200 : vector<1x128xf32> to vector<512x128xf32>
    %202 = arith.addf %199, %201 : vector<512x128xf32>
    %203 = arith.addf %192, %202 : vector<512x128xf32>
    %cst_192 = arith.constant 0.000000e+00 : f32
    %204 = vector.broadcast %cst_192 : f32 to vector<512x128xf32>
    %205 = arith.maximumf %203, %204 : vector<512x128xf32>
    %c0_193 = arith.constant 0 : index
    %c0_194 = arith.constant 0 : index
    %c0_195 = arith.constant 0 : index
    %206 = vector.load %arg10[%c0_193, %c0_194, %c0_195] : memref<1x512x128xf32, #tpu.memory_space<vmem>>, vector<1x512x128xf32>
    %207 = vector.shape_cast %206 : vector<1x512x128xf32> to vector<512x128xf32>
    %208 = vector.shape_cast %205 : vector<512x128xf32> to vector<1x512x128xf32>
    tpu.vector_store %arg10[%c0_193, %c0_194, %c0_195], %208 {strides = array<i32>} : memref<1x512x128xf32, #tpu.memory_space<vmem>>, vector<1x512x128xf32>,
    return
  }
  func.func @transform_0(%arg0: i32) -> (i32, i32, i32) {
    %c0_i32 = arith.constant 0 : i32
    %c0_i32_0 = arith.constant 0 : i32
    %c0_i32_1 = arith.constant 0 : i32
    return %arg0, %c0_i32, %c0_i32_0 : i32, i32, i32
  }
  func.func @transform_1(%arg0: i32) -> (i32, i32, i32, i32) {
    %c0_i32 = arith.constant 0 : i32
    %c0_i32_0 = arith.constant 0 : i32
    %c0_i32_1 = arith.constant 0 : i32
    %c0_i32_2 = arith.constant 0 : i32
    %c0_i32_3 = arith.constant 0 : i32
    return %c0_i32, %c0_i32_0, %c0_i32_1, %c0_i32_2 : i32, i32, i32, i32
  }
  func.func @transform_2(%arg0: i32) -> (i32, i32) {
    %c0_i32 = arith.constant 0 : i32
    %c0_i32_0 = arith.constant 0 : i32
    %c0_i32_1 = arith.constant 0 : i32
    return %c0_i32, %c0_i32_0 : i32, i32
  }
  func.func @transform_3(%arg0: i32) -> (i32, i32, i32, i32) {
    %c0_i32 = arith.constant 0 : i32
    %c0_i32_0 = arith.constant 0 : i32
    %c0_i32_1 = arith.constant 0 : i32
    %c0_i32_2 = arith.constant 0 : i32
    %c0_i32_3 = arith.constant 0 : i32
    return %c0_i32, %c0_i32_0, %c0_i32_1, %c0_i32_2 : i32, i32, i32, i32
  }
  func.func @transform_4(%arg0: i32) -> (i32, i32) {
    %c0_i32 = arith.constant 0 : i32
    %c0_i32_0 = arith.constant 0 : i32
    %c0_i32_1 = arith.constant 0 : i32
    return %c0_i32, %c0_i32_0 : i32, i32
  }
  func.func @transform_5(%arg0: i32) -> (i32, i32, i32, i32) {
    %c0_i32 = arith.constant 0 : i32
    %c0_i32_0 = arith.constant 0 : i32
    %c0_i32_1 = arith.constant 0 : i32
    %c0_i32_2 = arith.constant 0 : i32
    %c0_i32_3 = arith.constant 0 : i32
    return %c0_i32, %c0_i32_0, %c0_i32_1, %c0_i32_2 : i32, i32, i32, i32
  }
  func.func @transform_6(%arg0: i32) -> (i32, i32) {
    %c0_i32 = arith.constant 0 : i32
    %c0_i32_0 = arith.constant 0 : i32
    %c0_i32_1 = arith.constant 0 : i32
    return %c0_i32, %c0_i32_0 : i32, i32
  }
  func.func @transform_7(%arg0: i32) -> (i32, i32) {
    %c0_i32 = arith.constant 0 : i32
    %c0_i32_0 = arith.constant 0 : i32
    %c0_i32_1 = arith.constant 0 : i32
    return %c0_i32, %c0_i32_0 : i32, i32
  }
  func.func @transform_8(%arg0: i32) -> (i32, i32) {
    %c0_i32 = arith.constant 0 : i32
    %c0_i32_0 = arith.constant 0 : i32
    %c0_i32_1 = arith.constant 0 : i32
    return %c0_i32, %c0_i32_0 : i32, i32
  }
  func.func @transform_9(%arg0: i32) -> (i32, i32, i32) {
    %c0_i32 = arith.constant 0 : i32
    %c0_i32_0 = arith.constant 0 : i32
    %c0_i32_1 = arith.constant 0 : i32
    return %arg0, %c0_i32, %c0_i32_0 : i32, i32, i32
  }
}

</mosaic_0001>

<bundles_post_ra>
// kernel: tpu_custom_call.1
= control target key start
LH: loop header
LB: loop body
LE: loop exit
PB: predicated region body
PF: predicated region fallthrough
CT: control target
= control target key end

     0   :  { %s27689_s0 = inlined_call_operand.hbm [shape: bf16[2,576,128], index: 0, kind: input, shape index: {}]   ;;  %s27690_s1 = inlined_call_operand.hbm [shape: bf16[3,3,128,128], index: 1, kind: input, shape index: {}]   ;;  %s27691_s2 = inlined_call_operand.vmem [shape: f32[1,128], index: 2, kind: input, shape index: {}]   ;;  %s27692_s3 = inlined_call_operand.hbm [shape: bf16[3,3,128,128], index: 3, kind: input, shape index: {}]   ;;  %s27693_s4 = inlined_call_operand.vmem [shape: f32[1,128], index: 4, kind: input, shape index: {}]   ;;  %s27694_s5 = inlined_call_operand.hbm [shape: bf16[3,3,128,128], index: 5, kind: input, shape index: {}]   ;;  %s27695_s6 = inlined_call_operand.vmem [shape: f32[1,128], index: 6, kind: input, shape index: {}]   ;;  %s27696_s7 = inlined_call_operand.hbm [shape: bf16[128,128], index: 7, kind: input, shape index: {}]   ;;  %s27697_s8 = inlined_call_operand.vmem [shape: f32[1,128], index: 8, kind: input, shape index: {}]   ;;  %s27698_s9 = inlined_call_operand.hbm [shape: f32[2,512,128], index: 9, kind: output, shape index: {}]  }
   0x1   :  { %27726 = sst [smem:[#allocation198_spill]] %s27690_s1 }
   0x2   :  { %27727 = sst [smem:[#allocation199_spill]] %s27692_s3 }
   0x3   :  { %27728 = sst [smem:[#allocation200_spill]] %s27694_s5 }
   0x4   :  { %14 = vsyncpa [#allocation5], 0 }
   0x5   :  { %16 = vsyncpa [#allocation5 + $0x1], 0 }
   0x6   :  { %17 = vsyncpa [#allocation8], 0 }
   0x7   :  { %18 = vsyncpa [#allocation11], 0 }
   0x8   :  { %19 = vsyncpa [#allocation6], 0 }
   0x9   :  { %21 = vsyncpa [#allocation6 + $0x1], 0  ;;  %s23352_s30 = smov 0   ;;  %s23354_s10 = smov 0  }
   0xa   :  { %s23356_s11 = smov 0   ;;  %s23358_s12 = smov 0  }
   0xb LB: > { %s23373_s13 = sadd.s32 4294967295, %s23288_s12   ;;  %s17963_s14 = sadd.s32 4294967294, %s23288_s12   ;;  %s23288_s12 = sphi %s23358_s12, %s28642_s12   ;;  %s23284_s11 = sphi %s23356_s11, %s28641_s11   ;;  %s23280_s10 = sphi %s23354_s10, %s28640_s10   ;;  %s23276_s30 = sphi %s23352_s30, %s28639_s30  }
   0xc   : > { %p47_p0 = scmp.ne.s32.totalorder %s23280_s10, %s23276_s30  ;;  %p27699_p1 = scmp.eq.s32.totalorder %s23373_s13, 0 }
   0xd   : > { %p239_p2 = scmp.eq.s32.totalorder %s23373_s13, 1  ;;  %p245_p3 = scmp.eq.s32.totalorder %s17963_s14, 1 }
   0xe   : > { %p23382_p4 = por %p27699_p1, %p47_p0  ;;  %p17964_p5 = scmp.ge.s32.totalorder %s23288_s12, 1 }
   0xf   : > { %p23387_p6 = por %p245_p3, %p47_p0  ;;  %p252_p7 = scmp.lt.s32.totalorder %s23288_s12, 3 }
  0x10   : > { %s27729_s15 = scalar_select %p23382_p4, 1, 0 }
  0x11   : > { %s27730_s16 = scalar_select %p23387_p6, 1, 0 }
  0x12   : > { %p23392_p8 = pnand %p17964_p5, %p252_p7  ;;  %s23290_s18 = smov [#allocation7]  }
  0x13   : > { %s264_s19 = sshll.u32 %s23290_s18, 4  ;;  %s23291_s21 = smov [#allocation10]   ;;  %s265_s19 = int_to_ptr.vmem [resolvable:$true] %s264_s19 }
  0x14   : > { %s27731_s17 = scalar_select %p23392_p8, 1, 0 }
  0x15   : > { %p22464_p9 = pneg %p23392_p8  ;;  %s296_s22 = sshll.u32 %s23291_s21, 4  ;;  %s297_s22 = int_to_ptr.vmem [resolvable:$true] %s296_s22 }
  0x16   : > { %s23292_s23 = smov [#allocation9]   ;;  %s23095_s25 = scalar_lea.vmem %s265_s19, 9216 }
  0x17   : > { %p23401_p11 = pnand %p22464_p9, %p27699_p1  ;;  %s280_s24 = sshll.u32 %s23292_s23, 4  ;;  %s281_s24 = int_to_ptr.vmem [resolvable:$true] %s280_s24 }
  0x18   : > { %p23096_p13 = scmp.ne.s32.totalorder %s265_s19, %s23095_s25  ;;  %p23103_p5 = scmp.lt.s32.totalorder %s265_s19, %s265_s19 }
  0x19   : > { %p23086_p12 = pneg %p23401_p11  ;;  %p23104_p7 = scmp.lt.s32.totalorder %s23095_s25, %s23095_s25 }
  0x1b   : > { %p23098_p0 = pnand %p23096_p13, %p23086_p12  ;;  %p23105_p9 = por %p23104_p7, %p23103_p5 }
  0x1d   : > { %p23099_p3 = pneg %p23098_p0 }
  0x1f   : > { %p23106_p10 = pnand %p23105_p9, %p23099_p3 }
  0x21   : > { %23109 = shalt.err (!%p23106_p10)
}
  0x22   : > { %s27700_s26 = smov 64   ;;  %s27701_s27 = smov 4  }
  0x23   : > { %s27733_s1 = sld [smem:[#allocation198_spill]]  ;;  %s23121_s14 = scalar_lea.vmem %s297_s22, 9216 }
  0x24   : > { %p23122_p13 = scmp.ne.s32.totalorder %s297_s22, %s23121_s14  ;;  %p23129_p3 = scmp.lt.s32.totalorder %s297_s22, %s297_s22 }
  0x25   : > { %p23130_p10 = scmp.lt.s32.totalorder %s23121_s14, %s23121_s14 }
  0x26   : > { %p23124_p0 = pnand %p23122_p13, %p23086_p12 }
  0x27   : > { %p23131_p7 = por %p23130_p10, %p23129_p3 }
  0x28   : > { %p23125_p5 = pneg %p23124_p0 }
  0x29   : > { %22467 = dma.hbm_to_vmem [thread:$0]  (!%p23401_p11), %s27733_s1, 9216, %s265_s19, [#allocation8], %s27700_s26, %s27700_s26, %s27701_s27  }
  0x2a   : > { %p23132_p9 = pnand %p23131_p7, %p23125_p5 }
  0x2c   : > { %23135 = shalt.err (!%p23132_p9)
}
  0x2d   : > { %s27734_s5 = sld [smem:[#allocation200_spill]]  ;;  %s23147_s19 = scalar_lea.vmem %s281_s24, 9216 }
  0x2e   : > { %p23148_p1 = scmp.ne.s32.totalorder %s281_s24, %s23147_s19  ;;  %p23155_p3 = scmp.lt.s32.totalorder %s281_s24, %s281_s24 }
  0x2f   : > { %p23156_p5 = scmp.lt.s32.totalorder %s23147_s19, %s23147_s19 }
  0x30   : > { %p23150_p13 = pnand %p23148_p1, %p23086_p12 }
  0x31   : > { %p23157_p10 = por %p23156_p5, %p23155_p3 }
  0x32   : > { %p23151_p0 = pneg %p23150_p13 }
  0x33   : > { %22473 = dma.hbm_to_vmem [thread:$0]  (!%p23401_p11), %s27734_s5, 9216, %s297_s22, [#allocation11], %s27700_s26, %s27700_s26, %s27701_s27  }
  0x34   : > { %p23158_p7 = pnand %p23157_p10, %p23151_p0 }
  0x36   : > { %23161 = shalt.err (!%p23158_p7)
}
  0x37   : > { %s27735_s3 = sld [smem:[#allocation199_spill]]  ;;  %s23295_s22 = smov [#allocation12]  }
  0x38   : > { %s312_s28 = sshll.u32 %s23295_s22, 4  ;;  %s313_s28 = int_to_ptr.vmem [resolvable:$true] %s312_s28 }
  0x39   : > { %s23173_s29 = scalar_lea.vmem %s313_s28, 1024  ;;  %p23181_p0 = scmp.lt.s32.totalorder %s313_s28, %s313_s28 }
  0x3a   : > { %p23174_p1 = scmp.ne.s32.totalorder %s313_s28, %s23173_s29  ;;  %p23182_p3 = scmp.lt.s32.totalorder %s23173_s29, %s23173_s29 }
  0x3c   : > { %p23176_p9 = pnand %p23174_p1, %p23086_p12  ;;  %p23183_p5 = por %p23182_p3, %p23181_p0 }
  0x3d   : > { %22470 = dma.hbm_to_vmem [thread:$0]  (!%p23401_p11), %s27735_s3, 9216, %s281_s24, [#allocation8], %s27700_s26, %s27700_s26, %s27701_s27  }
  0x3e   : > { %p23177_p13 = pneg %p23176_p9 }
  0x40   : > { %p23184_p10 = pnand %p23183_p5, %p23177_p13 }
  0x42   : > { %23187 = shalt.err (!%p23184_p10)
}
  0x43   : > { %22476 = dma.hbm_to_vmem [thread:$0]  (!%p23401_p11), %s27696_s7, 1024, %s313_s28, [#allocation11], %s27700_s26, %s27700_s26, %s27701_s27  }
  0x44   : > { %s23452_s18 = sadd.s32 1, %s23288_s12   ;;  %s34_s20 = sadd.s32 1, %s23284_s11 }
  0x45   : > { %s31_s21 = ssub.s32 %s23288_s12, %s23452_s18  ;;  %p41_p12 = scmp.ne.s32.totalorder %s23284_s11, %s23280_s10 }
  0x46   : > { %p32_p7 = scmp.eq.s32.totalorder %s31_s21, 0  ;;  %p42_p1 = scmp.eq.s32.totalorder %s23288_s12, 0 }
  0x47   : > { %p23462_p9 = por %p239_p2, %p41_p12  ;;  %p22489_p13 = scmp.lt.s32.totalorder %s23288_s12, 2 }
  0x48   : > { %s23468_s23 = scalar_select %p32_p7, %s23284_s11, %s34_s20  }
  0x49   : > { %s27736_s19 = scalar_select %p23462_p9, 1, 0 }
  0x4a   : > { %p43_p0 = por %p42_p1, %p41_p12  ;;  %s329_s25 = sand.u32 1, %s23284_s11  }
  0x4b   : > { %s22441_s22 = smul.u32 288, %s329_s25  ;;  %s23483_s27 = scalar_lea.sflag [#allocation5], %s329_s25 }
  0x4c   : > { %s22442_s28 = smul.u32 4608, %s23288_s12  ;;  %p23472_p11 = pnand %p22489_p13, %p43_p0 }
  0x4d   : > { %s333_s26 = scalar_lea.vmem [#allocation4], %s22441_s22 }
  0x4e   : > { %s23479_s21 = scalar_lea.hbm %s27689_s0, %s22442_s28  ;;  %s340_s20 = sshll.u32 %s333_s26, 4  ;;  %s23481_s20 = int_to_ptr.vmem [resolvable:$true] %s340_s20 }
  0x4f   : > { %s23188_s1 = scalar_lea.hbm %s23479_s21, 4608  ;;  %p23190_p3 = pneg %p23472_p11 }
  0x50   : > { %p23189_p2 = scmp.ne.s32.totalorder %s23479_s21, %s23188_s1  ;;  %s23193_s28 = scalar_lea.hbm %s27689_s0, 9216 }
  0x51   : > { %p23194_p12 = scmp.lt.s32.totalorder %s23479_s21, %s27689_s0  ;;  %p23195_p7 = scmp.lt.s32.totalorder %s23193_s28, %s23188_s1 }
  0x52   : > { %p23191_p5 = pnand %p23190_p3, %p23189_p2 }
  0x53   : > { %p23196_p1 = por %p23195_p7, %p23194_p12 }
  0x54   : > { %p23192_p10 = pneg %p23191_p5 }
  0x56   : > { %p23197_p13 = pnand %p23196_p1, %p23192_p10 }
  0x58   : > { %23200 = shalt.err (!%p23197_p13)
}
  0x59   : > { %s23201_s26 = scalar_lea.vmem %s23481_s20, 4608  ;;  %s23296_s25 = smov [#allocation4]  }
  0x5a   : > { %p23202_p0 = scmp.ne.s32.totalorder %s23481_s20, %s23201_s26  ;;  %s23206_s22 = sshll.u32 %s23296_s25, 4  ;;  %s23207_s22 = int_to_ptr.vmem [resolvable:$false] %s23206_s22 }
  0x5b   : > { %s23208_s3 = scalar_lea.vmem %s23207_s22, 9216  ;;  %p23209_p5 = scmp.lt.s32.totalorder %s23481_s20, %s23207_s22 }
  0x5c   : > { %p23204_p6 = pnand %p23202_p0, %p23190_p3  ;;  %p23210_p9 = scmp.lt.s32.totalorder %s23208_s3, %s23201_s26 }
  0x5e   : > { %p23205_p2 = pneg %p23204_p6  ;;  %p23211_p4 = por %p23210_p9, %p23209_p5 }
  0x60   : > { %p23212_p8 = pnand %p23211_p4, %p23205_p2 }
  0x62   : > { %23215 = shalt.err (!%p23212_p8)
}
  0x63   : > { %s27738_s1 = smov 4   ;;  %s27739_s5 = smov 64  }
  0x64   : > { %22480 = dma.hbm_to_vmem [thread:$0]  (!%p23472_p11), %s23479_s21, 4608, %s23481_s20, %s23483_s27, %s27739_s5, %s27739_s5, %s27738_s1  }
  0x65   : > { %p27740_p6 = scmp.ne.s32.totalorder %s27731_s17, 0 }
  0x67   : > { %352 = sbr.rel (%p27740_p6) target bundleno = 2489 (0x9b9), region = 56 }
  0x6c   : > { %s23510_s24 = sand.u32 1, %s23280_s10   ;;  %p27741_p4 = scmp.ne.s32.totalorder %s27729_s15, 0 }
  0x6d   : > { %s22443_s28 = smul.u32 288, %s23510_s24  ;;  %s355_s14 = scalar_lea.sflag [#allocation5], %s23510_s24 }
  0x6f   : > { %s23514_s26 = scalar_lea.vmem [#allocation4], %s22443_s28 }
  0x70   : > { %23259 = dma.done.wait (%p27741_p4), %s355_s14, 4608  }
  0x71   : > { %23261 = vsyncadd (%p27741_p4), %s355_s14, 4294962688  ;;  %p27742_p8 = scmp.eq.s32.totalorder %s23373_s13, 0 }
  0x73   : > { %23263 = dma.done.wait (%p27742_p8), [#allocation8], 18432   ;;  %p27743_p9 = pmov %p27742_p8 }
  0x74   : > { %p27744_p11 = pmov %p27742_p8 }
  0x75   : > { %23265 = vsyncadd (%p27743_p9), [#allocation8], 4294948864 }
  0x76   : > { %23267 = dma.done.wait (%p27744_p11), [#allocation11], 10240   ;;  %p27745_p3 = pmov %p27742_p8 }
  0x77   : > { %v22537_v0 = vld [vmem:[#allocation7 + $0xf8] sm:$0xff]   ;;  %v22539_v2 = vld [vmem:[#allocation7 + $0xf0] sm:$0xff]   ;;  %v22541_v4 = vld [vmem:[#allocation7 + $0xe8] sm:$0xff]   ;;  %vm5363_vm0 = vcmask 1046528   ;;  %vm5684_vm1 = vcmask 1045504   ;;  %vm6261_vm2 = vcmask 1040384  }
  0x78   : > { %23269 = vsyncadd (%p27745_p3), [#allocation11], 4294957056  ;;  %v22538_v1 = vld [vmem:[#allocation7 + $0x38] sm:$0xff]   ;;  %20201 = vmatprep.subr.bf16.mxu0 %v22537_v0  ;;  %v22540_v3 = vld [vmem:[#allocation7 + $0x30] sm:$0xff]   ;;  %s17976_s5 = sshll.u32 %s23510_s24, 9  ;;  %s18696_s15 = sshll.u32 %s23373_s13, 13 }
  0x79   : > { %20281 = vmatprep.subr.bf16.mxu1 %v22538_v1  ;;  %20202 = vmatpush3.bf16.msra.mxu0 %v22537_v0  ;;  %v22542_v5 = vld [vmem:[#allocation7 + $0x28] sm:$0xff]   ;;  %v22543_v6 = vld [vmem:[#allocation7 + $0xe0] sm:$0xff]   ;;  %v22545_v8 = vld [vmem:[#allocation7 + $0xd8] sm:$0xff]   ;;  %s27090_s28 = scalar_lea.vmem [#allocation13], %s17976_s5  ;;  %s27640_s21 = scalar_lea.hbm %s27698_s9, %s18696_s15 }
  0x7a   : > { %20282 = vmatpush3.bf16.msra.mxu1 %v22538_v1  ;;  %20203 = vmatprep.subr.bf16.mxu0 %v22539_v2  ;;  %v22544_v7 = vld [vmem:[#allocation7 + $0x20] sm:$0xff]   ;;  %v22546_v9 = vld [vmem:[#allocation7 + $0x18] sm:$0xff]   ;;  %v22547_v10 = vld [vmem:[#allocation7 + $0xd0] sm:$0xff]   ;;  %s17852_s17 = sshll.u32 %s27090_s28, 4  ;;  %s17839_s13 = scalar_lea.sflag [#allocation6], %s23510_s24  ;;  %s27642_s17 = int_to_ptr.vmem [resolvable:$true] %s17852_s17 }
  0x7b   : > { %20283 = vmatprep.subr.bf16.mxu1 %v22540_v3  ;;  %v22548_v11 = vld [vmem:[#allocation7 + $0x10] sm:$0xff]   ;;  %v22554_v13 = vld [vmem:[%s23514_s26] sm:$0xff]   ;;  %v22549_v14 = vld [vmem:[#allocation7 + $0xc8] sm:$0xff]   ;;  %s23216_s20 = scalar_lea.vmem %s27642_s17, 8192  ;;  %p28636_p12 = scmp.ne.s32.totalorder %s27736_s19, 0 }
  0x7c   : > { %v22553_v12 = vld [vmem:[%s23514_s26 + $0x10] sm:$0xff]   ;;  %20297 = vmatprep.mubr.bf16.mxu1 %v22554_v13  ;;  %v22550_v15 = vld [vmem:[#allocation7 + $0x8] sm:$0xff]   ;;  %v22551_v16 = vld [vmem:[#allocation7 + $0xc0] sm:$0xff]   ;;  %p23217_p10 = scmp.ne.s32.totalorder %s27642_s17, %s23216_s20  ;;  %s23299_s25 = smov [#allocation13]  }
  0x7d   : > { %20204 = vmatpush3.bf16.msra.mxu0 %v22539_v2  ;;  %20217 = vmatprep.mubr.bf16.mxu0 %v22553_v12  ;;  %v22552_v17 = vld [vmem:[#allocation7] sm:$0xff]   ;;  %v22557_v18 = vld [vmem:[#allocation7 + $0x138] sm:$0xff]   ;;  %v23534_v20 = vld [vmem:[%s23514_s26 + $0x8] sm:$0xff]   ;;  %s23220_s22 = sshll.u32 %s23299_s25, 4  ;;  %s23221_s22 = int_to_ptr.vmem [resolvable:$false] %s23220_s22 }
  0x7e   : > { %20284 = vmatpush3.bf16.msra.mxu1 %v22540_v3  ;;  %20205 = vmatprep.subr.bf16.mxu0 %v22541_v4  ;;  %v23531_v19 = vld [vmem:[%s23514_s26 + $0x18] sm:$0xff]   ;;  %v23537_v21 = vld [vmem:[%s23514_s26 + $0x20] sm:$0xff]   ;;  %v22562_v22 = vld [vmem:[#allocation7 + $0x130] sm:$0xff]   ;;  %p23218_p7 = pnand %p23217_p10, %p28636_p12  ;;  %s23222_s3 = scalar_lea.vmem %s23221_s22, 16384 }
  0x7f   : > { %20285 = vmatprep.subr.bf16.mxu1 %v22542_v5  ;;  %v22567_v23 = vld [vmem:[#allocation7 + $0x128] sm:$0xff]   ;;  %v23546_v25 = vld [vmem:[%s23514_s26 + $0x30] sm:$0xff]   ;;  %v22572_v26 = vld [vmem:[#allocation7 + $0x120] sm:$0xff]   ;;  %p23223_p13 = scmp.lt.s32.totalorder %s27642_s17, %s23221_s22  ;;  %p23224_p0 = scmp.lt.s32.totalorder %s23222_s3, %s23216_s20 }
  0x80   : > { %v23543_v24 = vld [vmem:[%s23514_s26 + $0x28] sm:$0xff]   ;;  %v22577_v27 = vld [vmem:[#allocation7 + $0x118] sm:$0xff]   ;;  %v22563_v29 = vld [vmem:[%s23514_s26 + $0x40] sm:$0xff]   ;;  %p23219_p1 = pneg %p23218_p7 }
  0x81   : > { %20206 = vmatpush3.bf16.msra.mxu0 %v22541_v4  ;;  %v22561_v28 = vld [vmem:[%s23514_s26 + $0x38] sm:$0xff]   ;;  %v22582_v30 = vld [vmem:[#allocation7 + $0x110] sm:$0xff]   ;;  %v22587_v33 = vld [vmem:[#allocation7 + $0x108] sm:$0xff]   ;;  %p23225_p2 = por %p23224_p0, %p23223_p13 }
  0x82   : > { %20286 = vmatpush3.bf16.msra.mxu1 %v22542_v5  ;;  %20207 = vmatprep.subr.bf16.mxu0 %v22543_v6  ;;  %v22588_v31 = vld [vmem:[#allocation7 + $0x78] sm:$0xff]   ;;  %v22589_v32 = vld [vmem:[#allocation7 + $0x70] sm:$0xff]   ;;  %v22564_v34 = vld [vmem:[%s23514_s26 + $0x48] sm:$0xff]  }
  0x83   : > { %20287 = vmatprep.subr.bf16.mxu1 %v22544_v7  ;;  %v22565_v35 = vld [vmem:[%s23514_s26 + $0x50] sm:$0xff]   ;;  %v22592_v36 = vld [vmem:[#allocation7 + $0x68] sm:$0xff]   ;;  %v22593_v37 = vld [vmem:[#allocation7 + $0x60] sm:$0xff]   ;;  %p23226_p5 = pnand %p23225_p2, %p23219_p1 }
  0x84   : > { %v22596_v38 = vld [vmem:[#allocation7 + $0x100] sm:$0xff]   ;;  %v22566_v39 = vld [vmem:[%s23514_s26 + $0x58] sm:$0xff]   ;;  %v22598_v43 = vld [vmem:[#allocation7 + $0x50] sm:$0xff]  }
  0x85   : > { %20208 = vmatpush3.bf16.msra.mxu0 %v22543_v6  ;;  %v22568_v40 = vld [vmem:[%s23514_s26 + $0x60] sm:$0xff]   ;;  %v22597_v41 = vld [vmem:[#allocation7 + $0x58] sm:$0xff]   ;;  %v22569_v44 = vld [vmem:[%s23514_s26 + $0x68] sm:$0xff]  }
  0x86   : > { %20288 = vmatpush3.bf16.msra.mxu1 %v22544_v7  ;;  %20209 = vmatprep.subr.bf16.mxu0 %v22545_v8  ;;  %v23560_v42 = vld [vmem:[#allocation7 + $0x178] sm:$0xff]   ;;  %v22570_v45 = vld [vmem:[%s23514_s26 + $0x70] sm:$0xff]   ;;  %v22601_v46 = vld [vmem:[#allocation7 + $0x48] sm:$0xff]  }
  0x87   : > { %20289 = vmatprep.subr.bf16.mxu1 %v22546_v9  ;;  %v22602_v47 = vld [vmem:[#allocation7 + $0x40] sm:$0xff]   ;;  %v22571_v48 = vld [vmem:[%s23514_s26 + $0x78] sm:$0xff]   ;;  %v22574_v50 = vld [vmem:[%s23514_s26 + $0x88] sm:$0xff]  }
  0x88   : > { %v22573_v49 = vld [vmem:[%s23514_s26 + $0x80] sm:$0xff]   ;;  %v22575_v51 = vld [vmem:[%s23514_s26 + $0x90] sm:$0xff]   ;;  %v22576_v52 = vld [vmem:[%s23514_s26 + $0x98] sm:$0xff]  }
  0x89   : > { %20210 = vmatpush3.bf16.msra.mxu0 %v22545_v8  ;;  %v22578_v53 = vld [vmem:[%s23514_s26 + $0xa0] sm:$0xff]   ;;  %v22579_v54 = vld [vmem:[%s23514_s26 + $0xa8] sm:$0xff]   ;;  %v22580_v55 = vld [vmem:[%s23514_s26 + $0xb0] sm:$0xff]  }
  0x8a   : > { %20290 = vmatpush3.bf16.msra.mxu1 %v22546_v9  ;;  %20211 = vmatprep.subr.bf16.mxu0 %v22547_v10  ;;  %v22581_v56 = vld [vmem:[%s23514_s26 + $0xb8] sm:$0xff]   ;;  %v22583_v57 = vld [vmem:[%s23514_s26 + $0xc0] sm:$0xff]   ;;  %v22584_v58 = vld [vmem:[%s23514_s26 + $0xc8] sm:$0xff]  }
  0x8b   : > { %20291 = vmatprep.subr.bf16.mxu1 %v22548_v11  ;;  %v22585_v59 = vld [vmem:[%s23514_s26 + $0xd0] sm:$0xff]   ;;  %v23578_v60 = vld [vmem:[%s23514_s26 + $0xd8] sm:$0xff]   ;;  %v23581_v61 = vld [vmem:[%s23514_s26 + $0xe0] sm:$0xff]  }
  0x8c   : > { %v22610_v62 = vld [vmem:[#allocation7 + $0xb8] sm:$0xff]   ;;  %v23586_v63 = vld [vmem:[%s23514_s26 + $0xe8] sm:$0xff]   ;;  %v23589_v0 = vld [vmem:[%s23514_s26 + $0xf0] sm:$0xff]  }
  0x8d   : > { %20212 = vmatpush3.bf16.msra.mxu0 %v22547_v10  ;;  %v23596_v1 = vld [vmem:[%s23514_s26 + $0xf8] sm:$0xff]   ;;  %v23599_v2 = vld [vmem:[%s23514_s26 + $0x100] sm:$0xff]   ;;  %v23606_v3 = vld [vmem:[%s23514_s26 + $0x108] sm:$0xff]  }
  0x8e   : > { %20292 = vmatpush3.bf16.msra.mxu1 %v22548_v11  ;;  %20213 = vmatprep.subr.bf16.mxu0 %v22549_v14  ;;  %v23611_v4 = vld [vmem:[%s23514_s26 + $0x10] sm:$0xff]   ;;  %v23615_v5 = vld [vmem:[%s23514_s26] sm:$0xff]   ;;  %v22605_v8 = vld [vmem:[#allocation7 + $0x168] sm:$0xff]  }
  0x8f   : > { %20293 = vmatprep.subr.bf16.mxu1 %v22550_v15  ;;  %v22604_v6 = vld [vmem:[#allocation7 + $0x170] sm:$0xff]   ;;  %v22612_v9 = vld [vmem:[#allocation7 + $0xa8] sm:$0xff]   ;;  %v22606_v10 = vld [vmem:[#allocation7 + $0x160] sm:$0xff]  }
  0x90   : > { %v22611_v7 = vld [vmem:[#allocation7 + $0xb0] sm:$0xff]   ;;  %v22613_v11 = vld [vmem:[#allocation7 + $0xa0] sm:$0xff]   ;;  %v22607_v13 = vld [vmem:[#allocation7 + $0x158] sm:$0xff]  }
  0x91   : > { %20214 = vmatpush3.bf16.msra.mxu0 %v22549_v14  ;;  %v23630_v14 = vld [vmem:[%s23514_s26 + $0x20] sm:$0xff]  }
  0x92   : > { %20294 = vmatpush3.bf16.msra.mxu1 %v22550_v15  ;;  %20215 = vmatprep.subr.bf16.mxu0 %v22551_v16  ;;  %v22615_v15 = vld [vmem:[#allocation7 + $0x98] sm:$0xff]  }
  0x93   : > { %20295 = vmatprep.subr.bf16.mxu1 %v22552_v17 }
  0x95   : > { %20216 = vmatpush3.bf16.msra.mxu0 %v22551_v16  ;;  %v22608_v16 = vld [vmem:[#allocation7 + $0x150] sm:$0xff]  }
  0x96   : > { %20296 = vmatpush3.bf16.msra.mxu1 %v22552_v17  ;;  %20361 = vmatprep.subr.bf16.mxu0 %v22557_v18  ;;  %v22616_v17 = vld [vmem:[#allocation7 + $0x90] sm:$0xff]  }
  0x97   : > { %20441 = vmatprep.subr.bf16.mxu1 %v22588_v31 }
  0x98   : > { %20218 = vmatmul.mubr.bf16.vlgmr.msra.gmra.mxu0 %v23531_v19 }
  0x99   : > { %20298 = vmatmul.mubr.bf16.vlgmr.msra.gmra.mxu1 %v23534_v20  ;;  %20362 = vmatpush3.bf16.msra.mxu0 %v22557_v18  ;;  %v23634_v18 = vld [vmem:[%s23514_s26 + $0x38] sm:$0xff]  }
  0x9a   : > { %20221 = vmatprep.mubr.bf16.mxu0 %v23537_v21  ;;  %20301 = vmatprep.mubr.bf16.mxu1 %v22553_v12  ;;  %v23625_v12 = vld [vmem:[%s23514_s26 + $0x18] sm:$0xff]  }
  0x9b   : > { %20363 = vmatprep.subr.bf16.mxu0 %v22562_v22  ;;  %20442 = vmatpush3.bf16.msra.mxu1 %v22588_v31  ;;  %v23673_v31 = vld [vmem:[%s23514_s26 + $0x68] sm:$0xff]  }
  0x9c   : > { %20443 = vmatprep.subr.bf16.mxu1 %v22589_v32 }
  0x9d   : > { %20364 = vmatpush3.bf16.msra.mxu0 %v22562_v22  ;;  %v23646_v22 = vld [vmem:[%s23514_s26 + $0x30] sm:$0xff]  }
  0x9e   : > { %20365 = vmatprep.subr.bf16.mxu0 %v22567_v23 }
  0x9f   : > { %20444 = vmatpush3.bf16.msra.mxu1 %v22589_v32  ;;  %v23678_v32 = vld [vmem:[%s23514_s26 + $0x70] sm:$0xff]  }
  0xa0   : > { %20222 = vmatmul.mubr.bf16.gmra.mxu0 %v23543_v24  ;;  %20445 = vmatprep.subr.bf16.mxu1 %v22592_v36 }
  0xa1   : > { %20302 = vmatmul.mubr.bf16.gmra.mxu1 %v23531_v19  ;;  %20225 = vmatprep.mubr.bf16.mxu0 %v23546_v25 }
  0xa2   : > { %20305 = vmatprep.mubr.bf16.mxu1 %v23537_v21  ;;  %20366 = vmatpush3.bf16.msra.mxu0 %v22567_v23  ;;  %v22617_v23 = vld [vmem:[#allocation7 + $0x88] sm:$0xff]  }
  0xa3   : > { %20367 = vmatprep.subr.bf16.mxu0 %v22572_v26  ;;  %20446 = vmatpush3.bf16.msra.mxu1 %v22592_v36  ;;  %v23698_v36 = vld [vmem:[%s23514_s26 + $0x90] sm:$0xff]  }
  0xa4   : > { %20447 = vmatprep.subr.bf16.mxu1 %v22593_v37 }
  0xa6   : > { %20368 = vmatpush3.bf16.msra.mxu0 %v22572_v26  ;;  %v23650_v26 = vld [vmem:[%s23514_s26 + $0x48] sm:$0xff]  }
  0xa7   : > { %20369 = vmatprep.subr.bf16.mxu0 %v22577_v27  ;;  %20448 = vmatpush3.bf16.msra.mxu1 %v22593_v37 }
  0xa8   : > { %20226 = vmatmul.mubr.bf16.gmra.mxu0 %v22561_v28  ;;  %20449 = vmatprep.subr.bf16.mxu1 %v22597_v41 }
  0xa9   : > { %20306 = vmatmul.mubr.bf16.gmra.mxu1 %v23543_v24  ;;  %20229 = vmatprep.mubr.bf16.mxu0 %v22563_v29 }
  0xaa   : > { %20309 = vmatprep.mubr.bf16.mxu1 %v23546_v25  ;;  %20370 = vmatpush3.bf16.msra.mxu0 %v22577_v27  ;;  %v23655_v27 = vld [vmem:[%s23514_s26 + $0x50] sm:$0xff]  }
  0xab   : > { %20371 = vmatprep.subr.bf16.mxu0 %v22582_v30  ;;  %20450 = vmatpush3.bf16.msra.mxu1 %v22597_v41 }
  0xac   : > { %20451 = vmatprep.subr.bf16.mxu1 %v22598_v43 }
  0xae   : > { %20372 = vmatpush3.bf16.msra.mxu0 %v22582_v30  ;;  %v23668_v30 = vld [vmem:[%s23514_s26 + $0x60] sm:$0xff]  }
  0xaf   : > { %20373 = vmatprep.subr.bf16.mxu0 %v22587_v33  ;;  %20452 = vmatpush3.bf16.msra.mxu1 %v22598_v43 }
  0xb0   : > { %20230 = vmatmul.mubr.bf16.gmra.mxu0 %v22564_v34  ;;  %20453 = vmatprep.subr.bf16.mxu1 %v22601_v46 }
  0xb1   : > { %20310 = vmatmul.mubr.bf16.gmra.mxu1 %v22561_v28  ;;  %20233 = vmatprep.mubr.bf16.mxu0 %v22565_v35  ;;  %v23658_v28 = vld [vmem:[#allocation7 + $0x1b8] sm:$0xff]  }
  0xb2   : > { %20313 = vmatprep.mubr.bf16.mxu1 %v22563_v29  ;;  %20374 = vmatpush3.bf16.msra.mxu0 %v22587_v33  ;;  %v23663_v29 = vld [vmem:[%s23514_s26 + $0x58] sm:$0xff]  }
  0xb3   : > { %20375 = vmatprep.subr.bf16.mxu0 %v22596_v38  ;;  %20454 = vmatpush3.bf16.msra.mxu1 %v22601_v46  ;;  %v23683_v33 = vld [vmem:[%s23514_s26 + $0x78] sm:$0xff]  }
  0xb4   : > { %20455 = vmatprep.subr.bf16.mxu1 %v22602_v47 }
  0xb6   : > { %20376 = vmatpush3.bf16.msra.mxu0 %v22596_v38  ;;  %v23703_v38 = vld [vmem:[%s23514_s26 + $0x98] sm:$0xff]  }
  0xb7   : > { %20521 = vmatprep.subr.bf16.mxu0 %v23560_v42  ;;  %20456 = vmatpush3.bf16.msra.mxu1 %v22602_v47 }
  0xb8   : > { %20234 = vmatmul.mubr.bf16.gmra.mxu0 %v22566_v39  ;;  %20601 = vmatprep.subr.bf16.mxu1 %v22610_v62 }
  0xb9   : > { %20314 = vmatmul.mubr.bf16.gmra.mxu1 %v22564_v34  ;;  %20237 = vmatprep.mubr.bf16.mxu0 %v22568_v40  ;;  %v23688_v34 = vld [vmem:[%s23514_s26 + $0x80] sm:$0xff]  }
  0xba   : > { %20317 = vmatprep.mubr.bf16.mxu1 %v22565_v35  ;;  %v23693_v35 = vld [vmem:[%s23514_s26 + $0x88] sm:$0xff]  }
  0xc0   : > { %20238 = vmatmul.mubr.bf16.gmra.mxu0 %v22569_v44 }
  0xc1   : > { %20318 = vmatmul.mubr.bf16.gmra.mxu1 %v22566_v39  ;;  %20241 = vmatprep.mubr.bf16.mxu0 %v22570_v45 }
  0xc2   : > { %20321 = vmatprep.mubr.bf16.mxu1 %v22568_v40  ;;  %v23708_v40 = vld [vmem:[%s23514_s26 + $0xa0] sm:$0xff]  }
  0xc8   : > { %20242 = vmatmul.mubr.bf16.gmra.mxu0 %v22571_v48 }
  0xc9   : > { %20322 = vmatmul.mubr.bf16.gmra.mxu1 %v22569_v44  ;;  %20245 = vmatprep.mubr.bf16.mxu0 %v22573_v49 }
  0xca   : > { %20325 = vmatprep.mubr.bf16.mxu1 %v22570_v45 }
  0xd0   : > { %20246 = vmatmul.mubr.bf16.gmra.mxu0 %v22574_v50 }
  0xd1   : > { %20326 = vmatmul.mubr.bf16.gmra.mxu1 %v22571_v48  ;;  %20249 = vmatprep.mubr.bf16.mxu0 %v22575_v51 }
  0xd2   : > { %20329 = vmatprep.mubr.bf16.mxu1 %v22573_v49 }
  0xd8   : > { %20250 = vmatmul.mubr.bf16.gmra.mxu0 %v22576_v52 }
  0xd9   : > { %20330 = vmatmul.mubr.bf16.gmra.mxu1 %v22574_v50  ;;  %20253 = vmatprep.mubr.bf16.mxu0 %v22578_v53  ;;  %v23717_v50 = vld [vmem:[%s23514_s26 + $0xa8] sm:$0xff]  }
  0xda   : > { %20333 = vmatprep.mubr.bf16.mxu1 %v22575_v51 }
  0xe0   : > { %20254 = vmatmul.mubr.bf16.gmra.mxu0 %v22579_v54 }
  0xe1   : > { %20334 = vmatmul.mubr.bf16.gmra.mxu1 %v22576_v52  ;;  %20257 = vmatprep.mubr.bf16.mxu0 %v22580_v55  ;;  %v23722_v52 = vld [vmem:[%s23514_s26 + $0xb0] sm:$0xff]  }
  0xe2   : > { %20337 = vmatprep.mubr.bf16.mxu1 %v22578_v53 }
  0xe8   : > { %20258 = vmatmul.mubr.bf16.gmra.mxu0 %v22581_v56 }
  0xe9   : > { %20338 = vmatmul.mubr.bf16.gmra.mxu1 %v22579_v54  ;;  %20261 = vmatprep.mubr.bf16.mxu0 %v22583_v57 }
  0xea   : > { %20341 = vmatprep.mubr.bf16.mxu1 %v22580_v55 }
  0xf0   : > { %20262 = vmatmul.mubr.bf16.gmra.mxu0 %v22584_v58 }
  0xf1   : > { %20342 = vmatmul.mubr.bf16.gmra.mxu1 %v22581_v56  ;;  %20265 = vmatprep.mubr.bf16.mxu0 %v22585_v59 }
  0xf2   : > { %20345 = vmatprep.mubr.bf16.mxu1 %v22583_v57 }
  0xf8   : > { %20266 = vmatmul.mubr.bf16.gmra.mxu0 %v23578_v60 }
  0xf9   : > { %20346 = vmatmul.mubr.bf16.gmra.mxu1 %v22584_v58  ;;  %20269 = vmatprep.mubr.bf16.mxu0 %v23581_v61 }
  0xfa   : > { %20349 = vmatprep.mubr.bf16.mxu1 %v22585_v59 }
 0x100   : > { %20270 = vmatmul.mubr.bf16.gmra.mxu0 %v23586_v63 }
 0x101   : > { %20350 = vmatmul.mubr.bf16.gmra.mxu1 %v23578_v60  ;;  %20273 = vmatprep.mubr.bf16.mxu0 %v23589_v0 }
 0x102   : > { %20353 = vmatprep.mubr.bf16.mxu1 %v23581_v61 }
 0x108   : > { %20274 = vmatmul.mubr.bf16.gmra.mxu0 %v23596_v1 }
 0x109   : > { %20354 = vmatmul.mubr.bf16.gmra.mxu1 %v23586_v63  ;;  %20277 = vmatprep.mubr.bf16.mxu0 %v23599_v2 }
 0x10a   : > { %20357 = vmatprep.mubr.bf16.mxu1 %v23589_v0 }
 0x110   : > { %20278 = vmatmul.mubr.bf16.gmra.mxu0 %v23606_v3 }
 0x111   : > { %20358 = vmatmul.mubr.bf16.gmra.mxu1 %v23596_v1  ;;  %20377 = vmatprep.mubr.bf16.mxu0 %v23611_v4 }
 0x112   : > { %20457 = vmatprep.mubr.bf16.mxu1 %v23615_v5 }
 0x118   : > { %20378 = vmatmul.mubr.bf16.vlgmr.msra.gmra.mxu0 %v23531_v19  ;;  %v23638_v19 = vld [vmem:[%s23514_s26 + $0x28] sm:$0xff]  }
 0x119   : > { %20458 = vmatmul.mubr.bf16.vlgmr.msra.gmra.mxu1 %v23534_v20  ;;  %20522 = vmatpush3.bf16.msra.mxu0 %v23560_v42  ;;  %v23642_v20 = vld [vmem:[%s23514_s26 + $0x40] sm:$0xff]  }
 0x11a   : > { %20381 = vmatprep.mubr.bf16.mxu0 %v23537_v21  ;;  %20461 = vmatprep.mubr.bf16.mxu1 %v23611_v4  ;;  %v22609_v21 = vld [vmem:[#allocation7 + $0x148] sm:$0xff]  }
 0x11b   : > { %20523 = vmatprep.subr.bf16.mxu0 %v22604_v6  ;;  %20602 = vmatpush3.bf16.msra.mxu1 %v22610_v62 }
 0x11c   : > { %20603 = vmatprep.subr.bf16.mxu1 %v22611_v7 }
 0x11d   : > { %20524 = vmatpush3.bf16.msra.mxu0 %v22604_v6 }
 0x11e   : > { %20525 = vmatprep.subr.bf16.mxu0 %v22605_v8 }
 0x11f   : > { %20604 = vmatpush3.bf16.msra.mxu1 %v22611_v7  ;;  %v23731_v7 = vld [vmem:[%s23514_s26 + $0xb8] sm:$0xff]  }
 0x120   : > { %20382 = vmatmul.mubr.bf16.gmra.mxu0 %v23543_v24  ;;  %20605 = vmatprep.subr.bf16.mxu1 %v22612_v9  ;;  %v22614_v24 = vld [vmem:[#allocation7 + $0x140] sm:$0xff]  }
 0x121   : > { %20462 = vmatmul.mubr.bf16.gmra.mxu1 %v23625_v12  ;;  %20385 = vmatprep.mubr.bf16.mxu0 %v23546_v25  ;;  %v22618_v25 = vld [vmem:[#allocation7 + $0x80] sm:$0xff]  }
 0x122   : > { %20465 = vmatprep.mubr.bf16.mxu1 %v23630_v14  ;;  %20526 = vmatpush3.bf16.msra.mxu0 %v22605_v8 }
 0x123   : > { %20527 = vmatprep.subr.bf16.mxu0 %v22606_v10  ;;  %20606 = vmatpush3.bf16.msra.mxu1 %v22612_v9  ;;  %v23736_v9 = vld [vmem:[%s23514_s26 + $0xc0] sm:$0xff]  }
 0x124   : > { %20607 = vmatprep.subr.bf16.mxu1 %v22613_v11 }
 0x126   : > { %20528 = vmatpush3.bf16.msra.mxu0 %v22606_v10 }
 0x127   : > { %20529 = vmatprep.subr.bf16.mxu0 %v22607_v13  ;;  %20608 = vmatpush3.bf16.msra.mxu1 %v22613_v11 }
 0x128   : > { %20386 = vmatmul.mubr.bf16.gmra.mxu0 %v23634_v18  ;;  %20609 = vmatprep.subr.bf16.mxu1 %v22615_v15 }
 0x129   : > { %20466 = vmatmul.mubr.bf16.gmra.mxu1 %v23638_v19  ;;  %20389 = vmatprep.mubr.bf16.mxu0 %v23642_v20 }
 0x12a   : > { %20469 = vmatprep.mubr.bf16.mxu1 %v23646_v22  ;;  %20530 = vmatpush3.bf16.msra.mxu0 %v22607_v13 }
 0x12b   : > { %20531 = vmatprep.subr.bf16.mxu0 %v22608_v16  ;;  %20610 = vmatpush3.bf16.msra.mxu1 %v22615_v15 }
 0x12c   : > { %20611 = vmatprep.subr.bf16.mxu1 %v22616_v17 }
 0x12e   : > { %20532 = vmatpush3.bf16.msra.mxu0 %v22608_v16 }
 0x12f   : > { %20533 = vmatprep.subr.bf16.mxu0 %v22609_v21  ;;  %20612 = vmatpush3.bf16.msra.mxu1 %v22616_v17 }
 0x130   : > { %20390 = vmatmul.mubr.bf16.gmra.mxu0 %v23650_v26  ;;  %20613 = vmatprep.subr.bf16.mxu1 %v22617_v23 }
 0x131   : > { %20470 = vmatmul.mubr.bf16.gmra.mxu1 %v23634_v18  ;;  %20393 = vmatprep.mubr.bf16.mxu0 %v23655_v27 }
 0x132   : > { %20473 = vmatprep.mubr.bf16.mxu1 %v23642_v20  ;;  %20534 = vmatpush3.bf16.msra.mxu0 %v22609_v21 }
 0x133   : > { %20535 = vmatprep.subr.bf16.mxu0 %v22614_v24  ;;  %20614 = vmatpush3.bf16.msra.mxu1 %v22617_v23 }
 0x134   : > { %20615 = vmatprep.subr.bf16.mxu1 %v22618_v25 }
 0x136   : > { %20536 = vmatpush3.bf16.msra.mxu0 %v22614_v24 }
 0x137   : > { %20616 = vmatpush3.bf16.msra.mxu1 %v22618_v25  ;;  %20681 = vmatprep.subr.bf16.mxu0 %v23658_v28  ;;  %v23745_v25 = vld [vmem:[%s23514_s26 + $0xc8] sm:$0xff]  }
 0x138   : > { %20394 = vmatmul.mubr.bf16.gmra.mxu0 %v23663_v29 }
 0x139   : > { %20474 = vmatmul.mubr.bf16.gmra.mxu1 %v23650_v26  ;;  %20397 = vmatprep.mubr.bf16.mxu0 %v23668_v30 }
 0x13a   : > { %20477 = vmatprep.mubr.bf16.mxu1 %v23655_v27 }
 0x140   : > { %20398 = vmatmul.mubr.bf16.gmra.mxu0 %v23673_v31 }
 0x141   : > { %20478 = vmatmul.mubr.bf16.gmra.mxu1 %v23663_v29  ;;  %20401 = vmatprep.mubr.bf16.mxu0 %v23678_v32 }
 0x142   : > { %20481 = vmatprep.mubr.bf16.mxu1 %v23668_v30 }
 0x148   : > { %20402 = vmatmul.mubr.bf16.gmra.mxu0 %v23683_v33 }
 0x149   : > { %20482 = vmatmul.mubr.bf16.gmra.mxu1 %v23673_v31  ;;  %20405 = vmatprep.mubr.bf16.mxu0 %v23688_v34 }
 0x14a   : > { %20485 = vmatprep.mubr.bf16.mxu1 %v23678_v32 }
 0x150   : > { %20406 = vmatmul.mubr.bf16.gmra.mxu0 %v23693_v35 }
 0x151   : > { %20486 = vmatmul.mubr.bf16.gmra.mxu1 %v23683_v33  ;;  %20409 = vmatprep.mubr.bf16.mxu0 %v23698_v36 }
 0x152   : > { %20489 = vmatprep.mubr.bf16.mxu1 %v23688_v34 }
 0x158   : > { %v20219_v37 = vpop.f32.mrf.mxu0  ;;  %20410 = vmatmul.mubr.bf16.gmra.mxu0 %v23703_v38 }
 0x159   : > { %v20299_v39 = vpop.f32.mrf.mxu1  ;;  %20490 = vmatmul.mubr.bf16.gmra.mxu1 %v23693_v35  ;;  %20413 = vmatprep.mubr.bf16.mxu0 %v23708_v40 }
 0x15a   : > { %v1732_v41 = vpop.f32.mrf.mxu0  ;;  %20493 = vmatprep.mubr.bf16.mxu1 %v23698_v36  ;;  %v23750_v39 = vld [vmem:[%s23514_s26 + $0xd0] sm:$0xff]  }
 0x15b   : > { %v2081_v42 = vpop.f32.mrf.mxu1 }
 0x15c   : > { %v23712_v43 = vadd.f32 %v2081_v42, %v1732_v41  ;;  %v20220_v44 = vpop.f32.mrf.mxu0 }
 0x15d   : > { %v20300_v45 = vpop.f32.mrf.mxu1 }
 0x15e   : > { %v1735_v46 = vpop.f32.mrf.mxu0 }
 0x15f   : > { %v2084_v47 = vpop.f32.mrf.mxu1 }
 0x160   : > { %v23714_v48 = vadd.f32 %v2084_v47, %v1735_v46  ;;  %v20223_v49 = vpop.f32.mrf.mxu0  ;;  %20414 = vmatmul.mubr.bf16.gmra.mxu0 %v23717_v50 }
 0x161   : > { %v20303_v51 = vpop.f32.mrf.mxu1  ;;  %20494 = vmatmul.mubr.bf16.gmra.mxu1 %v23703_v38  ;;  %20417 = vmatprep.mubr.bf16.mxu0 %v23722_v52 }
 0x162   : > { %v1748_v53 = vpop.f32.mrf.mxu0  ;;  %20497 = vmatprep.mubr.bf16.mxu1 %v23708_v40  ;;  %v23756_v51 = vld [vmem:[#allocation7 + $0x1f8] sm:$0xff]  }
 0x163   : > { %v2097_v54 = vpop.f32.mrf.mxu1  ;;  %20761 = vmatprep.subr.bf16.mxu1 %v23756_v51 }
 0x164   : > { %v23726_v55 = vadd.f32 %v2097_v54, %v1748_v53  ;;  %v20224_v56 = vpop.f32.mrf.mxu0 }
 0x165   : > { %v20304_v57 = vpop.f32.mrf.mxu1 }
 0x166   : > { %v1751_v58 = vpop.f32.mrf.mxu0 }
 0x167   : > { %v2100_v59 = vpop.f32.mrf.mxu1 }
 0x168   : > { %v23728_v62 = vadd.f32 %v2100_v59, %v1751_v58  ;;  %v20227_v6 = vpop.f32.mrf.mxu0  ;;  %20418 = vmatmul.mubr.bf16.gmra.mxu0 %v23731_v7 }
 0x169   : > { %v20307_v8 = vpop.f32.mrf.mxu1  ;;  %20498 = vmatmul.mubr.bf16.gmra.mxu1 %v23717_v50  ;;  %20421 = vmatprep.mubr.bf16.mxu0 %v23736_v9 }
 0x16a   : > { %v1764_v10 = vpop.f32.mrf.mxu0  ;;  %20501 = vmatprep.mubr.bf16.mxu1 %v23722_v52 }
 0x16b   : > { %v2113_v11 = vpop.f32.mrf.mxu1 }
 0x16c   : > { %v23740_v13 = vadd.f32 %v2113_v11, %v1764_v10  ;;  %v20228_v15 = vpop.f32.mrf.mxu0 }
 0x16d   : > { %v20308_v16 = vpop.f32.mrf.mxu1 }
 0x16e   : > { %v1767_v17 = vpop.f32.mrf.mxu0 }
 0x16f   : > { %v2116_v21 = vpop.f32.mrf.mxu1 }
 0x170   : > { %v23742_v23 = vadd.f32 %v2116_v21, %v1767_v17  ;;  %v20231_v24 = vpop.f32.mrf.mxu0  ;;  %20422 = vmatmul.mubr.bf16.gmra.mxu0 %v23745_v25  ;;  %v23776_v21 = vld [vmem:[%s23514_s26 + $0xe0] sm:$0xff]  }
 0x171   : > { %v20311_v37 = vpop.f32.mrf.mxu1  ;;  %20502 = vmatmul.mubr.bf16.gmra.mxu1 %v23731_v7  ;;  %20425 = vmatprep.mubr.bf16.mxu0 %v23750_v39 }
 0x172   : > { %v1780_v41 = vpop.f32.mrf.mxu0  ;;  %20505 = vmatprep.mubr.bf16.mxu1 %v23736_v9 }
 0x173   : > { %v2129_v42 = vpop.f32.mrf.mxu1 }
 0x174   : > { %v23754_v44 = vadd.f32 %v2129_v42, %v1780_v41  ;;  %v20232_v45 = vpop.f32.mrf.mxu0 }
 0x175   : > { %v20312_v46 = vpop.f32.mrf.mxu1 }
 0x176   : > { %v1783_v47 = vpop.f32.mrf.mxu0 }
 0x177   : > { %v2132_v49 = vpop.f32.mrf.mxu1 }
 0x178   : > { %v23758_v53 = vadd.f32 %v2132_v49, %v1783_v47  ;;  %v20235_v54 = vpop.f32.mrf.mxu0  ;;  %20426 = vmatmul.mubr.bf16.gmra.mxu0 %v23578_v60 }
 0x179   : > { %v20315_v56 = vpop.f32.mrf.mxu1  ;;  %20506 = vmatmul.mubr.bf16.gmra.mxu1 %v23745_v25  ;;  %20429 = vmatprep.mubr.bf16.mxu0 %v23581_v61  ;;  %v23771_v61 = vld [vmem:[%s23514_s26 + $0xd8] sm:$0xff]  }
 0x17a   : > { %v1796_v57 = vpop.f32.mrf.mxu0  ;;  %20509 = vmatprep.mubr.bf16.mxu1 %v23750_v39 }
 0x17b   : > { %v2145_v58 = vpop.f32.mrf.mxu1 }
 0x17c   : > { %v23765_v59 = vadd.f32 %v2145_v58, %v1796_v57  ;;  %v20236_v6 = vpop.f32.mrf.mxu0 }
 0x17d   : > { %v20316_v8 = vpop.f32.mrf.mxu1 }
 0x17e   : > { %v1799_v10 = vpop.f32.mrf.mxu0 }
 0x17f   : > { %v2148_v11 = vpop.f32.mrf.mxu1 }
 0x180   : > { %v23767_v60 = vadd.f32 %v2148_v11, %v1799_v10  ;;  %v20239_v15 = vpop.f32.mrf.mxu0  ;;  %20430 = vmatmul.mubr.bf16.gmra.mxu0 %v23586_v63 }
 0x181   : > { %v20319_v16 = vpop.f32.mrf.mxu1  ;;  %20510 = vmatmul.mubr.bf16.gmra.mxu1 %v23771_v61  ;;  %20433 = vmatprep.mubr.bf16.mxu0 %v23589_v0 }
 0x182   : > { %27746 = vst [vmem:[#allocation18_spill] sm:$0xff] %v23767_v60  ;;  %v1812_v17 = vpop.f32.mrf.mxu0  ;;  %20513 = vmatprep.mubr.bf16.mxu1 %v23776_v21 }
 0x183   : > { %v2161_v24 = vpop.f32.mrf.mxu1 }
 0x184   : > { %v23779_v37 = vadd.f32 %v2161_v24, %v1812_v17  ;;  %v20240_v41 = vpop.f32.mrf.mxu0 }
 0x185   : > { %v20320_v42 = vpop.f32.mrf.mxu1 }
 0x186   : > { %27747 = vst [vmem:[#allocation19_spill] sm:$0xff] %v23779_v37  ;;  %v1815_v45 = vpop.f32.mrf.mxu0 }
 0x187   : > { %v2164_v46 = vpop.f32.mrf.mxu1 }
 0x188   : > { %v23781_v47 = vadd.f32 %v2164_v46, %v1815_v45  ;;  %v20243_v49 = vpop.f32.mrf.mxu0  ;;  %20434 = vmatmul.mubr.bf16.gmra.mxu0 %v23596_v1  ;;  %v22620_v46 = vld [vmem:[#allocation7 + $0x1b0] sm:$0xff]  }
 0x189   : > { %v20323_v54 = vpop.f32.mrf.mxu1  ;;  %20514 = vmatmul.mubr.bf16.gmra.mxu1 %v23586_v63  ;;  %20437 = vmatprep.mubr.bf16.mxu0 %v23599_v2 }
 0x18a   : > { %27748 = vst [vmem:[#allocation20_spill] sm:$0xff] %v23781_v47  ;;  %v1828_v56 = vpop.f32.mrf.mxu0  ;;  %20517 = vmatprep.mubr.bf16.mxu1 %v23589_v0 }
 0x18b   : > { %v2177_v57 = vpop.f32.mrf.mxu1 }
 0x18c   : > { %v23787_v58 = vadd.f32 %v2177_v57, %v1828_v56  ;;  %v20244_v6 = vpop.f32.mrf.mxu0  ;;  %v23019_v56 = vld [vmem:[%s23514_s26 + $0x8] sm:$0xff]  }
 0x18d   : > { %v20324_v8 = vpop.f32.mrf.mxu1  ;;  %v22621_v57 = vld [vmem:[#allocation7 + $0x1a8] sm:$0xff]  }
 0x18e   : > { %27749 = vst [vmem:[#allocation21_spill] sm:$0xff] %v23787_v58  ;;  %v1831_v10 = vpop.f32.mrf.mxu0 }
 0x18f   : > { %v2180_v11 = vpop.f32.mrf.mxu1 }
 0x190   : > { %v23789_v15 = vadd.f32 %v2180_v11, %v1831_v10  ;;  %v20247_v16 = vpop.f32.mrf.mxu0  ;;  %20438 = vmatmul.mubr.bf16.gmra.mxu0 %v23606_v3  ;;  %v22628_v11 = vld [vmem:[#allocation7 + $0x1e8] sm:$0xff]  }
 0x191   : > { %v20327_v17 = vpop.f32.mrf.mxu1  ;;  %20518 = vmatmul.mubr.bf16.gmra.mxu1 %v23596_v1  ;;  %20537 = vmatprep.mubr.bf16.mxu0 %v23611_v4  ;;  %v22627_v1 = vld [vmem:[#allocation7 + $0x1f0] sm:$0xff]  }
 0x192   : > { %27750 = vst [vmem:[#allocation22_spill] sm:$0xff] %v23789_v15  ;;  %v1844_v63 = vpop.f32.mrf.mxu0  ;;  %20617 = vmatprep.mubr.bf16.mxu1 %v23615_v5 }
 0x193   : > { %v2193_v0 = vpop.f32.mrf.mxu1 }
 0x194   : > { %v23795_v2 = vadd.f32 %v2193_v0, %v1844_v63  ;;  %v20248_v24 = vpop.f32.mrf.mxu0  ;;  %v22622_v63 = vld [vmem:[#allocation7 + $0x1a0] sm:$0xff]  }
 0x195   : > { %v20328_v41 = vpop.f32.mrf.mxu1  ;;  %v22629_v24 = vld [vmem:[#allocation7 + $0x1e0] sm:$0xff]  }
 0x196   : > { %27751 = vst [vmem:[#allocation23_spill] sm:$0xff] %v23795_v2  ;;  %v1847_v42 = vpop.f32.mrf.mxu0 }
 0x197   : > { %v2196_v45 = vpop.f32.mrf.mxu1 }
 0x198   : > { %v23797_v49 = vadd.f32 %v2196_v45, %v1847_v42  ;;  %v20251_v3 = vpop.f32.mrf.mxu0  ;;  %20538 = vmatmul.mubr.bf16.vlgmr.msra.gmra.mxu0 %v23625_v12  ;;  %v22623_v45 = vld [vmem:[#allocation7 + $0x198] sm:$0xff]  }
 0x199   : > { %v20331_v54 = vpop.f32.mrf.mxu1  ;;  %20618 = vmatmul.mubr.bf16.vlgmr.msra.gmra.mxu1 %v23019_v56  ;;  %20682 = vmatpush3.bf16.msra.mxu0 %v23658_v28 }
 0x19a   : > { %27752 = vst [vmem:[#allocation24_spill] sm:$0xff] %v23797_v49  ;;  %v1860_v5 = vpop.f32.mrf.mxu0  ;;  %20541 = vmatprep.mubr.bf16.mxu0 %v23630_v14  ;;  %20621 = vmatprep.mubr.bf16.mxu1 %v23611_v4 }
 0x19b   : > { %v2209_v6 = vpop.f32.mrf.mxu1  ;;  %20683 = vmatprep.subr.bf16.mxu0 %v22620_v46  ;;  %20762 = vmatpush3.bf16.msra.mxu1 %v23756_v51 }
 0x19c   : > { %v23805_v8 = vadd.f32 %v2209_v6, %v1860_v5  ;;  %v20252_v10 = vpop.f32.mrf.mxu0  ;;  %20763 = vmatprep.subr.bf16.mxu1 %v22627_v1 }
 0x19d   : > { %v20332_v16 = vpop.f32.mrf.mxu1  ;;  %20684 = vmatpush3.bf16.msra.mxu0 %v22620_v46 }
 0x19e   : > { %27753 = vst [vmem:[#allocation25_spill] sm:$0xff] %v23805_v8  ;;  %v1863_v17 = vpop.f32.mrf.mxu0  ;;  %20685 = vmatprep.subr.bf16.mxu0 %v22621_v57 }
 0x19f   : > { %v2212_v28 = vpop.f32.mrf.mxu1  ;;  %20764 = vmatpush3.bf16.msra.mxu1 %v22627_v1  ;;  %v22631_v1 = vld [vmem:[#allocation7 + $0x1d8] sm:$0xff]  }
 0x1a0   : > { %v23807_v0 = vadd.f32 %v2212_v28, %v1863_v17  ;;  %v20255_v4 = vpop.f32.mrf.mxu0  ;;  %20542 = vmatmul.mubr.bf16.gmra.mxu0 %v23638_v19  ;;  %20765 = vmatprep.subr.bf16.mxu1 %v22628_v11  ;;  %v22625_v17 = vld [vmem:[#allocation7 + $0x188] sm:$0xff]  }
 0x1a1   : > { %v20335_v51 = vpop.f32.mrf.mxu1  ;;  %20622 = vmatmul.mubr.bf16.gmra.mxu1 %v23625_v12  ;;  %20545 = vmatprep.mubr.bf16.mxu0 %v23646_v22  ;;  %v22624_v12 = vld [vmem:[#allocation7 + $0x190] sm:$0xff]   ;;  %v22633_v4 = vld [vmem:[#allocation7 + $0x1c8] sm:$0xff]  }
 0x1a2   : > { %27754 = vst [vmem:[#allocation26_spill] sm:$0xff] %v23807_v0  ;;  %v1876_v41 = vpop.f32.mrf.mxu0  ;;  %20625 = vmatprep.mubr.bf16.mxu1 %v23630_v14  ;;  %20686 = vmatpush3.bf16.msra.mxu0 %v22621_v57  ;;  %v22632_v57 = vld [vmem:[#allocation7 + $0x1d0] sm:$0xff]  }
 0x1a3   : > { %v2225_v42 = vpop.f32.mrf.mxu1  ;;  %20687 = vmatprep.subr.bf16.mxu0 %v22622_v63  ;;  %20766 = vmatpush3.bf16.msra.mxu1 %v22628_v11 }
 0x1a4   : > { %v23813_v46 = vadd.f32 %v2225_v42, %v1876_v41  ;;  %v20256_v3 = vpop.f32.mrf.mxu0  ;;  %20767 = vmatprep.subr.bf16.mxu1 %v22629_v24 }
 0x1a5   : > { %v20336_v54 = vpop.f32.mrf.mxu1 }
 0x1a6   : > { %27755 = vst [vmem:[#allocation27_spill] sm:$0xff] %v23813_v46  ;;  %v1879_v56 = vpop.f32.mrf.mxu0  ;;  %20688 = vmatpush3.bf16.msra.mxu0 %v22622_v63 }
 0x1a7   : > { %v2228_v5 = vpop.f32.mrf.mxu1  ;;  %20689 = vmatprep.subr.bf16.mxu0 %v22623_v45  ;;  %20768 = vmatpush3.bf16.msra.mxu1 %v22629_v24 }
 0x1a8   : > { %v23815_v6 = vadd.f32 %v2228_v5, %v1879_v56  ;;  %v20259_v14 = vpop.f32.mrf.mxu0  ;;  %20546 = vmatmul.mubr.bf16.gmra.mxu0 %v23634_v18  ;;  %20769 = vmatprep.subr.bf16.mxu1 %v22631_v1  ;;  %v23829_v56 = vld [vmem:[#allocation7 + $0x238] sm:$0xff]  }
 0x1a9   : > { %v20339_v10 = vpop.f32.mrf.mxu1  ;;  %20626 = vmatmul.mubr.bf16.gmra.mxu1 %v23638_v19  ;;  %20549 = vmatprep.mubr.bf16.mxu0 %v23642_v20  ;;  %v22630_v19 = vld [vmem:[#allocation7 + $0x180] sm:$0xff]  }
 0x1aa   : > { %27756 = vst [vmem:[#allocation28_spill] sm:$0xff] %v23815_v6  ;;  %v1892_v11 = vpop.f32.mrf.mxu0  ;;  %20629 = vmatprep.mubr.bf16.mxu1 %v23646_v22  ;;  %20690 = vmatpush3.bf16.msra.mxu0 %v22623_v45  ;;  %v22634_v45 = vld [vmem:[#allocation7 + $0x1c0] sm:$0xff]   ;;  %v23983_v6 = vld [vmem:[%s23514_s26 + $0x50] sm:$0xff]  }
 0x1ab   : > { %v2241_v16 = vpop.f32.mrf.mxu1  ;;  %20691 = vmatprep.subr.bf16.mxu0 %v22624_v12  ;;  %20770 = vmatpush3.bf16.msra.mxu1 %v22631_v1 }
 0x1ac   : > { %v23821_v28 = vadd.f32 %v2241_v16, %v1892_v11  ;;  %v20260_v63 = vpop.f32.mrf.mxu0  ;;  %20771 = vmatprep.subr.bf16.mxu1 %v22632_v57 }
 0x1ad   : > { %v20340_v24 = vpop.f32.mrf.mxu1 }
 0x1ae   : > { %27757 = vst [vmem:[#allocation29_spill] sm:$0xff] %v23821_v28  ;;  %v1895_v51 = vpop.f32.mrf.mxu0  ;;  %20692 = vmatpush3.bf16.msra.mxu0 %v22624_v12 }
 0x1af   : > { %v2244_v41 = vpop.f32.mrf.mxu1  ;;  %20693 = vmatprep.subr.bf16.mxu0 %v22625_v17  ;;  %20772 = vmatpush3.bf16.msra.mxu1 %v22632_v57 }
 0x1b0   : > { %v23823_v42 = vadd.f32 %v2244_v41, %v1895_v51  ;;  %v20263_v22 = vpop.f32.mrf.mxu0  ;;  %20550 = vmatmul.mubr.bf16.gmra.mxu0 %v23650_v26  ;;  %20773 = vmatprep.subr.bf16.mxu1 %v22633_v4 }
 0x1b1   : > { %v20343_v3 = vpop.f32.mrf.mxu1  ;;  %20630 = vmatmul.mubr.bf16.gmra.mxu1 %v23634_v18  ;;  %20553 = vmatprep.mubr.bf16.mxu0 %v23655_v27 }
 0x1b2   : > { %27758 = vst [vmem:[#allocation30_spill] sm:$0xff] %v23823_v42  ;;  %v1908_v1 = vpop.f32.mrf.mxu0  ;;  %20633 = vmatprep.mubr.bf16.mxu1 %v23642_v20  ;;  %20694 = vmatpush3.bf16.msra.mxu0 %v22625_v17  ;;  %v23980_v42 = vld [vmem:[%s23514_s26 + $0x48] sm:$0xff]  }
 0x1b3   : > { %v2257_v54 = vpop.f32.mrf.mxu1  ;;  %20695 = vmatprep.subr.bf16.mxu0 %v22630_v19  ;;  %20774 = vmatpush3.bf16.msra.mxu1 %v22633_v4 }
 0x1b4   : > { %v23831_v5 = vadd.f32 %v2257_v54, %v1908_v1  ;;  %v20264_v12 = vpop.f32.mrf.mxu0  ;;  %20775 = vmatprep.subr.bf16.mxu1 %v22634_v45 }
 0x1b5   : > { %v20344_v14 = vpop.f32.mrf.mxu1 }
 0x1b6   : > { %27759 = vst [vmem:[#allocation31_spill] sm:$0xff] %v23831_v5  ;;  %v1911_v57 = vpop.f32.mrf.mxu0  ;;  %20696 = vmatpush3.bf16.msra.mxu0 %v22630_v19 }
 0x1b7   : > { %v2260_v10 = vpop.f32.mrf.mxu1  ;;  %20776 = vmatpush3.bf16.msra.mxu1 %v22634_v45  ;;  %20841 = vmatprep.subr.bf16.mxu0 %v23829_v56 }
 0x1b8   : > { %v23834_v18 = vadd.f32 %v2260_v10, %v1911_v57  ;;  %v20267_v20 = vpop.f32.mrf.mxu0  ;;  %20554 = vmatmul.mubr.bf16.gmra.mxu0 %v23663_v29 }
 0x1b9   : > { %v20347_v11 = vpop.f32.mrf.mxu1  ;;  %20634 = vmatmul.mubr.bf16.gmra.mxu1 %v23650_v26  ;;  %20557 = vmatprep.mubr.bf16.mxu0 %v23668_v30 }
 0x1ba   : > { %27760 = vst [vmem:[#allocation32_spill] sm:$0xff] %v23834_v18  ;;  %v1924_v16 = vpop.f32.mrf.mxu0  ;;  %20637 = vmatprep.mubr.bf16.mxu1 %v23655_v27 }
 0x1bb   : > { %v2273_v17 = vpop.f32.mrf.mxu1 }
 0x1bc   : > { %v23840_v63 = vadd.f32 %v2273_v17, %v1924_v16  ;;  %v20268_v4 = vpop.f32.mrf.mxu0 }
 0x1bd   : > { %v20348_v24 = vpop.f32.mrf.mxu1 }
 0x1be   : > { %27761 = vst [vmem:[#allocation33_spill] sm:$0xff] %v23840_v63  ;;  %v1927_v51 = vpop.f32.mrf.mxu0  ;;  %v23967_v63 = vld [vmem:[%s23514_s26 + $0x40] sm:$0xff]  }
 0x1bf   : > { %v2276_v41 = vpop.f32.mrf.mxu1 }
 0x1c0   : > { %v23842_v19 = vadd.f32 %v2276_v41, %v1927_v51  ;;  %v20271_v22 = vpop.f32.mrf.mxu0  ;;  %20558 = vmatmul.mubr.bf16.gmra.mxu0 %v23673_v31 }
 0x1c1   : > { %v20351_v45 = vpop.f32.mrf.mxu1  ;;  %20638 = vmatmul.mubr.bf16.gmra.mxu1 %v23663_v29  ;;  %20561 = vmatprep.mubr.bf16.mxu0 %v23678_v32 }
 0x1c2   : > { %27762 = vst [vmem:[#allocation34_spill] sm:$0xff] %v23842_v19  ;;  %v1940_v26 = vpop.f32.mrf.mxu0  ;;  %20641 = vmatprep.mubr.bf16.mxu1 %v23668_v30 }
 0x1c3   : > { %v2289_v27 = vpop.f32.mrf.mxu1 }
 0x1c4   : > { %v23848_v3 = vadd.f32 %v2289_v27, %v1940_v26  ;;  %v20272_v1 = vpop.f32.mrf.mxu0 }
 0x1c5   : > { %v20352_v54 = vpop.f32.mrf.mxu1 }
 0x1c6   : > { %27763 = vst [vmem:[#allocation35_spill] sm:$0xff] %v23848_v3  ;;  %v1943_v12 = vpop.f32.mrf.mxu0  ;;  %v23964_v3 = vld [vmem:[%s23514_s26 + $0x38] sm:$0xff]  }
 0x1c7   : > { %v2292_v14 = vpop.f32.mrf.mxu1 }
 0x1c8   : > { %v23850_v57 = vadd.f32 %v2292_v14, %v1943_v12  ;;  %v20275_v10 = vpop.f32.mrf.mxu0  ;;  %20562 = vmatmul.mubr.bf16.gmra.mxu0 %v23683_v33 }
 0x1c9   : > { %v20355_v20 = vpop.f32.mrf.mxu1  ;;  %20642 = vmatmul.mubr.bf16.gmra.mxu1 %v23673_v31  ;;  %20565 = vmatprep.mubr.bf16.mxu0 %v23688_v34 }
 0x1ca   : > { %27764 = vst [vmem:[#allocation36_spill] sm:$0xff] %v23850_v57  ;;  %v1956_v29 = vpop.f32.mrf.mxu0  ;;  %20645 = vmatprep.mubr.bf16.mxu1 %v23678_v32  ;;  %v22642_v57 = vld [vmem:[#allocation7 + $0x230] sm:$0xff]  }
 0x1cb   : > { %v2305_v30 = vpop.f32.mrf.mxu1 }
 0x1cc   : > { %v23856_v11 = vadd.f32 %v2305_v30, %v1956_v29  ;;  %v20276_v16 = vpop.f32.mrf.mxu0 }
 0x1cd   : > { %v20356_v17 = vpop.f32.mrf.mxu1 }
 0x1ce   : > { %27765 = vst [vmem:[#allocation37_spill] sm:$0xff] %v23856_v11  ;;  %v1959_v4 = vpop.f32.mrf.mxu0  ;;  %v23024_v11 = vld [vmem:[%s23514_s26 + $0x108] sm:$0xff]  }
 0x1cf   : > { %v2308_v24 = vpop.f32.mrf.mxu1 }
 0x1d0   : > { %v23858_v51 = vadd.f32 %v2308_v24, %v1959_v4  ;;  %v20279_v41 = vpop.f32.mrf.mxu0  ;;  %20566 = vmatmul.mubr.bf16.gmra.mxu0 %v23693_v35 }
 0x1d1   : > { %v20359_v22 = vpop.f32.mrf.mxu1  ;;  %20646 = vmatmul.mubr.bf16.gmra.mxu1 %v23683_v33  ;;  %20569 = vmatprep.mubr.bf16.mxu0 %v23698_v36 }
 0x1d2   : > { %27766 = vst [vmem:[#allocation38_spill] sm:$0xff] %v23858_v51  ;;  %v1972_v31 = vpop.f32.mrf.mxu0  ;;  %20649 = vmatprep.mubr.bf16.mxu1 %v23688_v34 }
 0x1d3   : > { %v2321_v32 = vpop.f32.mrf.mxu1 }
 0x1d4   : > { %v23864_v45 = vadd.f32 %v2321_v32, %v1972_v31  ;;  %v20280_v26 = vpop.f32.mrf.mxu0 }
 0x1d5   : > { %v20360_v27 = vpop.f32.mrf.mxu1 }
 0x1d6   : > { %27767 = vst [vmem:[#allocation39_spill] sm:$0xff] %v23864_v45  ;;  %v1975_v1 = vpop.f32.mrf.mxu0  ;;  %v23935_v45 = vld [vmem:[%s23514_s26 + $0x20] sm:$0xff]  }
 0x1d7   : > { %v2324_v54 = vpop.f32.mrf.mxu1 }
 0x1d8   : > { %v23866_v12 = vadd.f32 %v2324_v54, %v1975_v1  ;;  %v20379_v14 = vpop.f32.mrf.mxu0  ;;  %20570 = vmatmul.mubr.bf16.gmra.mxu0 %v23703_v38 }
 0x1d9   : > { %v20459_v10 = vpop.f32.mrf.mxu1  ;;  %20650 = vmatmul.mubr.bf16.gmra.mxu1 %v23693_v35  ;;  %20573 = vmatprep.mubr.bf16.mxu0 %v23708_v40 }
 0x1da   : > { %27768 = vst [vmem:[#allocation40_spill] sm:$0xff] %v23866_v12  ;;  %v23871_v33 = vadd.f32 %v20459_v10, %v20379_v14  ;;  %v2435_v34 = vpop.f32.mrf.mxu0  ;;  %20653 = vmatprep.mubr.bf16.mxu1 %v23698_v36 }
 0x1db   : > { %v2772_v20 = vpop.f32.mrf.mxu1 }
 0x1dc   : > { %v23874_v29 = vadd.f32 %v2772_v20, %v2435_v34  ;;  %v20380_v30 = vpop.f32.mrf.mxu0 }
 0x1dd   : > { %v20460_v16 = vpop.f32.mrf.mxu1 }
 0x1de   : > { %v2438_v17 = vpop.f32.mrf.mxu0 }
 0x1df   : > { %v2775_v4 = vpop.f32.mrf.mxu1 }
 0x1e0   : > { %v23876_v24 = vadd.f32 %v2775_v4, %v2438_v17  ;;  %v20383_v41 = vpop.f32.mrf.mxu0  ;;  %20574 = vmatmul.mubr.bf16.gmra.mxu0 %v23717_v50 }
 0x1e1   : > { %v20463_v35 = vpop.f32.mrf.mxu1  ;;  %20654 = vmatmul.mubr.bf16.gmra.mxu1 %v23703_v38  ;;  %20577 = vmatprep.mubr.bf16.mxu0 %v23722_v52 }
 0x1e2   : > { %v23881_v22 = vadd.f32 %v20463_v35, %v20383_v41  ;;  %v2451_v36 = vpop.f32.mrf.mxu0  ;;  %20657 = vmatprep.mubr.bf16.mxu1 %v23708_v40 }
 0x1e3   : > { %v2788_v31 = vpop.f32.mrf.mxu1 }
 0x1e4   : > { %v23884_v32 = vadd.f32 %v2788_v31, %v2451_v36  ;;  %v20384_v26 = vpop.f32.mrf.mxu0 }
 0x1e5   : > { %v20464_v27 = vpop.f32.mrf.mxu1 }
 0x1e6   : > { %v2454_v1 = vpop.f32.mrf.mxu0 }
 0x1e7   : > { %v2791_v54 = vpop.f32.mrf.mxu1 }
 0x1e8   : > { %v23886_v14 = vadd.f32 %v2791_v54, %v2454_v1  ;;  %v20387_v10 = vpop.f32.mrf.mxu0  ;;  %20578 = vmatmul.mubr.bf16.gmra.mxu0 %v23731_v7 }
 0x1e9   : > { %v20467_v38 = vpop.f32.mrf.mxu1  ;;  %20658 = vmatmul.mubr.bf16.gmra.mxu1 %v23717_v50  ;;  %20581 = vmatprep.mubr.bf16.mxu0 %v23736_v9 }
 0x1ea   : > { %v23891_v34 = vadd.f32 %v20467_v38, %v20387_v10  ;;  %v2467_v40 = vpop.f32.mrf.mxu0  ;;  %20661 = vmatprep.mubr.bf16.mxu1 %v23722_v52 }
 0x1eb   : > { %v2804_v20 = vpop.f32.mrf.mxu1 }
 0x1ec   : > { %v23894_v30 = vadd.f32 %v2804_v20, %v2467_v40  ;;  %v20388_v16 = vpop.f32.mrf.mxu0 }
 0x1ed   : > { %v20468_v17 = vpop.f32.mrf.mxu1 }
 0x1ee   : > { %v2470_v4 = vpop.f32.mrf.mxu0 }
 0x1ef   : > { %v2807_v41 = vpop.f32.mrf.mxu1 }
 0x1f0   : > { %v23896_v35 = vadd.f32 %v2807_v41, %v2470_v4  ;;  %v20391_v36 = vpop.f32.mrf.mxu0  ;;  %20582 = vmatmul.mubr.bf16.gmra.mxu0 %v23745_v25 }
 0x1f1   : > { %v20471_v50 = vpop.f32.mrf.mxu1  ;;  %20662 = vmatmul.mubr.bf16.gmra.mxu1 %v23731_v7  ;;  %20585 = vmatprep.mubr.bf16.mxu0 %v23750_v39 }
 0x1f2   : > { %v23901_v31 = vadd.f32 %v20471_v50, %v20391_v36  ;;  %v2483_v52 = vpop.f32.mrf.mxu0  ;;  %20665 = vmatprep.mubr.bf16.mxu1 %v23736_v9 }
 0x1f3   : > { %v2820_v26 = vpop.f32.mrf.mxu1 }
 0x1f4   : > { %v23904_v27 = vadd.f32 %v2820_v26, %v2483_v52  ;;  %v20392_v1 = vpop.f32.mrf.mxu0 }
 0x1f5   : > { %v20472_v54 = vpop.f32.mrf.mxu1 }
 0x1f6   : > { %v2486_v10 = vpop.f32.mrf.mxu0  ;;  %v23020_v54 = vld [vmem:[%s23514_s26 + $0xe8] sm:$0xff]  }
 0x1f7   : > { %v2823_v38 = vpop.f32.mrf.mxu1 }
 0x1f8   : > { %v23906_v40 = vadd.f32 %v2823_v38, %v2486_v10  ;;  %v20395_v20 = vpop.f32.mrf.mxu0  ;;  %20586 = vmatmul.mubr.bf16.gmra.mxu0 %v23771_v61  ;;  %v23021_v10 = vld [vmem:[%s23514_s26 + $0xf0] sm:$0xff]  }
 0x1f9   : > { %v20475_v7 = vpop.f32.mrf.mxu1  ;;  %20666 = vmatmul.mubr.bf16.gmra.mxu1 %v23745_v25  ;;  %20589 = vmatprep.mubr.bf16.mxu0 %v23776_v21 }
 0x1fa   : > { %v23911_v9 = vadd.f32 %v20475_v7, %v20395_v20  ;;  %v2499_v16 = vpop.f32.mrf.mxu0  ;;  %20669 = vmatprep.mubr.bf16.mxu1 %v23750_v39 }
 0x1fb   : > { %v2836_v17 = vpop.f32.mrf.mxu1 }
 0x1fc   : > { %v23914_v4 = vadd.f32 %v2836_v17, %v2499_v16  ;;  %v20396_v41 = vpop.f32.mrf.mxu0 }
 0x1fd   : > { %v20476_v36 = vpop.f32.mrf.mxu1 }
 0x1fe   : > { %v2502_v50 = vpop.f32.mrf.mxu0 }
 0x1ff   : > { %v2839_v52 = vpop.f32.mrf.mxu1 }
 0x200   : > { %v23916_v26 = vadd.f32 %v2839_v52, %v2502_v50  ;;  %v20399_v1 = vpop.f32.mrf.mxu0  ;;  %20590 = vmatmul.mubr.bf16.gmra.mxu0 %v23020_v54 }
 0x201   : > { %v20479_v25 = vpop.f32.mrf.mxu1  ;;  %20670 = vmatmul.mubr.bf16.gmra.mxu1 %v23771_v61  ;;  %20593 = vmatprep.mubr.bf16.mxu0 %v23021_v10  ;;  %v23022_v61 = vld [vmem:[%s23514_s26 + $0xf8] sm:$0xff]  }
 0x202   : > { %27769 = vst [vmem:[#allocation41_spill] sm:$0xff] %v23916_v26  ;;  %v23921_v39 = vadd.f32 %v20479_v25, %v20399_v1  ;;  %v2515_v38 = vpop.f32.mrf.mxu0  ;;  %20673 = vmatprep.mubr.bf16.mxu1 %v23776_v21  ;;  %v23023_v1 = vld [vmem:[%s23514_s26 + $0x100] sm:$0xff]  }
 0x203   : > { %v2852_v20 = vpop.f32.mrf.mxu1 }
 0x204   : > { %27770 = vst [vmem:[#allocation42_spill] sm:$0xff] %v23921_v39  ;;  %v23924_v7 = vadd.f32 %v2852_v20, %v2515_v38  ;;  %v20400_v16 = vpop.f32.mrf.mxu0 }
 0x205   : > { %v20480_v17 = vpop.f32.mrf.mxu1 }
 0x206   : > { %27771 = vst [vmem:[#allocation43_spill] sm:$0xff] %v23924_v7  ;;  %v2518_v41 = vpop.f32.mrf.mxu0 }
 0x207   : > { %v2855_v36 = vpop.f32.mrf.mxu1 }
 0x208   : > { %v23926_v50 = vadd.f32 %v2855_v36, %v2518_v41  ;;  %v20403_v52 = vpop.f32.mrf.mxu0  ;;  %20594 = vmatmul.mubr.bf16.gmra.mxu0 %v23022_v61 }
 0x209   : > { %v20483_v12 = vpop.f32.mrf.mxu1  ;;  %20674 = vmatmul.mubr.bf16.gmra.mxu1 %v23020_v54  ;;  %20597 = vmatprep.mubr.bf16.mxu0 %v23023_v1 }
 0x20a   : > { %27772 = vst [vmem:[#allocation44_spill] sm:$0xff] %v23926_v50  ;;  %v23930_v25 = vadd.f32 %v20483_v12, %v20403_v52  ;;  %v2531_v21 = vpop.f32.mrf.mxu0  ;;  %20677 = vmatprep.mubr.bf16.mxu1 %v23021_v10 }
 0x20b   : > { %v2868_v38 = vpop.f32.mrf.mxu1 }
 0x20c   : > { %27773 = vst [vmem:[#allocation45_spill] sm:$0xff] %v23930_v25  ;;  %v23932_v20 = vadd.f32 %v2868_v38, %v2531_v21  ;;  %v20404_v16 = vpop.f32.mrf.mxu0 }
 0x20d   : > { %v20484_v17 = vpop.f32.mrf.mxu1  ;;  %v23947_v16 = vld [vmem:[%s23514_s26 + $0x28] sm:$0xff]  }
 0x20e   : > { %27774 = vst [vmem:[#allocation46_spill] sm:$0xff] %v23932_v20  ;;  %v2534_v41 = vpop.f32.mrf.mxu0 }
 0x20f   : > { %v2871_v36 = vpop.f32.mrf.mxu1 }
 0x210   : > { %v23937_v51 = vadd.f32 %v2871_v36, %v2534_v41  ;;  %v20407_v54 = vpop.f32.mrf.mxu0  ;;  %20598 = vmatmul.mubr.bf16.gmra.mxu0 %v23024_v11  ;;  %v23950_v36 = vld [vmem:[%s23514_s26 + $0x30] sm:$0xff]  }
 0x211   : > { %v20487_v12 = vpop.f32.mrf.mxu1  ;;  %20678 = vmatmul.mubr.bf16.gmra.mxu1 %v23022_v61  ;;  %20697 = vmatprep.mubr.bf16.mxu0 %v23935_v45 }
 0x212   : > { %27775 = vst [vmem:[#allocation47_spill] sm:$0xff] %v23937_v51  ;;  %v23941_v10 = vadd.f32 %v20487_v12, %v20407_v54  ;;  %v2547_v52 = vpop.f32.mrf.mxu0  ;;  %20777 = vmatprep.mubr.bf16.mxu1 %v23935_v45 }
 0x213   : > { %v2884_v1 = vpop.f32.mrf.mxu1 }
 0x214   : > { %27776 = vst [vmem:[#allocation48_spill] sm:$0xff] %v23941_v10  ;;  %v23944_v21 = vadd.f32 %v2884_v1, %v2547_v52  ;;  %v20408_v38 = vpop.f32.mrf.mxu0 }
 0x215   : > { %v20488_v17 = vpop.f32.mrf.mxu1  ;;  %v22647_v38 = vld [vmem:[#allocation7 + $0x228] sm:$0xff]  }
 0x216   : > { %27777 = vst [vmem:[#allocation49_spill] sm:$0xff] %v23944_v21  ;;  %v2550_v41 = vpop.f32.mrf.mxu0 }
 0x217   : > { %v2887_v11 = vpop.f32.mrf.mxu1 }
 0x218   : > { %v23952_v61 = vadd.f32 %v2887_v11, %v2550_v41  ;;  %v20411_v54 = vpop.f32.mrf.mxu0  ;;  %20698 = vmatmul.mubr.bf16.vlgmr.msra.gmra.mxu0 %v23947_v16 }
 0x219   : > { %v20491_v12 = vpop.f32.mrf.mxu1  ;;  %20778 = vmatmul.mubr.bf16.vlgmr.msra.gmra.mxu1 %v23947_v16  ;;  %20842 = vmatpush3.bf16.msra.mxu0 %v23829_v56 }
 0x21a   : > { %27778 = vst [vmem:[#allocation50_spill] sm:$0xff] %v23952_v61  ;;  %v23957_v52 = vadd.f32 %v20491_v12, %v20411_v54  ;;  %v2563_v1 = vpop.f32.mrf.mxu0  ;;  %20701 = vmatprep.mubr.bf16.mxu0 %v23950_v36  ;;  %20781 = vmatprep.mubr.bf16.mxu1 %v23950_v36  ;;  %v22652_v12 = vld [vmem:[#allocation7 + $0x220] sm:$0xff]  }
 0x21b   : > { %v2900_v17 = vpop.f32.mrf.mxu1  ;;  %20843 = vmatprep.subr.bf16.mxu0 %v22642_v57 }
 0x21c   : > { %27779 = vst [vmem:[#allocation51_spill] sm:$0xff] %v23957_v52  ;;  %v23961_v41 = vadd.f32 %v2900_v17, %v2563_v1  ;;  %v20412_v11 = vpop.f32.mrf.mxu0 }
 0x21d   : > { %v20492_v19 = vpop.f32.mrf.mxu1  ;;  %20844 = vmatpush3.bf16.msra.mxu0 %v22642_v57  ;;  %v22657_v11 = vld [vmem:[#allocation7 + $0x218] sm:$0xff]  }
 0x21e   : > { %27780 = vst [vmem:[#allocation52_spill] sm:$0xff] %v23961_v41  ;;  %v2566_v56 = vpop.f32.mrf.mxu0  ;;  %20845 = vmatprep.subr.bf16.mxu0 %v22647_v38 }
 0x21f   : > { %v2903_v54 = vpop.f32.mrf.mxu1 }
 0x220   : > { %v23969_v18 = vadd.f32 %v2903_v54, %v2566_v56  ;;  %v20415_v5 = vpop.f32.mrf.mxu0  ;;  %20702 = vmatmul.mubr.bf16.gmra.mxu0 %v23964_v3 }
 0x221   : > { %v20495_v1 = vpop.f32.mrf.mxu1  ;;  %20782 = vmatmul.mubr.bf16.gmra.mxu1 %v23964_v3  ;;  %20705 = vmatprep.mubr.bf16.mxu0 %v23967_v63 }
 0x222   : > { %27781 = vst [vmem:[#allocation53_spill] sm:$0xff] %v23969_v18  ;;  %v23974_v19 = vadd.f32 %v20495_v1, %v20415_v5  ;;  %v2579_v17 = vpop.f32.mrf.mxu0  ;;  %20785 = vmatprep.mubr.bf16.mxu1 %v23967_v63  ;;  %20846 = vmatpush3.bf16.msra.mxu0 %v22647_v38  ;;  %v22662_v5 = vld [vmem:[#allocation7 + $0x210] sm:$0xff]  }
 0x223   : > { %v2916_v57 = vpop.f32.mrf.mxu1  ;;  %20847 = vmatprep.subr.bf16.mxu0 %v22652_v12 }
 0x224   : > { %27782 = vst [vmem:[#allocation54_spill] sm:$0xff] %v23974_v19  ;;  %v23977_v56 = vadd.f32 %v2916_v57, %v2579_v17  ;;  %v20416_v54 = vpop.f32.mrf.mxu0  ;;  %v23999_v19 = vld [vmem:[%s23514_s26 + $0x60] sm:$0xff]  }
 0x225   : > { %v20496_v28 = vpop.f32.mrf.mxu1  ;;  %v22667_v54 = vld [vmem:[#allocation7 + $0x208] sm:$0xff]  }
 0x226   : > { %27783 = vst [vmem:[#allocation55_spill] sm:$0xff] %v23977_v56  ;;  %v2582_v46 = vpop.f32.mrf.mxu0  ;;  %20848 = vmatpush3.bf16.msra.mxu0 %v22652_v12 }
 0x227   : > { %v2919_v18 = vpop.f32.mrf.mxu1  ;;  %20849 = vmatprep.subr.bf16.mxu0 %v22657_v11 }
 0x228   : > { %v23985_v1 = vadd.f32 %v2919_v18, %v2582_v46  ;;  %v20419_v38 = vpop.f32.mrf.mxu0  ;;  %20706 = vmatmul.mubr.bf16.gmra.mxu0 %v23980_v42 }
 0x229   : > { %v20499_v17 = vpop.f32.mrf.mxu1  ;;  %20786 = vmatmul.mubr.bf16.gmra.mxu1 %v23980_v42  ;;  %20709 = vmatprep.mubr.bf16.mxu0 %v23983_v6 }
 0x22a   : > { %27784 = vst [vmem:[#allocation56_spill] sm:$0xff] %v23985_v1  ;;  %v23990_v28 = vadd.f32 %v20499_v17, %v20419_v38  ;;  %v2595_v57 = vpop.f32.mrf.mxu0  ;;  %20789 = vmatprep.mubr.bf16.mxu1 %v23983_v6  ;;  %20850 = vmatpush3.bf16.msra.mxu0 %v22657_v11  ;;  %v23996_v1 = vld [vmem:[%s23514_s26 + $0x58] sm:$0xff]   ;;  %v22672_v38 = vld [vmem:[#allocation7 + $0x200] sm:$0xff]  }
 0x22b   : > { %v2932_v12 = vpop.f32.mrf.mxu1  ;;  %20851 = vmatprep.subr.bf16.mxu0 %v22662_v5 }
 0x22c   : > { %27785 = vst [vmem:[#allocation57_spill] sm:$0xff] %v23990_v28  ;;  %v23993_v46 = vadd.f32 %v2932_v12, %v2595_v57  ;;  %v20420_v18 = vpop.f32.mrf.mxu0 }
 0x22d   : > { %v20500_v56 = vpop.f32.mrf.mxu1 }
 0x22e   : > { %27786 = vst [vmem:[#allocation58_spill] sm:$0xff] %v23993_v46  ;;  %v2598_v0 = vpop.f32.mrf.mxu0  ;;  %20852 = vmatpush3.bf16.msra.mxu0 %v22662_v5  ;;  %v24015_v46 = vld [vmem:[%s23514_s26 + $0x70] sm:$0xff]  }
 0x22f   : > { %v2935_v41 = vpop.f32.mrf.mxu1  ;;  %20853 = vmatprep.subr.bf16.mxu0 %v22667_v54 }
 0x230   : > { %v24001_v17 = vadd.f32 %v2935_v41, %v2598_v0  ;;  %v20423_v11 = vpop.f32.mrf.mxu0  ;;  %20710 = vmatmul.mubr.bf16.gmra.mxu0 %v23996_v1  ;;  %v24012_v41 = vld [vmem:[%s23514_s26 + $0x68] sm:$0xff]  }
 0x231   : > { %v20503_v57 = vpop.f32.mrf.mxu1  ;;  %20790 = vmatmul.mubr.bf16.gmra.mxu1 %v23996_v1  ;;  %20713 = vmatprep.mubr.bf16.mxu0 %v23999_v19 }
 0x232   : > { %27787 = vst [vmem:[#allocation59_spill] sm:$0xff] %v24001_v17  ;;  %v24006_v56 = vadd.f32 %v20503_v57, %v20423_v11  ;;  %v2611_v12 = vpop.f32.mrf.mxu0  ;;  %20793 = vmatprep.mubr.bf16.mxu1 %v23999_v19  ;;  %20854 = vmatpush3.bf16.msra.mxu0 %v22667_v54 }
 0x233   : > { %v2948_v5 = vpop.f32.mrf.mxu1  ;;  %20855 = vmatprep.subr.bf16.mxu0 %v22672_v38 }
 0x234   : > { %27788 = vst [vmem:[#allocation60_spill] sm:$0xff] %v24006_v56  ;;  %v24009_v18 = vadd.f32 %v2948_v5, %v2611_v12  ;;  %v20424_v0 = vpop.f32.mrf.mxu0 }
 0x235   : > { %v20504_v17 = vpop.f32.mrf.mxu1 }
 0x236   : > { %27789 = vst [vmem:[#allocation61_spill] sm:$0xff] %v24009_v18  ;;  %v2614_v28 = vpop.f32.mrf.mxu0  ;;  %20856 = vmatpush3.bf16.msra.mxu0 %v22672_v38  ;;  %v24028_v18 = vld [vmem:[%s23514_s26 + $0x78] sm:$0xff]  }
 0x237   : > { %v2951_v11 = vpop.f32.mrf.mxu1 }
 0x238   : > { %v24017_v57 = vadd.f32 %v2951_v11, %v2614_v28  ;;  %v20427_v56 = vpop.f32.mrf.mxu0  ;;  %20714 = vmatmul.mubr.bf16.gmra.mxu0 %v24012_v41  ;;  %v24031_v11 = vld [vmem:[%s23514_s26 + $0x80] sm:$0xff]  }
 0x239   : > { %v20507_v54 = vpop.f32.mrf.mxu1  ;;  %20794 = vmatmul.mubr.bf16.gmra.mxu1 %v24012_v41  ;;  %20717 = vmatprep.mubr.bf16.mxu0 %v24015_v46 }
 0x23a   : > { %27790 = vst [vmem:[#allocation62_spill] sm:$0xff] %v24017_v57  ;;  %v24022_v12 = vadd.f32 %v20507_v54, %v20427_v56  ;;  %v2627_v17 = vpop.f32.mrf.mxu0  ;;  %20797 = vmatprep.mubr.bf16.mxu1 %v24015_v46 }
 0x23b   : > { %v2964_v5 = vpop.f32.mrf.mxu1 }
 0x23c   : > { %27791 = vst [vmem:[#allocation63_spill] sm:$0xff] %v24022_v12  ;;  %v24025_v0 = vadd.f32 %v2964_v5, %v2627_v17  ;;  %v20428_v38 = vpop.f32.mrf.mxu0  ;;  %v24044_v12 = vld [vmem:[%s23514_s26 + $0x88] sm:$0xff]  }
 0x23d   : > { %v20508_v28 = vpop.f32.mrf.mxu1 }
 0x23e   : > { %27792 = vst [vmem:[#allocation64_spill] sm:$0xff] %v24025_v0  ;;  %v2630_v57 = vpop.f32.mrf.mxu0 }
 0x23f   : > { %v2967_v8 = vpop.f32.mrf.mxu1 }
 0x240   : > { %v24033_v52 = vadd.f32 %v2967_v8, %v2630_v57  ;;  %v20431_v56 = vpop.f32.mrf.mxu0  ;;  %20718 = vmatmul.mubr.bf16.gmra.mxu0 %v24028_v18  ;;  %v24047_v57 = vld [vmem:[%s23514_s26 + $0x90] sm:$0xff]  }
 0x241   : > { %v20511_v54 = vpop.f32.mrf.mxu1  ;;  %20798 = vmatmul.mubr.bf16.gmra.mxu1 %v24028_v18  ;;  %20721 = vmatprep.mubr.bf16.mxu0 %v24031_v11 }
 0x242   : > { %27793 = vst [vmem:[#allocation65_spill] sm:$0xff] %v24033_v52  ;;  %v24038_v17 = vadd.f32 %v20511_v54, %v20431_v56  ;;  %v2643_v5 = vpop.f32.mrf.mxu0  ;;  %20801 = vmatprep.mubr.bf16.mxu1 %v24031_v11 }
 0x243   : > { %v2980_v38 = vpop.f32.mrf.mxu1 }
 0x244   : > { %27794 = vst [vmem:[#allocation66_spill] sm:$0xff] %v24038_v17  ;;  %v24041_v28 = vadd.f32 %v2980_v38, %v2643_v5  ;;  %v20432_v0 = vpop.f32.mrf.mxu0  ;;  %v24060_v17 = vld [vmem:[%s23514_s26 + $0x98] sm:$0xff]  }
 0x245   : > { %v20512_v8 = vpop.f32.mrf.mxu1 }
 0x246   : > { %27795 = vst [vmem:[#allocation67_spill] sm:$0xff] %v24041_v28  ;;  %v2646_v52 = vpop.f32.mrf.mxu0 }
 0x247   : > { %v2983_v61 = vpop.f32.mrf.mxu1 }
 0x248   : > { %v24049_v49 = vadd.f32 %v2983_v61, %v2646_v52  ;;  %v20435_v56 = vpop.f32.mrf.mxu0  ;;  %20722 = vmatmul.mubr.bf16.gmra.mxu0 %v24044_v12  ;;  %v24063_v52 = vld [vmem:[%s23514_s26 + $0xa0] sm:$0xff]  }
 0x249   : > { %v20515_v54 = vpop.f32.mrf.mxu1  ;;  %20802 = vmatmul.mubr.bf16.gmra.mxu1 %v24044_v12  ;;  %20725 = vmatprep.mubr.bf16.mxu0 %v24047_v57 }
 0x24a   : > { %27796 = vst [vmem:[#allocation68_spill] sm:$0xff] %v24049_v49  ;;  %v24054_v0 = vadd.f32 %v20515_v54, %v20435_v56  ;;  %v2659_v5 = vpop.f32.mrf.mxu0  ;;  %20805 = vmatprep.mubr.bf16.mxu1 %v24047_v57 }
 0x24b   : > { %v2996_v38 = vpop.f32.mrf.mxu1 }
 0x24c   : > { %27797 = vst [vmem:[#allocation69_spill] sm:$0xff] %v24054_v0  ;;  %v24057_v8 = vadd.f32 %v2996_v38, %v2659_v5  ;;  %v20436_v28 = vpop.f32.mrf.mxu0  ;;  %v24076_v0 = vld [vmem:[%s23514_s26 + $0xa8] sm:$0xff]  }
 0x24d   : > { %v20516_v61 = vpop.f32.mrf.mxu1 }
 0x24e   : > { %27798 = vst [vmem:[#allocation70_spill] sm:$0xff] %v24057_v8  ;;  %v2662_v49 = vpop.f32.mrf.mxu0 }
 0x24f   : > { %v2999_v21 = vpop.f32.mrf.mxu1 }
 0x250   : > { %v24065_v2 = vadd.f32 %v2999_v21, %v2662_v49  ;;  %v20439_v56 = vpop.f32.mrf.mxu0  ;;  %20726 = vmatmul.mubr.bf16.gmra.mxu0 %v24060_v17  ;;  %v24079_v21 = vld [vmem:[%s23514_s26 + $0xb0] sm:$0xff]  }
 0x251   : > { %v20519_v54 = vpop.f32.mrf.mxu1  ;;  %20806 = vmatmul.mubr.bf16.gmra.mxu1 %v24060_v17  ;;  %20729 = vmatprep.mubr.bf16.mxu0 %v24063_v52 }
 0x252   : > { %27799 = vst [vmem:[#allocation71_spill] sm:$0xff] %v24065_v2  ;;  %v24070_v28 = vadd.f32 %v20519_v54, %v20439_v56  ;;  %v2675_v5 = vpop.f32.mrf.mxu0  ;;  %20809 = vmatprep.mubr.bf16.mxu1 %v24063_v52 }
 0x253   : > { %v3012_v38 = vpop.f32.mrf.mxu1 }
 0x254   : > { %27800 = vst [vmem:[#allocation72_spill] sm:$0xff] %v24070_v28  ;;  %v24073_v61 = vadd.f32 %v3012_v38, %v2675_v5  ;;  %v20440_v8 = vpop.f32.mrf.mxu0  ;;  %v24092_v28 = vld [vmem:[%s23514_s26 + $0xb8] sm:$0xff]  }
 0x255   : > { %v20520_v49 = vpop.f32.mrf.mxu1 }
 0x256   : > { %27801 = vst [vmem:[#allocation73_spill] sm:$0xff] %v24073_v61  ;;  %v2678_v2 = vpop.f32.mrf.mxu0 }
 0x257   : > { %v3015_v10 = vpop.f32.mrf.mxu1 }
 0x258   : > { %v24081_v51 = vadd.f32 %v3015_v10, %v2678_v2  ;;  %v20539_v56 = vpop.f32.mrf.mxu0  ;;  %20730 = vmatmul.mubr.bf16.gmra.mxu0 %v24076_v0  ;;  %v24095_v10 = vld [vmem:[%s23514_s26 + $0xc0] sm:$0xff]  }
 0x259   : > { %v20619_v54 = vpop.f32.mrf.mxu1  ;;  %20810 = vmatmul.mubr.bf16.gmra.mxu1 %v24076_v0  ;;  %20733 = vmatprep.mubr.bf16.mxu0 %v24079_v21 }
 0x25a   : > { %27802 = vst [vmem:[#allocation74_spill] sm:$0xff] %v24081_v51  ;;  %v24086_v8 = vadd.f32 %v20619_v54, %v20539_v56  ;;  %v3126_v5 = vpop.f32.mrf.mxu0  ;;  %20813 = vmatprep.mubr.bf16.mxu1 %v24079_v21 }
 0x25b   : > { %v3463_v38 = vpop.f32.mrf.mxu1 }
 0x25c   : > { %27803 = vst [vmem:[#allocation75_spill] sm:$0xff] %v24086_v8  ;;  %v24089_v49 = vadd.f32 %v3463_v38, %v3126_v5  ;;  %v20540_v61 = vpop.f32.mrf.mxu0  ;;  %v24108_v8 = vld [vmem:[%s23514_s26 + $0xc8] sm:$0xff]  }
 0x25d   : > { %v20620_v2 = vpop.f32.mrf.mxu1 }
 0x25e   : > { %27804 = vst [vmem:[#allocation76_spill] sm:$0xff] %v24089_v49  ;;  %v3129_v51 = vpop.f32.mrf.mxu0 }
 0x25f   : > { %v3466_v15 = vpop.f32.mrf.mxu1 }
 0x260   : > { %v24097_v20 = vadd.f32 %v3466_v15, %v3129_v51  ;;  %v20543_v56 = vpop.f32.mrf.mxu0  ;;  %20734 = vmatmul.mubr.bf16.gmra.mxu0 %v24092_v28  ;;  %v24111_v51 = vld [vmem:[%s23514_s26 + $0xd0] sm:$0xff]  }
 0x261   : > { %v20623_v54 = vpop.f32.mrf.mxu1  ;;  %20814 = vmatmul.mubr.bf16.gmra.mxu1 %v24092_v28  ;;  %20737 = vmatprep.mubr.bf16.mxu0 %v24095_v10 }
 0x262   : > { %27805 = vst [vmem:[#allocation77_spill] sm:$0xff] %v24097_v20  ;;  %v24102_v61 = vadd.f32 %v20623_v54, %v20543_v56  ;;  %v3142_v5 = vpop.f32.mrf.mxu0  ;;  %20817 = vmatprep.mubr.bf16.mxu1 %v24095_v10 }
 0x263   : > { %v3479_v38 = vpop.f32.mrf.mxu1 }
 0x264   : > { %27806 = vst [vmem:[#allocation78_spill] sm:$0xff] %v24102_v61  ;;  %v24105_v2 = vadd.f32 %v3479_v38, %v3142_v5  ;;  %v20544_v49 = vpop.f32.mrf.mxu0  ;;  %v24124_v61 = vld [vmem:[%s23514_s26 + $0xd8] sm:$0xff]  }
 0x265   : > { %v20624_v15 = vpop.f32.mrf.mxu1 }
 0x266   : > { %27807 = vst [vmem:[#allocation79_spill] sm:$0xff] %v24105_v2  ;;  %v3145_v20 = vpop.f32.mrf.mxu0 }
 0x267   : > { %v3482_v58 = vpop.f32.mrf.mxu1 }
 0x268   : > { %v24113_v25 = vadd.f32 %v3482_v58, %v3145_v20  ;;  %v20547_v56 = vpop.f32.mrf.mxu0  ;;  %20738 = vmatmul.mubr.bf16.gmra.mxu0 %v24108_v8  ;;  %v24127_v20 = vld [vmem:[%s23514_s26 + $0xe0] sm:$0xff]  }
 0x269   : > { %v20627_v54 = vpop.f32.mrf.mxu1  ;;  %20818 = vmatmul.mubr.bf16.gmra.mxu1 %v24108_v8  ;;  %20741 = vmatprep.mubr.bf16.mxu0 %v24111_v51 }
 0x26a   : > { %27808 = vst [vmem:[#allocation80_spill] sm:$0xff] %v24113_v25  ;;  %v24118_v49 = vadd.f32 %v20627_v54, %v20547_v56  ;;  %v3158_v5 = vpop.f32.mrf.mxu0  ;;  %20821 = vmatprep.mubr.bf16.mxu1 %v24111_v51 }
 0x26b   : > { %v3495_v38 = vpop.f32.mrf.mxu1 }
 0x26c   : > { %27809 = vst [vmem:[#allocation81_spill] sm:$0xff] %v24118_v49  ;;  %v24121_v15 = vadd.f32 %v3495_v38, %v3158_v5  ;;  %v20548_v2 = vpop.f32.mrf.mxu0  ;;  %v24140_v49 = vld [vmem:[%s23514_s26 + $0xe8] sm:$0xff]  }
 0x26d   : > { %v20628_v58 = vpop.f32.mrf.mxu1 }
 0x26e   : > { %27810 = vst [vmem:[#allocation82_spill] sm:$0xff] %v24121_v15  ;;  %v3161_v25 = vpop.f32.mrf.mxu0 }
 0x26f   : > { %v3498_v50 = vpop.f32.mrf.mxu1 }
 0x270   : > { %v24129_v47 = vadd.f32 %v3498_v50, %v3161_v25  ;;  %v20551_v56 = vpop.f32.mrf.mxu0  ;;  %20742 = vmatmul.mubr.bf16.gmra.mxu0 %v24124_v61  ;;  %v24143_v25 = vld [vmem:[%s23514_s26 + $0xf0] sm:$0xff]  }
 0x271   : > { %v20631_v54 = vpop.f32.mrf.mxu1  ;;  %20822 = vmatmul.mubr.bf16.gmra.mxu1 %v24124_v61  ;;  %20745 = vmatprep.mubr.bf16.mxu0 %v24127_v20 }
 0x272   : > { %27811 = vst [vmem:[#allocation83_spill] sm:$0xff] %v24129_v47  ;;  %v24134_v2 = vadd.f32 %v20631_v54, %v20551_v56  ;;  %v3174_v5 = vpop.f32.mrf.mxu0  ;;  %20825 = vmatprep.mubr.bf16.mxu1 %v24127_v20 }
 0x273   : > { %v3511_v38 = vpop.f32.mrf.mxu1 }
 0x274   : > { %27812 = vst [vmem:[#allocation84_spill] sm:$0xff] %v24134_v2  ;;  %v24137_v58 = vadd.f32 %v3511_v38, %v3174_v5  ;;  %v20552_v15 = vpop.f32.mrf.mxu0  ;;  %v24156_v2 = vld [vmem:[%s23514_s26 + $0xf8] sm:$0xff]  }
 0x275   : > { %v20632_v50 = vpop.f32.mrf.mxu1  ;;  %27817 = vst [vmem:[#allocation89_spill] sm:$0xff] %v24156_v2 }
 0x276   : > { %27813 = vst [vmem:[#allocation85_spill] sm:$0xff] %v24137_v58  ;;  %v3177_v47 = vpop.f32.mrf.mxu0 }
 0x277   : > { %v3514_v7 = vpop.f32.mrf.mxu1 }
 0x278   : > { %v24145_v37 = vadd.f32 %v3514_v7, %v3177_v47  ;;  %v20555_v56 = vpop.f32.mrf.mxu0  ;;  %20746 = vmatmul.mubr.bf16.gmra.mxu0 %v24140_v49  ;;  %v24159_v7 = vld [vmem:[%s23514_s26 + $0x100] sm:$0xff]  }
 0x279   : > { %v20635_v54 = vpop.f32.mrf.mxu1  ;;  %20826 = vmatmul.mubr.bf16.gmra.mxu1 %v24140_v49  ;;  %20749 = vmatprep.mubr.bf16.mxu0 %v24143_v25  ;;  %27818 = vst [vmem:[#allocation90_spill] sm:$0xff] %v24159_v7 }
 0x27a   : > { %27814 = vst [vmem:[#allocation86_spill] sm:$0xff] %v24145_v37  ;;  %v24150_v15 = vadd.f32 %v20635_v54, %v20555_v56  ;;  %v3190_v5 = vpop.f32.mrf.mxu0  ;;  %20829 = vmatprep.mubr.bf16.mxu1 %v24143_v25  ;;  %v22675_v37 = vld [vmem:[#allocation9 + $0xf8] sm:$0xff]  }
 0x27b   : > { %v3527_v38 = vpop.f32.mrf.mxu1  ;;  %20921 = vmatprep.subr.bf16.mxu1 %v22675_v37 }
 0x27c   : > { %27815 = vst [vmem:[#allocation87_spill] sm:$0xff] %v24150_v15  ;;  %v24153_v50 = vadd.f32 %v3527_v38, %v3190_v5  ;;  %v20556_v58 = vpop.f32.mrf.mxu0  ;;  %20922 = vmatpush3.bf16.msra.mxu1 %v22675_v37  ;;  %v24174_v15 = vld [vmem:[%s23514_s26 + $0x108] sm:$0xff]  }
 0x27d   : > { %v20636_v47 = vpop.f32.mrf.mxu1  ;;  %27823 = vst [vmem:[#allocation95_spill] sm:$0xff] %v24174_v15 }
 0x27e   : > { %27816 = vst [vmem:[#allocation88_spill] sm:$0xff] %v24153_v50  ;;  %v24161_v39 = vpop.f32.mrf.mxu0 }
 0x27f   : > { %27819 = vst [vmem:[#allocation91_spill] sm:$0xff] %v24161_v39  ;;  %v24163_v26 = vpop.f32.mrf.mxu1  ;;  %v24177_v39 = vld [vmem:[%s23514_s26 + $0x110] sm:$0xff]  }
 0x280   : > { %27820 = vst [vmem:[#allocation92_spill] sm:$0xff] %v24163_v26  ;;  %v20559_v56 = vpop.f32.mrf.mxu0  ;;  %20750 = vmatmul.mubr.bf16.gmra.mxu0 %v24156_v2 }
 0x281   : > { %v20639_v54 = vpop.f32.mrf.mxu1  ;;  %20830 = vmatmul.mubr.bf16.gmra.mxu1 %v24156_v2  ;;  %20753 = vmatprep.mubr.bf16.mxu0 %v24159_v7 }
 0x282   : > { %v24168_v58 = vadd.f32 %v20639_v54, %v20559_v56  ;;  %v3206_v5 = vpop.f32.mrf.mxu0  ;;  %20833 = vmatprep.mubr.bf16.mxu1 %v24159_v7 }
 0x283   : > { %v3543_v38 = vpop.f32.mrf.mxu1 }
 0x284   : > { %27821 = vst [vmem:[#allocation93_spill] sm:$0xff] %v24168_v58  ;;  %v24171_v47 = vadd.f32 %v3543_v38, %v3206_v5  ;;  %v20560_v50 = vpop.f32.mrf.mxu0 }
 0x285   : > { %v20640_v26 = vpop.f32.mrf.mxu1 }
 0x286   : > { %27822 = vst [vmem:[#allocation94_spill] sm:$0xff] %v24171_v47  ;;  %v24179_v37 = vpop.f32.mrf.mxu0  ;;  %v24192_v47 = vld [vmem:[%s23514_s26 + $0x118] sm:$0xff]  }
 0x287   : > { %27824 = vst [vmem:[#allocation96_spill] sm:$0xff] %v24179_v37  ;;  %v24181_v2 = vpop.f32.mrf.mxu1  ;;  %27828 = vst [vmem:[#allocation100_spill] sm:$0xff] %v24192_v47 }
 0x288   : > { %27825 = vst [vmem:[#allocation97_spill] sm:$0xff] %v24181_v2  ;;  %v20563_v60 = vpop.f32.mrf.mxu0  ;;  %20754 = vmatmul.mubr.bf16.gmra.mxu0 %v24174_v15  ;;  %v22676_v2 = vld [vmem:[#allocation9 + $0xf0] sm:$0xff]  }
 0x289   : > { %v20643_v56 = vpop.f32.mrf.mxu1  ;;  %20834 = vmatmul.mubr.bf16.gmra.mxu1 %v24174_v15  ;;  %20757 = vmatprep.mubr.bf16.mxu0 %v24177_v39 }
 0x28a   : > { %v24186_v54 = vadd.f32 %v20643_v56, %v20563_v60  ;;  %v3222_v50 = vpop.f32.mrf.mxu0  ;;  %20837 = vmatprep.mubr.bf16.mxu1 %v24177_v39  ;;  %20923 = vmatprep.subr.bf16.mxu1 %v22676_v2 }
 0x28b   : > { %v3559_v26 = vpop.f32.mrf.mxu1  ;;  %20924 = vmatpush3.bf16.msra.mxu1 %v22676_v2 }
 0x28c   : > { %27826 = vst [vmem:[#allocation98_spill] sm:$0xff] %v24186_v54  ;;  %v24189_v5 = vadd.f32 %v3559_v26, %v3222_v50  ;;  %v20564_v38 = vpop.f32.mrf.mxu0 }
 0x28d   : > { %v20644_v58 = vpop.f32.mrf.mxu1 }
 0x28e   : > { %27827 = vst [vmem:[#allocation99_spill] sm:$0xff] %v24189_v5  ;;  %v24194_v37 = vpop.f32.mrf.mxu0 }
 0x28f   : > { %27829 = vst [vmem:[#allocation101_spill] sm:$0xff] %v24194_v37  ;;  %v24196_v7 = vpop.f32.mrf.mxu1 }
 0x290   : > { %27830 = vst [vmem:[#allocation102_spill] sm:$0xff] %v24196_v7  ;;  %v20567_v15 = vpop.f32.mrf.mxu0  ;;  %20758 = vmatmul.mubr.bf16.gmra.mxu0 %v24192_v47 }
 0x291   : > { %v20647_v60 = vpop.f32.mrf.mxu1  ;;  %20838 = vmatmul.mubr.bf16.gmra.mxu1 %v24192_v47  ;;  %20857 = vmatprep.mubr.bf16.mxu0 %v23935_v45 }
 0x292   : > { %v24201_v56 = vadd.f32 %v20647_v60, %v20567_v15  ;;  %v3238_v50 = vpop.f32.mrf.mxu0 }
 0x293   : > { %v3575_v26 = vpop.f32.mrf.mxu1 }
 0x294   : > { %27831 = vst [vmem:[#allocation103_spill] sm:$0xff] %v24201_v56  ;;  %v24203_v58 = vadd.f32 %v3575_v26, %v3238_v50  ;;  %v20568_v38 = vpop.f32.mrf.mxu0 }
 0x295   : > { %v20648_v5 = vpop.f32.mrf.mxu1  ;;  %v22677_v38 = vld [vmem:[#allocation9 + $0xe8] sm:$0xff]  }
 0x296   : > { %27832 = vst [vmem:[#allocation104_spill] sm:$0xff] %v24203_v58  ;;  %v24205_v54 = vpop.f32.mrf.mxu0  ;;  %20925 = vmatprep.subr.bf16.mxu1 %v22677_v38 }
 0x297   : > { %v24207_v7 = vpop.f32.mrf.mxu1  ;;  %20926 = vmatpush3.bf16.msra.mxu1 %v22677_v38 }
 0x298   : > { %v20571_v37 = vpop.f32.mrf.mxu0  ;;  %20858 = vmatmul.mubr.bf16.vlgmr.msra.gmra.mxu0 %v23947_v16 }
 0x299   : > { %v20651_v2 = vpop.f32.mrf.mxu1  ;;  %20861 = vmatprep.mubr.bf16.mxu0 %v23950_v36 }
 0x29a   : > { %v24211_v47 = vadd.f32 %v20651_v2, %v20571_v37  ;;  %v3254_v45 = vpop.f32.mrf.mxu0 }
 0x29b   : > { %v3591_v15 = vpop.f32.mrf.mxu1 }
 0x29c   : > { %27833 = vst [vmem:[#allocation105_spill] sm:$0xff] %v24211_v47  ;;  %v24213_v60 = vadd.f32 %v3591_v15, %v3254_v45  ;;  %v20572_v50 = vpop.f32.mrf.mxu0 }
 0x29d   : > { %v20652_v26 = vpop.f32.mrf.mxu1 }
 0x29e   : > { %27834 = vst [vmem:[#allocation106_spill] sm:$0xff] %v24213_v60  ;;  %v24215_v5 = vpop.f32.mrf.mxu0 }
 0x29f   : > { %v24217_v58 = vpop.f32.mrf.mxu1 }
 0x2a0   : > { %v20575_v56 = vpop.f32.mrf.mxu0  ;;  %20862 = vmatmul.mubr.bf16.gmra.mxu0 %v23964_v3 }
 0x2a1   : > { %v20655_v16 = vpop.f32.mrf.mxu1  ;;  %20865 = vmatprep.mubr.bf16.mxu0 %v23967_v63 }
 0x2a2   : > { %v24221_v36 = vadd.f32 %v20655_v16, %v20575_v56  ;;  %v3270_v37 = vpop.f32.mrf.mxu0 }
 0x2a3   : > { %v3607_v2 = vpop.f32.mrf.mxu1 }
 0x2a4   : > { %27835 = vst [vmem:[#allocation107_spill] sm:$0xff] %v24221_v36  ;;  %v24223_v45 = vadd.f32 %v3607_v2, %v3270_v37  ;;  %v20576_v15 = vpop.f32.mrf.mxu0 }
 0x2a5   : > { %v20656_v50 = vpop.f32.mrf.mxu1  ;;  %v22678_v15 = vld [vmem:[#allocation9 + $0xe0] sm:$0xff]  }
 0x2a6   : > { %27836 = vst [vmem:[#allocation108_spill] sm:$0xff] %v24223_v45  ;;  %v24225_v26 = vpop.f32.mrf.mxu0  ;;  %20927 = vmatprep.subr.bf16.mxu1 %v22678_v15 }
 0x2a7   : > { %v24227_v60 = vpop.f32.mrf.mxu1  ;;  %20928 = vmatpush3.bf16.msra.mxu1 %v22678_v15 }
 0x2a8   : > { %v20579_v47 = vpop.f32.mrf.mxu0  ;;  %20866 = vmatmul.mubr.bf16.gmra.mxu0 %v23980_v42 }
 0x2a9   : > { %v20659_v3 = vpop.f32.mrf.mxu1  ;;  %20869 = vmatprep.mubr.bf16.mxu0 %v23983_v6 }
 0x2aa   : > { %v24231_v38 = vadd.f32 %v20659_v3, %v20579_v47  ;;  %v3286_v63 = vpop.f32.mrf.mxu0 }
 0x2ab   : > { %v3623_v56 = vpop.f32.mrf.mxu1 }
 0x2ac   : > { %27837 = vst [vmem:[#allocation109_spill] sm:$0xff] %v24231_v38  ;;  %v24233_v16 = vadd.f32 %v3623_v56, %v3286_v63  ;;  %v20580_v37 = vpop.f32.mrf.mxu0 }
 0x2ad   : > { %v20660_v2 = vpop.f32.mrf.mxu1 }
 0x2ae   : > { %27838 = vst [vmem:[#allocation110_spill] sm:$0xff] %v24233_v16  ;;  %v24235_v50 = vpop.f32.mrf.mxu0 }
 0x2af   : > { %v24237_v45 = vpop.f32.mrf.mxu1 }
 0x2b0   : > { %v20583_v36 = vpop.f32.mrf.mxu0  ;;  %20870 = vmatmul.mubr.bf16.gmra.mxu0 %v23996_v1 }
 0x2b1   : > { %v20663_v42 = vpop.f32.mrf.mxu1  ;;  %20873 = vmatprep.mubr.bf16.mxu0 %v23999_v19 }
 0x2b2   : > { %v24241_v6 = vadd.f32 %v20663_v42, %v20583_v36  ;;  %v3302_v47 = vpop.f32.mrf.mxu0 }
 0x2b3   : > { %v3639_v3 = vpop.f32.mrf.mxu1 }
 0x2b4   : > { %27839 = vst [vmem:[#allocation111_spill] sm:$0xff] %v24241_v6  ;;  %v24243_v63 = vadd.f32 %v3639_v3, %v3302_v47  ;;  %v20584_v56 = vpop.f32.mrf.mxu0 }
 0x2b5   : > { %v20664_v37 = vpop.f32.mrf.mxu1  ;;  %v22679_v56 = vld [vmem:[#allocation9 + $0xd8] sm:$0xff]  }
 0x2b6   : > { %27840 = vst [vmem:[#allocation112_spill] sm:$0xff] %v24243_v63  ;;  %v24245_v2 = vpop.f32.mrf.mxu0  ;;  %20929 = vmatprep.subr.bf16.mxu1 %v22679_v56 }
 0x2b7   : > { %v24247_v16 = vpop.f32.mrf.mxu1  ;;  %20930 = vmatpush3.bf16.msra.mxu1 %v22679_v56 }
 0x2b8   : > { %v20587_v38 = vpop.f32.mrf.mxu0  ;;  %20874 = vmatmul.mubr.bf16.gmra.mxu0 %v24012_v41 }
 0x2b9   : > { %v20667_v1 = vpop.f32.mrf.mxu1  ;;  %20877 = vmatprep.mubr.bf16.mxu0 %v24015_v46 }
 0x2ba   : > { %v24251_v15 = vadd.f32 %v20667_v1, %v20587_v38  ;;  %v3318_v19 = vpop.f32.mrf.mxu0 }
 0x2bb   : > { %v3655_v36 = vpop.f32.mrf.mxu1 }
 0x2bc   : > { %27841 = vst [vmem:[#allocation113_spill] sm:$0xff] %v24251_v15  ;;  %v24253_v42 = vadd.f32 %v3655_v36, %v3318_v19  ;;  %v20588_v47 = vpop.f32.mrf.mxu0 }
 0x2bd   : > { %v20668_v3 = vpop.f32.mrf.mxu1 }
 0x2be   : > { %27842 = vst [vmem:[#allocation114_spill] sm:$0xff] %v24253_v42  ;;  %v24255_v37 = vpop.f32.mrf.mxu0 }
 0x2bf   : > { %v24257_v63 = vpop.f32.mrf.mxu1 }
 0x2c0   : > { %v20591_v6 = vpop.f32.mrf.mxu0  ;;  %20878 = vmatmul.mubr.bf16.gmra.mxu0 %v24028_v18 }
 0x2c1   : > { %v20671_v41 = vpop.f32.mrf.mxu1  ;;  %20881 = vmatprep.mubr.bf16.mxu0 %v24031_v11 }
 0x2c2   : > { %v24261_v46 = vadd.f32 %v20671_v41, %v20591_v6  ;;  %v3334_v38 = vpop.f32.mrf.mxu0 }
 0x2c3   : > { %v3671_v1 = vpop.f32.mrf.mxu1 }
 0x2c4   : > { %27843 = vst [vmem:[#allocation115_spill] sm:$0xff] %v24261_v46  ;;  %v24263_v19 = vadd.f32 %v3671_v1, %v3334_v38  ;;  %v20592_v36 = vpop.f32.mrf.mxu0 }
 0x2c5   : > { %v20672_v47 = vpop.f32.mrf.mxu1  ;;  %v22680_v36 = vld [vmem:[#allocation9 + $0xd0] sm:$0xff]  }
 0x2c6   : > { %27844 = vst [vmem:[#allocation116_spill] sm:$0xff] %v24263_v19  ;;  %v24265_v3 = vpop.f32.mrf.mxu0  ;;  %v22681_v19 = vld [vmem:[#allocation9 + $0x38] sm:$0xff]   ;;  %20931 = vmatprep.subr.bf16.mxu1 %v22680_v36 }
 0x2c7   : > { %27845 = vst [vmem:[#allocation117_spill] sm:$0xff] %v24265_v3  ;;  %v24267_v42 = vpop.f32.mrf.mxu1  ;;  %20932 = vmatpush3.bf16.msra.mxu1 %v22680_v36  ;;  %21001 = vmatprep.subr.bf16.mxu0 %v22681_v19  ;;  %v27912_v3 = vld [vmem:[#allocation71_spill] sm:$0xff] }
 0x2c8   : > { %27846 = vst [vmem:[#allocation118_spill] sm:$0xff] %v24267_v42  ;;  %v20595_v15 = vpop.f32.mrf.mxu0  ;;  %20882 = vmatmul.mubr.bf16.gmra.mxu0 %v24044_v12 }
 0x2c9   : > { %v20675_v18 = vpop.f32.mrf.mxu1  ;;  %20885 = vmatprep.mubr.bf16.mxu0 %v24047_v57  ;;  %21002 = vmatpush3.bf16.msra.mxu0 %v22681_v19 }
 0x2ca   : > { %v24271_v56 = vadd.f32 %v20675_v18, %v20595_v15  ;;  %v3350_v11 = vpop.f32.mrf.mxu0  ;;  %v22682_v18 = vld [vmem:[#allocation9 + $0x30] sm:$0xff]  }
 0x2cb   : > { %v3687_v6 = vpop.f32.mrf.mxu1  ;;  %21003 = vmatprep.subr.bf16.mxu0 %v22682_v18 }
 0x2cc   : > { %27847 = vst [vmem:[#allocation119_spill] sm:$0xff] %v24271_v56  ;;  %v24273_v41 = vadd.f32 %v3687_v6, %v3350_v11  ;;  %v20596_v38 = vpop.f32.mrf.mxu0 }
 0x2cd   : > { %v20676_v1 = vpop.f32.mrf.mxu1  ;;  %21004 = vmatpush3.bf16.msra.mxu0 %v22682_v18 }
 0x2ce   : > { %27848 = vst [vmem:[#allocation120_spill] sm:$0xff] %v24273_v41  ;;  %v24275_v47 = vpop.f32.mrf.mxu0 }
 0x2cf   : > { %27849 = vst [vmem:[#allocation121_spill] sm:$0xff] %v24275_v47  ;;  %v24277_v46 = vpop.f32.mrf.mxu1 }
 0x2d0   : > { %27850 = vst [vmem:[#allocation122_spill] sm:$0xff] %v24277_v46  ;;  %v20599_v42 = vpop.f32.mrf.mxu0  ;;  %20886 = vmatmul.mubr.bf16.gmra.mxu0 %v24060_v17  ;;  %v22684_v17 = vld [vmem:[#allocation9 + $0x28] sm:$0xff]  }
 0x2d1   : > { %v20679_v12 = vpop.f32.mrf.mxu1  ;;  %20889 = vmatprep.mubr.bf16.mxu0 %v24063_v52  ;;  %21005 = vmatprep.subr.bf16.mxu0 %v22684_v17 }
 0x2d2   : > { %v24281_v57 = vadd.f32 %v20679_v12, %v20599_v42  ;;  %v3366_v15 = vpop.f32.mrf.mxu0  ;;  %21006 = vmatpush3.bf16.msra.mxu0 %v22684_v17  ;;  %v22685_v12 = vld [vmem:[#allocation9 + $0x20] sm:$0xff]  }
 0x2d3   : > { %v3703_v11 = vpop.f32.mrf.mxu1  ;;  %21007 = vmatprep.subr.bf16.mxu0 %v22685_v12 }
 0x2d4   : > { %27851 = vst [vmem:[#allocation123_spill] sm:$0xff] %v24281_v57  ;;  %v24283_v6 = vadd.f32 %v3703_v11, %v3366_v15  ;;  %v20600_v38 = vpop.f32.mrf.mxu0 }
 0x2d5   : > { %v20680_v1 = vpop.f32.mrf.mxu1 }
 0x2d6   : > { %27852 = vst [vmem:[#allocation124_spill] sm:$0xff] %v24283_v6  ;;  %v24285_v41 = vpop.f32.mrf.mxu0  ;;  %21008 = vmatpush3.bf16.msra.mxu0 %v22685_v12 }
 0x2d7   : > { %27853 = vst [vmem:[#allocation125_spill] sm:$0xff] %v24285_v41  ;;  %v24287_v36 = vpop.f32.mrf.mxu1 }
 0x2d8   : > { %27854 = vst [vmem:[#allocation126_spill] sm:$0xff] %v24287_v36  ;;  %v20699_v56 = vpop.f32.mrf.mxu0  ;;  %20890 = vmatmul.mubr.bf16.gmra.mxu0 %v24076_v0  ;;  %v22686_v0 = vld [vmem:[#allocation9 + $0x18] sm:$0xff]  }
 0x2d9   : > { %v20779_v52 = vpop.f32.mrf.mxu1  ;;  %20893 = vmatprep.mubr.bf16.mxu0 %v24079_v21  ;;  %v22683_v56 = vld [vmem:[#allocation9 + $0xc8] sm:$0xff]   ;;  %21009 = vmatprep.subr.bf16.mxu0 %v22686_v0 }
 0x2da   : > { %v4748_v42 = vadd.f32 %v20779_v52, %v23871_v33  ;;  %v4073_v19 = vpop.f32.mrf.mxu0  ;;  %20933 = vmatprep.subr.bf16.mxu1 %v22683_v56  ;;  %v24298_v33 = vld [vmem:[%s27691_s2] ss:$0 sm:$0xff]  ;;  %21010 = vmatpush3.bf16.msra.mxu0 %v22686_v0 }
 0x2db   : > { %v4328_v15 = vadd.f32 %v4073_v19, %v23712_v43  ;;  %v4491_v11 = vpop.f32.mrf.mxu1  ;;  %20934 = vmatpush3.bf16.msra.mxu1 %v22683_v56 }
 0x2dc   : > { %v4746_v18 = vadd.f32 %v4491_v11, %v23874_v29  ;;  %v20700_v38 = vpop.f32.mrf.mxu0 }
 0x2dd   : > { %v20780_v1 = vpop.f32.mrf.mxu1  ;;  %v22687_v38 = vld [vmem:[#allocation9 + $0x10] sm:$0xff]  }
 0x2de   : > { %v4076_v6 = vpop.f32.mrf.mxu0  ;;  %21011 = vmatprep.subr.bf16.mxu0 %v22687_v38 }
 0x2df   : > { %v4329_v57 = vadd.f32 %v4076_v6, %v23714_v48  ;;  %v4494_v21 = vpop.f32.mrf.mxu1  ;;  %v5367_v48 = vrot.slane %v4748_v42, 1  ;;  %v5364_v6 = vrot.slane %v4746_v18, 1  ;;  %21012 = vmatpush3.bf16.msra.mxu0 %v22687_v38 }
 0x2e0   : > { %v4747_v43 = vadd.f32 %v4494_v21, %v23876_v24  ;;  %v20703_v17 = vpop.f32.mrf.mxu0  ;;  %20894 = vmatmul.mubr.bf16.gmra.mxu0 %v24092_v28  ;;  %v5235_v24 = vadd.f32 %v24298_v33, %v4328_v15  ;;  %v23297_v15 = vmov 0  }
 0x2e1   : > { %v5236_v29 = vadd.f32 %v24298_v33, %v4329_v57  ;;  %v20783_v52 = vpop.f32.mrf.mxu1  ;;  %20897 = vmatprep.mubr.bf16.mxu0 %v24095_v10  ;;  %1307 = vst [vmem:[#allocation2] sm:$0xf] %v23297_v15  ;;  %1308 = vst [vmem:[#allocation2 + $0x4] sm:$0xf] %v23297_v15 }
 0x2e2   : > { %v5365_v19 = vrot.slane %v4747_v43, 1  ;;  %v4752_v12 = vadd.f32 %v20783_v52, %v23881_v22  ;;  %v4089_v11 = vpop.f32.mrf.mxu0  ;;  %v22689_v43 = vld [vmem:[#allocation9 + $0x8] sm:$0xff]   ;;  %1309 = vst [vmem:[#allocation2 + $0x8] sm:$0xf] %v23297_v15  ;;  %1310 = vst [vmem:[#allocation2 + $0xc] sm:$0xf] %v23297_v15 }
 0x2e3   : > { %v4332_v28 = vadd.f32 %v4089_v11, %v23726_v55  ;;  %v4507_v1 = vpop.f32.mrf.mxu1  ;;  %1311 = vst [vmem:[#allocation2 + $0x110] sm:$0xf] %v23297_v15  ;;  %1312 = vst [vmem:[#allocation2 + $0x114] sm:$0xf] %v23297_v15  ;;  %21013 = vmatprep.subr.bf16.mxu0 %v22689_v43 }
 0x2e4   : > { %v5366_v57 = vsel %vm5363_vm0, %v5364_v6, %v5365_v19  ;;  %v5368_v56 = vsel %vm5363_vm0, %v5365_v19, %v5367_v48  ;;  %v4750_v10 = vadd.f32 %v4507_v1, %v23884_v32  ;;  %v20704_v21 = vpop.f32.mrf.mxu0  ;;  %1313 = vst [vmem:[#allocation2 + $0x118] sm:$0xf] %v23297_v15  ;;  %1314 = vst [vmem:[#allocation2 + $0x11c] sm:$0xf] %v23297_v15  ;;  %v5375_v6 = vrot.slane %v4752_v12, 1 }
 0x2e5   : > { %v24310_v42 = vadd.f32 %v5366_v57, %v5235_v24  ;;  %v24312_v18 = vadd.f32 %v5368_v56, %v5236_v29  ;;  %v20784_v22 = vpop.f32.mrf.mxu1  ;;  %1315 = vst [vmem:[#allocation3] sm:$0xf] %v23297_v15  ;;  %1316 = vst [vmem:[#allocation3 + $0x4] sm:$0xf] %v23297_v15  ;;  %21014 = vmatpush3.bf16.msra.mxu0 %v22689_v43  ;;  %v5239_v1 = vadd.f32 %v24298_v33, %v4332_v28 }
 0x2e6   : > { %v4092_v0 = vpop.f32.mrf.mxu0  ;;  %1317 = vst [vmem:[#allocation3 + $0x8] sm:$0xf] %v23297_v15  ;;  %1318 = vst [vmem:[#allocation3 + $0xc] sm:$0xf] %v23297_v15  ;;  %v5371_v19 = vrot.slane %v4750_v10, 1 }
 0x2e7   : > { %1319 = vst [vmem:[#allocation3 + $0x110] sm:$0xf] %v23297_v15  ;;  %1320 = vst [vmem:[#allocation3 + $0x114] sm:$0xf] %v23297_v15  ;;  %v4333_v55 = vadd.f32 %v4092_v0, %v23728_v62  ;;  %v4510_v32 = vpop.f32.mrf.mxu1  ;;  %v22690_v62 = vld [vmem:[#allocation9] sm:$0xff]  }
 0x2e8   : > { %1321 = vst [vmem:[#allocation3 + $0x118] sm:$0xf] %v23297_v15  ;;  %1322 = vst [vmem:[#allocation3 + $0x11c] sm:$0xf] %v23297_v15  ;;  %v4751_v17 = vadd.f32 %v4510_v32, %v23886_v14  ;;  %v20707_v29 = vpop.f32.mrf.mxu0  ;;  %20898 = vmatmul.mubr.bf16.gmra.mxu0 %v24108_v8  ;;  %21015 = vmatprep.subr.bf16.mxu0 %v22690_v62 }
 0x2e9   : > { %v5240_v52 = vadd.f32 %v24298_v33, %v4333_v55  ;;  %v20787_v48 = vpop.f32.mrf.mxu1  ;;  %20901 = vmatprep.mubr.bf16.mxu0 %v24111_v51  ;;  %21016 = vmatpush3.bf16.msra.mxu0 %v22690_v62 }
 0x2ea   : > { %v5373_v11 = vrot.slane %v4751_v17, 1  ;;  %v4756_v38 = vadd.f32 %v20787_v48, %v23891_v34  ;;  %v4105_v24 = vpop.f32.mrf.mxu0  ;;  %v22688_v48 = vld [vmem:[#allocation9 + $0xc0] sm:$0xff]  }
 0x2eb   : > { %v4336_v14 = vadd.f32 %v4105_v24, %v23740_v13  ;;  %v4523_v57 = vpop.f32.mrf.mxu1  ;;  %20935 = vmatprep.subr.bf16.mxu1 %v22688_v48 }
 0x2ec   : > { %v5374_v8 = vsel %vm5363_vm0, %v5371_v19, %v5373_v11  ;;  %v5376_v56 = vsel %vm5363_vm0, %v5373_v11, %v5375_v6  ;;  %v4754_v21 = vadd.f32 %v4523_v57, %v23894_v30  ;;  %v20708_v51 = vpop.f32.mrf.mxu0  ;;  %v5383_v22 = vrot.slane %v4756_v38, 1  ;;  %20936 = vmatpush3.bf16.msra.mxu1 %v22688_v48  ;;  %v27857_v48 = vld [vmem:[#allocation89_spill] sm:$0xff] }
 0x2ed   : > { %v24325_v12 = vadd.f32 %v5374_v8, %v5239_v1  ;;  %v24327_v10 = vadd.f32 %v5376_v56, %v5240_v52  ;;  %v20788_v34 = vpop.f32.mrf.mxu1  ;;  %v5243_v6 = vadd.f32 %v24298_v33, %v4336_v14 }
 0x2ee   : > { %v5379_v0 = vrot.slane %v4754_v21, 1  ;;  %v4108_v43 = vpop.f32.mrf.mxu0 }
 0x2ef   : > { %v4337_v13 = vadd.f32 %v4108_v43, %v23742_v23  ;;  %v4526_v28 = vpop.f32.mrf.mxu1 }
 0x2f0   : > { %v4755_v15 = vadd.f32 %v4526_v28, %v23896_v35  ;;  %v20711_v55 = vpop.f32.mrf.mxu0  ;;  %20902 = vmatmul.mubr.bf16.gmra.mxu0 %v24124_v61 }
 0x2f1   : > { %v5244_v30 = vadd.f32 %v24298_v33, %v4337_v13  ;;  %v20791_v32 = vpop.f32.mrf.mxu1  ;;  %20905 = vmatprep.mubr.bf16.mxu0 %v24127_v20 }
 0x2f2   : > { %v5381_v17 = vrot.slane %v4755_v15, 1  ;;  %v4760_v29 = vadd.f32 %v20791_v32, %v23901_v31  ;;  %v4121_v52 = vpop.f32.mrf.mxu0 }
 0x2f3   : > { %v4340_v23 = vadd.f32 %v4121_v52, %v23754_v44  ;;  %v4539_v19 = vpop.f32.mrf.mxu1 }
 0x2f4   : > { %v5382_v35 = vsel %vm5363_vm0, %v5379_v0, %v5381_v17  ;;  %v5384_v11 = vsel %vm5363_vm0, %v5381_v17, %v5383_v22  ;;  %v4758_v61 = vadd.f32 %v4539_v19, %v23904_v27  ;;  %v20712_v38 = vpop.f32.mrf.mxu0  ;;  %v5391_v56 = vrot.slane %v4760_v29, 1  ;;  %v27856_v29 = vld [vmem:[#allocation41_spill] sm:$0xff]  ;;  %v27858_v19 = vld [vmem:[#allocation90_spill] sm:$0xff] }
 0x2f5   : > { %v24340_v24 = vadd.f32 %v5382_v35, %v5243_v6  ;;  %v24342_v20 = vadd.f32 %v5384_v11, %v5244_v30  ;;  %v20792_v31 = vpop.f32.mrf.mxu1  ;;  %v5247_v0 = vadd.f32 %v24298_v33, %v4340_v23 }
 0x2f6   : > { %v4124_v62 = vpop.f32.mrf.mxu0  ;;  %v5387_v21 = vrot.slane %v4758_v61, 1  ;;  %v27859_v61 = vld [vmem:[#allocation42_spill] sm:$0xff] }
 0x2f7   : > { %v4341_v1 = vadd.f32 %v4124_v62, %v23758_v53  ;;  %v4542_v14 = vpop.f32.mrf.mxu1 }
 0x2f8   : > { %v4759_v44 = vadd.f32 %v4542_v14, %v23906_v40  ;;  %v20715_v57 = vpop.f32.mrf.mxu0  ;;  %20906 = vmatmul.mubr.bf16.gmra.mxu0 %v24140_v49 }
 0x2f9   : > { %v5248_v8 = vadd.f32 %v24298_v33, %v4341_v1  ;;  %v20795_v27 = vpop.f32.mrf.mxu1  ;;  %20909 = vmatprep.mubr.bf16.mxu0 %v24143_v25  ;;  %v27860_v1 = vld [vmem:[#allocation19_spill] sm:$0xff] }
 0x2fa   : > { %v5389_v51 = vrot.slane %v4759_v44, 1  ;;  %v4764_v34 = vadd.f32 %v20795_v27, %v23911_v9  ;;  %v4137_v22 = vpop.f32.mrf.mxu0  ;;  %v27855_v9 = vld [vmem:[#allocation18_spill] sm:$0xff]  ;;  %v27861_v27 = vld [vmem:[#allocation43_spill] sm:$0xff] }
 0x2fb   : > { %v4344_v53 = vadd.f32 %v4137_v22, %v23765_v59  ;;  %v4555_v43 = vpop.f32.mrf.mxu1 }
 0x2fc   : > { %v5390_v40 = vsel %vm5363_vm0, %v5387_v21, %v5389_v51  ;;  %v5392_v49 = vsel %vm5363_vm0, %v5389_v51, %v5391_v56  ;;  %v4762_v13 = vadd.f32 %v4555_v43, %v23914_v4  ;;  %v20716_v28 = vpop.f32.mrf.mxu0  ;;  %v5399_v4 = vrot.slane %v4764_v34, 1 }
 0x2fd   : > { %v24355_v15 = vadd.f32 %v5390_v40, %v5247_v0  ;;  %v24357_v25 = vadd.f32 %v5392_v49, %v5248_v8  ;;  %v20796_v55 = vpop.f32.mrf.mxu1  ;;  %v5251_v62 = vadd.f32 %v24298_v33, %v4344_v53  ;;  %v24374_v0 = vld [vmem:[#allocation9 + $0x138] sm:$0xff]   ;;  %v27862_v40 = vld [vmem:[#allocation20_spill] sm:$0xff] }
 0x2fe   : > { %v4140_v30 = vpop.f32.mrf.mxu0  ;;  %v5395_v35 = vrot.slane %v4762_v13, 1  ;;  %21081 = vmatprep.subr.bf16.mxu1 %v24374_v0  ;;  %v27863_v13 = vld [vmem:[#allocation44_spill] sm:$0xff] }
 0x2ff   : > { %v4345_v32 = vadd.f32 %v4140_v30, %v27855_v9  ;;  %v4558_v17 = vpop.f32.mrf.mxu1  ;;  %v27864_v30 = vld [vmem:[#allocation95_spill] sm:$0xff] }
 0x300   : > { %v4763_v52 = vadd.f32 %v4558_v17, %v27856_v29  ;;  %v20719_v59 = vpop.f32.mrf.mxu0  ;;  %20910 = vmatmul.mubr.bf16.gmra.mxu0 %v27857_v48 }
 0x301   : > { %v5252_v6 = vadd.f32 %v24298_v33, %v4345_v32  ;;  %v20799_v23 = vpop.f32.mrf.mxu1  ;;  %20913 = vmatprep.mubr.bf16.mxu0 %v27858_v19  ;;  %v27865_v59 = vld [vmem:[#allocation45_spill] sm:$0xff] }
 0x302   : > { %v5397_v11 = vrot.slane %v4763_v52, 1  ;;  %v4768_v38 = vadd.f32 %v20799_v23, %v27859_v61  ;;  %v4153_v31 = vpop.f32.mrf.mxu0  ;;  %v27866_v19 = vld [vmem:[#allocation21_spill] sm:$0xff] }
 0x303   : > { %v4348_v14 = vadd.f32 %v4153_v31, %v27860_v1  ;;  %v4571_v44 = vpop.f32.mrf.mxu1  ;;  %v27867_v31 = vld [vmem:[#allocation46_spill] sm:$0xff] }
 0x304   : > { %v5398_v57 = vsel %vm5363_vm0, %v5395_v35, %v5397_v11  ;;  %v5400_v8 = vsel %vm5363_vm0, %v5397_v11, %v5399_v4  ;;  %v4766_v56 = vadd.f32 %v4571_v44, %v27861_v27  ;;  %v20720_v21 = vpop.f32.mrf.mxu0  ;;  %v5407_v17 = vrot.slane %v4768_v38, 1  ;;  %v27868_v27 = vld [vmem:[#allocation22_spill] sm:$0xff] }
 0x305   : > { %v24370_v51 = vadd.f32 %v5398_v57, %v5251_v62  ;;  %v24372_v34 = vadd.f32 %v5400_v8, %v5252_v6  ;;  %v20800_v22 = vpop.f32.mrf.mxu1  ;;  %v5255_v23 = vadd.f32 %v24298_v33, %v4348_v14  ;;  %v22691_v57 = vld [vmem:[#allocation2] sm:$0xff]   ;;  %v27869_v21 = vld [vmem:[#allocation47_spill] sm:$0xff] }
 0x306   : > { %v4156_v43 = vpop.f32.mrf.mxu0  ;;  %v5403_v29 = vrot.slane %v4766_v56, 1 }
 0x307   : > { %v4349_v53 = vadd.f32 %v4156_v43, %v27862_v40  ;;  %v4574_v49 = vpop.f32.mrf.mxu1  ;;  %v27870_v40 = vld [vmem:[#allocation100_spill] sm:$0xff] }
 0x308   : > { %v4767_v28 = vadd.f32 %v4574_v49, %v27863_v13  ;;  %v20723_v55 = vpop.f32.mrf.mxu0  ;;  %20914 = vmatmul.mubr.bf16.gmra.mxu0 %v27864_v30  ;;  %v27871_v30 = vld [vmem:[#allocation48_spill] sm:$0xff] }
 0x309   : > { %v5256_v9 = vadd.f32 %v24298_v33, %v4349_v53  ;;  %v20803_v32 = vpop.f32.mrf.mxu1  ;;  %20917 = vmatprep.mubr.bf16.mxu0 %v24177_v39 }
 0x30a   : > { %v5405_v52 = vrot.slane %v4767_v28, 1  ;;  %v4772_v48 = vadd.f32 %v20803_v32, %v27865_v59  ;;  %v4169_v6 = vpop.f32.mrf.mxu0 }
 0x30b   : > { %v4352_v4 = vadd.f32 %v4169_v6, %v27866_v19  ;;  %v4587_v35 = vpop.f32.mrf.mxu1  ;;  %v27873_v19 = vld [vmem:[#allocation49_spill] sm:$0xff] }
 0x30c   : > { %v5406_v11 = vsel %vm5363_vm0, %v5403_v29, %v5405_v52  ;;  %v5408_v61 = vsel %vm5363_vm0, %v5405_v52, %v5407_v17  ;;  %v4770_v62 = vadd.f32 %v4587_v35, %v27867_v31  ;;  %v20724_v1 = vpop.f32.mrf.mxu0  ;;  %v5415_v13 = vrot.slane %v4772_v48, 1  ;;  %v27872_v29 = vld [vmem:[#allocation23_spill] sm:$0xff] }
 0x30d   : > { %v24388_v44 = vadd.f32 %v5406_v11, %v5255_v23  ;;  %v24390_v39 = vadd.f32 %v5408_v61, %v5256_v9  ;;  %v20804_v38 = vpop.f32.mrf.mxu1  ;;  %v5259_v17 = vadd.f32 %v24298_v33, %v4352_v4  ;;  %v22692_v61 = vld [vmem:[#allocation2 + $0x8] sm:$0xff]  }
 0x30e   : > { %v4172_v8 = vpop.f32.mrf.mxu0  ;;  %v5411_v28 = vrot.slane %v4770_v62, 1  ;;  %v27874_v38 = vld [vmem:[#allocation24_spill] sm:$0xff] }
 0x30f   : > { %v4353_v56 = vadd.f32 %v4172_v8, %v27868_v27  ;;  %v4590_v14 = vpop.f32.mrf.mxu1  ;;  %v27875_v8 = vld [vmem:[#allocation50_spill] sm:$0xff] }
 0x310   : > { %v4771_v22 = vadd.f32 %v4590_v14, %v27869_v21  ;;  %v20727_v43 = vpop.f32.mrf.mxu0  ;;  %20918 = vmatmul.mubr.bf16.gmra.mxu0 %v27870_v40 }
 0x311   : > { %v5260_v53 = vadd.f32 %v24298_v33, %v4353_v56  ;;  %v20807_v49 = vpop.f32.mrf.mxu1  ;;  %21017 = vmatprep.mubr.bf16.mxu0 %v22691_v57 }
 0x312   : > { %v5413_v55 = vrot.slane %v4771_v22, 1  ;;  %v4776_v9 = vadd.f32 %v20807_v49, %v27871_v30  ;;  %v4185_v32 = vpop.f32.mrf.mxu0  ;;  %v27876_v49 = vld [vmem:[#allocation51_spill] sm:$0xff] }
 0x313   : > { %v4356_v52 = vadd.f32 %v4185_v32, %v27872_v29  ;;  %v4603_v59 = vpop.f32.mrf.mxu1 }
 0x314   : > { %v5414_v6 = vsel %vm5363_vm0, %v5411_v28, %v5413_v55  ;;  %v5416_v23 = vsel %vm5363_vm0, %v5413_v55, %v5415_v13  ;;  %v4774_v35 = vadd.f32 %v4603_v59, %v27873_v19  ;;  %v20728_v11 = vpop.f32.mrf.mxu0  ;;  %v5423_v22 = vrot.slane %v4776_v9, 1  ;;  %v27877_v55 = vld [vmem:[#allocation25_spill] sm:$0xff]  ;;  %v27878_v59 = vld [vmem:[#allocation52_spill] sm:$0xff] }
 0x315   : > { %v24402_v31 = vadd.f32 %v5414_v6, %v5259_v17  ;;  %v24404_v48 = vadd.f32 %v5416_v23, %v5260_v53  ;;  %v20808_v62 = vpop.f32.mrf.mxu1  ;;  %v5263_v53 = vadd.f32 %v24298_v33, %v4356_v52  ;;  %v27880_v52 = vld [vmem:[#allocation53_spill] sm:$0xff] }
 0x316   : > { %v4188_v1 = vpop.f32.mrf.mxu0  ;;  %v5419_v43 = vrot.slane %v4774_v35, 1 }
 0x317   : > { %v4357_v57 = vadd.f32 %v4188_v1, %v27874_v38  ;;  %v4606_v4 = vpop.f32.mrf.mxu1 }
 0x318   : > { %v4775_v27 = vadd.f32 %v4606_v4, %v27875_v8  ;;  %v20731_v56 = vpop.f32.mrf.mxu0  ;;  %21018 = vmatmul.mubr.bf16.vlgmr.msra.gmra.mxu0 %v22692_v61  ;;  %v27879_v61 = vld [vmem:[#allocation26_spill] sm:$0xff] }
 0x319   : > { %v5264_v14 = vadd.f32 %v24298_v33, %v4357_v57  ;;  %v20811_v21 = vpop.f32.mrf.mxu1 }
 0x31a   : > { %v5421_v40 = vrot.slane %v4775_v27, 1  ;;  %v4780_v13 = vadd.f32 %v20811_v21, %v27876_v49  ;;  %v4201_v28 = vpop.f32.mrf.mxu0  ;;  %v27882_v49 = vld [vmem:[#allocation27_spill] sm:$0xff] }
 0x31b   : > { %v4360_v30 = vadd.f32 %v4201_v28, %v27877_v55  ;;  %v4619_v32 = vpop.f32.mrf.mxu1 }
 0x31c   : > { %v5422_v17 = vsel %vm5363_vm0, %v5419_v43, %v5421_v40  ;;  %v5424_v29 = vsel %vm5363_vm0, %v5421_v40, %v5423_v22  ;;  %v4778_v6 = vadd.f32 %v4619_v32, %v27878_v59  ;;  %v20732_v23 = vpop.f32.mrf.mxu0  ;;  %v5431_v27 = vrot.slane %v4780_v13, 1  ;;  %v27881_v22 = vld [vmem:[#allocation54_spill] sm:$0xff] }
 0x31d   : > { %v24415_v19 = vadd.f32 %v5422_v17, %v5263_v53  ;;  %v24417_v9 = vadd.f32 %v5424_v29, %v5264_v14  ;;  %v20812_v35 = vpop.f32.mrf.mxu1  ;;  %v5267_v14 = vadd.f32 %v24298_v33, %v4360_v30  ;;  %v27883_v17 = vld [vmem:[#allocation55_spill] sm:$0xff]  ;;  %v27885_v30 = vld [vmem:[#allocation56_spill] sm:$0xff] }
 0x31e   : > { %v4204_v11 = vpop.f32.mrf.mxu0  ;;  %v5427_v56 = vrot.slane %v4778_v6, 1 }
 0x31f   : > { %v4361_v62 = vadd.f32 %v4204_v11, %v27879_v61  ;;  %v4622_v1 = vpop.f32.mrf.mxu1  ;;  %v27884_v11 = vld [vmem:[#allocation28_spill] sm:$0xff] }
 0x320   : > { %v4779_v38 = vadd.f32 %v4622_v1, %v27880_v52  ;;  %v20735_v57 = vpop.f32.mrf.mxu0 }
 0x321   : > { %v5268_v4 = vadd.f32 %v24298_v33, %v4361_v62  ;;  %v20815_v8 = vpop.f32.mrf.mxu1 }
 0x322   : > { %v5429_v21 = vrot.slane %v4779_v38, 1  ;;  %v4784_v43 = vadd.f32 %v20815_v8, %v27881_v22  ;;  %v4217_v40 = vpop.f32.mrf.mxu0 }
 0x323   : > { %v4364_v28 = vadd.f32 %v4217_v40, %v27882_v49  ;;  %v4635_v53 = vpop.f32.mrf.mxu1 }
 0x324   : > { %v5430_v55 = vsel %vm5363_vm0, %v5427_v56, %v5429_v21  ;;  %v5432_v32 = vsel %vm5363_vm0, %v5429_v21, %v5431_v27  ;;  %v4782_v29 = vadd.f32 %v4635_v53, %v27883_v17  ;;  %v20736_v59 = vpop.f32.mrf.mxu0  ;;  %v5439_v8 = vrot.slane %v4784_v43, 1  ;;  %v27886_v21 = vld [vmem:[#allocation57_spill] sm:$0xff]  ;;  %v27888_v17 = vld [vmem:[#allocation58_spill] sm:$0xff] }
 0x325   : > { %v24428_v23 = vadd.f32 %v5430_v55, %v5267_v14  ;;  %v24430_v13 = vadd.f32 %v5432_v32, %v5268_v4  ;;  %v20816_v6 = vpop.f32.mrf.mxu1  ;;  %v5271_v4 = vadd.f32 %v24298_v33, %v4364_v28  ;;  %v27887_v14 = vld [vmem:[#allocation29_spill] sm:$0xff]  ;;  %v27890_v28 = vld [vmem:[#allocation59_spill] sm:$0xff] }
 0x326   : > { %v4220_v35 = vpop.f32.mrf.mxu0  ;;  %v5435_v27 = vrot.slane %v4782_v29, 1 }
 0x327   : > { %v4365_v61 = vadd.f32 %v4220_v35, %v27884_v11  ;;  %v4638_v62 = vpop.f32.mrf.mxu1 }
 0x328   : > { %v4783_v1 = vadd.f32 %v4638_v62, %v27885_v30  ;;  %v20739_v52 = vpop.f32.mrf.mxu0 }
 0x329   : > { %v5272_v38 = vadd.f32 %v24298_v33, %v4365_v61  ;;  %v20819_v57 = vpop.f32.mrf.mxu1  ;;  %v27889_v61 = vld [vmem:[#allocation30_spill] sm:$0xff] }
 0x32a   : > { %v5437_v56 = vrot.slane %v4783_v1, 1  ;;  %v4788_v22 = vadd.f32 %v20819_v57, %v27886_v21  ;;  %v4233_v40 = vpop.f32.mrf.mxu0 }
 0x32b   : > { %v4368_v49 = vadd.f32 %v4233_v40, %v27887_v14  ;;  %v4651_v53 = vpop.f32.mrf.mxu1  ;;  %v27891_v40 = vld [vmem:[#allocation60_spill] sm:$0xff] }
 0x32c   : > { %v5438_v55 = vsel %vm5363_vm0, %v5435_v27, %v5437_v56  ;;  %v5440_v32 = vsel %vm5363_vm0, %v5437_v56, %v5439_v8  ;;  %v4786_v59 = vadd.f32 %v4651_v53, %v27888_v17  ;;  %v20740_v6 = vpop.f32.mrf.mxu0  ;;  %v5447_v21 = vrot.slane %v4788_v22, 1  ;;  %v27892_v53 = vld [vmem:[#allocation31_spill] sm:$0xff] }
 0x32d   : > { %v24441_v35 = vadd.f32 %v5438_v55, %v5271_v4  ;;  %v24443_v43 = vadd.f32 %v5440_v32, %v5272_v38  ;;  %v20820_v29 = vpop.f32.mrf.mxu1  ;;  %v5275_v38 = vadd.f32 %v24298_v33, %v4368_v49  ;;  %v27895_v49 = vld [vmem:[#allocation62_spill] sm:$0xff] }
 0x32e   : > { %v4236_v11 = vpop.f32.mrf.mxu0  ;;  %v5443_v8 = vrot.slane %v4786_v59, 1  ;;  %v27893_v29 = vld [vmem:[#allocation61_spill] sm:$0xff] }
 0x32f   : > { %v4369_v62 = vadd.f32 %v4236_v11, %v27889_v61  ;;  %v4654_v30 = vpop.f32.mrf.mxu1 }
 0x330   : > { %v4787_v1 = vadd.f32 %v4654_v30, %v27890_v28  ;;  %v20743_v52 = vpop.f32.mrf.mxu0  ;;  %v27894_v28 = vld [vmem:[#allocation32_spill] sm:$0xff] }
 0x331   : > { %v5276_v57 = vadd.f32 %v24298_v33, %v4369_v62  ;;  %v20823_v27 = vpop.f32.mrf.mxu1 }
 0x332   : > { %v5445_v56 = vrot.slane %v4787_v1, 1  ;;  %v4792_v14 = vadd.f32 %v20823_v27, %v27891_v40  ;;  %v4249_v4 = vpop.f32.mrf.mxu0 }
 0x333   : > { %v4372_v55 = vadd.f32 %v4249_v4, %v27892_v53  ;;  %v4667_v32 = vpop.f32.mrf.mxu1 }
 0x334   : > { %v5446_v17 = vsel %vm5363_vm0, %v5443_v8, %v5445_v56  ;;  %v5448_v6 = vsel %vm5363_vm0, %v5445_v56, %v5447_v21  ;;  %v4790_v11 = vadd.f32 %v4667_v32, %v27893_v29  ;;  %v20744_v61 = vpop.f32.mrf.mxu0  ;;  %v5455_v53 = vrot.slane %v4792_v14, 1  ;;  %v27896_v32 = vld [vmem:[#allocation63_spill] sm:$0xff] }
 0x335   : > { %v24454_v62 = vadd.f32 %v5446_v17, %v5275_v38  ;;  %v24456_v22 = vadd.f32 %v5448_v6, %v5276_v57  ;;  %v20824_v59 = vpop.f32.mrf.mxu1  ;;  %v5279_v57 = vadd.f32 %v24298_v33, %v4372_v55  ;;  %v27897_v17 = vld [vmem:[#allocation33_spill] sm:$0xff] }
 0x336   : > { %v4252_v30 = vpop.f32.mrf.mxu0  ;;  %v5451_v21 = vrot.slane %v4790_v11, 1  ;;  %v27900_v55 = vld [vmem:[#allocation65_spill] sm:$0xff] }
 0x337   : > { %v4373_v1 = vadd.f32 %v4252_v30, %v27894_v28  ;;  %v4670_v52 = vpop.f32.mrf.mxu1  ;;  %v27898_v28 = vld [vmem:[#allocation64_spill] sm:$0xff] }
 0x338   : > { %v4791_v27 = vadd.f32 %v4670_v52, %v27895_v49  ;;  %v20747_v40 = vpop.f32.mrf.mxu0 }
 0x339   : > { %v5280_v4 = vadd.f32 %v24298_v33, %v4373_v1  ;;  %v20827_v8 = vpop.f32.mrf.mxu1  ;;  %v27899_v40 = vld [vmem:[#allocation34_spill] sm:$0xff] }
 0x33a   : > { %v5453_v56 = vrot.slane %v4791_v27, 1  ;;  %v4796_v29 = vadd.f32 %v20827_v8, %v27896_v32  ;;  %v4265_v38 = vpop.f32.mrf.mxu0 }
 0x33b   : > { %v4376_v6 = vadd.f32 %v4265_v38, %v27897_v17  ;;  %v4683_v61 = vpop.f32.mrf.mxu1 }
 0x33c   : > { %v5454_v59 = vsel %vm5363_vm0, %v5451_v21, %v5453_v56  ;;  %v5456_v30 = vsel %vm5363_vm0, %v5453_v56, %v5455_v53  ;;  %v4794_v52 = vadd.f32 %v4683_v61, %v27898_v28  ;;  %v20748_v49 = vpop.f32.mrf.mxu0  ;;  %v5463_v41 = vrot.slane %v4796_v29, 1  ;;  %v27901_v61 = vld [vmem:[#allocation66_spill] sm:$0xff] }
 0x33d   : > { %v24467_v1 = vadd.f32 %v5454_v59, %v5279_v57  ;;  %v24469_v14 = vadd.f32 %v5456_v30, %v5280_v4  ;;  %v20828_v11 = vpop.f32.mrf.mxu1  ;;  %v5283_v4 = vadd.f32 %v24298_v33, %v4376_v6  ;;  %v27902_v59 = vld [vmem:[#allocation35_spill] sm:$0xff]  ;;  %v27905_v6 = vld [vmem:[#allocation68_spill] sm:$0xff] }
 0x33e   : > { %v4268_v27 = vpop.f32.mrf.mxu0  ;;  %v5459_v53 = vrot.slane %v4794_v52, 1 }
 0x33f   : > { %v4377_v8 = vadd.f32 %v4268_v27, %v27899_v40  ;;  %v4686_v32 = vpop.f32.mrf.mxu1  ;;  %v27903_v40 = vld [vmem:[#allocation67_spill] sm:$0xff] }
 0x340   : > { %v4795_v36 = vadd.f32 %v4686_v32, %v27900_v55  ;;  %v20751_v38 = vpop.f32.mrf.mxu0 }
 0x341   : > { %v5284_v17 = vadd.f32 %v24298_v33, %v4377_v8  ;;  %v20831_v21 = vpop.f32.mrf.mxu1  ;;  %v27904_v38 = vld [vmem:[#allocation36_spill] sm:$0xff] }
 0x342   : > { %v5461_v56 = vrot.slane %v4795_v36, 1  ;;  %v4800_v28 = vadd.f32 %v20831_v21, %v27901_v61  ;;  %v4281_v57 = vpop.f32.mrf.mxu0 }
 0x343   : > { %v4380_v30 = vadd.f32 %v4281_v57, %v27902_v59  ;;  %v4699_v49 = vpop.f32.mrf.mxu1 }
 0x344   : > { %v5462_v11 = vsel %vm5363_vm0, %v5459_v53, %v5461_v56  ;;  %v5464_v27 = vsel %vm5363_vm0, %v5461_v56, %v5463_v41  ;;  %v4798_v32 = vadd.f32 %v4699_v49, %v27903_v40  ;;  %v20752_v55 = vpop.f32.mrf.mxu0  ;;  %v5471_v47 = vrot.slane %v4800_v28, 1  ;;  %v27906_v49 = vld [vmem:[#allocation69_spill] sm:$0xff] }
 0x345   : > { %v24480_v8 = vadd.f32 %v5462_v11, %v5283_v4  ;;  %v24482_v29 = vadd.f32 %v5464_v27, %v5284_v17  ;;  %v20832_v36 = vpop.f32.mrf.mxu1  ;;  %v5287_v17 = vadd.f32 %v24298_v33, %v4380_v30  ;;  %v27907_v11 = vld [vmem:[#allocation37_spill] sm:$0xff] }
 0x346   : > { %v4284_v52 = vpop.f32.mrf.mxu0  ;;  %v5467_v41 = vrot.slane %v4798_v32, 1 }
 0x347   : > { %v4381_v21 = vadd.f32 %v4284_v52, %v27904_v38  ;;  %v4702_v61 = vpop.f32.mrf.mxu1  ;;  %v27908_v38 = vld [vmem:[#allocation70_spill] sm:$0xff] }
 0x348   : > { %v4799_v46 = vadd.f32 %v4702_v61, %v27905_v6  ;;  %v20755_v57 = vpop.f32.mrf.mxu0 }
 0x349   : > { %v5288_v59 = vadd.f32 %v24298_v33, %v4381_v21  ;;  %v20835_v53 = vpop.f32.mrf.mxu1  ;;  %v22723_v57 = vld [vmem:[#allocation9 + $0x78] sm:$0xff]  }
 0x34a   : > { %v5469_v56 = vrot.slane %v4799_v46, 1  ;;  %v4804_v40 = vadd.f32 %v20835_v53, %v27906_v49  ;;  %v4297_v4 = vpop.f32.mrf.mxu0  ;;  %v27911_v53 = vld [vmem:[#allocation38_spill] sm:$0xff]  ;;  %21161 = vmatprep.subr.bf16.mxu0 %v22723_v57 }
 0x34b   : > { %v4384_v27 = vadd.f32 %v4297_v4, %v27907_v11  ;;  %v4715_v55 = vpop.f32.mrf.mxu1  ;;  %21162 = vmatpush3.bf16.msra.mxu0 %v22723_v57 }
 0x34c   : > { %v5470_v36 = vsel %vm5363_vm0, %v5467_v41, %v5469_v56  ;;  %v5472_v52 = vsel %vm5363_vm0, %v5469_v56, %v5471_v47  ;;  %v4802_v61 = vadd.f32 %v4715_v55, %v27908_v38  ;;  %v20756_v6 = vpop.f32.mrf.mxu0  ;;  %v5479_v56 = vrot.slane %v4804_v40, 1  ;;  %v22724_v38 = vld [vmem:[#allocation9 + $0x70] sm:$0xff]  }
 0x34d   : > { %v24493_v21 = vadd.f32 %v5470_v36, %v5287_v17  ;;  %v24495_v28 = vadd.f32 %v5472_v52, %v5288_v59  ;;  %v20836_v46 = vpop.f32.mrf.mxu1  ;;  %v27913_v36 = vld [vmem:[#allocation72_spill] sm:$0xff]  ;;  %v5291_v6 = vadd.f32 %v24298_v33, %v4384_v27  ;;  %21163 = vmatprep.subr.bf16.mxu0 %v22724_v38 }
 0x34e   : > { %v4300_v32 = vpop.f32.mrf.mxu0  ;;  %v5475_v55 = vrot.slane %v4802_v61, 1  ;;  %v27914_v46 = vld [vmem:[#allocation39_spill] sm:$0xff]  ;;  %v27916_v27 = vld [vmem:[#allocation40_spill] sm:$0xff] }
 0x34f   : > { %27909 = vst [vmem:[#allocation18_spill] sm:$0xff] %v24493_v21  ;;  %27910 = vst [vmem:[#allocation41_spill] sm:$0xff] %v24495_v28  ;;  %v4385_v49 = vadd.f32 %v4300_v32, %v27911_v53  ;;  %v4718_v30 = vpop.f32.mrf.mxu1  ;;  %21164 = vmatpush3.bf16.msra.mxu0 %v22724_v38 }
 0x350   : > { %v4803_v4 = vadd.f32 %v4718_v30, %v27912_v3  ;;  %v20759_v11 = vpop.f32.mrf.mxu0 }
 0x351   : > { %v5292_v41 = vadd.f32 %v24298_v33, %v4385_v49  ;;  %v20839_v47 = vpop.f32.mrf.mxu1  ;;  %v27915_v11 = vld [vmem:[#allocation73_spill] sm:$0xff] }
 0x352   : > { %v5477_v17 = vrot.slane %v4803_v4, 1  ;;  %v4808_v59 = vadd.f32 %v20839_v47, %v27913_v36  ;;  %v4313_v52 = vpop.f32.mrf.mxu0  ;;  %v22728_v47 = vld [vmem:[#allocation9 + $0x68] sm:$0xff]  }
 0x353   : > { %v4388_v32 = vadd.f32 %v4313_v52, %v27914_v46  ;;  %v4731_v53 = vpop.f32.mrf.mxu1  ;;  %v27917_v46 = vld [vmem:[#allocation74_spill] sm:$0xff]  ;;  %21165 = vmatprep.subr.bf16.mxu0 %v22728_v47 }
 0x354   : > { %v5478_v3 = vsel %vm5363_vm0, %v5475_v55, %v5477_v17  ;;  %v5480_v30 = vsel %vm5363_vm0, %v5477_v17, %v5479_v56  ;;  %v4806_v49 = vadd.f32 %v4731_v53, %v27915_v11  ;;  %v20760_v28 = vpop.f32.mrf.mxu0  ;;  %21166 = vmatpush3.bf16.msra.mxu0 %v22728_v47  ;;  %v27920_v47 = vld [vmem:[#allocation76_spill] sm:$0xff] }
 0x355   : > { %v24506_v40 = vadd.f32 %v5478_v3, %v5291_v6  ;;  %v24508_v61 = vadd.f32 %v5480_v30, %v5292_v41  ;;  %v20840_v57 = vpop.f32.mrf.mxu1  ;;  %v5487_v28 = vrot.slane %v4808_v59, 1  ;;  %v22729_v41 = vld [vmem:[#allocation9 + $0x60] sm:$0xff]   ;;  %v5295_v3 = vadd.f32 %v24298_v33, %v4388_v32 }
 0x356   : > { %v4316_v4 = vpop.f32.mrf.mxu0  ;;  %v5483_v17 = vrot.slane %v4806_v49, 1  ;;  %21167 = vmatprep.subr.bf16.mxu0 %v22729_v41  ;;  %v22732_v49 = vld [vmem:[#allocation9 + $0x58] sm:$0xff]  }
 0x357   : > { %v4389_v36 = vadd.f32 %v4316_v4, %v27916_v27  ;;  %v4734_v52 = vpop.f32.mrf.mxu1  ;;  %v27919_v27 = vld [vmem:[#allocation75_spill] sm:$0xff] }
 0x358   : > { %v4807_v21 = vadd.f32 %v4734_v52, %v27917_v46  ;;  %v20859_v55 = vpop.f32.mrf.mxu0  ;;  %21168 = vmatpush3.bf16.msra.mxu0 %v22729_v41  ;;  %v27921_v52 = vld [vmem:[#allocation77_spill] sm:$0xff] }
 0x359   : > { %v5296_v56 = vadd.f32 %v24298_v33, %v4389_v36  ;;  %v5166_v36 = vadd.f32 %v20859_v55, %v27919_v27  ;;  %21169 = vmatprep.subr.bf16.mxu0 %v22732_v49  ;;  %v27923_v27 = vld [vmem:[#allocation79_spill] sm:$0xff] }
 0x35a   : > { %v5485_v6 = vrot.slane %v4807_v21, 1  ;;  %v4909_v53 = vpop.f32.mrf.mxu0 }
 0x35b   : > { %v5164_v59 = vadd.f32 %v4909_v53, %v27920_v47  ;;  %v5688_v32 = vrot.slane %v5166_v36, 2 }
 0x35c   : > { %v5486_v38 = vsel %vm5363_vm0, %v5483_v17, %v5485_v6  ;;  %v5488_v30 = vsel %vm5363_vm0, %v5485_v6, %v5487_v28  ;;  %v20860_v11 = vpop.f32.mrf.mxu0  ;;  %21170 = vmatpush3.bf16.msra.mxu0 %v22732_v49 }
 0x35d   : > { %v24516_v57 = vadd.f32 %v5486_v38, %v5295_v3  ;;  %v24518_v4 = vadd.f32 %v5488_v30, %v5296_v56  ;;  %v5685_v28 = vrot.slane %v5164_v59, 2  ;;  %v22733_v3 = vld [vmem:[#allocation9 + $0x50] sm:$0xff]   ;;  %v27922_v30 = vld [vmem:[#allocation78_spill] sm:$0xff] }
 0x35e   : > { %v4912_v21 = vpop.f32.mrf.mxu0  ;;  %21171 = vmatprep.subr.bf16.mxu0 %v22733_v3 }
 0x35f   : > { %27918 = vst [vmem:[#allocation89_spill] sm:$0xff] %v24518_v4  ;;  %v5165_v46 = vadd.f32 %v4912_v21, %v27921_v52  ;;  %v23298_v21 = vmov 0.0  }
 0x360   : > { %v20863_v33 = vpop.f32.mrf.mxu0  ;;  %21172 = vmatpush3.bf16.msra.mxu0 %v22733_v3  ;;  %v24529_v49 = vrot.slane %v23298_v21, 7 }
 0x361   : > { %v5686_v17 = vrot.slane %v5165_v46, 2  ;;  %v5170_v11 = vadd.f32 %v20863_v33, %v27922_v30  ;;  %v22737_v46 = vld [vmem:[#allocation9 + $0x48] sm:$0xff]  }
 0x362   : > { %v4925_v6 = vpop.f32.mrf.mxu0  ;;  %27924 = vst [vmem:[#allocation90_spill] sm:$0xff] %v24529_v49  ;;  %21173 = vmatprep.subr.bf16.mxu0 %v22737_v46 }
 0x363   : > { %v5687_v56 = vsel %vm5684_vm1, %v5685_v28, %v5686_v17  ;;  %v5689_v55 = vsel %vm5684_vm1, %v5686_v17, %v5688_v32  ;;  %v5168_v47 = vadd.f32 %v4925_v6, %v27923_v27  ;;  %v27925_v32 = vld [vmem:[#allocation80_spill] sm:$0xff] }
 0x364   : > { %v5877_v53 = vadd.f32 %v5687_v56, %v24310_v42  ;;  %v5878_v41 = vadd.f32 %v5689_v55, %v24312_v18  ;;  %v20864_v38 = vpop.f32.mrf.mxu0  ;;  %v22738_v42 = vld [vmem:[#allocation9 + $0x40] sm:$0xff]   ;;  %v5696_v55 = vrot.slane %v5170_v11, 2  ;;  %21174 = vmatpush3.bf16.msra.mxu0 %v22737_v46 }
 0x365   : > { %v5692_v33 = vrot.slane %v5168_v47, 2  ;;  %21175 = vmatprep.subr.bf16.mxu0 %v22738_v42 }
 0x366   : > { %v5941_v36 = vmax.f32 %v5877_v53, 0.0  ;;  %v5942_v59 = vmax.f32 %v5878_v41, 0.0  ;;  %v4928_v52 = vpop.f32.mrf.mxu0 }
 0x367   : > { %v5169_v28 = vadd.f32 %v4928_v52, %v27925_v32  ;;  %v27926_v52 = vld [vmem:[#allocation81_spill] sm:$0xff]  ;;  %v27927_v32 = vld [vmem:[#allocation82_spill] sm:$0xff] }
 0x368   : > { %v6262_v17 = vrot.slane %v5941_v36, 7  ;;  %v6263_v18 = vrot.slane %v5942_v59, 7  ;;  %v20867_v56 = vpop.f32.mrf.mxu0  ;;  %21176 = vmatpush3.bf16.msra.mxu0 %v22738_v42 }
 0x369   : > { %v5694_v38 = vrot.slane %v5169_v28, 2  ;;  %v5174_v46 = vadd.f32 %v20867_v56, %v27926_v52 }
 0x36a   : > { %v6264_v6 = vsel %vm6261_vm2, %v6262_v17, %v6263_v18  ;;  %v6266_v3 = vsel %vm6261_vm2, %v6263_v18, %v24529_v49  ;;  %v6453_v53 = vsel %vm6261_vm2, 0.0, %v6262_v17  ;;  %v4941_v41 = vpop.f32.mrf.mxu0 }
 0x36b   : > { %v18700_v30 = vpack.c.bf16 %v6264_v6, %v6453_v53  ;;  %v18705_v27 = vpack.c.bf16 %v24529_v49, %v6266_v3  ;;  %v5695_v36 = vsel %vm5684_vm1, %v5692_v33, %v5694_v38  ;;  %v5697_v59 = vsel %vm5684_vm1, %v5694_v38, %v5696_v55  ;;  %v27928_v3 = vld [vmem:[#allocation83_spill] sm:$0xff] }
 0x36c   : > { %v5881_v11 = vadd.f32 %v5695_v36, %v24325_v12  ;;  %v5882_v47 = vadd.f32 %v5697_v59, %v24327_v10  ;;  %v20868_v21 = vpop.f32.mrf.mxu0  ;;  %v5172_v28 = vadd.f32 %v4941_v41, %v27927_v32  ;;  %v5704_v38 = vrot.slane %v5174_v46, 2 }
 0x36d   : > { %19017 = vst [vmem:[#allocation2 + $0x10] sm:$0xff] %v18700_v30   ;;  %19018 = vst [vmem:[#allocation2 + $0x18] sm:$0xff] %v18705_v27  }
 0x36e   : > { %v5945_v17 = vmax.f32 %v5881_v11, 0.0  ;;  %v5946_v18 = vmax.f32 %v5882_v47, 0.0  ;;  %v4944_v6 = vpop.f32.mrf.mxu0  ;;  %v5700_v12 = vrot.slane %v5172_v28, 2  ;;  %v22700_v47 = vld [vmem:[#allocation9 + $0x130] sm:$0xff]  }
 0x36f   : > { %v5173_v53 = vadd.f32 %v4944_v6, %v27928_v3  ;;  %v27929_v28 = vld [vmem:[#allocation84_spill] sm:$0xff] }
 0x370   : > { %v6269_v33 = vrot.slane %v5945_v17, 7  ;;  %v6271_v4 = vrot.slane %v5946_v18, 7  ;;  %v20871_v55 = vpop.f32.mrf.mxu0 }
 0x371   : > { %v5702_v36 = vrot.slane %v5173_v53, 2  ;;  %v5178_v17 = vadd.f32 %v20871_v55, %v27929_v28 }
 0x372   : > { %v6270_v10 = vsel %vm6261_vm2, %v24529_v49, %v6269_v33  ;;  %v6272_v30 = vsel %vm6261_vm2, %v6269_v33, %v6271_v4  ;;  %v6274_v56 = vsel %vm6261_vm2, %v6271_v4, %v24529_v49  ;;  %v4957_v42 = vpop.f32.mrf.mxu0  ;;  %v27930_v4 = vld [vmem:[#allocation85_spill] sm:$0xff] }
 0x373   : > { %v18710_v41 = vpack.c.bf16 %v6272_v30, %v6270_v10  ;;  %v18715_v27 = vpack.c.bf16 %v24529_v49, %v6274_v56  ;;  %v5703_v59 = vsel %vm5684_vm1, %v5700_v12, %v5702_v36  ;;  %v5705_v11 = vsel %vm5684_vm1, %v5702_v36, %v5704_v38  ;;  %v27931_v38 = vld [vmem:[#allocation86_spill] sm:$0xff]  ;;  %v22705_v56 = vld [vmem:[#allocation9 + $0x128] sm:$0xff]  }
 0x374   : > { %v5885_v21 = vadd.f32 %v5703_v59, %v24340_v24  ;;  %v5886_v52 = vadd.f32 %v5705_v11, %v24342_v20  ;;  %v20872_v46 = vpop.f32.mrf.mxu0  ;;  %v22693_v32 = vld [vmem:[#allocation2 + $0x10] sm:$0xff]   ;;  %v5176_v18 = vadd.f32 %v4957_v42, %v27930_v4  ;;  %v22694_v6 = vld [vmem:[#allocation2 + $0x18] sm:$0xff]   ;;  %v5712_v10 = vrot.slane %v5178_v17, 2 }
 0x375   : > { %19019 = vst [vmem:[#allocation2 + $0x20] sm:$0xff] %v18710_v41   ;;  %19020 = vst [vmem:[#allocation2 + $0x28] sm:$0xff] %v18715_v27   ;;  %20937 = vmatprep.mubr.bf16.mxu1 %v22693_v32  ;;  %21021 = vmatprep.mubr.bf16.mxu0 %v22693_v32  ;;  %v22710_v46 = vld [vmem:[#allocation9 + $0x120] sm:$0xff]  }
 0x376   : > { %v5949_v3 = vmax.f32 %v5885_v21, 0.0  ;;  %v5950_v53 = vmax.f32 %v5886_v52, 0.0  ;;  %v4960_v33 = vpop.f32.mrf.mxu0  ;;  %20938 = vmatmul.mubr.bf16.vlgmr.msra.gmra.mxu1 %v22694_v6  ;;  %21022 = vmatmul.mubr.bf16.gmra.mxu0 %v22694_v6  ;;  %v5708_v30 = vrot.slane %v5176_v18, 2  ;;  %v27932_v18 = vld [vmem:[#allocation91_spill] sm:$0xff]  ;;  %v27933_v6 = vld [vmem:[#allocation92_spill] sm:$0xff] }
 0x377   : > { %v5177_v12 = vadd.f32 %v4960_v33, %v27931_v38  ;;  %21082 = vmatpush3.bf16.msra.mxu1 %v24374_v0  ;;  %v27935_v38 = vld [vmem:[#allocation88_spill] sm:$0xff] }
 0x378   : > { %v6277_v24 = vrot.slane %v5949_v3, 7  ;;  %v6279_v20 = vrot.slane %v5950_v53, 7  ;;  %v20875_v36 = vpop.f32.mrf.mxu0  ;;  %21083 = vmatprep.subr.bf16.mxu1 %v22700_v47  ;;  %v3531_v3 = vadd.f32 %v27933_v6, %v27932_v18  ;;  %v27934_v53 = vld [vmem:[#allocation87_spill] sm:$0xff] }
 0x379   : > { %v5710_v55 = vrot.slane %v5177_v12, 2  ;;  %v5182_v33 = vadd.f32 %v20875_v36, %v27934_v53  ;;  %v22715_v36 = vld [vmem:[#allocation9 + $0x118] sm:$0xff]   ;;  %v27936_v53 = vld [vmem:[#allocation96_spill] sm:$0xff] }
 0x37a   : > { %v6278_v42 = vsel %vm6261_vm2, %v24529_v49, %v6277_v24  ;;  %v6280_v41 = vsel %vm6261_vm2, %v6277_v24, %v6279_v20  ;;  %v6282_v27 = vsel %vm6261_vm2, %v6279_v20, %v24529_v49  ;;  %v4973_v59 = vpop.f32.mrf.mxu0 }
 0x37b   : > { %v18720_v11 = vpack.c.bf16 %v6280_v41, %v6278_v42  ;;  %v18725_v21 = vpack.c.bf16 %v24529_v49, %v6282_v27  ;;  %v5711_v52 = vsel %vm5684_vm1, %v5708_v30, %v5710_v55  ;;  %v5713_v0 = vsel %vm5684_vm1, %v5710_v55, %v5712_v10  ;;  %21084 = vmatpush3.bf16.msra.mxu1 %v22700_v47 }
 0x37c   : > { %v5889_v32 = vadd.f32 %v5711_v52, %v24355_v15  ;;  %v5890_v28 = vadd.f32 %v5713_v0, %v24357_v25  ;;  %v20876_v17 = vpop.f32.mrf.mxu0  ;;  %v22696_v4 = vld [vmem:[#allocation2 + $0x20] sm:$0xff]   ;;  %v5180_v12 = vadd.f32 %v4973_v59, %v27935_v38  ;;  %v22697_v24 = vld [vmem:[#allocation2 + $0x28] sm:$0xff]   ;;  %21085 = vmatprep.subr.bf16.mxu1 %v22705_v56  ;;  %v5720_v42 = vrot.slane %v5182_v33, 2  ;;  %v27937_v33 = vld [vmem:[#allocation97_spill] sm:$0xff] }
 0x37d   : > { %19021 = vst [vmem:[#allocation2 + $0x30] sm:$0xff] %v18720_v11   ;;  %19022 = vst [vmem:[#allocation2 + $0x38] sm:$0xff] %v18725_v21   ;;  %20941 = vmatprep.mubr.bf16.mxu1 %v22696_v4  ;;  %21025 = vmatprep.mubr.bf16.mxu0 %v22696_v4  ;;  %v22720_v17 = vld [vmem:[#allocation9 + $0x110] sm:$0xff]   ;;  %v3547_v38 = vadd.f32 %v27937_v33, %v27936_v53  ;;  %v27940_v33 = vld [vmem:[#allocation101_spill] sm:$0xff] }
 0x37e   : > { %v5953_v20 = vmax.f32 %v5889_v32, 0.0  ;;  %v5954_v10 = vmax.f32 %v5890_v28, 0.0  ;;  %v4976_v30 = vpop.f32.mrf.mxu0  ;;  %20942 = vmatmul.mubr.bf16.gmra.mxu1 %v22697_v24  ;;  %21026 = vmatmul.mubr.bf16.gmra.mxu0 %v22697_v24  ;;  %v5716_v41 = vrot.slane %v5180_v12, 2  ;;  %v27938_v12 = vld [vmem:[#allocation93_spill] sm:$0xff] }
 0x37f   : > { %v5181_v15 = vadd.f32 %v4976_v30, %v3531_v3  ;;  %21086 = vmatpush3.bf16.msra.mxu1 %v22705_v56 }
 0x380   : > { %v6285_v25 = vrot.slane %v5953_v20, 7  ;;  %v6287_v47 = vrot.slane %v5954_v10, 7  ;;  %v20879_v55 = vpop.f32.mrf.mxu0  ;;  %21087 = vmatprep.subr.bf16.mxu1 %v22710_v46  ;;  %v27939_v20 = vld [vmem:[#allocation94_spill] sm:$0xff] }
 0x381   : > { %v5718_v27 = vrot.slane %v5181_v15, 2  ;;  %v5186_v24 = vadd.f32 %v20879_v55, %v27938_v12  ;;  %v22727_v55 = vld [vmem:[#allocation9 + $0x108] sm:$0xff]  }
 0x382   : > { %v6286_v59 = vsel %vm6261_vm2, %v24529_v49, %v6285_v25  ;;  %v6288_v11 = vsel %vm6261_vm2, %v6285_v25, %v6287_v47  ;;  %v6290_v21 = vsel %vm6261_vm2, %v6287_v47, %v24529_v49  ;;  %v4989_v52 = vpop.f32.mrf.mxu0 }
 0x383   : > { %v18730_v0 = vpack.c.bf16 %v6288_v11, %v6286_v59  ;;  %v18735_v32 = vpack.c.bf16 %v24529_v49, %v6290_v21  ;;  %v5719_v28 = vsel %vm5684_vm1, %v5716_v41, %v5718_v27  ;;  %v5721_v56 = vsel %vm5684_vm1, %v5718_v27, %v5720_v42  ;;  %21088 = vmatpush3.bf16.msra.mxu1 %v22710_v46 }
 0x384   : > { %v5893_v4 = vadd.f32 %v5719_v28, %v24370_v51  ;;  %v5894_v18 = vadd.f32 %v5721_v56, %v24372_v34  ;;  %v20880_v6 = vpop.f32.mrf.mxu0  ;;  %v22698_v3 = vld [vmem:[#allocation2 + $0x30] sm:$0xff]   ;;  %v5184_v10 = vadd.f32 %v4989_v52, %v27939_v20  ;;  %v22699_v30 = vld [vmem:[#allocation2 + $0x38] sm:$0xff]   ;;  %21089 = vmatprep.subr.bf16.mxu1 %v22715_v36  ;;  %v5728_v41 = vrot.slane %v5186_v24, 2  ;;  %v27942_v24 = vld [vmem:[#allocation98_spill] sm:$0xff] }
 0x385   : > { %19023 = vst [vmem:[#allocation2 + $0x40] sm:$0xff] %v18730_v0   ;;  %19024 = vst [vmem:[#allocation2 + $0x48] sm:$0xff] %v18735_v32   ;;  %20945 = vmatprep.mubr.bf16.mxu1 %v22698_v3  ;;  %21029 = vmatprep.mubr.bf16.mxu0 %v22698_v3 }
 0x386   : > { %v5957_v15 = vmax.f32 %v5893_v4, 0.0  ;;  %v5958_v25 = vmax.f32 %v5894_v18, 0.0  ;;  %v4992_v47 = vpop.f32.mrf.mxu0  ;;  %20946 = vmatmul.mubr.bf16.gmra.mxu1 %v22699_v30  ;;  %21030 = vmatmul.mubr.bf16.gmra.mxu0 %v22699_v30  ;;  %v5724_v27 = vrot.slane %v5184_v10, 2  ;;  %v22736_v4 = vld [vmem:[#allocation9 + $0x100] sm:$0xff]   ;;  %v27943_v10 = vld [vmem:[#allocation99_spill] sm:$0xff] }
 0x387   : > { %v5185_v51 = vadd.f32 %v4992_v47, %v3547_v38  ;;  %21090 = vmatpush3.bf16.msra.mxu1 %v22715_v36  ;;  %v27941_v38 = vld [vmem:[#allocation102_spill] sm:$0xff] }
 0x388   : > { %v6293_v34 = vrot.slane %v5957_v15, 7  ;;  %v6295_v46 = vrot.slane %v5958_v25, 7  ;;  %v20883_v42 = vpop.f32.mrf.mxu0  ;;  %21091 = vmatprep.subr.bf16.mxu1 %v22720_v17  ;;  %v3563_v12 = vadd.f32 %v27941_v38, %v27940_v33  ;;  %v27944_v33 = vld [vmem:[#allocation103_spill] sm:$0xff] }
 0x389   : > { %v5726_v59 = vrot.slane %v5185_v51, 2  ;;  %v5190_v20 = vadd.f32 %v20883_v42, %v27942_v24 }
 0x38a   : > { %v6294_v11 = vsel %vm6261_vm2, %v24529_v49, %v6293_v34  ;;  %v6296_v21 = vsel %vm6261_vm2, %v6293_v34, %v6295_v46  ;;  %v6298_v52 = vsel %vm6261_vm2, %v6295_v46, %v24529_v49  ;;  %v5005_v0 = vpop.f32.mrf.mxu0 }
 0x38b   : > { %v18740_v32 = vpack.c.bf16 %v6296_v21, %v6294_v11  ;;  %v18745_v28 = vpack.c.bf16 %v24529_v49, %v6298_v52  ;;  %v5727_v56 = vsel %vm5684_vm1, %v5724_v27, %v5726_v59  ;;  %v5729_v36 = vsel %vm5684_vm1, %v5726_v59, %v5728_v41  ;;  %21092 = vmatpush3.bf16.msra.mxu1 %v22720_v17  ;;  %v24608_v27 = vld [vmem:[#allocation9 + $0x178] sm:$0xff]  }
 0x38c   : > { %v5897_v18 = vadd.f32 %v5727_v56, %v24388_v44  ;;  %v5898_v6 = vadd.f32 %v5729_v36, %v24390_v39  ;;  %v20884_v3 = vpop.f32.mrf.mxu0  ;;  %v24596_v53 = vld [vmem:[#allocation2 + $0x40] sm:$0xff]   ;;  %v5188_v30 = vadd.f32 %v5005_v0, %v27943_v10  ;;  %v24602_v15 = vld [vmem:[#allocation2 + $0x48] sm:$0xff]   ;;  %21093 = vmatprep.subr.bf16.mxu1 %v22727_v55  ;;  %v5736_v46 = vrot.slane %v5190_v20, 2 }
 0x38d   : > { %19025 = vst [vmem:[#allocation2 + $0x50] sm:$0xff] %v18740_v32   ;;  %19026 = vst [vmem:[#allocation2 + $0x58] sm:$0xff] %v18745_v28   ;;  %20949 = vmatprep.mubr.bf16.mxu1 %v24596_v53  ;;  %21033 = vmatprep.mubr.bf16.mxu0 %v24596_v53  ;;  %v3579_v3 = vadd.f32 %v24207_v7, %v24205_v54 }
 0x38e   : > { %v5961_v25 = vmax.f32 %v5897_v18, 0.0  ;;  %v5962_v44 = vmax.f32 %v5898_v6, 0.0  ;;  %v5008_v47 = vpop.f32.mrf.mxu0  ;;  %20950 = vmatmul.mubr.bf16.gmra.mxu1 %v24602_v15  ;;  %21034 = vmatmul.mubr.bf16.gmra.mxu0 %v24602_v15  ;;  %v5732_v42 = vrot.slane %v5188_v30, 2 }
 0x38f   : > { %v5189_v39 = vadd.f32 %v5008_v47, %v3563_v12  ;;  %21094 = vmatpush3.bf16.msra.mxu1 %v22727_v55  ;;  %v27945_v12 = vld [vmem:[#allocation104_spill] sm:$0xff] }
 0x390   : > { %v6301_v17 = vrot.slane %v5961_v25, 7  ;;  %v6303_v51 = vrot.slane %v5962_v44, 7  ;;  %v20887_v34 = vpop.f32.mrf.mxu0  ;;  %21095 = vmatprep.subr.bf16.mxu1 %v22736_v4 }
 0x391   : > { %v5734_v41 = vrot.slane %v5189_v39, 2  ;;  %v5194_v38 = vadd.f32 %v20887_v34, %v27944_v33 }
 0x392   : > { %v6302_v59 = vsel %vm6261_vm2, %v24529_v49, %v6301_v17  ;;  %v6304_v11 = vsel %vm6261_vm2, %v6301_v17, %v6303_v51  ;;  %v6306_v21 = vsel %vm6261_vm2, %v6303_v51, %v24529_v49  ;;  %v5021_v52 = vpop.f32.mrf.mxu0 }
 0x393   : > { %v18750_v0 = vpack.c.bf16 %v6304_v11, %v6302_v59  ;;  %v18755_v32 = vpack.c.bf16 %v24529_v49, %v6306_v21  ;;  %v5735_v55 = vsel %vm5684_vm1, %v5732_v42, %v5734_v41  ;;  %v5737_v28 = vsel %vm5684_vm1, %v5734_v41, %v5736_v46  ;;  %21096 = vmatpush3.bf16.msra.mxu1 %v22736_v4 }
 0x394   : > { %v5901_v56 = vadd.f32 %v5735_v55, %v24402_v31  ;;  %v5902_v36 = vadd.f32 %v5737_v28, %v24404_v48  ;;  %v20888_v18 = vpop.f32.mrf.mxu0  ;;  %v24620_v6 = vld [vmem:[#allocation2 + $0x50] sm:$0xff]   ;;  %v5192_v24 = vadd.f32 %v5021_v52, %v27945_v12  ;;  %v24626_v20 = vld [vmem:[#allocation2 + $0x58] sm:$0xff]   ;;  %21241 = vmatprep.subr.bf16.mxu1 %v24608_v27  ;;  %v5744_v25 = vrot.slane %v5194_v38, 2 }
 0x395   : > { %19027 = vst [vmem:[#allocation2 + $0x60] sm:$0xff] %v18750_v0   ;;  %19028 = vst [vmem:[#allocation2 + $0x68] sm:$0xff] %v18755_v32   ;;  %20953 = vmatprep.mubr.bf16.mxu1 %v24620_v6  ;;  %21037 = vmatprep.mubr.bf16.mxu0 %v24620_v6  ;;  %v3595_v32 = vadd.f32 %v24217_v58, %v24215_v5  ;;  %v27946_v55 = vld [vmem:[#allocation105_spill] sm:$0xff] }
 0x396   : > { %v5965_v31 = vmax.f32 %v5901_v56, 0.0  ;;  %v5966_v10 = vmax.f32 %v5902_v36, 0.0  ;;  %v5024_v48 = vpop.f32.mrf.mxu0  ;;  %20954 = vmatmul.mubr.bf16.gmra.mxu1 %v24626_v20  ;;  %21038 = vmatmul.mubr.bf16.gmra.mxu0 %v24626_v20  ;;  %v5740_v44 = vrot.slane %v5192_v24, 2  ;;  %v27947_v56 = vld [vmem:[#allocation106_spill] sm:$0xff] }
 0x397   : > { %v5193_v4 = vadd.f32 %v5024_v48, %v3579_v3 }
 0x398   : > { %v6309_v7 = vrot.slane %v5965_v31, 7  ;;  %v6311_v54 = vrot.slane %v5966_v10, 7  ;;  %v20891_v30 = vpop.f32.mrf.mxu0 }
 0x399   : > { %v5742_v47 = vrot.slane %v5193_v4, 2  ;;  %v5198_v28 = vadd.f32 %v20891_v30, %v27946_v55 }
 0x39a   : > { %v6310_v39 = vsel %vm6261_vm2, %v24529_v49, %v6309_v7  ;;  %v6312_v17 = vsel %vm6261_vm2, %v6309_v7, %v6311_v54  ;;  %v6314_v51 = vsel %vm6261_vm2, %v6311_v54, %v24529_v49  ;;  %v5037_v34 = vpop.f32.mrf.mxu0 }
 0x39b   : > { %v18760_v46 = vpack.c.bf16 %v6312_v17, %v6310_v39  ;;  %v18765_v42 = vpack.c.bf16 %v24529_v49, %v6314_v51  ;;  %v5743_v41 = vsel %vm5684_vm1, %v5740_v44, %v5742_v47  ;;  %v5745_v59 = vsel %vm5684_vm1, %v5742_v47, %v5744_v25 }
 0x39c   : > { %v5905_v11 = vadd.f32 %v5743_v41, %v24415_v19  ;;  %v5906_v21 = vadd.f32 %v5745_v59, %v24417_v9  ;;  %v20892_v52 = vpop.f32.mrf.mxu0  ;;  %v24643_v0 = vld [vmem:[#allocation2 + $0x60] sm:$0xff]   ;;  %v5196_v36 = vadd.f32 %v5037_v34, %v27947_v56  ;;  %v24649_v18 = vld [vmem:[#allocation2 + $0x68] sm:$0xff]   ;;  %v5752_v12 = vrot.slane %v5198_v28, 2  ;;  %v27949_v41 = vld [vmem:[#allocation108_spill] sm:$0xff] }
 0x39d   : > { %19029 = vst [vmem:[#allocation2 + $0x70] sm:$0xff] %v18760_v46   ;;  %19030 = vst [vmem:[#allocation2 + $0x78] sm:$0xff] %v18765_v42   ;;  %20957 = vmatprep.mubr.bf16.mxu1 %v24643_v0  ;;  %21041 = vmatprep.mubr.bf16.mxu0 %v24643_v0  ;;  %v3611_v34 = vadd.f32 %v24227_v60, %v24225_v26  ;;  %v27948_v46 = vld [vmem:[#allocation107_spill] sm:$0xff] }
 0x39e   : > { %v5969_v3 = vmax.f32 %v5905_v11, 0.0  ;;  %v5970_v33 = vmax.f32 %v5906_v21, 0.0  ;;  %v5040_v38 = vpop.f32.mrf.mxu0  ;;  %20958 = vmatmul.mubr.bf16.gmra.mxu1 %v24649_v18  ;;  %21042 = vmatmul.mubr.bf16.gmra.mxu0 %v24649_v18  ;;  %v5748_v24 = vrot.slane %v5196_v36, 2 }
 0x39f   : > { %v5197_v19 = vadd.f32 %v5040_v38, %v3595_v32 }
 0x3a0   : > { %v6317_v58 = vrot.slane %v5969_v3, 7  ;;  %v6319_v5 = vrot.slane %v5970_v33, 7  ;;  %v20895_v9 = vpop.f32.mrf.mxu0 }
 0x3a1   : > { %v5750_v31 = vrot.slane %v5197_v19, 2  ;;  %v5202_v42 = vadd.f32 %v20895_v9, %v27948_v46 }
 0x3a2   : > { %v6318_v10 = vsel %vm6261_vm2, %v24529_v49, %v6317_v58  ;;  %v6320_v48 = vsel %vm6261_vm2, %v6317_v58, %v6319_v5  ;;  %v6322_v4 = vsel %vm6261_vm2, %v6319_v5, %v24529_v49  ;;  %v5053_v7 = vpop.f32.mrf.mxu0 }
 0x3a3   : > { %v18770_v54 = vpack.c.bf16 %v6320_v48, %v6318_v10  ;;  %v18775_v30 = vpack.c.bf16 %v24529_v49, %v6322_v4  ;;  %v5751_v25 = vsel %vm5684_vm1, %v5748_v24, %v5750_v31  ;;  %v5753_v44 = vsel %vm5684_vm1, %v5750_v31, %v5752_v12  ;;  %v27950_v4 = vld [vmem:[#allocation109_spill] sm:$0xff] }
 0x3a4   : > { %v5909_v47 = vadd.f32 %v5751_v25, %v24428_v23  ;;  %v5910_v39 = vadd.f32 %v5753_v44, %v24430_v13  ;;  %v20896_v17 = vpop.f32.mrf.mxu0  ;;  %v24665_v51 = vld [vmem:[#allocation2 + $0x70] sm:$0xff]   ;;  %v5200_v59 = vadd.f32 %v5053_v7, %v27949_v41  ;;  %v24671_v11 = vld [vmem:[#allocation2 + $0x78] sm:$0xff]   ;;  %v5760_v55 = vrot.slane %v5202_v42, 2 }
 0x3a5   : > { %19031 = vst [vmem:[#allocation2 + $0x80] sm:$0xff] %v18770_v54   ;;  %19032 = vst [vmem:[#allocation2 + $0x88] sm:$0xff] %v18775_v30   ;;  %20961 = vmatprep.mubr.bf16.mxu1 %v24665_v51  ;;  %21045 = vmatprep.mubr.bf16.mxu0 %v24665_v51  ;;  %v3627_v48 = vadd.f32 %v24237_v45, %v24235_v50  ;;  %v27951_v54 = vld [vmem:[#allocation110_spill] sm:$0xff] }
 0x3a6   : > { %v5973_v21 = vmax.f32 %v5909_v47, 0.0  ;;  %v5974_v52 = vmax.f32 %v5910_v39, 0.0  ;;  %v5056_v32 = vpop.f32.mrf.mxu0  ;;  %20962 = vmatmul.mubr.bf16.gmra.mxu1 %v24671_v11  ;;  %21046 = vmatmul.mubr.bf16.gmra.mxu0 %v24671_v11  ;;  %v5756_v28 = vrot.slane %v5200_v59, 2 }
 0x3a7   : > { %v5201_v23 = vadd.f32 %v5056_v32, %v3611_v34 }
 0x3a8   : > { %v6325_v60 = vrot.slane %v5973_v21, 7  ;;  %v6327_v26 = vrot.slane %v5974_v52, 7  ;;  %v20899_v13 = vpop.f32.mrf.mxu0 }
 0x3a9   : > { %v5758_v56 = vrot.slane %v5201_v23, 2  ;;  %v5206_v7 = vadd.f32 %v20899_v13, %v27950_v4 }
 0x3aa   : > { %v6326_v36 = vsel %vm6261_vm2, %v24529_v49, %v6325_v60  ;;  %v6328_v3 = vsel %vm6261_vm2, %v6325_v60, %v6327_v26  ;;  %v6330_v33 = vsel %vm6261_vm2, %v6327_v26, %v24529_v49  ;;  %v5069_v38 = vpop.f32.mrf.mxu0 }
 0x3ab   : > { %v18780_v19 = vpack.c.bf16 %v6328_v3, %v6326_v36  ;;  %v18785_v58 = vpack.c.bf16 %v24529_v49, %v6330_v33  ;;  %v5759_v5 = vsel %vm5684_vm1, %v5756_v28, %v5758_v56  ;;  %v5761_v9 = vsel %vm5684_vm1, %v5758_v56, %v5760_v55  ;;  %v27952_v36 = vld [vmem:[#allocation111_spill] sm:$0xff]  ;;  %v27953_v33 = vld [vmem:[#allocation112_spill] sm:$0xff] }
 0x3ac   : > { %v5913_v12 = vadd.f32 %v5759_v5, %v24441_v35  ;;  %v5914_v24 = vadd.f32 %v5761_v9, %v24443_v43  ;;  %v20900_v31 = vpop.f32.mrf.mxu0  ;;  %v24687_v10 = vld [vmem:[#allocation2 + $0x80] sm:$0xff]   ;;  %v5204_v30 = vadd.f32 %v5069_v38, %v27951_v54  ;;  %v24693_v25 = vld [vmem:[#allocation2 + $0x88] sm:$0xff]   ;;  %v5768_v17 = vrot.slane %v5206_v7, 2 }
 0x3ad   : > { %19033 = vst [vmem:[#allocation2 + $0x90] sm:$0xff] %v18780_v19   ;;  %19034 = vst [vmem:[#allocation2 + $0x98] sm:$0xff] %v18785_v58   ;;  %20965 = vmatprep.mubr.bf16.mxu1 %v24687_v10  ;;  %21049 = vmatprep.mubr.bf16.mxu0 %v24687_v10  ;;  %v3643_v56 = vadd.f32 %v24247_v16, %v24245_v2 }
 0x3ae   : > { %v5977_v44 = vmax.f32 %v5913_v12, 0.0  ;;  %v5978_v47 = vmax.f32 %v5914_v24, 0.0  ;;  %v5072_v39 = vpop.f32.mrf.mxu0  ;;  %20966 = vmatmul.mubr.bf16.gmra.mxu1 %v24693_v25  ;;  %21050 = vmatmul.mubr.bf16.gmra.mxu0 %v24693_v25  ;;  %v5764_v34 = vrot.slane %v5204_v30, 2 }
 0x3af   : > { %v5205_v35 = vadd.f32 %v5072_v39, %v3627_v48 }
 0x3b0   : > { %v6333_v45 = vrot.slane %v5977_v44, 7  ;;  %v6335_v50 = vrot.slane %v5978_v47, 7  ;;  %v20903_v43 = vpop.f32.mrf.mxu0 }
 0x3b1   : > { %v5766_v46 = vrot.slane %v5205_v35, 2  ;;  %v5210_v3 = vadd.f32 %v20903_v43, %v27952_v36 }
 0x3b2   : > { %v6334_v42 = vsel %vm6261_vm2, %v24529_v49, %v6333_v45  ;;  %v6336_v41 = vsel %vm6261_vm2, %v6333_v45, %v6335_v50  ;;  %v6338_v59 = vsel %vm6261_vm2, %v6335_v50, %v24529_v49  ;;  %v5085_v21 = vpop.f32.mrf.mxu0 }
 0x3b3   : > { %v18790_v52 = vpack.c.bf16 %v6336_v41, %v6334_v42  ;;  %v18795_v32 = vpack.c.bf16 %v24529_v49, %v6338_v59  ;;  %v5767_v23 = vsel %vm5684_vm1, %v5764_v34, %v5766_v46  ;;  %v5769_v60 = vsel %vm5684_vm1, %v5766_v46, %v5768_v17  ;;  %v27954_v34 = vld [vmem:[#allocation113_spill] sm:$0xff]  ;;  %v27955_v42 = vld [vmem:[#allocation114_spill] sm:$0xff] }
 0x3b4   : > { %v5917_v26 = vadd.f32 %v5767_v23, %v24454_v62  ;;  %v5918_v13 = vadd.f32 %v5769_v60, %v24456_v22  ;;  %v20904_v55 = vpop.f32.mrf.mxu0  ;;  %v24709_v28 = vld [vmem:[#allocation2 + $0x90] sm:$0xff]   ;;  %v5208_v38 = vadd.f32 %v5085_v21, %v27953_v33  ;;  %v24715_v19 = vld [vmem:[#allocation2 + $0x98] sm:$0xff]   ;;  %v5776_v12 = vrot.slane %v5210_v3, 2 }
 0x3b5   : > { %19035 = vst [vmem:[#allocation2 + $0xa0] sm:$0xff] %v18790_v52   ;;  %19036 = vst [vmem:[#allocation2 + $0xa8] sm:$0xff] %v18795_v32   ;;  %20969 = vmatprep.mubr.bf16.mxu1 %v24709_v28  ;;  %21053 = vmatprep.mubr.bf16.mxu0 %v24709_v28  ;;  %v3659_v17 = vadd.f32 %v24257_v63, %v24255_v37 }
 0x3b6   : > { %v5981_v58 = vmax.f32 %v5917_v26, 0.0  ;;  %v5982_v5 = vmax.f32 %v5918_v13, 0.0  ;;  %v5088_v9 = vpop.f32.mrf.mxu0  ;;  %20970 = vmatmul.mubr.bf16.gmra.mxu1 %v24715_v19  ;;  %21054 = vmatmul.mubr.bf16.gmra.mxu0 %v24715_v19  ;;  %v5772_v24 = vrot.slane %v5208_v38, 2 }
 0x3b7   : > { %v5209_v62 = vadd.f32 %v5088_v9, %v3643_v56 }
 0x3b8   : > { %v6341_v16 = vrot.slane %v5981_v58, 7  ;;  %v6343_v2 = vrot.slane %v5982_v5, 7  ;;  %v20907_v22 = vpop.f32.mrf.mxu0 }
 0x3b9   : > { %v5774_v31 = vrot.slane %v5209_v62, 2  ;;  %v5214_v46 = vadd.f32 %v20907_v22, %v27954_v34  ;;  %v27957_v22 = vld [vmem:[#allocation118_spill] sm:$0xff] }
 0x3ba   : > { %v6342_v48 = vsel %vm6261_vm2, %v24529_v49, %v6341_v16  ;;  %v6344_v4 = vsel %vm6261_vm2, %v6341_v16, %v6343_v2  ;;  %v6346_v7 = vsel %vm6261_vm2, %v6343_v2, %v24529_v49  ;;  %v5101_v54 = vpop.f32.mrf.mxu0  ;;  %v27956_v2 = vld [vmem:[#allocation117_spill] sm:$0xff] }
 0x3bb   : > { %v18800_v30 = vpack.c.bf16 %v6344_v4, %v6342_v48  ;;  %v18805_v44 = vpack.c.bf16 %v24529_v49, %v6346_v7  ;;  %v5775_v47 = vsel %vm5684_vm1, %v5772_v24, %v5774_v31  ;;  %v5777_v39 = vsel %vm5684_vm1, %v5774_v31, %v5776_v12  ;;  %v27958_v24 = vld [vmem:[#allocation115_spill] sm:$0xff]  ;;  %v27959_v48 = vld [vmem:[#allocation116_spill] sm:$0xff] }
 0x3bc   : > { %v5921_v35 = vadd.f32 %v5775_v47, %v24467_v1  ;;  %v5922_v45 = vadd.f32 %v5777_v39, %v24469_v14  ;;  %v20908_v50 = vpop.f32.mrf.mxu0  ;;  %v24731_v43 = vld [vmem:[#allocation2 + $0xa0] sm:$0xff]   ;;  %v5212_v41 = vadd.f32 %v5101_v54, %v27955_v42  ;;  %v24737_v59 = vld [vmem:[#allocation2 + $0xa8] sm:$0xff]   ;;  %v5784_v23 = vrot.slane %v5214_v46, 2 }
 0x3bd   : > { %19037 = vst [vmem:[#allocation2 + $0xb0] sm:$0xff] %v18800_v30   ;;  %19038 = vst [vmem:[#allocation2 + $0xb8] sm:$0xff] %v18805_v44   ;;  %20973 = vmatprep.mubr.bf16.mxu1 %v24731_v43  ;;  %21057 = vmatprep.mubr.bf16.mxu0 %v24731_v43  ;;  %v3675_v12 = vadd.f32 %v27957_v22, %v27956_v2 }
 0x3be   : > { %v5985_v21 = vmax.f32 %v5921_v35, 0.0  ;;  %v5986_v52 = vmax.f32 %v5922_v45, 0.0  ;;  %v5104_v32 = vpop.f32.mrf.mxu0  ;;  %20974 = vmatmul.mubr.bf16.gmra.mxu1 %v24737_v59  ;;  %21058 = vmatmul.mubr.bf16.gmra.mxu0 %v24737_v59  ;;  %v5780_v60 = vrot.slane %v5212_v41, 2 }
 0x3bf   : > { %v5213_v1 = vadd.f32 %v5104_v32, %v3659_v17 }
 0x3c0   : > { %v6349_v63 = vrot.slane %v5985_v21, 7  ;;  %v6351_v37 = vrot.slane %v5986_v52, 7  ;;  %v20911_v14 = vpop.f32.mrf.mxu0 }
 0x3c1   : > { %v5782_v26 = vrot.slane %v5213_v1, 2  ;;  %v5218_v31 = vadd.f32 %v20911_v14, %v27958_v24  ;;  %v27960_v1 = vld [vmem:[#allocation18_spill] sm:$0xff] }
 0x3c2   : > { %v6350_v13 = vsel %vm6261_vm2, %v24529_v49, %v6349_v63  ;;  %v6352_v55 = vsel %vm6261_vm2, %v6349_v63, %v6351_v37  ;;  %v6354_v56 = vsel %vm6261_vm2, %v6351_v37, %v24529_v49  ;;  %v5117_v36 = vpop.f32.mrf.mxu0  ;;  %v27961_v37 = vld [vmem:[#allocation41_spill] sm:$0xff] }
 0x3c3   : > { %v18810_v3 = vpack.c.bf16 %v6352_v55, %v6350_v13  ;;  %v18815_v33 = vpack.c.bf16 %v24529_v49, %v6354_v56  ;;  %v5783_v38 = vsel %vm5684_vm1, %v5780_v60, %v5782_v26  ;;  %v5785_v58 = vsel %vm5684_vm1, %v5782_v26, %v5784_v23  ;;  %v27962_v26 = vld [vmem:[#allocation121_spill] sm:$0xff]  ;;  %v27963_v13 = vld [vmem:[#allocation122_spill] sm:$0xff]  ;;  %v27964_v56 = vld [vmem:[#allocation119_spill] sm:$0xff] }
 0x3c4   : > { %v5925_v5 = vadd.f32 %v5783_v38, %v24480_v8  ;;  %v5926_v9 = vadd.f32 %v5785_v58, %v24482_v29  ;;  %v20912_v62 = vpop.f32.mrf.mxu0  ;;  %v24753_v16 = vld [vmem:[#allocation2 + $0xb0] sm:$0xff]   ;;  %v5216_v4 = vadd.f32 %v5117_v36, %v27959_v48  ;;  %v24759_v7 = vld [vmem:[#allocation2 + $0xb8] sm:$0xff]   ;;  %v5792_v35 = vrot.slane %v5218_v31, 2 }
 0x3c5   : > { %19039 = vst [vmem:[#allocation2 + $0xc0] sm:$0xff] %v18810_v3   ;;  %19040 = vst [vmem:[#allocation2 + $0xc8] sm:$0xff] %v18815_v33   ;;  %20977 = vmatprep.mubr.bf16.mxu1 %v24753_v16  ;;  %21061 = vmatprep.mubr.bf16.mxu0 %v24753_v16  ;;  %v3691_v55 = vadd.f32 %v27963_v13, %v27962_v26  ;;  %v27965_v3 = vld [vmem:[#allocation120_spill] sm:$0xff]  ;;  %v24785_v62 = vld [vmem:[#allocation9 + $0xb8] sm:$0xff]  }
 0x3c6   : > { %v5989_v54 = vmax.f32 %v5925_v5, 0.0  ;;  %v5990_v30 = vmax.f32 %v5926_v9, 0.0  ;;  %v5120_v44 = vpop.f32.mrf.mxu0  ;;  %20978 = vmatmul.mubr.bf16.gmra.mxu1 %v24759_v7  ;;  %21062 = vmatmul.mubr.bf16.gmra.mxu0 %v24759_v7  ;;  %v5788_v45 = vrot.slane %v5216_v4, 2 }
 0x3c7   : > { %v5217_v8 = vadd.f32 %v5120_v44, %v3675_v12  ;;  %21321 = vmatprep.subr.bf16.mxu0 %v24785_v62 }
 0x3c8   : > { %v6357_v29 = vrot.slane %v5989_v54, 7  ;;  %v6359_v47 = vrot.slane %v5990_v30, 7  ;;  %v20915_v39 = vpop.f32.mrf.mxu0 }
 0x3c9   : > { %v5790_v50 = vrot.slane %v5217_v8, 2  ;;  %v5222_v36 = vadd.f32 %v20915_v39, %v27964_v56 }
 0x3ca   : > { %v6358_v17 = vsel %vm6261_vm2, %v24529_v49, %v6357_v29  ;;  %v6360_v34 = vsel %vm6261_vm2, %v6357_v29, %v6359_v47  ;;  %v6362_v46 = vsel %vm6261_vm2, %v6359_v47, %v24529_v49  ;;  %v5133_v42 = vpop.f32.mrf.mxu0 }
 0x3cb   : > { %v18820_v41 = vpack.c.bf16 %v6360_v34, %v6358_v17  ;;  %v18825_v21 = vpack.c.bf16 %v24529_v49, %v6362_v46  ;;  %v5791_v52 = vsel %vm5684_vm1, %v5788_v45, %v5790_v50  ;;  %v5793_v32 = vsel %vm5684_vm1, %v5790_v50, %v5792_v35  ;;  %v27966_v46 = vld [vmem:[#allocation125_spill] sm:$0xff] }
 0x3cc   : > { %v5929_v63 = vadd.f32 %v5791_v52, %v27960_v1  ;;  %v5930_v14 = vadd.f32 %v5793_v32, %v27961_v37  ;;  %v20916_v23 = vpop.f32.mrf.mxu0  ;;  %v24775_v60 = vld [vmem:[#allocation2 + $0xc0] sm:$0xff]   ;;  %v5220_v33 = vadd.f32 %v5133_v42, %v27965_v3  ;;  %v24781_v38 = vld [vmem:[#allocation2 + $0xc8] sm:$0xff]   ;;  %v5800_v31 = vrot.slane %v5222_v36, 2  ;;  %v27969_v32 = vld [vmem:[#allocation124_spill] sm:$0xff] }
 0x3cd   : > { %19041 = vst [vmem:[#allocation2 + $0xd0] sm:$0xff] %v18820_v41   ;;  %19042 = vst [vmem:[#allocation2 + $0xd8] sm:$0xff] %v18825_v21   ;;  %20981 = vmatprep.mubr.bf16.mxu1 %v24775_v60  ;;  %21065 = vmatprep.mubr.bf16.mxu0 %v24775_v60  ;;  %v27967_v42 = vld [vmem:[#allocation126_spill] sm:$0xff]  ;;  %v27968_v21 = vld [vmem:[#allocation123_spill] sm:$0xff] }
 0x3ce   : > { %v5993_v58 = vmax.f32 %v5929_v63, 0.0  ;;  %v5994_v5 = vmax.f32 %v5930_v14, 0.0  ;;  %v5136_v9 = vpop.f32.mrf.mxu0  ;;  %20982 = vmatmul.mubr.bf16.gmra.mxu1 %v24781_v38  ;;  %21066 = vmatmul.mubr.bf16.gmra.mxu0 %v24781_v38  ;;  %v5796_v48 = vrot.slane %v5220_v33, 2  ;;  %v3707_v41 = vadd.f32 %v27967_v42, %v27966_v46  ;;  %v24846_v42 = vld [vmem:[#allocation2] sm:$0xff]  }
 0x3cf   : > { %v5221_v2 = vadd.f32 %v5136_v9, %v3691_v55 }
 0x3d0   : > { %v6365_v22 = vrot.slane %v5993_v58, 7  ;;  %v6367_v12 = vrot.slane %v5994_v5, 7  ;;  %v20919_v24 = vpop.f32.mrf.mxu0 }
 0x3d1   : > { %v5798_v4 = vrot.slane %v5221_v2, 2  ;;  %v5226_v52 = vadd.f32 %v20919_v24, %v27968_v21 }
 0x3d2   : > { %v6366_v54 = vsel %vm6261_vm2, %v24529_v49, %v6365_v22  ;;  %v6368_v30 = vsel %vm6261_vm2, %v6365_v22, %v6367_v12  ;;  %v6370_v44 = vsel %vm6261_vm2, %v6367_v12, %v24529_v49  ;;  %v5149_v8 = vpop.f32.mrf.mxu0 }
 0x3d3   : > { %v18830_v29 = vpack.c.bf16 %v6368_v30, %v6366_v54  ;;  %v18835_v47 = vpack.c.bf16 %v24529_v49, %v6370_v44  ;;  %v5799_v39 = vsel %vm5684_vm1, %v5796_v48, %v5798_v4  ;;  %v5801_v35 = vsel %vm5684_vm1, %v5798_v4, %v5800_v31  ;;  %v27970_v31 = vld [vmem:[#allocation89_spill] sm:$0xff] }
 0x3d4   : > { %v5933_v45 = vadd.f32 %v5799_v39, %v24506_v40  ;;  %v5934_v50 = vadd.f32 %v5801_v35, %v24508_v61  ;;  %v20920_v17 = vpop.f32.mrf.mxu0  ;;  %v24800_v34 = vld [vmem:[#allocation2 + $0xd0] sm:$0xff]   ;;  %v5224_v1 = vadd.f32 %v5149_v8, %v27969_v32  ;;  %v24806_v63 = vld [vmem:[#allocation2 + $0xd8] sm:$0xff]   ;;  %v5808_v55 = vrot.slane %v5226_v52, 2  ;;  %v24855_v32 = vld [vmem:[#allocation2 + $0x8] sm:$0xff]  }
 0x3d5   : > { %19043 = vst [vmem:[#allocation2 + $0xe0] sm:$0xff] %v18830_v29   ;;  %19044 = vst [vmem:[#allocation2 + $0xe8] sm:$0xff] %v18835_v47   ;;  %20985 = vmatprep.mubr.bf16.mxu1 %v24800_v34  ;;  %21069 = vmatprep.mubr.bf16.mxu0 %v24800_v34  ;;  %v22748_v52 = vld [vmem:[#allocation9 + $0xb0] sm:$0xff]  }
 0x3d6   : > { %v5997_v37 = vmax.f32 %v5933_v45, 0.0  ;;  %v5998_v14 = vmax.f32 %v5934_v50, 0.0  ;;  %v5152_v23 = vpop.f32.mrf.mxu0  ;;  %20986 = vmatmul.mubr.bf16.gmra.mxu1 %v24806_v63  ;;  %21070 = vmatmul.mubr.bf16.gmra.mxu0 %v24806_v63  ;;  %v5804_v56 = vrot.slane %v5224_v1, 2  ;;  %v24858_v1 = vld [vmem:[#allocation2 + $0x10] sm:$0xff]  }
 0x3d7   : > { %v5225_v40 = vadd.f32 %v5152_v23, %v3707_v41  ;;  %v22751_v23 = vld [vmem:[#allocation9 + $0xa0] sm:$0xff]  }
 0x3d8   : > { %v6373_v61 = vrot.slane %v5997_v37, 7  ;;  %v6375_v26 = vrot.slane %v5998_v14, 7  ;;  %v21019_v13 = vpop.f32.mrf.mxu0  ;;  %v22750_v37 = vld [vmem:[#allocation9 + $0xa8] sm:$0xff]   ;;  %v22742_v14 = vld [vmem:[#allocation9 + $0x170] sm:$0xff]  }
 0x3d9   : > { %v5806_v36 = vrot.slane %v5225_v40, 2  ;;  %v24863_v40 = vld [vmem:[#allocation2 + $0x18] sm:$0xff]   ;;  %v22744_v13 = vld [vmem:[#allocation9 + $0x160] sm:$0xff]  }
 0x3da   : > { %v6374_v3 = vsel %vm6261_vm2, %v24529_v49, %v6373_v61  ;;  %v6376_v33 = vsel %vm6261_vm2, %v6373_v61, %v6375_v26  ;;  %v6378_v58 = vsel %vm6261_vm2, %v6375_v26, %v24529_v49  ;;  %v24817_v5 = vpop.f32.mrf.mxu0  ;;  %v24867_v61 = vld [vmem:[#allocation2 + $0x20] sm:$0xff]   ;;  %v22752_v26 = vld [vmem:[#allocation9 + $0x98] sm:$0xff]  }
 0x3db   : > { %v18840_v9 = vpack.c.bf16 %v6376_v33, %v6374_v3  ;;  %v18845_v2 = vpack.c.bf16 %v24529_v49, %v6378_v58  ;;  %v5807_v22 = vsel %vm5684_vm1, %v5804_v56, %v5806_v36  ;;  %v5809_v12 = vsel %vm5684_vm1, %v5806_v36, %v5808_v55  ;;  %v22753_v55 = vld [vmem:[#allocation9 + $0x90] sm:$0xff]   ;;  %v24872_v56 = vld [vmem:[#allocation2 + $0x28] sm:$0xff]   ;;  %v22756_v58 = vld [vmem:[#allocation9 + $0x80] sm:$0xff]  }
 0x3dc   : > { %v5937_v24 = vadd.f32 %v5807_v22, %v24516_v57  ;;  %v5938_v48 = vadd.f32 %v5809_v12, %v27970_v31  ;;  %v24824_v4 = vld [vmem:[#allocation2 + $0xe0] sm:$0xff]   ;;  %v21020_v54 = vpop.f32.mrf.mxu0  ;;  %v24826_v30 = vld [vmem:[#allocation2 + $0xe8] sm:$0xff]   ;;  %v24876_v36 = vld [vmem:[#allocation2 + $0x30] sm:$0xff]  }
 0x3dd   : > { %19045 = vst [vmem:[#allocation2 + $0xf0] sm:$0xff] %v18840_v9   ;;  %19046 = vst [vmem:[#allocation2 + $0xf8] sm:$0xff] %v18845_v2   ;;  %20989 = vmatprep.mubr.bf16.mxu1 %v24824_v4  ;;  %21073 = vmatprep.mubr.bf16.mxu0 %v24824_v4  ;;  %v22755_v3 = vld [vmem:[#allocation9 + $0x88] sm:$0xff]   ;;  %v22746_v33 = vld [vmem:[#allocation9 + $0x150] sm:$0xff]  }
 0x3de   : > { %v6001_v44 = vmax.f32 %v5937_v24, 0.0  ;;  %v6002_v8 = vmax.f32 %v5938_v48, 0.0  ;;  %20990 = vmatmul.mubr.bf16.gmra.mxu1 %v24826_v30  ;;  %21074 = vmatmul.mubr.bf16.gmra.mxu0 %v24826_v30  ;;  %v24880_v9 = vld [vmem:[#allocation2 + $0x38] sm:$0xff]   ;;  %v22749_v2 = vld [vmem:[#allocation9 + $0x148] sm:$0xff]   ;;  %v22754_v22 = vld [vmem:[#allocation9 + $0x140] sm:$0xff]  }
 0x3e0   : > { %v6381_v57 = vrot.slane %v6001_v44, 7  ;;  %v6383_v29 = vrot.slane %v6002_v8, 7 }
 0x3e2   : > { %v6382_v47 = vsel %vm6261_vm2, %v24529_v49, %v6381_v57  ;;  %v6384_v39 = vsel %vm6261_vm2, %v6381_v57, %v6383_v29  ;;  %v6386_v35 = vsel %vm6261_vm2, %v6383_v29, %v24529_v49 }
 0x3e3   : > { %v18850_v45 = vpack.c.bf16 %v6384_v39, %v6382_v47  ;;  %v18855_v50 = vpack.c.bf16 %v24529_v49, %v6386_v35  ;;  %v23048_v49 = vld [vmem:[#allocation2 + $0xb8] sm:$0xff]  }
 0x3e4   : > { %v24838_v17 = vld [vmem:[#allocation2 + $0xf0] sm:$0xff]   ;;  %v24840_v46 = vld [vmem:[#allocation2 + $0xf8] sm:$0xff]  }
 0x3e5   : > { %19047 = vst [vmem:[#allocation2 + $0x100] sm:$0xff] %v18850_v45   ;;  %19048 = vst [vmem:[#allocation2 + $0x108] sm:$0xff] %v18855_v50   ;;  %20993 = vmatprep.mubr.bf16.mxu1 %v24838_v17  ;;  %21077 = vmatprep.mubr.bf16.mxu0 %v24838_v17 }
 0x3e6   : > { %20994 = vmatmul.mubr.bf16.gmra.mxu1 %v24840_v46  ;;  %21078 = vmatmul.mubr.bf16.gmra.mxu0 %v24840_v46 }
 0x3e7   : > { %21177 = vmatprep.mubr.bf16.mxu0 %v24846_v42 }
 0x3ec   : > { %v24849_v41 = vld [vmem:[#allocation2 + $0x100] sm:$0xff]   ;;  %v24851_v21 = vld [vmem:[#allocation2 + $0x108] sm:$0xff]  }
 0x3ed   : > { %20997 = vmatprep.mubr.bf16.mxu1 %v24849_v41 }
 0x3ee   : > { %20998 = vmatmul.mubr.bf16.gmra.mxu1 %v24851_v21  ;;  %21178 = vmatmul.mubr.bf16.vlgmr.msra.gmra.mxu0 %v24855_v32 }
 0x3ef   : > { %21097 = vmatprep.mubr.bf16.mxu1 %v24858_v1  ;;  %21181 = vmatprep.mubr.bf16.mxu0 %v24858_v1 }
 0x3f0   : > { %21322 = vmatpush3.bf16.msra.mxu0 %v24785_v62  ;;  %v22743_v62 = vld [vmem:[#allocation9 + $0x168] sm:$0xff]  }
 0x3f1   : > { %21323 = vmatprep.subr.bf16.mxu0 %v22748_v52 }
 0x3f4   : > { %21324 = vmatpush3.bf16.msra.mxu0 %v22748_v52 }
 0x3f5   : > { %21325 = vmatprep.subr.bf16.mxu0 %v22750_v37 }
 0x3f6   : > { %21098 = vmatmul.mubr.bf16.vlgmr.msra.gmra.mxu1 %v24863_v40  ;;  %21182 = vmatmul.mubr.bf16.gmra.mxu0 %v24863_v40 }
 0x3f7   : > { %21101 = vmatprep.mubr.bf16.mxu1 %v24867_v61  ;;  %21185 = vmatprep.mubr.bf16.mxu0 %v24867_v61 }
 0x3f8   : > { %21242 = vmatpush3.bf16.msra.mxu1 %v24608_v27  ;;  %21326 = vmatpush3.bf16.msra.mxu0 %v22750_v37  ;;  %v22745_v27 = vld [vmem:[#allocation9 + $0x158] sm:$0xff]  }
 0x3f9   : > { %21243 = vmatprep.subr.bf16.mxu1 %v22742_v14  ;;  %21327 = vmatprep.subr.bf16.mxu0 %v22751_v23 }
 0x3fc   : > { %21244 = vmatpush3.bf16.msra.mxu1 %v22742_v14  ;;  %21328 = vmatpush3.bf16.msra.mxu0 %v22751_v23  ;;  %v24933_v14 = vld [vmem:[#allocation9 + $0x1f8] sm:$0xff]  }
 0x3fd   : > { %21245 = vmatprep.subr.bf16.mxu1 %v22743_v62  ;;  %21329 = vmatprep.subr.bf16.mxu0 %v22752_v26 }
 0x3fe   : > { %21102 = vmatmul.mubr.bf16.gmra.mxu1 %v24872_v56  ;;  %21186 = vmatmul.mubr.bf16.gmra.mxu0 %v24872_v56 }
 0x3ff   : > { %21105 = vmatprep.mubr.bf16.mxu1 %v24876_v36  ;;  %21189 = vmatprep.mubr.bf16.mxu0 %v24876_v36 }
 0x400   : > { %21246 = vmatpush3.bf16.msra.mxu1 %v22743_v62  ;;  %21330 = vmatpush3.bf16.msra.mxu0 %v22752_v26 }
 0x401   : > { %21247 = vmatprep.subr.bf16.mxu1 %v22744_v13  ;;  %21331 = vmatprep.subr.bf16.mxu0 %v22753_v55 }
 0x404   : > { %21248 = vmatpush3.bf16.msra.mxu1 %v22744_v13  ;;  %21332 = vmatpush3.bf16.msra.mxu0 %v22753_v55 }
 0x405   : > { %21249 = vmatprep.subr.bf16.mxu1 %v22745_v27  ;;  %21333 = vmatprep.subr.bf16.mxu0 %v22755_v3 }
 0x406   : > { %21106 = vmatmul.mubr.bf16.gmra.mxu1 %v24880_v9  ;;  %21190 = vmatmul.mubr.bf16.gmra.mxu0 %v24880_v9 }
 0x407   : > { %21109 = vmatprep.mubr.bf16.mxu1 %v24596_v53  ;;  %21193 = vmatprep.mubr.bf16.mxu0 %v24596_v53  ;;  %v24890_v53 = vld [vmem:[#allocation9 + $0x1b8] sm:$0xff]  }
 0x408   : > { %21250 = vmatpush3.bf16.msra.mxu1 %v22745_v27  ;;  %21334 = vmatpush3.bf16.msra.mxu0 %v22755_v3 }
 0x409   : > { %21251 = vmatprep.subr.bf16.mxu1 %v22746_v33  ;;  %21335 = vmatprep.subr.bf16.mxu0 %v22756_v58 }
 0x40c   : > { %21252 = vmatpush3.bf16.msra.mxu1 %v22746_v33  ;;  %21336 = vmatpush3.bf16.msra.mxu0 %v22756_v58 }
 0x40d   : > { %21253 = vmatprep.subr.bf16.mxu1 %v22749_v2  ;;  %21481 = vmatprep.subr.bf16.mxu0 %v24933_v14 }
 0x40e   : > { %21110 = vmatmul.mubr.bf16.gmra.mxu1 %v24602_v15  ;;  %21194 = vmatmul.mubr.bf16.gmra.mxu0 %v24602_v15  ;;  %v7535_v15 = vpop.f32.mrf.mxu0 }
 0x40f   : > { %21113 = vmatprep.mubr.bf16.mxu1 %v24620_v6  ;;  %21197 = vmatprep.mubr.bf16.mxu0 %v24620_v6 }
 0x410   : > { %21254 = vmatpush3.bf16.msra.mxu1 %v22749_v2 }
 0x411   : > { %21255 = vmatprep.subr.bf16.mxu1 %v22754_v22 }
 0x414   : > { %21256 = vmatpush3.bf16.msra.mxu1 %v22754_v22 }
 0x415   : > { %21401 = vmatprep.subr.bf16.mxu1 %v24890_v53 }
 0x416   : > { %21114 = vmatmul.mubr.bf16.gmra.mxu1 %v24626_v20  ;;  %21198 = vmatmul.mubr.bf16.gmra.mxu0 %v24626_v20 }
 0x417   : > { %21117 = vmatprep.mubr.bf16.mxu1 %v24643_v0  ;;  %21201 = vmatprep.mubr.bf16.mxu0 %v24643_v0 }
 0x41e   : > { %21118 = vmatmul.mubr.bf16.gmra.mxu1 %v24649_v18  ;;  %21202 = vmatmul.mubr.bf16.gmra.mxu0 %v24649_v18 }
 0x41f   : > { %21121 = vmatprep.mubr.bf16.mxu1 %v24665_v51  ;;  %21205 = vmatprep.mubr.bf16.mxu0 %v24665_v51 }
 0x426   : > { %21122 = vmatmul.mubr.bf16.gmra.mxu1 %v24671_v11  ;;  %21206 = vmatmul.mubr.bf16.gmra.mxu0 %v24671_v11 }
 0x427   : > { %21125 = vmatprep.mubr.bf16.mxu1 %v24687_v10  ;;  %21209 = vmatprep.mubr.bf16.mxu0 %v24687_v10 }
 0x42e   : > { %21126 = vmatmul.mubr.bf16.gmra.mxu1 %v24693_v25  ;;  %21210 = vmatmul.mubr.bf16.gmra.mxu0 %v24693_v25 }
 0x42f   : > { %21129 = vmatprep.mubr.bf16.mxu1 %v24709_v28  ;;  %21213 = vmatprep.mubr.bf16.mxu0 %v24709_v28 }
 0x436   : > { %v20939_v6 = vpop.f32.mrf.mxu1  ;;  %v21023_v20 = vpop.f32.mrf.mxu0  ;;  %21130 = vmatmul.mubr.bf16.gmra.mxu1 %v24715_v19  ;;  %21214 = vmatmul.mubr.bf16.gmra.mxu0 %v24715_v19 }
 0x437   : > { %21133 = vmatprep.mubr.bf16.mxu1 %v24731_v43  ;;  %21217 = vmatprep.mubr.bf16.mxu0 %v24731_v43 }
 0x438   : > { %v24913_v0 = vpop.f32.mrf.mxu1  ;;  %v7548_v18 = vpop.f32.mrf.mxu0 }
 0x43a   : > { %v20940_v51 = vpop.f32.mrf.mxu1  ;;  %v21024_v11 = vpop.f32.mrf.mxu0 }
 0x43c   : > { %v7186_v10 = vpop.f32.mrf.mxu1  ;;  %v7551_v25 = vpop.f32.mrf.mxu0 }
 0x43d   : > { %v24915_v12 = vadd.f32 %v7535_v15, %v7186_v10 }
 0x43e   : > { %v20943_v28 = vpop.f32.mrf.mxu1  ;;  %v21027_v24 = vpop.f32.mrf.mxu0  ;;  %21134 = vmatmul.mubr.bf16.gmra.mxu1 %v24737_v59  ;;  %21218 = vmatmul.mubr.bf16.gmra.mxu0 %v24737_v59 }
 0x43f   : > { %21137 = vmatprep.mubr.bf16.mxu1 %v24753_v16  ;;  %21221 = vmatprep.mubr.bf16.mxu0 %v24753_v16 }
 0x440   : > { %v7199_v19 = vpop.f32.mrf.mxu1  ;;  %v7564_v43 = vpop.f32.mrf.mxu0 }
 0x441   : > { %v24921_v31 = vadd.f32 %v7548_v18, %v7199_v19 }
 0x442   : > { %v20944_v48 = vpop.f32.mrf.mxu1  ;;  %v21028_v54 = vpop.f32.mrf.mxu0 }
 0x444   : > { %v7202_v44 = vpop.f32.mrf.mxu1  ;;  %v7567_v8 = vpop.f32.mrf.mxu0 }
 0x445   : > { %v24923_v57 = vadd.f32 %v7551_v25, %v7202_v44 }
 0x446   : > { %v20947_v29 = vpop.f32.mrf.mxu1  ;;  %v21031_v47 = vpop.f32.mrf.mxu0  ;;  %21138 = vmatmul.mubr.bf16.gmra.mxu1 %v24759_v7  ;;  %21222 = vmatmul.mubr.bf16.gmra.mxu0 %v24759_v7 }
 0x447   : > { %21141 = vmatprep.mubr.bf16.mxu1 %v24775_v60  ;;  %21225 = vmatprep.mubr.bf16.mxu0 %v24775_v60 }
 0x448   : > { %v7215_v59 = vpop.f32.mrf.mxu1  ;;  %v7580_v16 = vpop.f32.mrf.mxu0 }
 0x449   : > { %v24929_v39 = vadd.f32 %v7564_v43, %v7215_v59 }
 0x44a   : > { %v20948_v35 = vpop.f32.mrf.mxu1  ;;  %v21032_v45 = vpop.f32.mrf.mxu0 }
 0x44c   : > { %v7218_v50 = vpop.f32.mrf.mxu1  ;;  %v7583_v52 = vpop.f32.mrf.mxu0 }
 0x44d   : > { %v24931_v37 = vadd.f32 %v7567_v8, %v7218_v50 }
 0x44e   : > { %v20951_v23 = vpop.f32.mrf.mxu1  ;;  %v21035_v62 = vpop.f32.mrf.mxu0  ;;  %21142 = vmatmul.mubr.bf16.gmra.mxu1 %v24781_v38  ;;  %21226 = vmatmul.mubr.bf16.gmra.mxu0 %v24781_v38 }
 0x44f   : > { %21145 = vmatprep.mubr.bf16.mxu1 %v24800_v34  ;;  %21229 = vmatprep.mubr.bf16.mxu0 %v24800_v34 }
 0x450   : > { %v7231_v7 = vpop.f32.mrf.mxu1  ;;  %v7596_v60 = vpop.f32.mrf.mxu0 }
 0x451   : > { %v24940_v26 = vadd.f32 %v7580_v16, %v7231_v7  ;;  %v22764_v7 = vld [vmem:[#allocation9 + $0x1f0] sm:$0xff]  }
 0x452   : > { %v20952_v13 = vpop.f32.mrf.mxu1  ;;  %v21036_v55 = vpop.f32.mrf.mxu0 }
 0x454   : > { %v7234_v27 = vpop.f32.mrf.mxu1  ;;  %v7599_v3 = vpop.f32.mrf.mxu0 }
 0x455   : > { %v24942_v33 = vadd.f32 %v7583_v52, %v7234_v27 }
 0x456   : > { %v20955_v58 = vpop.f32.mrf.mxu1  ;;  %v21039_v2 = vpop.f32.mrf.mxu0  ;;  %21146 = vmatmul.mubr.bf16.gmra.mxu1 %v24806_v63  ;;  %21230 = vmatmul.mubr.bf16.gmra.mxu0 %v24806_v63 }
 0x457   : > { %27971 = vst [vmem:[#allocation42_spill] sm:$0xff] %v24942_v33  ;;  %21149 = vmatprep.mubr.bf16.mxu1 %v24824_v4  ;;  %21233 = vmatprep.mubr.bf16.mxu0 %v24824_v4 }
 0x458   : > { %v7247_v38 = vpop.f32.mrf.mxu1  ;;  %v7612_v22 = vpop.f32.mrf.mxu0 }
 0x459   : > { %v24948_v15 = vadd.f32 %v7596_v60, %v7247_v38 }
 0x45a   : > { %v20956_v6 = vpop.f32.mrf.mxu1  ;;  %v21040_v20 = vpop.f32.mrf.mxu0 }
 0x45b   : > { %27972 = vst [vmem:[#allocation19_spill] sm:$0xff] %v24948_v15  ;;  %v22767_v20 = vld [vmem:[#allocation9 + $0x1e0] sm:$0xff]  }
 0x45c   : > { %v7250_v18 = vpop.f32.mrf.mxu1  ;;  %v7615_v51 = vpop.f32.mrf.mxu0  ;;  %v25238_v15 = vld [vmem:[#allocation2 + $0xe0] sm:$0xff]  }
 0x45d   : > { %v24950_v11 = vadd.f32 %v7599_v3, %v7250_v18  ;;  %v22766_v3 = vld [vmem:[#allocation9 + $0x1e8] sm:$0xff]  }
 0x45e   : > { %v20959_v10 = vpop.f32.mrf.mxu1  ;;  %v21043_v25 = vpop.f32.mrf.mxu0  ;;  %21150 = vmatmul.mubr.bf16.gmra.mxu1 %v24826_v30  ;;  %21234 = vmatmul.mubr.bf16.gmra.mxu0 %v24826_v30 }
 0x45f   : > { %27973 = vst [vmem:[#allocation43_spill] sm:$0xff] %v24950_v11  ;;  %21153 = vmatprep.mubr.bf16.mxu1 %v24838_v17  ;;  %21237 = vmatprep.mubr.bf16.mxu0 %v24838_v17  ;;  %v22759_v25 = vld [vmem:[#allocation9 + $0x1a8] sm:$0xff]   ;;  %v25224_v11 = vld [vmem:[#allocation2 + $0xd0] sm:$0xff]  }
 0x460   : > { %v7263_v28 = vpop.f32.mrf.mxu1  ;;  %v7628_v24 = vpop.f32.mrf.mxu0 }
 0x461   : > { %v24956_v19 = vadd.f32 %v7612_v22, %v7263_v28  ;;  %v22768_v28 = vld [vmem:[#allocation9 + $0x1d8] sm:$0xff]  }
 0x462   : > { %v20960_v43 = vpop.f32.mrf.mxu1  ;;  %v21044_v48 = vpop.f32.mrf.mxu0 }
 0x463   : > { %27974 = vst [vmem:[#allocation20_spill] sm:$0xff] %v24956_v19 }
 0x464   : > { %v7266_v54 = vpop.f32.mrf.mxu1  ;;  %v7631_v44 = vpop.f32.mrf.mxu0 }
 0x465   : > { %v24958_v8 = vadd.f32 %v7615_v51, %v7266_v54 }
 0x466   : > { %v20963_v29 = vpop.f32.mrf.mxu1  ;;  %v21047_v47 = vpop.f32.mrf.mxu0  ;;  %21154 = vmatmul.mubr.bf16.gmra.mxu1 %v24840_v46  ;;  %21238 = vmatmul.mubr.bf16.gmra.mxu0 %v24840_v46 }
 0x467   : > { %27975 = vst [vmem:[#allocation44_spill] sm:$0xff] %v24958_v8  ;;  %21157 = vmatprep.mubr.bf16.mxu1 %v24849_v41  ;;  %21337 = vmatprep.mubr.bf16.mxu0 %v24846_v42 }
 0x468   : > { %v7279_v59 = vpop.f32.mrf.mxu1  ;;  %v7644_v16 = vpop.f32.mrf.mxu0 }
 0x469   : > { %v24964_v35 = vadd.f32 %v7628_v24, %v7279_v59 }
 0x46a   : > { %v20964_v45 = vpop.f32.mrf.mxu1  ;;  %v21048_v50 = vpop.f32.mrf.mxu0 }
 0x46b   : > { %27976 = vst [vmem:[#allocation95_spill] sm:$0xff] %v24964_v35  ;;  %v22761_v45 = vld [vmem:[#allocation9 + $0x198] sm:$0xff]   ;;  %v22771_v50 = vld [vmem:[#allocation9 + $0x1c8] sm:$0xff]   ;;  %v25168_v35 = vld [vmem:[#allocation2 + $0x90] sm:$0xff]  }
 0x46c   : > { %v7282_v52 = vpop.f32.mrf.mxu1  ;;  %v7647_v23 = vpop.f32.mrf.mxu0 }
 0x46d   : > { %v24966_v62 = vadd.f32 %v7631_v44, %v7282_v52 }
 0x46e   : > { %v20967_v60 = vpop.f32.mrf.mxu1  ;;  %v21051_v13 = vpop.f32.mrf.mxu0  ;;  %21158 = vmatmul.mubr.bf16.gmra.mxu1 %v24851_v21  ;;  %21338 = vmatmul.mubr.bf16.vlgmr.msra.gmra.mxu0 %v24855_v32  ;;  %v22758_v32 = vld [vmem:[#allocation9 + $0x1b0] sm:$0xff]  }
 0x46f   : > { %27977 = vst [vmem:[#allocation45_spill] sm:$0xff] %v24966_v62  ;;  %21257 = vmatprep.mubr.bf16.mxu1 %v24858_v1  ;;  %21341 = vmatprep.mubr.bf16.mxu0 %v24858_v1  ;;  %v22773_v13 = vld [vmem:[#allocation9 + $0x1c0] sm:$0xff]  }
 0x470   : > { %v7295_v42 = vpop.f32.mrf.mxu1  ;;  %v7660_v55 = vpop.f32.mrf.mxu0  ;;  %21482 = vmatpush3.bf16.msra.mxu0 %v24933_v14 }
 0x471   : > { %v24973_v27 = vadd.f32 %v7644_v16, %v7295_v42  ;;  %21483 = vmatprep.subr.bf16.mxu0 %v22764_v7 }
 0x472   : > { %v20968_v58 = vpop.f32.mrf.mxu1  ;;  %v21052_v2 = vpop.f32.mrf.mxu0 }
 0x473   : > { %27978 = vst [vmem:[#allocation21_spill] sm:$0xff] %v24973_v27  ;;  %v25122_v27 = vld [vmem:[#allocation2 + $0x58] sm:$0xff]  }
 0x474   : > { %v7298_v38 = vpop.f32.mrf.mxu1  ;;  %v7663_v22 = vpop.f32.mrf.mxu0  ;;  %21484 = vmatpush3.bf16.msra.mxu0 %v22764_v7 }
 0x475   : > { %v24975_v6 = vadd.f32 %v7647_v23, %v7298_v38  ;;  %21485 = vmatprep.subr.bf16.mxu0 %v22766_v3 }
 0x476   : > { %v20971_v18 = vpop.f32.mrf.mxu1  ;;  %v21055_v1 = vpop.f32.mrf.mxu0  ;;  %21258 = vmatmul.mubr.bf16.vlgmr.msra.gmra.mxu1 %v24863_v40  ;;  %21342 = vmatmul.mubr.bf16.gmra.mxu0 %v24863_v40 }
 0x477   : > { %27979 = vst [vmem:[#allocation46_spill] sm:$0xff] %v24975_v6  ;;  %21261 = vmatprep.mubr.bf16.mxu1 %v24867_v61  ;;  %21345 = vmatprep.mubr.bf16.mxu0 %v24867_v61  ;;  %v22760_v61 = vld [vmem:[#allocation9 + $0x1a0] sm:$0xff]  }
 0x478   : > { %21402 = vmatpush3.bf16.msra.mxu1 %v24890_v53  ;;  %v7311_v14 = vpop.f32.mrf.mxu1  ;;  %v7676_v51 = vpop.f32.mrf.mxu0  ;;  %21486 = vmatpush3.bf16.msra.mxu0 %v22766_v3  ;;  %v22769_v53 = vld [vmem:[#allocation9 + $0x1d0] sm:$0xff]   ;;  %v23033_v3 = vld [vmem:[#allocation2 + $0x40] sm:$0xff]  }
 0x479   : > { %v24982_v10 = vadd.f32 %v7660_v55, %v7311_v14  ;;  %21403 = vmatprep.subr.bf16.mxu1 %v22758_v32  ;;  %21487 = vmatprep.subr.bf16.mxu0 %v22767_v20 }
 0x47a   : > { %v20972_v24 = vpop.f32.mrf.mxu1  ;;  %v21056_v43 = vpop.f32.mrf.mxu0 }
 0x47b   : > { %27980 = vst [vmem:[#allocation22_spill] sm:$0xff] %v24982_v10  ;;  %v23035_v24 = vld [vmem:[#allocation2 + $0x50] sm:$0xff]   ;;  %v22792_v10 = vld [vmem:[#allocation9 + $0x220] sm:$0xff]  }
 0x47c   : > { %v7314_v48 = vpop.f32.mrf.mxu1  ;;  %v7679_v54 = vpop.f32.mrf.mxu0  ;;  %21404 = vmatpush3.bf16.msra.mxu1 %v22758_v32  ;;  %21488 = vmatpush3.bf16.msra.mxu0 %v22767_v20 }
 0x47d   : > { %v24984_v40 = vadd.f32 %v7663_v22, %v7314_v48  ;;  %21405 = vmatprep.subr.bf16.mxu1 %v22759_v25  ;;  %21489 = vmatprep.subr.bf16.mxu0 %v22768_v28  ;;  %v22765_v22 = vld [vmem:[#allocation9 + $0x188] sm:$0xff]  }
 0x47e   : > { %v20975_v44 = vpop.f32.mrf.mxu1  ;;  %v21059_v29 = vpop.f32.mrf.mxu0  ;;  %21262 = vmatmul.mubr.bf16.gmra.mxu1 %v24872_v56  ;;  %21346 = vmatmul.mubr.bf16.gmra.mxu0 %v24872_v56 }
 0x47f   : > { %27981 = vst [vmem:[#allocation47_spill] sm:$0xff] %v24984_v40  ;;  %21265 = vmatprep.mubr.bf16.mxu1 %v24876_v36  ;;  %21349 = vmatprep.mubr.bf16.mxu0 %v24876_v36  ;;  %v22762_v36 = vld [vmem:[#allocation9 + $0x190] sm:$0xff]   ;;  %v25108_v40 = vld [vmem:[#allocation2 + $0x48] sm:$0xff]  }
 0x480   : > { %v7327_v47 = vpop.f32.mrf.mxu1  ;;  %v7692_v59 = vpop.f32.mrf.mxu0  ;;  %21406 = vmatpush3.bf16.msra.mxu1 %v22759_v25  ;;  %21490 = vmatpush3.bf16.msra.mxu0 %v22768_v28  ;;  %v23034_v28 = vld [vmem:[#allocation2 + $0x48] sm:$0xff]  }
 0x481   : > { %v24990_v16 = vadd.f32 %v7676_v51, %v7327_v47  ;;  %21407 = vmatprep.subr.bf16.mxu1 %v22760_v61  ;;  %21491 = vmatprep.subr.bf16.mxu0 %v22769_v53 }
 0x482   : > { %v20976_v52 = vpop.f32.mrf.mxu1  ;;  %v21060_v23 = vpop.f32.mrf.mxu0 }
 0x483   : > { %27982 = vst [vmem:[#allocation100_spill] sm:$0xff] %v24990_v16  ;;  %v23036_v52 = vld [vmem:[#allocation2 + $0x58] sm:$0xff]   ;;  %v23037_v23 = vld [vmem:[#allocation2 + $0x60] sm:$0xff]  }
 0x484   : > { %v7330_v7 = vpop.f32.mrf.mxu1  ;;  %v7695_v60 = vpop.f32.mrf.mxu0  ;;  %21408 = vmatpush3.bf16.msra.mxu1 %v22760_v61  ;;  %21492 = vmatpush3.bf16.msra.mxu0 %v22769_v53  ;;  %v25002_v61 = vld [vmem:[#allocation9 + $0x238] sm:$0xff]  }
 0x485   : > { %v24992_v56 = vadd.f32 %v7679_v54, %v7330_v7  ;;  %21409 = vmatprep.subr.bf16.mxu1 %v22761_v45  ;;  %21493 = vmatprep.subr.bf16.mxu0 %v22771_v50 }
 0x486   : > { %v20979_v42 = vpop.f32.mrf.mxu1  ;;  %v21063_v55 = vpop.f32.mrf.mxu0  ;;  %21266 = vmatmul.mubr.bf16.gmra.mxu1 %v24880_v9  ;;  %21350 = vmatmul.mubr.bf16.gmra.mxu0 %v24880_v9  ;;  %v22770_v9 = vld [vmem:[#allocation9 + $0x180] sm:$0xff]  }
 0x487   : > { %27983 = vst [vmem:[#allocation48_spill] sm:$0xff] %v24992_v56  ;;  %21269 = vmatprep.mubr.bf16.mxu1 %v23033_v3  ;;  %21353 = vmatprep.mubr.bf16.mxu0 %v23033_v3 }
 0x488   : > { %v7343_v58 = vpop.f32.mrf.mxu1  ;;  %v7708_v2 = vpop.f32.mrf.mxu0  ;;  %21410 = vmatpush3.bf16.msra.mxu1 %v22761_v45  ;;  %21494 = vmatpush3.bf16.msra.mxu0 %v22771_v50 }
 0x489   : > { %v24996_v38 = vadd.f32 %v7692_v59, %v7343_v58  ;;  %21411 = vmatprep.subr.bf16.mxu1 %v22762_v36  ;;  %21495 = vmatprep.subr.bf16.mxu0 %v22773_v13 }
 0x48a   : > { %v20980_v32 = vpop.f32.mrf.mxu1  ;;  %v21064_v20 = vpop.f32.mrf.mxu0 }
 0x48b   : > { %27984 = vst [vmem:[#allocation23_spill] sm:$0xff] %v24996_v38  ;;  %v23038_v32 = vld [vmem:[#allocation2 + $0x68] sm:$0xff]   ;;  %v23039_v20 = vld [vmem:[#allocation2 + $0x70] sm:$0xff]  }
 0x48c   : > { %v7346_v18 = vpop.f32.mrf.mxu1  ;;  %v7711_v1 = vpop.f32.mrf.mxu0  ;;  %21412 = vmatpush3.bf16.msra.mxu1 %v22762_v36  ;;  %21496 = vmatpush3.bf16.msra.mxu0 %v22773_v13 }
 0x48d   : > { %v24998_v14 = vadd.f32 %v7695_v60, %v7346_v18  ;;  %21413 = vmatprep.subr.bf16.mxu1 %v22765_v22 }
 0x48e   : > { %v20983_v51 = vpop.f32.mrf.mxu1  ;;  %v21067_v25 = vpop.f32.mrf.mxu0  ;;  %21270 = vmatmul.mubr.bf16.gmra.mxu1 %v23034_v28  ;;  %21354 = vmatmul.mubr.bf16.gmra.mxu0 %v23034_v28 }
 0x48f   : > { %27985 = vst [vmem:[#allocation49_spill] sm:$0xff] %v24998_v14  ;;  %21273 = vmatprep.mubr.bf16.mxu1 %v23035_v24  ;;  %21357 = vmatprep.mubr.bf16.mxu0 %v23035_v24 }
 0x490   : > { %v7359_v43 = vpop.f32.mrf.mxu1  ;;  %v7724_v48 = vpop.f32.mrf.mxu0  ;;  %21414 = vmatpush3.bf16.msra.mxu1 %v22765_v22 }
 0x491   : > { %v25000_v54 = vadd.f32 %v7708_v2, %v7359_v43  ;;  %21415 = vmatprep.subr.bf16.mxu1 %v22770_v9 }
 0x492   : > { %v20984_v53 = vpop.f32.mrf.mxu1  ;;  %v21068_v44 = vpop.f32.mrf.mxu0 }
 0x493   : > { %27986 = vst [vmem:[#allocation24_spill] sm:$0xff] %v25000_v54  ;;  %v23040_v44 = vld [vmem:[#allocation2 + $0x78] sm:$0xff]  }
 0x494   : > { %v7362_v29 = vpop.f32.mrf.mxu1  ;;  %v7727_v47 = vpop.f32.mrf.mxu0  ;;  %21416 = vmatpush3.bf16.msra.mxu1 %v22770_v9 }
 0x495   : > { %v25004_v59 = vadd.f32 %v7711_v1, %v7362_v29  ;;  %21561 = vmatprep.subr.bf16.mxu1 %v25002_v61  ;;  %v23041_v29 = vld [vmem:[#allocation2 + $0x80] sm:$0xff]  }
 0x496   : > { %v20987_v45 = vpop.f32.mrf.mxu1  ;;  %v21071_v50 = vpop.f32.mrf.mxu0  ;;  %21274 = vmatmul.mubr.bf16.gmra.mxu1 %v23036_v52  ;;  %21358 = vmatmul.mubr.bf16.gmra.mxu0 %v23036_v52 }
 0x497   : > { %27987 = vst [vmem:[#allocation50_spill] sm:$0xff] %v25004_v59  ;;  %21277 = vmatprep.mubr.bf16.mxu1 %v23037_v23  ;;  %21361 = vmatprep.mubr.bf16.mxu0 %v23037_v23  ;;  %v25093_v59 = vld [vmem:[#allocation2 + $0x38] sm:$0xff]  }
 0x498   : > { %v7375_v7 = vpop.f32.mrf.mxu1  ;;  %v7740_v60 = vpop.f32.mrf.mxu0 }
 0x499   : > { %v25007_v36 = vadd.f32 %v7724_v48, %v7375_v7 }
 0x49a   : > { %v20988_v13 = vpop.f32.mrf.mxu1  ;;  %v21072_v42 = vpop.f32.mrf.mxu0 }
 0x49b   : > { %27988 = vst [vmem:[#allocation51_spill] sm:$0xff] %v25007_v36  ;;  %v25083_v36 = vld [vmem:[#allocation2 + $0x30] sm:$0xff]  }
 0x49c   : > { %v7378_v55 = vpop.f32.mrf.mxu1  ;;  %v7743_v3 = vpop.f32.mrf.mxu0 }
 0x49d   : > { %v25009_v58 = vadd.f32 %v7727_v47, %v7378_v55 }
 0x49e   : > { %v20991_v2 = vpop.f32.mrf.mxu1  ;;  %v21075_v22 = vpop.f32.mrf.mxu0  ;;  %21278 = vmatmul.mubr.bf16.gmra.mxu1 %v23038_v32  ;;  %21362 = vmatmul.mubr.bf16.gmra.mxu0 %v23038_v32 }
 0x49f   : > { %27989 = vst [vmem:[#allocation25_spill] sm:$0xff] %v25009_v58  ;;  %21281 = vmatprep.mubr.bf16.mxu1 %v23039_v20  ;;  %21365 = vmatprep.mubr.bf16.mxu0 %v23039_v20  ;;  %v23043_v2 = vld [vmem:[#allocation2 + $0x90] sm:$0xff]  }
 0x4a0   : > { %v7391_v18 = vpop.f32.mrf.mxu1  ;;  %v7756_v1 = vpop.f32.mrf.mxu0 }
 0x4a1   : > { %v25011_v9 = vadd.f32 %v7740_v60, %v7391_v18 }
 0x4a2   : > { %v20992_v51 = vpop.f32.mrf.mxu1  ;;  %v21076_v25 = vpop.f32.mrf.mxu0 }
 0x4a3   : > { %27990 = vst [vmem:[#allocation52_spill] sm:$0xff] %v25011_v9 }
 0x4a4   : > { %v7394_v28 = vpop.f32.mrf.mxu1  ;;  %v7759_v24 = vpop.f32.mrf.mxu0 }
 0x4a5   : > { %v25013_v43 = vadd.f32 %v7743_v3, %v7394_v28  ;;  %v23042_v3 = vld [vmem:[#allocation2 + $0x88] sm:$0xff]  }
 0x4a6   : > { %v20995_v48 = vpop.f32.mrf.mxu1  ;;  %v21079_v53 = vpop.f32.mrf.mxu0  ;;  %21282 = vmatmul.mubr.bf16.gmra.mxu1 %v23040_v44  ;;  %21366 = vmatmul.mubr.bf16.gmra.mxu0 %v23040_v44 }
 0x4a7   : > { %27991 = vst [vmem:[#allocation26_spill] sm:$0xff] %v25013_v43  ;;  %21285 = vmatprep.mubr.bf16.mxu1 %v23041_v29  ;;  %21369 = vmatprep.mubr.bf16.mxu0 %v23041_v29  ;;  %v23044_v53 = vld [vmem:[#allocation2 + $0x98] sm:$0xff]   ;;  %v23045_v29 = vld [vmem:[#allocation2 + $0xa0] sm:$0xff]  }
 0x4a8   : > { %v7407_v47 = vpop.f32.mrf.mxu1  ;;  %v7772_v45 = vpop.f32.mrf.mxu0 }
 0x4a9   : > { %v25015_v50 = vadd.f32 %v7756_v1, %v7407_v47 }
 0x4aa   : > { %v20996_v52 = vpop.f32.mrf.mxu1  ;;  %v21080_v23 = vpop.f32.mrf.mxu0 }
 0x4ab   : > { %27992 = vst [vmem:[#allocation53_spill] sm:$0xff] %v25015_v50 }
 0x4ac   : > { %v7410_v7 = vpop.f32.mrf.mxu1  ;;  %v7775_v60 = vpop.f32.mrf.mxu0 }
 0x4ad   : > { %v25017_v13 = vadd.f32 %v7759_v24, %v7410_v7 }
 0x4ae   : > { %v20999_v42 = vpop.f32.mrf.mxu1  ;;  %v21179_v55 = vpop.f32.mrf.mxu0  ;;  %21286 = vmatmul.mubr.bf16.gmra.mxu1 %v23042_v3  ;;  %21370 = vmatmul.mubr.bf16.gmra.mxu0 %v23042_v3 }
 0x4af   : > { %27993 = vst [vmem:[#allocation54_spill] sm:$0xff] %v25017_v13  ;;  %21289 = vmatprep.mubr.bf16.mxu1 %v23043_v2  ;;  %21373 = vmatprep.mubr.bf16.mxu0 %v23043_v2  ;;  %v23050_v13 = vld [vmem:[#allocation2 + $0xc8] sm:$0xff]  }
 0x4b0   : > { %v7423_v22 = vpop.f32.mrf.mxu1  ;;  %v8223_v32 = vpop.f32.mrf.mxu0 }
 0x4b1   : > { %v25019_v20 = vadd.f32 %v7772_v45, %v7423_v22 }
 0x4b2   : > { %v21000_v18 = vpop.f32.mrf.mxu1  ;;  %v21180_v1 = vpop.f32.mrf.mxu0 }
 0x4b3   : > { %27994 = vst [vmem:[#allocation27_spill] sm:$0xff] %v25019_v20  ;;  %v23046_v18 = vld [vmem:[#allocation2 + $0xa8] sm:$0xff]   ;;  %v23047_v1 = vld [vmem:[#allocation2 + $0xb0] sm:$0xff]  }
 0x4b4   : > { %v7426_v51 = vpop.f32.mrf.mxu1  ;;  %v8226_v25 = vpop.f32.mrf.mxu0 }
 0x4b5   : > { %v25021_v28 = vadd.f32 %v7775_v60, %v7426_v51 }
 0x4b6   : > { %v21099_v24 = vpop.f32.mrf.mxu1  ;;  %v21183_v48 = vpop.f32.mrf.mxu0  ;;  %21290 = vmatmul.mubr.bf16.gmra.mxu1 %v23044_v53  ;;  %21374 = vmatmul.mubr.bf16.gmra.mxu0 %v23044_v53 }
 0x4b7   : > { %27995 = vst [vmem:[#allocation55_spill] sm:$0xff] %v25021_v28  ;;  %v25023_v44 = vadd.f32 %v21179_v55, %v21099_v24  ;;  %21293 = vmatprep.mubr.bf16.mxu1 %v23045_v29  ;;  %21377 = vmatprep.mubr.bf16.mxu0 %v23045_v29 }
 0x4b8   : > { %v7886_v47 = vpop.f32.mrf.mxu1  ;;  %v8239_v52 = vpop.f32.mrf.mxu0 }
 0x4b9   : > { %v25025_v45 = vadd.f32 %v8223_v32, %v7886_v47 }
 0x4ba   : > { %v21100_v23 = vpop.f32.mrf.mxu1  ;;  %v21184_v7 = vpop.f32.mrf.mxu0 }
 0x4bc   : > { %v7889_v42 = vpop.f32.mrf.mxu1  ;;  %v8242_v3 = vpop.f32.mrf.mxu0 }
 0x4bd   : > { %v25027_v60 = vadd.f32 %v8226_v25, %v7889_v42 }
 0x4be   : > { %v21103_v2 = vpop.f32.mrf.mxu1  ;;  %v21187_v22 = vpop.f32.mrf.mxu0  ;;  %21294 = vmatmul.mubr.bf16.gmra.mxu1 %v23046_v18  ;;  %21378 = vmatmul.mubr.bf16.gmra.mxu0 %v23046_v18 }
 0x4bf   : > { %v25029_v55 = vadd.f32 %v21183_v48, %v21103_v2  ;;  %21297 = vmatprep.mubr.bf16.mxu1 %v23047_v1  ;;  %21381 = vmatprep.mubr.bf16.mxu0 %v23047_v1  ;;  %v23049_v2 = vld [vmem:[#allocation2 + $0xc0] sm:$0xff]  }
 0x4c0   : > { %v7902_v51 = vpop.f32.mrf.mxu1  ;;  %v8255_v24 = vpop.f32.mrf.mxu0 }
 0x4c1   : > { %v25031_v32 = vadd.f32 %v8239_v52, %v7902_v51 }
 0x4c2   : > { %v21104_v53 = vpop.f32.mrf.mxu1  ;;  %v21188_v29 = vpop.f32.mrf.mxu0 }
 0x4c4   : > { %v7905_v47 = vpop.f32.mrf.mxu1  ;;  %v8258_v23 = vpop.f32.mrf.mxu0 }
 0x4c5   : > { %v25033_v25 = vadd.f32 %v8242_v3, %v7905_v47 }
 0x4c6   : > { %v21107_v7 = vpop.f32.mrf.mxu1  ;;  %v21191_v42 = vpop.f32.mrf.mxu0  ;;  %21298 = vmatmul.mubr.bf16.gmra.mxu1 %v23048_v49  ;;  %21382 = vmatmul.mubr.bf16.gmra.mxu0 %v23048_v49 }
 0x4c7   : > { %v25035_v48 = vadd.f32 %v21187_v22, %v21107_v7  ;;  %21301 = vmatprep.mubr.bf16.mxu1 %v23049_v2  ;;  %21385 = vmatprep.mubr.bf16.mxu0 %v23049_v2 }
 0x4c8   : > { %v7918_v18 = vpop.f32.mrf.mxu1  ;;  %v8271_v1 = vpop.f32.mrf.mxu0 }
 0x4c9   : > { %v25037_v52 = vadd.f32 %v8255_v24, %v7918_v18 }
 0x4ca   : > { %v21108_v51 = vpop.f32.mrf.mxu1  ;;  %v21192_v53 = vpop.f32.mrf.mxu0 }
 0x4cc   : > { %v7921_v29 = vpop.f32.mrf.mxu1  ;;  %v8274_v28 = vpop.f32.mrf.mxu0 }
 0x4cd   : > { %v25039_v3 = vadd.f32 %v8258_v23, %v7921_v29 }
 0x4ce   : > { %v21111_v47 = vpop.f32.mrf.mxu1  ;;  %v21195_v20 = vpop.f32.mrf.mxu0  ;;  %21302 = vmatmul.mubr.bf16.gmra.mxu1 %v23050_v13  ;;  %21386 = vmatmul.mubr.bf16.gmra.mxu0 %v23050_v13 }
 0x4cf   : > { %v25041_v49 = vadd.f32 %v21191_v42, %v21111_v47  ;;  %21305 = vmatprep.mubr.bf16.mxu1 %v24800_v34  ;;  %21389 = vmatprep.mubr.bf16.mxu0 %v24800_v34 }
 0x4d0   : > { %v7934_v22 = vpop.f32.mrf.mxu1  ;;  %v8287_v24 = vpop.f32.mrf.mxu0 }
 0x4d1   : > { %v25045_v7 = vadd.f32 %v8271_v1, %v7934_v22 }
 0x4d2   : > { %v21112_v2 = vpop.f32.mrf.mxu1  ;;  %v21196_v18 = vpop.f32.mrf.mxu0 }
 0x4d4   : > { %v7937_v51 = vpop.f32.mrf.mxu1  ;;  %v8290_v23 = vpop.f32.mrf.mxu0 }
 0x4d5   : > { %v25047_v53 = vadd.f32 %v8274_v28, %v7937_v51 }
 0x4d6   : > { %v21115_v29 = vpop.f32.mrf.mxu1  ;;  %v21199_v50 = vpop.f32.mrf.mxu0  ;;  %21306 = vmatmul.mubr.bf16.gmra.mxu1 %v24806_v63  ;;  %21390 = vmatmul.mubr.bf16.gmra.mxu0 %v24806_v63 }
 0x4d7   : > { %v25051_v13 = vadd.f32 %v21195_v20, %v21115_v29  ;;  %21309 = vmatprep.mubr.bf16.mxu1 %v24824_v4  ;;  %21393 = vmatprep.mubr.bf16.mxu0 %v24824_v4 }
 0x4d8   : > { %v7950_v34 = vpop.f32.mrf.mxu1  ;;  %v8303_v42 = vpop.f32.mrf.mxu0 }
 0x4d9   : > { %v25055_v1 = vadd.f32 %v8287_v24, %v7950_v34 }
 0x4da   : > { %v21116_v47 = vpop.f32.mrf.mxu1  ;;  %v21200_v22 = vpop.f32.mrf.mxu0 }
 0x4db   : > { %27996 = vst [vmem:[#allocation28_spill] sm:$0xff] %v25055_v1  ;;  %v25268_v1 = vld [vmem:[#allocation2 + $0x100] sm:$0xff]  }
 0x4dc   : > { %v7953_v28 = vpop.f32.mrf.mxu1  ;;  %v8306_v2 = vpop.f32.mrf.mxu0  ;;  %28047 = vst [vmem:[#allocation94_spill] sm:$0xff] %v25268_v1 }
 0x4dd   : > { %v25057_v18 = vadd.f32 %v8290_v23, %v7953_v28  ;;  %v25069_v28 = vld [vmem:[#allocation2 + $0x20] sm:$0xff]  }
 0x4de   : > { %v21119_v51 = vpop.f32.mrf.mxu1  ;;  %v21203_v43 = vpop.f32.mrf.mxu0  ;;  %21310 = vmatmul.mubr.bf16.gmra.mxu1 %v24826_v30  ;;  %21394 = vmatmul.mubr.bf16.gmra.mxu0 %v24826_v30 }
 0x4df   : > { %27997 = vst [vmem:[#allocation56_spill] sm:$0xff] %v25057_v18  ;;  %v25061_v63 = vadd.f32 %v21199_v50, %v21119_v51  ;;  %21313 = vmatprep.mubr.bf16.mxu1 %v24838_v17  ;;  %21397 = vmatprep.mubr.bf16.mxu0 %v24838_v17  ;;  %v25252_v18 = vld [vmem:[#allocation2 + $0xf0] sm:$0xff]  }
 0x4e0   : > { %v7966_v4 = vpop.f32.mrf.mxu1  ;;  %v8319_v20 = vpop.f32.mrf.mxu0  ;;  %28041 = vst [vmem:[#allocation92_spill] sm:$0xff] %v25252_v18 }
 0x4e1   : > { %27998 = vst [vmem:[#allocation57_spill] sm:$0xff] %v25061_v63  ;;  %v25065_v24 = vadd.f32 %v8303_v42, %v7966_v4 }
 0x4e2   : > { %v21120_v29 = vpop.f32.mrf.mxu1  ;;  %v21204_v34 = vpop.f32.mrf.mxu0 }
 0x4e3   : > { %27999 = vst [vmem:[#allocation29_spill] sm:$0xff] %v25065_v24 }
 0x4e4   : > { %v7969_v23 = vpop.f32.mrf.mxu1  ;;  %v8322_v47 = vpop.f32.mrf.mxu0 }
 0x4e5   : > { %v25067_v22 = vadd.f32 %v8306_v2, %v7969_v23  ;;  %v25079_v23 = vld [vmem:[#allocation2 + $0x28] sm:$0xff]  }
 0x4e6   : > { %v21123_v9 = vpop.f32.mrf.mxu1  ;;  %v21207_v30 = vpop.f32.mrf.mxu0  ;;  %21314 = vmatmul.mubr.bf16.gmra.mxu1 %v24840_v46  ;;  %21398 = vmatmul.mubr.bf16.gmra.mxu0 %v24840_v46 }
 0x4e7   : > { %28000 = vst [vmem:[#allocation58_spill] sm:$0xff] %v25067_v22  ;;  %v25073_v50 = vadd.f32 %v21203_v43, %v21123_v9  ;;  %21317 = vmatprep.mubr.bf16.mxu1 %v24849_v41  ;;  %21497 = vmatprep.mubr.bf16.mxu0 %v25069_v28 }
 0x4e8   : > { %v7982_v17 = vpop.f32.mrf.mxu1  ;;  %v8335_v42 = vpop.f32.mrf.mxu0 }
 0x4e9   : > { %28001 = vst [vmem:[#allocation30_spill] sm:$0xff] %v25073_v50  ;;  %v25077_v51 = vadd.f32 %v8319_v20, %v7982_v17  ;;  %v25210_v50 = vld [vmem:[#allocation2 + $0xc0] sm:$0xff]  }
 0x4ea   : > { %v21124_v2 = vpop.f32.mrf.mxu1  ;;  %v21208_v4 = vpop.f32.mrf.mxu0 }
 0x4eb   : > { %28002 = vst [vmem:[#allocation59_spill] sm:$0xff] %v25077_v51  ;;  %v25196_v51 = vld [vmem:[#allocation2 + $0xb0] sm:$0xff]  }
 0x4ec   : > { %v7985_v29 = vpop.f32.mrf.mxu1  ;;  %v8338_v34 = vpop.f32.mrf.mxu0 }
 0x4ed   : > { %v25081_v58 = vadd.f32 %v8322_v47, %v7985_v29 }
 0x4ee   : > { %v21127_v46 = vpop.f32.mrf.mxu1  ;;  %v21211_v9 = vpop.f32.mrf.mxu0  ;;  %21318 = vmatmul.mubr.bf16.gmra.mxu1 %v24851_v21  ;;  %21498 = vmatmul.mubr.bf16.vlgmr.msra.gmra.mxu0 %v25079_v23  ;;  %v25097_v21 = vld [vmem:[#allocation2 + $0x40] sm:$0xff]  }
 0x4ef   : > { %28003 = vst [vmem:[#allocation60_spill] sm:$0xff] %v25081_v58  ;;  %v25087_v41 = vadd.f32 %v21207_v30, %v21127_v46  ;;  %21417 = vmatprep.mubr.bf16.mxu1 %v25069_v28  ;;  %21501 = vmatprep.mubr.bf16.mxu0 %v25083_v36  ;;  %v22782_v30 = vld [vmem:[#allocation9 + $0x230] sm:$0xff]   ;;  %v25182_v58 = vld [vmem:[#allocation2 + $0xa0] sm:$0xff]  }
 0x4f0   : > { %v7998_v43 = vpop.f32.mrf.mxu1  ;;  %v8351_v20 = vpop.f32.mrf.mxu0 }
 0x4f1   : > { %28004 = vst [vmem:[#allocation31_spill] sm:$0xff] %v25087_v41  ;;  %v25091_v17 = vadd.f32 %v8335_v42, %v7998_v43 }
 0x4f2   : > { %v21128_v47 = vpop.f32.mrf.mxu1  ;;  %v21212_v2 = vpop.f32.mrf.mxu0 }
 0x4f3   : > { %28005 = vst [vmem:[#allocation61_spill] sm:$0xff] %v25091_v17  ;;  %v22787_v47 = vld [vmem:[#allocation9 + $0x228] sm:$0xff]  }
 0x4f4   : > { %v8001_v4 = vpop.f32.mrf.mxu1  ;;  %v8354_v29 = vpop.f32.mrf.mxu0 }
 0x4f5   : > { %v25095_v54 = vadd.f32 %v8338_v34, %v8001_v4 }
 0x4f6   : > { %v21131_v46 = vpop.f32.mrf.mxu1  ;;  %v21215_v14 = vpop.f32.mrf.mxu0  ;;  %21418 = vmatmul.mubr.bf16.vlgmr.msra.gmra.mxu1 %v25079_v23  ;;  %21502 = vmatmul.mubr.bf16.gmra.mxu0 %v25093_v59 }
 0x4f7   : > { %28006 = vst [vmem:[#allocation32_spill] sm:$0xff] %v25095_v54  ;;  %v25101_v38 = vadd.f32 %v21211_v9, %v21131_v46  ;;  %21421 = vmatprep.mubr.bf16.mxu1 %v25083_v36  ;;  %21505 = vmatprep.mubr.bf16.mxu0 %v25097_v21  ;;  %v25112_v46 = vld [vmem:[#allocation2 + $0x50] sm:$0xff]  }
 0x4f8   : > { %21562 = vmatpush3.bf16.msra.mxu1 %v25002_v61  ;;  %v8014_v42 = vpop.f32.mrf.mxu1  ;;  %v8367_v34 = vpop.f32.mrf.mxu0 }
 0x4f9   : > { %28007 = vst [vmem:[#allocation62_spill] sm:$0xff] %v25101_v38  ;;  %v25106_v43 = vadd.f32 %v8351_v20, %v8014_v42  ;;  %21563 = vmatprep.subr.bf16.mxu1 %v22782_v30 }
 0x4fa   : > { %v21132_v2 = vpop.f32.mrf.mxu1  ;;  %v21216_v4 = vpop.f32.mrf.mxu0 }
 0x4fb   : > { %28008 = vst [vmem:[#allocation63_spill] sm:$0xff] %v25106_v43 }
 0x4fc   : > { %v8017_v56 = vpop.f32.mrf.mxu1  ;;  %v8370_v16 = vpop.f32.mrf.mxu0  ;;  %21564 = vmatpush3.bf16.msra.mxu1 %v22782_v30 }
 0x4fd   : > { %v25110_v9 = vadd.f32 %v8354_v29, %v8017_v56  ;;  %21565 = vmatprep.subr.bf16.mxu1 %v22787_v47  ;;  %v22797_v29 = vld [vmem:[#allocation9 + $0x218] sm:$0xff]  }
 0x4fe   : > { %v21135_v61 = vpop.f32.mrf.mxu1  ;;  %v21219_v6 = vpop.f32.mrf.mxu0  ;;  %21422 = vmatmul.mubr.bf16.gmra.mxu1 %v25093_v59  ;;  %21506 = vmatmul.mubr.bf16.gmra.mxu0 %v25108_v40 }
 0x4ff   : > { %28009 = vst [vmem:[#allocation33_spill] sm:$0xff] %v25110_v9  ;;  %v25116_v20 = vadd.f32 %v21215_v14, %v21135_v61  ;;  %21425 = vmatprep.mubr.bf16.mxu1 %v25097_v21  ;;  %21509 = vmatprep.mubr.bf16.mxu0 %v25112_v46  ;;  %v25126_v61 = vld [vmem:[#allocation2 + $0x60] sm:$0xff]  }
 0x500   : > { %v8030_v42 = vpop.f32.mrf.mxu1  ;;  %v8383_v30 = vpop.f32.mrf.mxu0  ;;  %21566 = vmatpush3.bf16.msra.mxu1 %v22787_v47 }
 0x501   : > { %28010 = vst [vmem:[#allocation64_spill] sm:$0xff] %v25116_v20  ;;  %v25120_v56 = vadd.f32 %v8367_v34, %v8030_v42  ;;  %21567 = vmatprep.subr.bf16.mxu1 %v22792_v10  ;;  %v22802_v20 = vld [vmem:[#allocation9 + $0x210] sm:$0xff]  }
 0x502   : > { %v21136_v2 = vpop.f32.mrf.mxu1  ;;  %v21220_v4 = vpop.f32.mrf.mxu0 }
 0x503   : > { %28011 = vst [vmem:[#allocation34_spill] sm:$0xff] %v25120_v56  ;;  %v25136_v56 = vld [vmem:[#allocation2 + $0x68] sm:$0xff]  }
 0x504   : > { %v8033_v9 = vpop.f32.mrf.mxu1  ;;  %v8386_v43 = vpop.f32.mrf.mxu0  ;;  %21568 = vmatpush3.bf16.msra.mxu1 %v22792_v10 }
 0x505   : > { %v25124_v14 = vadd.f32 %v8370_v16, %v8033_v9  ;;  %21569 = vmatprep.subr.bf16.mxu1 %v22797_v29  ;;  %v22807_v9 = vld [vmem:[#allocation9 + $0x208] sm:$0xff]  }
 0x506   : > { %v21139_v38 = vpop.f32.mrf.mxu1  ;;  %v21223_v54 = vpop.f32.mrf.mxu0  ;;  %21426 = vmatmul.mubr.bf16.gmra.mxu1 %v25108_v40  ;;  %21510 = vmatmul.mubr.bf16.gmra.mxu0 %v25122_v27 }
 0x507   : > { %28012 = vst [vmem:[#allocation65_spill] sm:$0xff] %v25124_v14  ;;  %v25130_v34 = vadd.f32 %v21219_v6, %v21139_v38  ;;  %21429 = vmatprep.mubr.bf16.mxu1 %v25112_v46  ;;  %21513 = vmatprep.mubr.bf16.mxu0 %v25126_v61  ;;  %v25140_v38 = vld [vmem:[#allocation2 + $0x70] sm:$0xff]  }
 0x508   : > { %v8046_v47 = vpop.f32.mrf.mxu1  ;;  %v8399_v10 = vpop.f32.mrf.mxu0  ;;  %21570 = vmatpush3.bf16.msra.mxu1 %v22797_v29 }
 0x509   : > { %28013 = vst [vmem:[#allocation66_spill] sm:$0xff] %v25130_v34  ;;  %v25134_v16 = vadd.f32 %v8383_v30, %v8046_v47  ;;  %21571 = vmatprep.subr.bf16.mxu1 %v22802_v20  ;;  %v22812_v34 = vld [vmem:[#allocation9 + $0x200] sm:$0xff]  }
 0x50a   : > { %v21140_v42 = vpop.f32.mrf.mxu1  ;;  %v21224_v2 = vpop.f32.mrf.mxu0 }
 0x50b   : > { %28014 = vst [vmem:[#allocation35_spill] sm:$0xff] %v25134_v16 }
 0x50c   : > { %v8049_v4 = vpop.f32.mrf.mxu1  ;;  %v8402_v14 = vpop.f32.mrf.mxu0  ;;  %21572 = vmatpush3.bf16.msra.mxu1 %v22802_v20 }
 0x50d   : > { %v25138_v6 = vadd.f32 %v8386_v43, %v8049_v4  ;;  %21573 = vmatprep.subr.bf16.mxu1 %v22807_v9 }
 0x50e   : > { %v21143_v62 = vpop.f32.mrf.mxu1  ;;  %v21227_v17 = vpop.f32.mrf.mxu0  ;;  %21430 = vmatmul.mubr.bf16.gmra.mxu1 %v25122_v27  ;;  %21514 = vmatmul.mubr.bf16.gmra.mxu0 %v25136_v56 }
 0x50f   : > { %28015 = vst [vmem:[#allocation67_spill] sm:$0xff] %v25138_v6  ;;  %v25144_v30 = vadd.f32 %v21223_v54, %v21143_v62  ;;  %21433 = vmatprep.mubr.bf16.mxu1 %v25126_v61  ;;  %21517 = vmatprep.mubr.bf16.mxu0 %v25140_v38  ;;  %v25150_v6 = vld [vmem:[#allocation2 + $0x78] sm:$0xff]   ;;  %v25154_v62 = vld [vmem:[#allocation2 + $0x80] sm:$0xff]  }
 0x510   : > { %v8062_v29 = vpop.f32.mrf.mxu1  ;;  %v8415_v20 = vpop.f32.mrf.mxu0  ;;  %21574 = vmatpush3.bf16.msra.mxu1 %v22807_v9 }
 0x511   : > { %28016 = vst [vmem:[#allocation36_spill] sm:$0xff] %v25144_v30  ;;  %v25148_v43 = vadd.f32 %v8399_v10, %v8062_v29  ;;  %21575 = vmatprep.subr.bf16.mxu1 %v22812_v34 }
 0x512   : > { %v21144_v47 = vpop.f32.mrf.mxu1  ;;  %v21228_v42 = vpop.f32.mrf.mxu0 }
 0x513   : > { %28017 = vst [vmem:[#allocation68_spill] sm:$0xff] %v25148_v43 }
 0x514   : > { %v8065_v2 = vpop.f32.mrf.mxu1  ;;  %v8418_v4 = vpop.f32.mrf.mxu0  ;;  %21576 = vmatpush3.bf16.msra.mxu1 %v22812_v34 }
 0x515   : > { %v25152_v16 = vadd.f32 %v8402_v14, %v8065_v2 }
 0x516   : > { %v21147_v54 = vpop.f32.mrf.mxu1  ;;  %v21231_v30 = vpop.f32.mrf.mxu0  ;;  %21434 = vmatmul.mubr.bf16.gmra.mxu1 %v25136_v56  ;;  %21518 = vmatmul.mubr.bf16.gmra.mxu0 %v25150_v6 }
 0x517   : > { %28018 = vst [vmem:[#allocation69_spill] sm:$0xff] %v25152_v16  ;;  %v25158_v10 = vadd.f32 %v21227_v17, %v21147_v54  ;;  %21437 = vmatprep.mubr.bf16.mxu1 %v25140_v38  ;;  %21521 = vmatprep.mubr.bf16.mxu0 %v25154_v62  ;;  %v25164_v16 = vld [vmem:[#allocation2 + $0x88] sm:$0xff]  }
 0x518   : > { %v8078_v9 = vpop.f32.mrf.mxu1  ;;  %v8431_v29 = vpop.f32.mrf.mxu0 }
 0x519   : > { %28019 = vst [vmem:[#allocation37_spill] sm:$0xff] %v25158_v10  ;;  %v25162_v47 = vadd.f32 %v8415_v20, %v8078_v9 }
 0x51a   : > { %v21148_v14 = vpop.f32.mrf.mxu1  ;;  %v21232_v34 = vpop.f32.mrf.mxu0 }
 0x51b   : > { %28020 = vst [vmem:[#allocation70_spill] sm:$0xff] %v25162_v47  ;;  %v25178_v47 = vld [vmem:[#allocation2 + $0x98] sm:$0xff]  }
 0x51c   : > { %v8081_v42 = vpop.f32.mrf.mxu1  ;;  %v8434_v2 = vpop.f32.mrf.mxu0 }
 0x51d   : > { %v25166_v43 = vadd.f32 %v8418_v4, %v8081_v42 }
 0x51e   : > { %v21151_v17 = vpop.f32.mrf.mxu1  ;;  %v21235_v54 = vpop.f32.mrf.mxu0  ;;  %21438 = vmatmul.mubr.bf16.gmra.mxu1 %v25150_v6  ;;  %21522 = vmatmul.mubr.bf16.gmra.mxu0 %v25164_v16 }
 0x51f   : > { %28021 = vst [vmem:[#allocation38_spill] sm:$0xff] %v25166_v43  ;;  %v25172_v10 = vadd.f32 %v21231_v30, %v21151_v17  ;;  %21441 = vmatprep.mubr.bf16.mxu1 %v25154_v62  ;;  %21525 = vmatprep.mubr.bf16.mxu0 %v25168_v35 }
 0x520   : > { %v8094_v20 = vpop.f32.mrf.mxu1  ;;  %v8447_v9 = vpop.f32.mrf.mxu0 }
 0x521   : > { %28022 = vst [vmem:[#allocation71_spill] sm:$0xff] %v25172_v10  ;;  %v25176_v14 = vadd.f32 %v8431_v29, %v8094_v20 }
 0x522   : > { %v21152_v4 = vpop.f32.mrf.mxu1  ;;  %v21236_v34 = vpop.f32.mrf.mxu0 }
 0x523   : > { %28023 = vst [vmem:[#allocation72_spill] sm:$0xff] %v25176_v14  ;;  %v25192_v14 = vld [vmem:[#allocation2 + $0xa8] sm:$0xff]  }
 0x524   : > { %v8097_v42 = vpop.f32.mrf.mxu1  ;;  %v8450_v43 = vpop.f32.mrf.mxu0 }
 0x525   : > { %v25180_v41 = vadd.f32 %v8434_v2, %v8097_v42 }
 0x526   : > { %v21155_v30 = vpop.f32.mrf.mxu1  ;;  %v21239_v17 = vpop.f32.mrf.mxu0  ;;  %21442 = vmatmul.mubr.bf16.gmra.mxu1 %v25164_v16  ;;  %21526 = vmatmul.mubr.bf16.gmra.mxu0 %v25178_v47 }
 0x527   : > { %28024 = vst [vmem:[#allocation39_spill] sm:$0xff] %v25180_v41  ;;  %v25186_v10 = vadd.f32 %v21235_v54, %v21155_v30  ;;  %21445 = vmatprep.mubr.bf16.mxu1 %v25168_v35  ;;  %21529 = vmatprep.mubr.bf16.mxu0 %v25182_v58 }
 0x528   : > { %v8110_v29 = vpop.f32.mrf.mxu1  ;;  %v8463_v20 = vpop.f32.mrf.mxu0 }
 0x529   : > { %28025 = vst [vmem:[#allocation73_spill] sm:$0xff] %v25186_v10  ;;  %v25190_v4 = vadd.f32 %v8447_v9, %v8110_v29 }
 0x52a   : > { %v21156_v2 = vpop.f32.mrf.mxu1  ;;  %v21240_v34 = vpop.f32.mrf.mxu0 }
 0x52b   : > { %28026 = vst [vmem:[#allocation40_spill] sm:$0xff] %v25190_v4  ;;  %v25206_v4 = vld [vmem:[#allocation2 + $0xb8] sm:$0xff]  }
 0x52c   : > { %v8113_v42 = vpop.f32.mrf.mxu1  ;;  %v8466_v41 = vpop.f32.mrf.mxu0 }
 0x52d   : > { %v25194_v8 = vadd.f32 %v8450_v43, %v8113_v42 }
 0x52e   : > { %v21159_v54 = vpop.f32.mrf.mxu1  ;;  %v21339_v30 = vpop.f32.mrf.mxu0  ;;  %21446 = vmatmul.mubr.bf16.gmra.mxu1 %v25178_v47  ;;  %21530 = vmatmul.mubr.bf16.gmra.mxu0 %v25192_v14 }
 0x52f   : > { %28027 = vst [vmem:[#allocation74_spill] sm:$0xff] %v25194_v8  ;;  %v25200_v10 = vadd.f32 %v21239_v17, %v21159_v54  ;;  %21449 = vmatprep.mubr.bf16.mxu1 %v25182_v58  ;;  %21533 = vmatprep.mubr.bf16.mxu0 %v25196_v51 }
 0x530   : > { %v8126_v9 = vpop.f32.mrf.mxu1  ;;  %v8914_v29 = vpop.f32.mrf.mxu0 }
 0x531   : > { %28028 = vst [vmem:[#allocation75_spill] sm:$0xff] %v25200_v10  ;;  %v25204_v2 = vadd.f32 %v8463_v20, %v8126_v9 }
 0x532   : > { %v21160_v43 = vpop.f32.mrf.mxu1  ;;  %v21340_v34 = vpop.f32.mrf.mxu0 }
 0x533   : > { %28029 = vst [vmem:[#allocation76_spill] sm:$0xff] %v25204_v2  ;;  %v25220_v2 = vld [vmem:[#allocation2 + $0xc8] sm:$0xff]  }
 0x534   : > { %v8129_v42 = vpop.f32.mrf.mxu1  ;;  %v8917_v8 = vpop.f32.mrf.mxu0 }
 0x535   : > { %v25208_v19 = vadd.f32 %v8466_v41, %v8129_v42 }
 0x536   : > { %v21259_v17 = vpop.f32.mrf.mxu1  ;;  %v21343_v54 = vpop.f32.mrf.mxu0  ;;  %21450 = vmatmul.mubr.bf16.gmra.mxu1 %v25192_v14  ;;  %21534 = vmatmul.mubr.bf16.gmra.mxu0 %v25206_v4 }
 0x537   : > { %28030 = vst [vmem:[#allocation77_spill] sm:$0xff] %v25208_v19  ;;  %v25214_v10 = vadd.f32 %v21339_v30, %v21259_v17  ;;  %21453 = vmatprep.mubr.bf16.mxu1 %v25196_v51  ;;  %21537 = vmatprep.mubr.bf16.mxu0 %v25210_v50 }
 0x538   : > { %v8577_v20 = vpop.f32.mrf.mxu1  ;;  %v8930_v9 = vpop.f32.mrf.mxu0 }
 0x539   : > { %28031 = vst [vmem:[#allocation78_spill] sm:$0xff] %v25214_v10  ;;  %v25218_v43 = vadd.f32 %v8914_v29, %v8577_v20 }
 0x53a   : > { %v21260_v41 = vpop.f32.mrf.mxu1  ;;  %v21344_v34 = vpop.f32.mrf.mxu0 }
 0x53b   : > { %28032 = vst [vmem:[#allocation79_spill] sm:$0xff] %v25218_v43  ;;  %v25234_v43 = vld [vmem:[#allocation2 + $0xd8] sm:$0xff]  }
 0x53c   : > { %v8580_v42 = vpop.f32.mrf.mxu1  ;;  %v8933_v19 = vpop.f32.mrf.mxu0 }
 0x53d   : > { %v25222_v22 = vadd.f32 %v8917_v8, %v8580_v42 }
 0x53e   : > { %v21263_v30 = vpop.f32.mrf.mxu1  ;;  %v21347_v17 = vpop.f32.mrf.mxu0  ;;  %21454 = vmatmul.mubr.bf16.gmra.mxu1 %v25206_v4  ;;  %21538 = vmatmul.mubr.bf16.gmra.mxu0 %v25220_v2 }
 0x53f   : > { %28033 = vst [vmem:[#allocation80_spill] sm:$0xff] %v25222_v22  ;;  %v25228_v10 = vadd.f32 %v21343_v54, %v21263_v30  ;;  %21457 = vmatprep.mubr.bf16.mxu1 %v25210_v50  ;;  %21541 = vmatprep.mubr.bf16.mxu0 %v25224_v11 }
 0x540   : > { %v8593_v29 = vpop.f32.mrf.mxu1  ;;  %v8946_v20 = vpop.f32.mrf.mxu0 }
 0x541   : > { %28034 = vst [vmem:[#allocation81_spill] sm:$0xff] %v25228_v10  ;;  %v25232_v41 = vadd.f32 %v8930_v9, %v8593_v29 }
 0x542   : > { %v21264_v8 = vpop.f32.mrf.mxu1  ;;  %v21348_v34 = vpop.f32.mrf.mxu0 }
 0x543   : > { %28035 = vst [vmem:[#allocation82_spill] sm:$0xff] %v25232_v41  ;;  %v25248_v41 = vld [vmem:[#allocation2 + $0xe8] sm:$0xff]  }
 0x544   : > { %v8596_v42 = vpop.f32.mrf.mxu1  ;;  %v8949_v22 = vpop.f32.mrf.mxu0  ;;  %28039 = vst [vmem:[#allocation86_spill] sm:$0xff] %v25248_v41 }
 0x545   : > { %v25236_v24 = vadd.f32 %v8933_v19, %v8596_v42 }
 0x546   : > { %v21267_v54 = vpop.f32.mrf.mxu1  ;;  %v21351_v30 = vpop.f32.mrf.mxu0  ;;  %21458 = vmatmul.mubr.bf16.gmra.mxu1 %v25220_v2  ;;  %21542 = vmatmul.mubr.bf16.gmra.mxu0 %v25234_v43 }
 0x547   : > { %28036 = vst [vmem:[#allocation83_spill] sm:$0xff] %v25236_v24  ;;  %v25242_v10 = vadd.f32 %v21347_v17, %v21267_v54  ;;  %21461 = vmatprep.mubr.bf16.mxu1 %v25224_v11  ;;  %21545 = vmatprep.mubr.bf16.mxu0 %v25238_v15 }
 0x548   : > { %v8609_v9 = vpop.f32.mrf.mxu1  ;;  %v8962_v29 = vpop.f32.mrf.mxu0 }
 0x549   : > { %28037 = vst [vmem:[#allocation84_spill] sm:$0xff] %v25242_v10  ;;  %v25246_v8 = vadd.f32 %v8946_v20, %v8609_v9 }
 0x54a   : > { %v21268_v19 = vpop.f32.mrf.mxu1  ;;  %v21352_v34 = vpop.f32.mrf.mxu0 }
 0x54b   : > { %28038 = vst [vmem:[#allocation85_spill] sm:$0xff] %v25246_v8  ;;  %v25264_v8 = vld [vmem:[#allocation2 + $0xf8] sm:$0xff]  }
 0x54c   : > { %v8612_v42 = vpop.f32.mrf.mxu1  ;;  %v8965_v24 = vpop.f32.mrf.mxu0  ;;  %28045 = vst [vmem:[#allocation97_spill] sm:$0xff] %v25264_v8 }
 0x54d   : > { %v25250_v63 = vadd.f32 %v8949_v22, %v8612_v42 }
 0x54e   : > { %v21271_v17 = vpop.f32.mrf.mxu1  ;;  %v21355_v54 = vpop.f32.mrf.mxu0  ;;  %21462 = vmatmul.mubr.bf16.gmra.mxu1 %v25234_v43  ;;  %21546 = vmatmul.mubr.bf16.gmra.mxu0 %v25248_v41 }
 0x54f   : > { %28040 = vst [vmem:[#allocation91_spill] sm:$0xff] %v25250_v63  ;;  %v25256_v10 = vadd.f32 %v21351_v30, %v21271_v17  ;;  %21465 = vmatprep.mubr.bf16.mxu1 %v25238_v15  ;;  %21549 = vmatprep.mubr.bf16.mxu0 %v25252_v18 }
 0x550   : > { %v8625_v20 = vpop.f32.mrf.mxu1  ;;  %v8978_v9 = vpop.f32.mrf.mxu0 }
 0x551   : > { %28042 = vst [vmem:[#allocation87_spill] sm:$0xff] %v25256_v10  ;;  %v25260_v19 = vadd.f32 %v8962_v29, %v8625_v20 }
 0x552   : > { %v21272_v22 = vpop.f32.mrf.mxu1  ;;  %v21356_v34 = vpop.f32.mrf.mxu0 }
 0x553   : > { %28043 = vst [vmem:[#allocation88_spill] sm:$0xff] %v25260_v19 }
 0x554   : > { %v8628_v42 = vpop.f32.mrf.mxu1  ;;  %v25262_v63 = vpop.f32.mrf.mxu0 }
 0x555   : > { %28044 = vst [vmem:[#allocation96_spill] sm:$0xff] %v25262_v63  ;;  %v25266_v33 = vadd.f32 %v8965_v24, %v8628_v42  ;;  %v22813_v24 = vld [vmem:[#allocation10 + $0xf8] sm:$0xff]   ;;  %v25278_v63 = vld [vmem:[#allocation2 + $0x110] sm:$0xff]  }
 0x556   : > { %v21275_v30 = vpop.f32.mrf.mxu1  ;;  %v21359_v17 = vpop.f32.mrf.mxu0  ;;  %21466 = vmatmul.mubr.bf16.gmra.mxu1 %v25248_v41  ;;  %21550 = vmatmul.mubr.bf16.gmra.mxu0 %v25264_v8 }
 0x557   : > { %28046 = vst [vmem:[#allocation93_spill] sm:$0xff] %v25266_v33  ;;  %v25272_v10 = vadd.f32 %v21355_v54, %v21275_v30  ;;  %21469 = vmatprep.mubr.bf16.mxu1 %v25252_v18  ;;  %21553 = vmatprep.mubr.bf16.mxu0 %v25268_v1  ;;  %v25284_v54 = vld [vmem:[#allocation2 + $0x108] sm:$0xff]   ;;  %v22814_v30 = vld [vmem:[#allocation10 + $0x38] sm:$0xff]  }
 0x558   : > { %v8641_v29 = vpop.f32.mrf.mxu1  ;;  %v8994_v20 = vpop.f32.mrf.mxu0  ;;  %21641 = vmatprep.subr.bf16.mxu0 %v22813_v24  ;;  %28052 = vst [vmem:[#allocation103_spill] sm:$0xff] %v25284_v54  ;;  %21721 = vmatprep.subr.bf16.mxu1 %v22814_v30 }
 0x559   : > { %28048 = vst [vmem:[#allocation101_spill] sm:$0xff] %v25272_v10  ;;  %v25276_v22 = vadd.f32 %v8978_v9, %v8641_v29  ;;  %21642 = vmatpush3.bf16.msra.mxu0 %v22813_v24 }
 0x55a   : > { %v21276_v34 = vpop.f32.mrf.mxu1  ;;  %v21360_v42 = vpop.f32.mrf.mxu0 }
 0x55b   : > { %28049 = vst [vmem:[#allocation102_spill] sm:$0xff] %v25276_v22  ;;  %v25294_v22 = vld [vmem:[#allocation2 + $0x118] sm:$0xff]  }
 0x55c   : > { %v25280_v33 = vpop.f32.mrf.mxu1  ;;  %v25282_v19 = vpop.f32.mrf.mxu0  ;;  %28055 = vst [vmem:[#allocation106_spill] sm:$0xff] %v25294_v22 }
 0x55d   : > { %28050 = vst [vmem:[#allocation98_spill] sm:$0xff] %v25280_v33  ;;  %28051 = vst [vmem:[#allocation99_spill] sm:$0xff] %v25282_v19 }
 0x55e   : > { %v21279_v10 = vpop.f32.mrf.mxu1  ;;  %v21363_v18 = vpop.f32.mrf.mxu0  ;;  %21470 = vmatmul.mubr.bf16.gmra.mxu1 %v25264_v8  ;;  %21554 = vmatmul.mubr.bf16.gmra.mxu0 %v25284_v54 }
 0x55f   : > { %v25288_v9 = vadd.f32 %v21359_v17, %v21279_v10  ;;  %21473 = vmatprep.mubr.bf16.mxu1 %v25268_v1  ;;  %21557 = vmatprep.mubr.bf16.mxu0 %v25278_v63 }
 0x560   : > { %v8657_v29 = vpop.f32.mrf.mxu1  ;;  %v9010_v34 = vpop.f32.mrf.mxu0 }
 0x561   : > { %28053 = vst [vmem:[#allocation104_spill] sm:$0xff] %v25288_v9  ;;  %v25292_v42 = vadd.f32 %v8994_v20, %v8657_v29 }
 0x562   : > { %v21280_v19 = vpop.f32.mrf.mxu1  ;;  %v21364_v24 = vpop.f32.mrf.mxu0 }
 0x563   : > { %28054 = vst [vmem:[#allocation105_spill] sm:$0xff] %v25292_v42  ;;  %v22815_v24 = vld [vmem:[#allocation10 + $0xf0] sm:$0xff]  }
 0x564   : > { %v25296_v33 = vpop.f32.mrf.mxu1  ;;  %v25298_v8 = vpop.f32.mrf.mxu0  ;;  %21643 = vmatprep.subr.bf16.mxu0 %v22815_v24 }
 0x565   : > { %28056 = vst [vmem:[#allocation107_spill] sm:$0xff] %v25296_v33  ;;  %28057 = vst [vmem:[#allocation108_spill] sm:$0xff] %v25298_v8  ;;  %21644 = vmatpush3.bf16.msra.mxu0 %v22815_v24 }
 0x566   : > { %v21283_v41 = vpop.f32.mrf.mxu1  ;;  %v21367_v10 = vpop.f32.mrf.mxu0  ;;  %21474 = vmatmul.mubr.bf16.gmra.mxu1 %v25284_v54  ;;  %21558 = vmatmul.mubr.bf16.gmra.mxu0 %v25294_v22 }
 0x567   : > { %v25302_v17 = vadd.f32 %v21363_v18, %v21283_v41  ;;  %21477 = vmatprep.mubr.bf16.mxu1 %v25278_v63 }
 0x568   : > { %v8673_v20 = vpop.f32.mrf.mxu1  ;;  %v9026_v29 = vpop.f32.mrf.mxu0 }
 0x569   : > { %28058 = vst [vmem:[#allocation109_spill] sm:$0xff] %v25302_v17  ;;  %v25305_v19 = vadd.f32 %v9010_v34, %v8673_v20 }
 0x56a   : > { %v21284_v42 = vpop.f32.mrf.mxu1  ;;  %v21368_v9 = vpop.f32.mrf.mxu0 }
 0x56b   : > { %28059 = vst [vmem:[#allocation110_spill] sm:$0xff] %v25305_v19 }
 0x56c   : > { %v25307_v33 = vpop.f32.mrf.mxu1  ;;  %v25309_v8 = vpop.f32.mrf.mxu0 }
 0x56d   : > { %28060 = vst [vmem:[#allocation111_spill] sm:$0xff] %v25307_v33  ;;  %28061 = vst [vmem:[#allocation112_spill] sm:$0xff] %v25309_v8  ;;  %v22816_v8 = vld [vmem:[#allocation10 + $0x30] sm:$0xff]  }
 0x56e   : > { %v21287_v54 = vpop.f32.mrf.mxu1  ;;  %v21371_v1 = vpop.f32.mrf.mxu0  ;;  %21478 = vmatmul.mubr.bf16.gmra.mxu1 %v25294_v22 }
 0x56f   : > { %v25312_v18 = vadd.f32 %v21367_v10, %v21287_v54  ;;  %21577 = vmatprep.mubr.bf16.mxu1 %v25069_v28 }
 0x570   : > { %v8689_v41 = vpop.f32.mrf.mxu1  ;;  %v9042_v34 = vpop.f32.mrf.mxu0 }
 0x571   : > { %v25315_v20 = vadd.f32 %v9026_v29, %v8689_v41  ;;  %v22817_v29 = vld [vmem:[#allocation10 + $0xe8] sm:$0xff]  }
 0x572   : > { %v21288_v42 = vpop.f32.mrf.mxu1  ;;  %v21372_v9 = vpop.f32.mrf.mxu0  ;;  %21645 = vmatprep.subr.bf16.mxu0 %v22817_v29 }
 0x573   : > { %21646 = vmatpush3.bf16.msra.mxu0 %v22817_v29 }
 0x574   : > { %v25317_v19 = vpop.f32.mrf.mxu1  ;;  %v25319_v17 = vpop.f32.mrf.mxu0 }
 0x575   : > { %28062 = vst [vmem:[#allocation113_spill] sm:$0xff] %v25319_v17 }
 0x576   : > { %v21291_v24 = vpop.f32.mrf.mxu1  ;;  %v21375_v33 = vpop.f32.mrf.mxu0  ;;  %21578 = vmatmul.mubr.bf16.vlgmr.msra.gmra.mxu1 %v25079_v23 }
 0x577   : > { %v25322_v22 = vadd.f32 %v21371_v1, %v21291_v24  ;;  %21581 = vmatprep.mubr.bf16.mxu1 %v25083_v36  ;;  %21722 = vmatpush3.bf16.msra.mxu1 %v22814_v30  ;;  %v22818_v1 = vld [vmem:[#allocation10 + $0x28] sm:$0xff]  }
 0x578   : > { %v8705_v28 = vpop.f32.mrf.mxu1  ;;  %v9058_v54 = vpop.f32.mrf.mxu0  ;;  %21723 = vmatprep.subr.bf16.mxu1 %v22816_v8 }
 0x579   : > { %v25325_v10 = vadd.f32 %v9042_v34, %v8705_v28 }
 0x57a   : > { %v21292_v41 = vpop.f32.mrf.mxu1  ;;  %v21376_v42 = vpop.f32.mrf.mxu0 }
 0x57b   : > { %28063 = vst [vmem:[#allocation114_spill] sm:$0xff] %v25325_v10  ;;  %21724 = vmatpush3.bf16.msra.mxu1 %v22816_v8 }
 0x57c   : > { %v25327_v9 = vpop.f32.mrf.mxu1  ;;  %v25329_v17 = vpop.f32.mrf.mxu0  ;;  %21725 = vmatprep.subr.bf16.mxu1 %v22818_v1 }
 0x57d   : > { %28064 = vst [vmem:[#allocation117_spill] sm:$0xff] %v25329_v17 }
 0x57e   : > { %v21295_v23 = vpop.f32.mrf.mxu1  ;;  %v21379_v24 = vpop.f32.mrf.mxu0  ;;  %21582 = vmatmul.mubr.bf16.gmra.mxu1 %v25093_v59 }
 0x57f   : > { %v25332_v36 = vadd.f32 %v21375_v33, %v21295_v23  ;;  %21585 = vmatprep.mubr.bf16.mxu1 %v25097_v21  ;;  %21726 = vmatpush3.bf16.msra.mxu1 %v22818_v1 }
 0x580   : > { %v8721_v30 = vpop.f32.mrf.mxu1  ;;  %v9074_v34 = vpop.f32.mrf.mxu0 }
 0x581   : > { %v25335_v8 = vadd.f32 %v9058_v54, %v8721_v30  ;;  %v22819_v54 = vld [vmem:[#allocation10 + $0xe0] sm:$0xff]  }
 0x582   : > { %v21296_v28 = vpop.f32.mrf.mxu1  ;;  %v21380_v41 = vpop.f32.mrf.mxu0  ;;  %21647 = vmatprep.subr.bf16.mxu0 %v22819_v54 }
 0x583   : > { %28065 = vst [vmem:[#allocation118_spill] sm:$0xff] %v25335_v8  ;;  %21648 = vmatpush3.bf16.msra.mxu0 %v22819_v54 }
 0x584   : > { %v25337_v42 = vpop.f32.mrf.mxu1  ;;  %v25339_v29 = vpop.f32.mrf.mxu0 }
 0x585   : > { %28066 = vst [vmem:[#allocation115_spill] sm:$0xff] %v25339_v29  ;;  %v22820_v29 = vld [vmem:[#allocation10 + $0x20] sm:$0xff]  }
 0x586   : > { %v21299_v17 = vpop.f32.mrf.mxu1  ;;  %v21383_v10 = vpop.f32.mrf.mxu0  ;;  %21586 = vmatmul.mubr.bf16.gmra.mxu1 %v25108_v40  ;;  %21727 = vmatprep.subr.bf16.mxu1 %v22820_v29 }
 0x587   : > { %v25342_v33 = vadd.f32 %v21379_v24, %v21299_v17  ;;  %21589 = vmatprep.mubr.bf16.mxu1 %v25112_v46  ;;  %21728 = vmatpush3.bf16.msra.mxu1 %v22820_v29  ;;  %v22821_v29 = vld [vmem:[#allocation10 + $0xd8] sm:$0xff]  }
 0x588   : > { %v8737_v59 = vpop.f32.mrf.mxu1  ;;  %v9090_v21 = vpop.f32.mrf.mxu0  ;;  %21649 = vmatprep.subr.bf16.mxu0 %v22821_v29 }
 0x589   : > { %v25345_v23 = vadd.f32 %v9074_v34, %v8737_v59  ;;  %21650 = vmatpush3.bf16.msra.mxu0 %v22821_v29 }
 0x58a   : > { %v21300_v1 = vpop.f32.mrf.mxu1  ;;  %v21384_v30 = vpop.f32.mrf.mxu0 }
 0x58b   : > { %28067 = vst [vmem:[#allocation116_spill] sm:$0xff] %v25345_v23 }
 0x58c   : > { %v25347_v28 = vpop.f32.mrf.mxu1  ;;  %v25349_v41 = vpop.f32.mrf.mxu0 }
 0x58d   : > { %28068 = vst [vmem:[#allocation18_spill] sm:$0xff] %v25349_v41 }
 0x58e   : > { %v21303_v8 = vpop.f32.mrf.mxu1  ;;  %v21387_v40 = vpop.f32.mrf.mxu0  ;;  %21590 = vmatmul.mubr.bf16.gmra.mxu1 %v25122_v27 }
 0x58f   : > { %v25352_v17 = vadd.f32 %v21383_v10, %v21303_v8  ;;  %21593 = vmatprep.mubr.bf16.mxu1 %v25126_v61 }
 0x590   : > { %v8753_v46 = vpop.f32.mrf.mxu1  ;;  %v9106_v24 = vpop.f32.mrf.mxu0 }
 0x591   : > { %v25355_v34 = vadd.f32 %v9090_v21, %v8753_v46 }
 0x592   : > { %v21304_v59 = vpop.f32.mrf.mxu1  ;;  %v21388_v1 = vpop.f32.mrf.mxu0 }
 0x593   : > { %28069 = vst [vmem:[#allocation41_spill] sm:$0xff] %v25355_v34 }
 0x594   : > { %v25357_v30 = vpop.f32.mrf.mxu1  ;;  %v25359_v54 = vpop.f32.mrf.mxu0 }
 0x595   : > { %28070 = vst [vmem:[#allocation121_spill] sm:$0xff] %v25359_v54  ;;  %v22822_v54 = vld [vmem:[#allocation10 + $0x18] sm:$0xff]  }
 0x596   : > { %v21307_v41 = vpop.f32.mrf.mxu1  ;;  %v21391_v23 = vpop.f32.mrf.mxu0  ;;  %21594 = vmatmul.mubr.bf16.gmra.mxu1 %v25136_v56  ;;  %21729 = vmatprep.subr.bf16.mxu1 %v22822_v54 }
 0x597   : > { %v25362_v27 = vadd.f32 %v21387_v40, %v21307_v41  ;;  %21597 = vmatprep.mubr.bf16.mxu1 %v25140_v38  ;;  %21730 = vmatpush3.bf16.msra.mxu1 %v22822_v54  ;;  %v22823_v54 = vld [vmem:[#allocation10 + $0xd0] sm:$0xff]  }
 0x598   : > { %v8769_v61 = vpop.f32.mrf.mxu1  ;;  %v9122_v10 = vpop.f32.mrf.mxu0  ;;  %21651 = vmatprep.subr.bf16.mxu0 %v22823_v54 }
 0x599   : > { %v25365_v8 = vadd.f32 %v9106_v24, %v8769_v61  ;;  %21652 = vmatpush3.bf16.msra.mxu0 %v22823_v54 }
 0x59a   : > { %v21308_v21 = vpop.f32.mrf.mxu1  ;;  %v21392_v46 = vpop.f32.mrf.mxu0 }
 0x59b   : > { %28071 = vst [vmem:[#allocation122_spill] sm:$0xff] %v25365_v8 }
 0x59c   : > { %v25367_v59 = vpop.f32.mrf.mxu1  ;;  %v25369_v1 = vpop.f32.mrf.mxu0 }
 0x59d   : > { %28072 = vst [vmem:[#allocation119_spill] sm:$0xff] %v25369_v1 }
 0x59e   : > { %v21311_v34 = vpop.f32.mrf.mxu1  ;;  %v21395_v56 = vpop.f32.mrf.mxu0  ;;  %21598 = vmatmul.mubr.bf16.gmra.mxu1 %v25150_v6 }
 0x59f   : > { %v25372_v41 = vadd.f32 %v21391_v23, %v21311_v34  ;;  %21601 = vmatprep.mubr.bf16.mxu1 %v25154_v62 }
 0x5a0   : > { %v8785_v38 = vpop.f32.mrf.mxu1  ;;  %v9138_v40 = vpop.f32.mrf.mxu0 }
 0x5a1   : > { %28073 = vst [vmem:[#allocation120_spill] sm:$0xff] %v25372_v41  ;;  %v25375_v24 = vadd.f32 %v9122_v10, %v8785_v38  ;;  %v28140_v41 = vld [vmem:[#allocation52_spill] sm:$0xff] }
 0x5a2   : > { %v21312_v61 = vpop.f32.mrf.mxu1  ;;  %v21396_v21 = vpop.f32.mrf.mxu0 }
 0x5a3   : > { %28074 = vst [vmem:[#allocation125_spill] sm:$0xff] %v25375_v24 }
 0x5a4   : > { %v25377_v46 = vpop.f32.mrf.mxu1  ;;  %v25379_v29 = vpop.f32.mrf.mxu0 }
 0x5a5   : > { %28075 = vst [vmem:[#allocation126_spill] sm:$0xff] %v25377_v46  ;;  %28076 = vst [vmem:[#allocation123_spill] sm:$0xff] %v25379_v29  ;;  %v22824_v29 = vld [vmem:[#allocation10 + $0x10] sm:$0xff]  }
 0x5a6   : > { %v21315_v1 = vpop.f32.mrf.mxu1  ;;  %v21399_v8 = vpop.f32.mrf.mxu0  ;;  %21602 = vmatmul.mubr.bf16.gmra.mxu1 %v25164_v16  ;;  %21731 = vmatprep.subr.bf16.mxu1 %v22824_v29 }
 0x5a7   : > { %v25382_v6 = vadd.f32 %v21395_v56, %v21315_v1  ;;  %21605 = vmatprep.mubr.bf16.mxu1 %v25168_v35  ;;  %21732 = vmatpush3.bf16.msra.mxu1 %v22824_v29 }
 0x5a8   : > { %v8801_v62 = vpop.f32.mrf.mxu1  ;;  %v9154_v23 = vpop.f32.mrf.mxu0 }
 0x5a9   : > { %28077 = vst [vmem:[#allocation124_spill] sm:$0xff] %v25382_v6  ;;  %v25385_v34 = vadd.f32 %v9138_v40, %v8801_v62 }
 0x5aa   : > { %v21316_v10 = vpop.f32.mrf.mxu1  ;;  %v21400_v38 = vpop.f32.mrf.mxu0 }
 0x5ab   : > { %28078 = vst [vmem:[#allocation89_spill] sm:$0xff] %v25385_v34 }
 0x5ac   : > { %v25387_v61 = vpop.f32.mrf.mxu1  ;;  %v25389_v21 = vpop.f32.mrf.mxu0 }
 0x5ad   : > { %28079 = vst [vmem:[#allocation127_spill] sm:$0xff] %v25387_v61  ;;  %28080 = vst [vmem:[#allocation128_spill] sm:$0xff] %v25389_v21 }
 0x5ae   : > { %v21319_v24 = vpop.f32.mrf.mxu1  ;;  %v21499_v16 = vpop.f32.mrf.mxu0  ;;  %21606 = vmatmul.mubr.bf16.gmra.mxu1 %v25178_v47 }
 0x5af   : > { %v25392_v1 = vadd.f32 %v21399_v8, %v21319_v24  ;;  %v10199_v35 = vadd.f32 %v21499_v16, %v25023_v44  ;;  %21609 = vmatprep.mubr.bf16.mxu1 %v25182_v58  ;;  %v7533_v58 = vadd.f32 %v24817_v5, %v24913_v0  ;;  %v22825_v5 = vld [vmem:[#allocation10 + $0xc8] sm:$0xff]  }
 0x5b0   : > { %v8817_v56 = vpop.f32.mrf.mxu1  ;;  %v9942_v40 = vpop.f32.mrf.mxu0  ;;  %21653 = vmatprep.subr.bf16.mxu0 %v22825_v5 }
 0x5b1   : > { %28081 = vst [vmem:[#allocation129_spill] sm:$0xff] %v25392_v1  ;;  %v25396_v62 = vadd.f32 %v9154_v23, %v8817_v56  ;;  %v10197_v10 = vadd.f32 %v9942_v40, %v25025_v45  ;;  %v10817_v45 = vrot.slane %v10199_v35, 1  ;;  %v25410_v56 = vld [vmem:[%s27693_s4] ss:$0 sm:$0xff]  ;;  %v22826_v35 = vld [vmem:[#allocation10 + $0x8] sm:$0xff]   ;;  %21654 = vmatpush3.bf16.msra.mxu0 %v22825_v5  ;;  %v28129_v1 = vld [vmem:[#allocation24_spill] sm:$0xff] }
 0x5b2   : > { %v21320_v54 = vpop.f32.mrf.mxu1  ;;  %v21500_v38 = vpop.f32.mrf.mxu0  ;;  %21733 = vmatprep.subr.bf16.mxu1 %v22826_v35 }
 0x5b3   : > { %28082 = vst [vmem:[#allocation130_spill] sm:$0xff] %v25396_v62  ;;  %v10814_v44 = vrot.slane %v10197_v10, 1  ;;  %21734 = vmatpush3.bf16.msra.mxu1 %v22826_v35 }
 0x5b4   : > { %v25399_v21 = vpop.f32.mrf.mxu1  ;;  %v9945_v34 = vpop.f32.mrf.mxu0 }
 0x5b5   : > { %28083 = vst [vmem:[#allocation131_spill] sm:$0xff] %v25399_v21  ;;  %v10198_v47 = vadd.f32 %v9945_v34, %v25027_v60 }
 0x5b6   : > { %v21419_v8 = vpop.f32.mrf.mxu1  ;;  %v21503_v24 = vpop.f32.mrf.mxu0  ;;  %21610 = vmatmul.mubr.bf16.gmra.mxu1 %v25192_v14 }
 0x5b7   : > { %v10815_v29 = vrot.slane %v10198_v47, 1  ;;  %v10203_v23 = vadd.f32 %v21503_v24, %v25029_v55  ;;  %21613 = vmatprep.mubr.bf16.mxu1 %v25196_v51 }
 0x5b8   : > { %v9524_v16 = vpop.f32.mrf.mxu1  ;;  %v9958_v60 = vpop.f32.mrf.mxu0 }
 0x5b9   : > { %v9779_v34 = vadd.f32 %v9524_v16, %v7533_v58  ;;  %v10816_v14 = vsel %vm5363_vm0, %v10814_v44, %v10815_v29  ;;  %v10201_v40 = vadd.f32 %v9958_v60, %v25031_v32  ;;  %v10818_v55 = vsel %vm5363_vm0, %v10815_v29, %v10817_v45 }
 0x5ba   : > { %v21420_v0 = vpop.f32.mrf.mxu1  ;;  %v21504_v10 = vpop.f32.mrf.mxu0  ;;  %v10825_v60 = vrot.slane %v10203_v23, 1 }
 0x5bb   : > { %v10686_v51 = vadd.f32 %v25410_v56, %v9779_v34  ;;  %v10821_v44 = vrot.slane %v10201_v40, 1 }
 0x5bc   : > { %v9527_v54 = vpop.f32.mrf.mxu1  ;;  %v9961_v38 = vpop.f32.mrf.mxu0 }
 0x5bd   : > { %v25416_v47 = vadd.f32 %v10816_v14, %v10686_v51  ;;  %v9780_v8 = vadd.f32 %v9527_v54, %v24915_v12  ;;  %v10202_v24 = vadd.f32 %v9961_v38, %v25033_v25 }
 0x5be   : > { %v21423_v32 = vpop.f32.mrf.mxu1  ;;  %v21507_v58 = vpop.f32.mrf.mxu0  ;;  %21614 = vmatmul.mubr.bf16.gmra.mxu1 %v25206_v4 }
 0x5bf   : > { %v10687_v29 = vadd.f32 %v25410_v56, %v9780_v8  ;;  %v10823_v45 = vrot.slane %v10202_v24, 1  ;;  %v10207_v16 = vadd.f32 %v21507_v58, %v25035_v48  ;;  %21617 = vmatprep.mubr.bf16.mxu1 %v25210_v50 }
 0x5c0   : > { %v9540_v34 = vpop.f32.mrf.mxu1  ;;  %v9974_v14 = vpop.f32.mrf.mxu0 }
 0x5c1   : > { %v25424_v12 = vadd.f32 %v10818_v55, %v10687_v29  ;;  %v9783_v25 = vadd.f32 %v9540_v34, %v24921_v31  ;;  %v10824_v5 = vsel %vm5363_vm0, %v10821_v44, %v10823_v45  ;;  %v10205_v4 = vadd.f32 %v9974_v14, %v25037_v52 }
 0x5c2   : > { %v21424_v40 = vpop.f32.mrf.mxu1  ;;  %v21508_v0 = vpop.f32.mrf.mxu0  ;;  %v10826_v10 = vsel %vm5363_vm0, %v10823_v45, %v10825_v60  ;;  %v10833_v32 = vrot.slane %v10207_v16, 1 }
 0x5c3   : > { %v10690_v48 = vadd.f32 %v25410_v56, %v9783_v25  ;;  %v10829_v38 = vrot.slane %v10205_v4, 1 }
 0x5c4   : > { %v9543_v51 = vpop.f32.mrf.mxu1  ;;  %v9977_v50 = vpop.f32.mrf.mxu0 }
 0x5c5   : > { %v25431_v35 = vadd.f32 %v10824_v5, %v10690_v48  ;;  %v9784_v23 = vadd.f32 %v9543_v51, %v24923_v57  ;;  %v10206_v55 = vadd.f32 %v9977_v50, %v25039_v3 }
 0x5c6   : > { %v21427_v54 = vpop.f32.mrf.mxu1  ;;  %v21511_v31 = vpop.f32.mrf.mxu0  ;;  %21618 = vmatmul.mubr.bf16.gmra.mxu1 %v25220_v2 }
 0x5c7   : > { %v10691_v52 = vadd.f32 %v25410_v56, %v9784_v23  ;;  %v10831_v8 = vrot.slane %v10206_v55, 1  ;;  %v10211_v24 = vadd.f32 %v21511_v31, %v25041_v49  ;;  %21621 = vmatprep.mubr.bf16.mxu1 %v25224_v11  ;;  %v22828_v11 = vld [vmem:[#allocation10] sm:$0xff]  }
 0x5c8   : > { %v9556_v58 = vpop.f32.mrf.mxu1  ;;  %v9990_v44 = vpop.f32.mrf.mxu0  ;;  %21735 = vmatprep.subr.bf16.mxu1 %v22828_v11 }
 0x5c9   : > { %v25439_v29 = vadd.f32 %v10826_v10, %v10691_v52  ;;  %v9787_v57 = vadd.f32 %v9556_v58, %v24929_v39  ;;  %v10832_v3 = vsel %vm5363_vm0, %v10829_v38, %v10831_v8  ;;  %v10209_v45 = vadd.f32 %v9990_v44, %v25045_v7  ;;  %21736 = vmatpush3.bf16.msra.mxu1 %v22828_v11  ;;  %v28085_v58 = vld [vmem:[#allocation42_spill] sm:$0xff]  ;;  %v28089_v11 = vld [vmem:[#allocation92_spill] sm:$0xff] }
 0x5ca   : > { %v21428_v2 = vpop.f32.mrf.mxu1  ;;  %v21512_v60 = vpop.f32.mrf.mxu0  ;;  %v10834_v34 = vsel %vm5363_vm0, %v10831_v8, %v10833_v32  ;;  %v10841_v51 = vrot.slane %v10211_v24, 1  ;;  %v22827_v8 = vld [vmem:[#allocation10 + $0xc0] sm:$0xff]  }
 0x5cb   : > { %v10694_v14 = vadd.f32 %v25410_v56, %v9787_v57  ;;  %v10837_v7 = vrot.slane %v10209_v45, 1  ;;  %v28086_v57 = vld [vmem:[#allocation56_spill] sm:$0xff]  ;;  %21655 = vmatprep.subr.bf16.mxu0 %v22827_v8  ;;  %v28087_v2 = vld [vmem:[#allocation86_spill] sm:$0xff] }
 0x5cc   : > { %v9559_v49 = vpop.f32.mrf.mxu1  ;;  %v9993_v25 = vpop.f32.mrf.mxu0  ;;  %21656 = vmatpush3.bf16.msra.mxu0 %v22827_v8 }
 0x5cd   : > { %v25446_v16 = vadd.f32 %v10832_v3, %v10694_v14  ;;  %v9788_v5 = vadd.f32 %v9559_v49, %v24931_v37  ;;  %v10210_v4 = vadd.f32 %v9993_v25, %v25047_v53  ;;  %v28088_v49 = vld [vmem:[#allocation57_spill] sm:$0xff] }
 0x5ce   : > { %v21431_v39 = vpop.f32.mrf.mxu1  ;;  %v21515_v40 = vpop.f32.mrf.mxu0  ;;  %21622 = vmatmul.mubr.bf16.gmra.mxu1 %v25234_v43  ;;  %v28084_v43 = vld [vmem:[#allocation28_spill] sm:$0xff] }
 0x5cf   : > { %v10695_v0 = vadd.f32 %v25410_v56, %v9788_v5  ;;  %v10839_v10 = vrot.slane %v10210_v4, 1  ;;  %v10215_v48 = vadd.f32 %v21515_v40, %v25051_v13  ;;  %21625 = vmatprep.mubr.bf16.mxu1 %v25238_v15 }
 0x5d0   : > { %v9572_v50 = vpop.f32.mrf.mxu1  ;;  %v10006_v23 = vpop.f32.mrf.mxu0 }
 0x5d1   : > { %v25454_v37 = vadd.f32 %v10834_v34, %v10695_v0  ;;  %v9791_v53 = vadd.f32 %v9572_v50, %v24940_v26  ;;  %v10840_v55 = vsel %vm5363_vm0, %v10837_v7, %v10839_v10  ;;  %v10213_v54 = vadd.f32 %v10006_v23, %v28084_v43  ;;  %v28090_v7 = vld [vmem:[#allocation19_spill] sm:$0xff] }
 0x5d2   : > { %v21432_v31 = vpop.f32.mrf.mxu1  ;;  %v21516_v38 = vpop.f32.mrf.mxu0  ;;  %v10842_v52 = vsel %vm5363_vm0, %v10839_v10, %v10841_v51  ;;  %v10849_v5 = vrot.slane %v10215_v48, 1  ;;  %v28091_v51 = vld [vmem:[#allocation29_spill] sm:$0xff]  ;;  %v28092_v48 = vld [vmem:[#allocation43_spill] sm:$0xff] }
 0x5d3   : > { %v10698_v13 = vadd.f32 %v25410_v56, %v9791_v53  ;;  %v10845_v60 = vrot.slane %v10213_v54, 1 }
 0x5d4   : > { %v9575_v15 = vpop.f32.mrf.mxu1  ;;  %v10009_v32 = vpop.f32.mrf.mxu0 }
 0x5d5   : > { %v25461_v24 = vadd.f32 %v10840_v55, %v10698_v13  ;;  %v9792_v44 = vadd.f32 %v9575_v15, %v28085_v58  ;;  %v10214_v3 = vadd.f32 %v10009_v32, %v28086_v57  ;;  %v28094_v58 = vld [vmem:[#allocation97_spill] sm:$0xff] }
 0x5d6   : > { %v21435_v26 = vpop.f32.mrf.mxu1  ;;  %v21519_v45 = vpop.f32.mrf.mxu0  ;;  %21626 = vmatmul.mubr.bf16.gmra.mxu1 %v28087_v2  ;;  %v28096_v2 = vld [vmem:[#allocation94_spill] sm:$0xff] }
 0x5d7   : > { %v10699_v34 = vadd.f32 %v25410_v56, %v9792_v44  ;;  %v10847_v14 = vrot.slane %v10214_v3, 1  ;;  %v10219_v25 = vadd.f32 %v21519_v45, %v28088_v49  ;;  %21629 = vmatprep.mubr.bf16.mxu1 %v28089_v11  ;;  %v28095_v26 = vld [vmem:[#allocation30_spill] sm:$0xff]  ;;  %v28097_v11 = vld [vmem:[#allocation20_spill] sm:$0xff] }
 0x5d8   : > { %v9588_v4 = vpop.f32.mrf.mxu1  ;;  %v10022_v39 = vpop.f32.mrf.mxu0 }
 0x5d9   : > { %v25469_v40 = vadd.f32 %v10842_v52, %v10699_v34  ;;  %v9795_v0 = vadd.f32 %v9588_v4, %v28090_v7  ;;  %v10848_v10 = vsel %vm5363_vm0, %v10845_v60, %v10847_v14  ;;  %v10217_v50 = vadd.f32 %v10022_v39, %v28091_v51  ;;  %v28093_v52 = vld [vmem:[#allocation58_spill] sm:$0xff]  ;;  %v28098_v39 = vld [vmem:[#allocation59_spill] sm:$0xff] }
 0x5da   : > { %v21436_v23 = vpop.f32.mrf.mxu1  ;;  %v21520_v53 = vpop.f32.mrf.mxu0  ;;  %v10850_v55 = vsel %vm5363_vm0, %v10847_v14, %v10849_v5  ;;  %v10857_v60 = vrot.slane %v10219_v25, 1 }
 0x5db   : > { %v10702_v43 = vadd.f32 %v25410_v56, %v9795_v0  ;;  %v10853_v44 = vrot.slane %v10217_v50, 1  ;;  %v25491_v23 = vld [vmem:[#allocation10 + $0x138] sm:$0xff]  }
 0x5dc   : > { %v9591_v54 = vpop.f32.mrf.mxu1  ;;  %v10025_v31 = vpop.f32.mrf.mxu0  ;;  %v25493_v53 = vld [vmem:[#allocation10 + $0x78] sm:$0xff]   ;;  %21801 = vmatprep.subr.bf16.mxu0 %v25491_v23 }
 0x5dd   : > { %v25476_v38 = vadd.f32 %v10848_v10, %v10702_v43  ;;  %v9796_v13 = vadd.f32 %v9591_v54, %v28092_v48  ;;  %v10218_v8 = vadd.f32 %v10025_v31, %v28093_v52  ;;  %v28099_v54 = vld [vmem:[#allocation44_spill] sm:$0xff]  ;;  %21881 = vmatprep.subr.bf16.mxu1 %v25493_v53 }
 0x5de   : > { %v21439_v15 = vpop.f32.mrf.mxu1  ;;  %v21523_v32 = vpop.f32.mrf.mxu0  ;;  %21630 = vmatmul.mubr.bf16.gmra.mxu1 %v28094_v58  ;;  %v28100_v48 = vld [vmem:[#allocation60_spill] sm:$0xff] }
 0x5df   : > { %v10703_v57 = vadd.f32 %v25410_v56, %v9796_v13  ;;  %v10855_v3 = vrot.slane %v10218_v8, 1  ;;  %v10223_v45 = vadd.f32 %v21523_v32, %v28095_v26  ;;  %21633 = vmatprep.mubr.bf16.mxu1 %v28096_v2  ;;  %v28101_v15 = vld [vmem:[#allocation103_spill] sm:$0xff] }
 0x5e0   : > { %v9604_v34 = vpop.f32.mrf.mxu1  ;;  %v10038_v14 = vpop.f32.mrf.mxu0 }
 0x5e1   : > { %v25484_v49 = vadd.f32 %v10850_v55, %v10703_v57  ;;  %v9799_v5 = vadd.f32 %v9604_v34, %v28097_v11  ;;  %v10856_v4 = vsel %vm5363_vm0, %v10853_v44, %v10855_v3  ;;  %v10221_v7 = vadd.f32 %v10038_v14, %v28098_v39  ;;  %v28102_v57 = vld [vmem:[#allocation31_spill] sm:$0xff] }
 0x5e2   : > { %v21440_v0 = vpop.f32.mrf.mxu1  ;;  %v21524_v10 = vpop.f32.mrf.mxu0  ;;  %v10858_v51 = vsel %vm5363_vm0, %v10855_v3, %v10857_v60  ;;  %v10865_v26 = vrot.slane %v10223_v45, 1  ;;  %v28103_v14 = vld [vmem:[#allocation95_spill] sm:$0xff] }
 0x5e3   : > { %v10706_v50 = vadd.f32 %v25410_v56, %v9799_v5  ;;  %v10861_v32 = vrot.slane %v10221_v7, 1 }
 0x5e4   : > { %v9607_v25 = vpop.f32.mrf.mxu1  ;;  %v10041_v43 = vpop.f32.mrf.mxu0 }
 0x5e5   : > { %v25495_v55 = vadd.f32 %v10856_v4, %v10706_v50  ;;  %v9800_v31 = vadd.f32 %v9607_v25, %v28099_v54  ;;  %v10222_v13 = vadd.f32 %v10041_v43, %v28100_v48  ;;  %v28104_v4 = vld [vmem:[#allocation61_spill] sm:$0xff]  ;;  %v22829_v25 = vld [vmem:[#allocation3] sm:$0xff]  }
 0x5e6   : > { %v21443_v52 = vpop.f32.mrf.mxu1  ;;  %v21527_v8 = vpop.f32.mrf.mxu0  ;;  %21634 = vmatmul.mubr.bf16.gmra.mxu1 %v28101_v15  ;;  %v28105_v54 = vld [vmem:[#allocation45_spill] sm:$0xff] }
 0x5e7   : > { %v10707_v58 = vadd.f32 %v25410_v56, %v9800_v31  ;;  %v10863_v44 = vrot.slane %v10222_v13, 1  ;;  %v10227_v3 = vadd.f32 %v21527_v8, %v28102_v57  ;;  %21637 = vmatprep.mubr.bf16.mxu1 %v25278_v63  ;;  %v28106_v31 = vld [vmem:[#allocation32_spill] sm:$0xff]  ;;  %v28107_v8 = vld [vmem:[#allocation106_spill] sm:$0xff] }
 0x5e8   : > { %v9620_v2 = vpop.f32.mrf.mxu1  ;;  %v10054_v60 = vpop.f32.mrf.mxu0 }
 0x5e9   : > { %v25505_v34 = vadd.f32 %v10858_v51, %v10707_v58  ;;  %v9803_v11 = vadd.f32 %v9620_v2, %v28103_v14  ;;  %v10864_v5 = vsel %vm5363_vm0, %v10861_v32, %v10863_v44  ;;  %v10225_v39 = vadd.f32 %v10054_v60, %v28104_v4 }
 0x5ea   : > { %v21444_v0 = vpop.f32.mrf.mxu1  ;;  %v21528_v7 = vpop.f32.mrf.mxu0  ;;  %v10866_v10 = vsel %vm5363_vm0, %v10863_v44, %v10865_v26  ;;  %v28108_v44 = vld [vmem:[#allocation62_spill] sm:$0xff]  ;;  %v10873_v26 = vrot.slane %v10227_v3, 1  ;;  %v22840_v3 = vld [vmem:[#allocation10 + $0x70] sm:$0xff]  }
 0x5eb   : > { %v10710_v50 = vadd.f32 %v25410_v56, %v9803_v11  ;;  %v10869_v15 = vrot.slane %v10225_v39, 1  ;;  %v28109_v11 = vld [vmem:[#allocation21_spill] sm:$0xff]  ;;  %v28110_v0 = vld [vmem:[#allocation63_spill] sm:$0xff] }
 0x5ec   : > { %v9623_v43 = vpop.f32.mrf.mxu1  ;;  %v10057_v63 = vpop.f32.mrf.mxu0 }
 0x5ed   : > { %v25512_v45 = vadd.f32 %v10864_v5, %v10710_v50  ;;  %v9804_v51 = vadd.f32 %v9623_v43, %v28105_v54  ;;  %v10226_v48 = vadd.f32 %v10057_v63, %v28106_v31  ;;  %v22830_v63 = vld [vmem:[#allocation3 + $0x8] sm:$0xff]  }
 0x5ee   : > { %v21447_v13 = vpop.f32.mrf.mxu1  ;;  %v21531_v52 = vpop.f32.mrf.mxu0  ;;  %21638 = vmatmul.mubr.bf16.gmra.mxu1 %v28107_v8 }
 0x5ef   : > { %v10711_v32 = vadd.f32 %v25410_v56, %v9804_v51  ;;  %v10871_v58 = vrot.slane %v10226_v48, 1  ;;  %v10231_v57 = vadd.f32 %v21531_v52, %v28108_v44  ;;  %21737 = vmatprep.mubr.bf16.mxu1 %v22829_v25  ;;  %v28112_v13 = vld [vmem:[#allocation33_spill] sm:$0xff] }
 0x5f0   : > { %v9636_v2 = vpop.f32.mrf.mxu1  ;;  %v10070_v60 = vpop.f32.mrf.mxu0 }
 0x5f1   : > { %v25519_v14 = vadd.f32 %v10866_v10, %v10711_v32  ;;  %v9807_v5 = vadd.f32 %v9636_v2, %v28109_v11  ;;  %v10872_v4 = vsel %vm5363_vm0, %v10869_v15, %v10871_v58  ;;  %v10229_v7 = vadd.f32 %v10070_v60, %v28110_v0  ;;  %v28111_v10 = vld [vmem:[#allocation46_spill] sm:$0xff] }
 0x5f2   : > { %v21448_v50 = vpop.f32.mrf.mxu1  ;;  %v21532_v43 = vpop.f32.mrf.mxu0  ;;  %v10874_v39 = vsel %vm5363_vm0, %v10871_v58, %v10873_v26  ;;  %v28113_v58 = vld [vmem:[#allocation64_spill] sm:$0xff]  ;;  %v10881_v60 = vrot.slane %v10231_v57, 1  ;;  %v28114_v0 = vld [vmem:[#allocation22_spill] sm:$0xff] }
 0x5f3   : > { %v10714_v54 = vadd.f32 %v25410_v56, %v9807_v5  ;;  %v10877_v32 = vrot.slane %v10229_v7, 1 }
 0x5f4   : > { %v9639_v51 = vpop.f32.mrf.mxu1  ;;  %v10073_v25 = vpop.f32.mrf.mxu0 }
 0x5f5   : > { %v25526_v31 = vadd.f32 %v10872_v4, %v10714_v54  ;;  %v9808_v48 = vadd.f32 %v9639_v51, %v28111_v10  ;;  %v10230_v52 = vadd.f32 %v10073_v25, %v28112_v13  ;;  %v28115_v54 = vld [vmem:[#allocation34_spill] sm:$0xff]  ;;  %v28116_v13 = vld [vmem:[#allocation47_spill] sm:$0xff] }
 0x5f6   : > { %v21451_v8 = vpop.f32.mrf.mxu1  ;;  %v21535_v15 = vpop.f32.mrf.mxu0  ;;  %21738 = vmatmul.mubr.bf16.vlgmr.msra.gmra.mxu1 %v22830_v63 }
 0x5f7   : > { %v10715_v44 = vadd.f32 %v25410_v56, %v9808_v48  ;;  %v10879_v2 = vrot.slane %v10230_v52, 1  ;;  %v10235_v26 = vadd.f32 %v21535_v15, %v28113_v58  ;;  %21882 = vmatpush3.bf16.msra.mxu1 %v25493_v53  ;;  %v28117_v52 = vld [vmem:[#allocation65_spill] sm:$0xff] }
 0x5f8   : > { %v9652_v11 = vpop.f32.mrf.mxu1  ;;  %v10086_v5 = vpop.f32.mrf.mxu0  ;;  %21883 = vmatprep.subr.bf16.mxu1 %v22840_v3 }
 0x5f9   : > { %v25533_v4 = vadd.f32 %v10874_v39, %v10715_v44  ;;  %v9811_v50 = vadd.f32 %v9652_v11, %v28114_v0  ;;  %v10880_v43 = vsel %vm5363_vm0, %v10877_v32, %v10879_v2  ;;  %v10233_v63 = vadd.f32 %v10086_v5, %v28115_v54  ;;  %v28118_v5 = vld [vmem:[#allocation66_spill] sm:$0xff]  ;;  %v28119_v54 = vld [vmem:[#allocation100_spill] sm:$0xff] }
 0x5fa   : > { %v21452_v7 = vpop.f32.mrf.mxu1  ;;  %v21536_v51 = vpop.f32.mrf.mxu0  ;;  %v10882_v25 = vsel %vm5363_vm0, %v10879_v2, %v10881_v60  ;;  %v10889_v2 = vrot.slane %v10235_v26, 1 }
 0x5fb   : > { %v10718_v10 = vadd.f32 %v25410_v56, %v9811_v50  ;;  %21884 = vmatpush3.bf16.msra.mxu1 %v22840_v3  ;;  %v10885_v32 = vrot.slane %v10233_v63, 1  ;;  %v28120_v51 = vld [vmem:[#allocation35_spill] sm:$0xff] }
 0x5fc   : > { %v9655_v53 = vpop.f32.mrf.mxu1  ;;  %v10089_v57 = vpop.f32.mrf.mxu0 }
 0x5fd   : > { %v25540_v48 = vadd.f32 %v10880_v43, %v10718_v10  ;;  %v9812_v39 = vadd.f32 %v9655_v53, %v28116_v13  ;;  %v10234_v8 = vadd.f32 %v10089_v57, %v28117_v52 }
 0x5fe   : > { %v21455_v15 = vpop.f32.mrf.mxu1  ;;  %v21539_v44 = vpop.f32.mrf.mxu0 }
 0x5ff   : > { %v10719_v58 = vadd.f32 %v25410_v56, %v9812_v39  ;;  %v10887_v11 = vrot.slane %v10234_v8, 1  ;;  %v10239_v0 = vadd.f32 %v21539_v44, %v28118_v5  ;;  %v22846_v39 = vld [vmem:[#allocation10 + $0x68] sm:$0xff]   ;;  %v28121_v15 = vld [vmem:[#allocation48_spill] sm:$0xff] }
 0x600   : > { %v9668_v60 = vpop.f32.mrf.mxu1  ;;  %v10102_v50 = vpop.f32.mrf.mxu0  ;;  %v28122_v44 = vld [vmem:[#allocation67_spill] sm:$0xff]  ;;  %21885 = vmatprep.subr.bf16.mxu1 %v22846_v39 }
 0x601   : > { %v25546_v3 = vadd.f32 %v10882_v25, %v10719_v58  ;;  %v9815_v43 = vadd.f32 %v9668_v60, %v28119_v54  ;;  %v10888_v7 = vsel %vm5363_vm0, %v10885_v32, %v10887_v11  ;;  %v10237_v10 = vadd.f32 %v10102_v50, %v28120_v51  ;;  %21886 = vmatpush3.bf16.msra.mxu1 %v22846_v39 }
 0x602   : > { %v21456_v53 = vpop.f32.mrf.mxu1  ;;  %v21540_v57 = vpop.f32.mrf.mxu0  ;;  %v10890_v63 = vsel %vm5363_vm0, %v10887_v11, %v10889_v2  ;;  %v28123_v11 = vld [vmem:[#allocation36_spill] sm:$0xff] }
 0x603   : > { %v10722_v13 = vadd.f32 %v25410_v56, %v9815_v43  ;;  %v10893_v60 = vrot.slane %v10237_v10, 1  ;;  %v10897_v43 = vrot.slane %v10239_v0, 1  ;;  %v28126_v0 = vld [vmem:[#allocation49_spill] sm:$0xff] }
 0x604   : > { %v9671_v52 = vpop.f32.mrf.mxu1  ;;  %v10105_v8 = vpop.f32.mrf.mxu0 }
 0x605   : > { %v25553_v26 = vadd.f32 %v10888_v7, %v10722_v13  ;;  %v9816_v25 = vadd.f32 %v9671_v52, %v28121_v15  ;;  %v10238_v58 = vadd.f32 %v10105_v8, %v28122_v44  ;;  %v28124_v7 = vld [vmem:[#allocation23_spill] sm:$0xff]  ;;  %v28125_v8 = vld [vmem:[#allocation68_spill] sm:$0xff] }
 0x606   : > { %v21459_v5 = vpop.f32.mrf.mxu1  ;;  %v21543_v32 = vpop.f32.mrf.mxu0 }
 0x607   : > { %v10723_v50 = vadd.f32 %v25410_v56, %v9816_v25  ;;  %v10895_v54 = vrot.slane %v10238_v58, 1  ;;  %v10243_v2 = vadd.f32 %v21543_v32, %v28123_v11 }
 0x608   : > { %v9684_v51 = vpop.f32.mrf.mxu1  ;;  %v10118_v53 = vpop.f32.mrf.mxu0 }
 0x609   : > { %v25559_v57 = vadd.f32 %v10890_v63, %v10723_v50  ;;  %v9819_v13 = vadd.f32 %v9684_v51, %v28124_v7  ;;  %v10896_v52 = vsel %vm5363_vm0, %v10893_v60, %v10895_v54  ;;  %v10241_v15 = vadd.f32 %v10118_v53, %v28125_v8  ;;  %v28127_v63 = vld [vmem:[#allocation69_spill] sm:$0xff] }
 0x60a   : > { %v21460_v44 = vpop.f32.mrf.mxu1  ;;  %v21544_v5 = vpop.f32.mrf.mxu0  ;;  %v10898_v10 = vsel %vm5363_vm0, %v10895_v54, %v10897_v43  ;;  %v28128_v8 = vld [vmem:[#allocation37_spill] sm:$0xff] }
 0x60b   : > { %v10726_v39 = vadd.f32 %v25410_v56, %v9819_v13  ;;  %v10901_v7 = vrot.slane %v10241_v15, 1  ;;  %v10905_v5 = vrot.slane %v10243_v2, 1 }
 0x60c   : > { %v9687_v25 = vpop.f32.mrf.mxu1  ;;  %v10121_v58 = vpop.f32.mrf.mxu0 }
 0x60d   : > { %v25566_v32 = vadd.f32 %v10896_v52, %v10726_v39  ;;  %v9820_v11 = vadd.f32 %v9687_v25, %v28126_v0  ;;  %v10242_v50 = vadd.f32 %v10121_v58, %v28127_v63  ;;  %v28130_v25 = vld [vmem:[#allocation70_spill] sm:$0xff] }
 0x60e   : > { %v21463_v62 = vpop.f32.mrf.mxu1  ;;  %v21547_v51 = vpop.f32.mrf.mxu0  ;;  %v22852_v63 = vld [vmem:[#allocation10 + $0x60] sm:$0xff]  }
 0x60f   : > { %v10727_v60 = vadd.f32 %v25410_v56, %v9820_v11  ;;  %v10903_v53 = vrot.slane %v10242_v50, 1  ;;  %v10247_v44 = vadd.f32 %v21547_v51, %v28128_v8  ;;  %v28131_v8 = vld [vmem:[#allocation50_spill] sm:$0xff]  ;;  %21887 = vmatprep.subr.bf16.mxu1 %v22852_v63 }
 0x610   : > { %v9700_v54 = vpop.f32.mrf.mxu1  ;;  %v10134_v43 = vpop.f32.mrf.mxu0  ;;  %21888 = vmatpush3.bf16.msra.mxu1 %v22852_v63 }
 0x611   : > { %v25572_v13 = vadd.f32 %v10898_v10, %v10727_v60  ;;  %v9823_v52 = vadd.f32 %v9700_v54, %v28129_v1  ;;  %v10904_v39 = vsel %vm5363_vm0, %v10901_v7, %v10903_v53  ;;  %v10245_v0 = vadd.f32 %v10134_v43, %v28130_v25  ;;  %v28132_v60 = vld [vmem:[#allocation38_spill] sm:$0xff] }
 0x612   : > { %v21464_v58 = vpop.f32.mrf.mxu1  ;;  %v21548_v62 = vpop.f32.mrf.mxu0  ;;  %v10906_v15 = vsel %vm5363_vm0, %v10903_v53, %v10905_v5  ;;  %v28133_v53 = vld [vmem:[#allocation71_spill] sm:$0xff] }
 0x613   : > { %v10730_v11 = vadd.f32 %v25410_v56, %v9823_v52  ;;  %v10909_v54 = vrot.slane %v10245_v0, 1  ;;  %v10913_v52 = vrot.slane %v10247_v44, 1  ;;  %v28136_v44 = vld [vmem:[#allocation25_spill] sm:$0xff] }
 0x614   : > { %v9703_v50 = vpop.f32.mrf.mxu1  ;;  %v10137_v51 = vpop.f32.mrf.mxu0 }
 0x615   : > { %v25579_v2 = vadd.f32 %v10904_v39, %v10730_v11  ;;  %v9824_v10 = vadd.f32 %v9703_v50, %v28131_v8  ;;  %v10246_v21 = vadd.f32 %v10137_v51, %v28132_v60  ;;  %v28134_v39 = vld [vmem:[#allocation51_spill] sm:$0xff]  ;;  %v28135_v51 = vld [vmem:[#allocation72_spill] sm:$0xff] }
 0x616   : > { %v21467_v1 = vpop.f32.mrf.mxu1  ;;  %v21551_v7 = vpop.f32.mrf.mxu0 }
 0x617   : > { %v10731_v43 = vadd.f32 %v25410_v56, %v9824_v10  ;;  %v10911_v25 = vrot.slane %v10246_v21, 1  ;;  %v10251_v5 = vadd.f32 %v21551_v7, %v28133_v53 }
 0x618   : > { %v9716_v58 = vpop.f32.mrf.mxu1  ;;  %v10150_v62 = vpop.f32.mrf.mxu0 }
 0x619   : > { %v25585_v6 = vadd.f32 %v10906_v15, %v10731_v43  ;;  %v9827_v11 = vadd.f32 %v9716_v58, %v28134_v39  ;;  %v10912_v50 = vsel %vm5363_vm0, %v10909_v54, %v10911_v25  ;;  %v10249_v8 = vadd.f32 %v10150_v62, %v28135_v51  ;;  %v28137_v15 = vld [vmem:[#allocation39_spill] sm:$0xff]  ;;  %v28138_v51 = vld [vmem:[#allocation73_spill] sm:$0xff] }
 0x61a   : > { %v21468_v60 = vpop.f32.mrf.mxu1  ;;  %v21552_v1 = vpop.f32.mrf.mxu0  ;;  %v10914_v0 = vsel %vm5363_vm0, %v10911_v25, %v10913_v52 }
 0x61b   : > { %v10734_v63 = vadd.f32 %v25410_v56, %v9827_v11  ;;  %v10917_v39 = vrot.slane %v10249_v8, 1  ;;  %v10921_v1 = vrot.slane %v10251_v5, 1 }
 0x61c   : > { %v9719_v21 = vpop.f32.mrf.mxu1  ;;  %v10153_v10 = vpop.f32.mrf.mxu0 }
 0x61d   : > { %v25592_v7 = vadd.f32 %v10912_v50, %v10734_v63  ;;  %v9828_v53 = vadd.f32 %v9719_v21, %v28136_v44  ;;  %v10250_v43 = vadd.f32 %v10153_v10, %v28137_v15  ;;  %v28141_v21 = vld [vmem:[#allocation40_spill] sm:$0xff]  ;;  %v22858_v15 = vld [vmem:[#allocation10 + $0x58] sm:$0xff]  }
 0x61e   : > { %v21471_v61 = vpop.f32.mrf.mxu1  ;;  %v21555_v58 = vpop.f32.mrf.mxu0  ;;  %21889 = vmatprep.subr.bf16.mxu1 %v22858_v15 }
 0x61f   : > { %v10735_v54 = vadd.f32 %v25410_v56, %v9828_v53  ;;  %v10919_v62 = vrot.slane %v10250_v43, 1  ;;  %v10255_v60 = vadd.f32 %v21555_v58, %v28138_v51  ;;  %v28142_v51 = vld [vmem:[#allocation26_spill] sm:$0xff]  ;;  %21890 = vmatpush3.bf16.msra.mxu1 %v22858_v15 }
 0x620   : > { %v9732_v25 = vpop.f32.mrf.mxu1  ;;  %v10166_v52 = vpop.f32.mrf.mxu0 }
 0x621   : > { %v25598_v11 = vadd.f32 %v10914_v0, %v10735_v54  ;;  %v9831_v50 = vadd.f32 %v9732_v25, %v28140_v41  ;;  %v10920_v63 = vsel %vm5363_vm0, %v10917_v39, %v10919_v62  ;;  %v10253_v44 = vadd.f32 %v10166_v52, %v28141_v21  ;;  %v28143_v54 = vld [vmem:[#allocation74_spill] sm:$0xff] }
 0x622   : > { %v21472_v10 = vpop.f32.mrf.mxu1  ;;  %v21556_v61 = vpop.f32.mrf.mxu0  ;;  %v10922_v8 = vsel %vm5363_vm0, %v10919_v62, %v10921_v1  ;;  %v28144_v62 = vld [vmem:[#allocation75_spill] sm:$0xff] }
 0x623   : > { %28139 = vst [vmem:[#allocation28_spill] sm:$0xff] %v25598_v11  ;;  %v10738_v53 = vadd.f32 %v25410_v56, %v9831_v50  ;;  %v10925_v25 = vrot.slane %v10253_v44, 1  ;;  %v10929_v50 = vrot.slane %v10255_v60, 1  ;;  %v28148_v60 = vld [vmem:[#allocation54_spill] sm:$0xff] }
 0x624   : > { %v9735_v43 = vpop.f32.mrf.mxu1  ;;  %v10169_v58 = vpop.f32.mrf.mxu0 }
 0x625   : > { %v25605_v5 = vadd.f32 %v10920_v63, %v10738_v53  ;;  %v9832_v0 = vadd.f32 %v9735_v43, %v28142_v51  ;;  %v10254_v46 = vadd.f32 %v10169_v58, %v28143_v54  ;;  %v28146_v63 = vld [vmem:[#allocation53_spill] sm:$0xff]  ;;  %v28147_v58 = vld [vmem:[#allocation76_spill] sm:$0xff] }
 0x626   : > { %v21475_v41 = vpop.f32.mrf.mxu1  ;;  %v21559_v39 = vpop.f32.mrf.mxu0 }
 0x627   : > { %v10739_v52 = vadd.f32 %v25410_v56, %v9832_v0  ;;  %v10927_v21 = vrot.slane %v10254_v46, 1  ;;  %v10259_v1 = vadd.f32 %v21559_v39, %v28144_v62 }
 0x628   : > { %v9748_v10 = vpop.f32.mrf.mxu1  ;;  %v10182_v61 = vpop.f32.mrf.mxu0 }
 0x629   : > { %v25611_v11 = vadd.f32 %v10922_v8, %v10739_v52  ;;  %v9835_v53 = vadd.f32 %v9748_v10, %v28146_v63  ;;  %v10928_v43 = vsel %vm5363_vm0, %v10925_v25, %v10927_v21  ;;  %v10257_v51 = vadd.f32 %v10182_v61, %v28147_v58  ;;  %v28149_v8 = vld [vmem:[#allocation77_spill] sm:$0xff] }
 0x62a   : > { %v21476_v54 = vpop.f32.mrf.mxu1  ;;  %v21560_v41 = vpop.f32.mrf.mxu0  ;;  %v10930_v44 = vsel %vm5363_vm0, %v10927_v21, %v10929_v50  ;;  %v10937_v10 = vrot.slane %v10259_v1, 1  ;;  %v28150_v21 = vld [vmem:[#allocation27_spill] sm:$0xff] }
 0x62b   : > { %28145 = vst [vmem:[#allocation42_spill] sm:$0xff] %v25611_v11  ;;  %v10742_v15 = vadd.f32 %v25410_v56, %v9835_v53  ;;  %v10933_v63 = vrot.slane %v10257_v51, 1  ;;  %v28152_v1 = vld [vmem:[#allocation55_spill] sm:$0xff] }
 0x62c   : > { %v9751_v46 = vpop.f32.mrf.mxu1  ;;  %v10185_v0 = vpop.f32.mrf.mxu0 }
 0x62d   : > { %v25618_v39 = vadd.f32 %v10928_v43, %v10742_v15  ;;  %v9836_v62 = vadd.f32 %v9751_v46, %v28148_v60  ;;  %v10258_v52 = vadd.f32 %v10185_v0, %v28149_v8  ;;  %v22864_v46 = vld [vmem:[#allocation10 + $0x50] sm:$0xff]  }
 0x62e   : > { %v21479_v11 = vpop.f32.mrf.mxu1  ;;  %21891 = vmatprep.subr.bf16.mxu1 %v22864_v46 }
 0x62f   : > { %v10743_v25 = vadd.f32 %v25410_v56, %v9836_v62  ;;  %v10935_v61 = vrot.slane %v10258_v52, 1  ;;  %21892 = vmatpush3.bf16.msra.mxu1 %v22864_v46 }
 0x630   : > { %v9764_v58 = vpop.f32.mrf.mxu1 }
 0x631   : > { %v25623_v54 = vadd.f32 %v10930_v44, %v10743_v25  ;;  %v9839_v50 = vadd.f32 %v9764_v58, %v28150_v21  ;;  %v10936_v53 = vsel %vm5363_vm0, %v10933_v63, %v10935_v61  ;;  %v10938_v43 = vsel %vm5363_vm0, %v10935_v61, %v10937_v10  ;;  %v28154_v63 = vld [vmem:[#allocation78_spill] sm:$0xff]  ;;  %v28155_v25 = vld [vmem:[#allocation79_spill] sm:$0xff]  ;;  %v28156_v21 = vld [vmem:[#allocation80_spill] sm:$0xff] }
 0x632   : > { %v21480_v41 = vpop.f32.mrf.mxu1 }
 0x633   : > { %v10746_v15 = vadd.f32 %v25410_v56, %v9839_v50 }
 0x634   : > { %v9767_v0 = vpop.f32.mrf.mxu1 }
 0x635   : > { %v25629_v11 = vadd.f32 %v10936_v53, %v10746_v15  ;;  %v9840_v51 = vadd.f32 %v9767_v0, %v28152_v1 }
 0x636   : > { %v21579_v60 = vpop.f32.mrf.mxu1 }
 0x637   : > { %28151 = vst [vmem:[#allocation56_spill] sm:$0xff] %v25629_v11  ;;  %v10747_v44 = vadd.f32 %v25410_v56, %v9840_v51  ;;  %v10617_v10 = vadd.f32 %v21579_v60, %v28154_v63  ;;  %v28157_v60 = vld [vmem:[#allocation81_spill] sm:$0xff] }
 0x638   : > { %v10360_v62 = vpop.f32.mrf.mxu1 }
 0x639   : > { %v25633_v8 = vadd.f32 %v10938_v43, %v10747_v44  ;;  %v10615_v61 = vadd.f32 %v10360_v62, %v28155_v25  ;;  %v11137_v41 = vrot.slane %v10617_v10, 2  ;;  %v28158_v62 = vld [vmem:[#allocation82_spill] sm:$0xff]  ;;  %v22870_v25 = vld [vmem:[#allocation10 + $0x48] sm:$0xff]  }
 0x63a   : > { %v21580_v52 = vpop.f32.mrf.mxu1  ;;  %21893 = vmatprep.subr.bf16.mxu1 %v22870_v25 }
 0x63b   : > { %28153 = vst [vmem:[#allocation86_spill] sm:$0xff] %v25633_v8  ;;  %v11134_v15 = vrot.slane %v10615_v61, 2  ;;  %v28159_v61 = vld [vmem:[#allocation83_spill] sm:$0xff]  ;;  %v22876_v8 = vld [vmem:[#allocation10 + $0x40] sm:$0xff]   ;;  %21894 = vmatpush3.bf16.msra.mxu1 %v22870_v25 }
 0x63c   : > { %v10363_v58 = vpop.f32.mrf.mxu1  ;;  %21895 = vmatprep.subr.bf16.mxu1 %v22876_v8 }
 0x63d   : > { %v10616_v50 = vadd.f32 %v10363_v58, %v28156_v21 }
 0x63e   : > { %v21583_v53 = vpop.f32.mrf.mxu1 }
 0x63f   : > { %v11135_v0 = vrot.slane %v10616_v50, 2  ;;  %v10621_v52 = vadd.f32 %v21583_v53, %v28157_v60  ;;  %21896 = vmatpush3.bf16.msra.mxu1 %v22876_v8 }
 0x640   : > { %v10376_v1 = vpop.f32.mrf.mxu1 }
 0x641   : > { %v11136_v46 = vsel %vm5684_vm1, %v11134_v15, %v11135_v0  ;;  %v11138_v56 = vsel %vm5684_vm1, %v11135_v0, %v11137_v41  ;;  %v10619_v63 = vadd.f32 %v10376_v1, %v28158_v62 }
 0x642   : > { %v11326_v43 = vadd.f32 %v11136_v46, %v25416_v47  ;;  %v11327_v51 = vadd.f32 %v11138_v56, %v25424_v12  ;;  %v21584_v44 = vpop.f32.mrf.mxu1  ;;  %v11145_v47 = vrot.slane %v10621_v52, 2  ;;  %v28160_v46 = vld [vmem:[#allocation90_spill] sm:$0xff] }
 0x643   : > { %v11141_v0 = vrot.slane %v10619_v63, 2 }
 0x644   : > { %v11390_v58 = vmax.f32 %v11326_v43, 0.0  ;;  %v11391_v21 = vmax.f32 %v11327_v51, 0.0  ;;  %v10379_v10 = vpop.f32.mrf.mxu1 }
 0x645   : > { %v10620_v50 = vadd.f32 %v10379_v10, %v28159_v61 }
 0x646   : > { %v11582_v15 = vrot.slane %v11390_v58, 7  ;;  %v11583_v11 = vrot.slane %v11391_v21, 7  ;;  %v21587_v41 = vpop.f32.mrf.mxu1  ;;  %v28161_v58 = vld [vmem:[#allocation84_spill] sm:$0xff]  ;;  %v28162_v21 = vld [vmem:[#allocation85_spill] sm:$0xff] }
 0x647   : > { %v11143_v12 = vrot.slane %v10620_v50, 2 }
 0x648   : > { %v11584_v53 = vsel %vm6261_vm2, %v11582_v15, %v11583_v11  ;;  %v11586_v1 = vsel %vm6261_vm2, %v11583_v11, %v28160_v46  ;;  %v11773_v56 = vsel %vm6261_vm2, 0.0, %v11582_v15  ;;  %v10392_v43 = vpop.f32.mrf.mxu1  ;;  %v10625_v11 = vadd.f32 %v21587_v41, %v28161_v58 }
 0x649   : > { %v18860_v51 = vpack.c.bf16 %v11584_v53, %v11773_v56  ;;  %v18865_v44 = vpack.c.bf16 %v28160_v46, %v11586_v1  ;;  %v11144_v60 = vsel %vm5684_vm1, %v11141_v0, %v11143_v12  ;;  %v11146_v62 = vsel %vm5684_vm1, %v11143_v12, %v11145_v47  ;;  %v28163_v53 = vld [vmem:[#allocation91_spill] sm:$0xff] }
 0x64a   : > { %v11330_v52 = vadd.f32 %v11144_v60, %v25431_v35  ;;  %v11331_v63 = vadd.f32 %v11146_v62, %v25439_v29  ;;  %v21588_v25 = vpop.f32.mrf.mxu1  ;;  %v10623_v10 = vadd.f32 %v10392_v43, %v28162_v21  ;;  %v11153_v12 = vrot.slane %v10625_v11, 2 }
 0x64b   : > { %19049 = vst [vmem:[#allocation3 + $0x10] sm:$0xff] %v18860_v51   ;;  %19050 = vst [vmem:[#allocation3 + $0x18] sm:$0xff] %v18865_v44  }
 0x64c   : > { %v11394_v61 = vmax.f32 %v11330_v52, 0.0  ;;  %v11395_v50 = vmax.f32 %v11331_v63, 0.0  ;;  %v10395_v15 = vpop.f32.mrf.mxu1  ;;  %v11149_v35 = vrot.slane %v10623_v10, 2  ;;  %v22839_v63 = vld [vmem:[#allocation10 + $0x130] sm:$0xff]   ;;  %v28164_v10 = vld [vmem:[#allocation87_spill] sm:$0xff] }
 0x64d   : > { %v10624_v1 = vadd.f32 %v10395_v15, %v28163_v53 }
 0x64e   : > { %v11589_v0 = vrot.slane %v11394_v61, 7  ;;  %v11591_v56 = vrot.slane %v11395_v50, 7  ;;  %v21591_v47 = vpop.f32.mrf.mxu1  ;;  %v28165_v50 = vld [vmem:[#allocation88_spill] sm:$0xff] }
 0x64f   : > { %v11151_v60 = vrot.slane %v10624_v1, 2  ;;  %v10629_v61 = vadd.f32 %v21591_v47, %v28164_v10 }
 0x650   : > { %v11590_v29 = vsel %vm6261_vm2, %v28160_v46, %v11589_v0  ;;  %v11592_v8 = vsel %vm6261_vm2, %v11589_v0, %v11591_v56  ;;  %v11594_v41 = vsel %vm6261_vm2, %v11591_v56, %v28160_v46  ;;  %v10408_v43 = vpop.f32.mrf.mxu1 }
 0x651   : > { %v18870_v51 = vpack.c.bf16 %v11592_v8, %v11590_v29  ;;  %v18875_v44 = vpack.c.bf16 %v28160_v46, %v11594_v41  ;;  %v11152_v62 = vsel %vm5684_vm1, %v11149_v35, %v11151_v60  ;;  %v11154_v52 = vsel %vm5684_vm1, %v11151_v60, %v11153_v12  ;;  %v28166_v12 = vld [vmem:[#allocation93_spill] sm:$0xff]  ;;  %v22845_v41 = vld [vmem:[#allocation10 + $0x128] sm:$0xff]  }
 0x652   : > { %v11334_v25 = vadd.f32 %v11152_v62, %v25446_v16  ;;  %v11335_v58 = vadd.f32 %v11154_v52, %v25454_v37  ;;  %v21592_v11 = vpop.f32.mrf.mxu1  ;;  %v22831_v21 = vld [vmem:[#allocation3 + $0x10] sm:$0xff]   ;;  %v10627_v15 = vadd.f32 %v10408_v43, %v28165_v50  ;;  %v22832_v53 = vld [vmem:[#allocation3 + $0x18] sm:$0xff]   ;;  %v11161_v29 = vrot.slane %v10629_v61, 2 }
 0x653   : > { %19051 = vst [vmem:[#allocation3 + $0x20] sm:$0xff] %v18870_v51   ;;  %19052 = vst [vmem:[#allocation3 + $0x28] sm:$0xff] %v18875_v44   ;;  %21657 = vmatprep.mubr.bf16.mxu0 %v22831_v21  ;;  %21741 = vmatprep.mubr.bf16.mxu1 %v22831_v21  ;;  %v22880_v43 = vld [vmem:[#allocation10 + $0xb8] sm:$0xff]   ;;  %v22851_v21 = vld [vmem:[#allocation10 + $0x120] sm:$0xff]  }
 0x654   : > { %v11398_v1 = vmax.f32 %v11334_v25, 0.0  ;;  %v11399_v0 = vmax.f32 %v11335_v58, 0.0  ;;  %v10411_v56 = vpop.f32.mrf.mxu1  ;;  %21658 = vmatmul.mubr.bf16.vlgmr.msra.gmra.mxu0 %v22832_v53  ;;  %21742 = vmatmul.mubr.bf16.gmra.mxu1 %v22832_v53  ;;  %v11157_v8 = vrot.slane %v10627_v15, 2  ;;  %v28167_v53 = vld [vmem:[#allocation98_spill] sm:$0xff] }
 0x655   : > { %v10628_v35 = vadd.f32 %v10411_v56, %v28166_v12  ;;  %21802 = vmatpush3.bf16.msra.mxu0 %v25491_v23  ;;  %22041 = vmatprep.subr.bf16.mxu1 %v22880_v43  ;;  %v28169_v56 = vld [vmem:[#allocation101_spill] sm:$0xff] }
 0x656   : > { %v11597_v16 = vrot.slane %v11398_v1, 7  ;;  %v11599_v37 = vrot.slane %v11399_v0, 7  ;;  %v21595_v60 = vpop.f32.mrf.mxu1  ;;  %21803 = vmatprep.subr.bf16.mxu0 %v22839_v63  ;;  %v28168_v1 = vld [vmem:[#allocation96_spill] sm:$0xff] }
 0x657   : > { %v11159_v47 = vrot.slane %v10628_v35, 2  ;;  %v8982_v0 = vadd.f32 %v28168_v1, %v28167_v53  ;;  %v10633_v12 = vadd.f32 %v21595_v60, %v28169_v56  ;;  %v28170_v35 = vld [vmem:[#allocation102_spill] sm:$0xff]  ;;  %v22857_v60 = vld [vmem:[#allocation10 + $0x118] sm:$0xff]   ;;  %v28171_v56 = vld [vmem:[#allocation107_spill] sm:$0xff] }
 0x658   : > { %v11598_v51 = vsel %vm6261_vm2, %v28160_v46, %v11597_v16  ;;  %v11600_v44 = vsel %vm6261_vm2, %v11597_v16, %v11599_v37  ;;  %v11602_v62 = vsel %vm6261_vm2, %v11599_v37, %v28160_v46  ;;  %v10424_v52 = vpop.f32.mrf.mxu1 }
 0x659   : > { %v18880_v25 = vpack.c.bf16 %v11600_v44, %v11598_v51  ;;  %v18885_v58 = vpack.c.bf16 %v28160_v46, %v11602_v62  ;;  %v11160_v23 = vsel %vm5684_vm1, %v11157_v8, %v11159_v47  ;;  %v11162_v11 = vsel %vm5684_vm1, %v11159_v47, %v11161_v29  ;;  %21804 = vmatpush3.bf16.msra.mxu0 %v22839_v63 }
 0x65a   : > { %v11338_v10 = vadd.f32 %v11160_v23, %v25461_v24  ;;  %v11339_v61 = vadd.f32 %v11162_v11, %v25469_v40  ;;  %v21596_v50 = vpop.f32.mrf.mxu1  ;;  %v22835_v15 = vld [vmem:[#allocation3 + $0x20] sm:$0xff]   ;;  %v10631_v16 = vadd.f32 %v10424_v52, %v28170_v35  ;;  %v22836_v37 = vld [vmem:[#allocation3 + $0x28] sm:$0xff]   ;;  %21805 = vmatprep.subr.bf16.mxu0 %v22845_v41  ;;  %v11169_v51 = vrot.slane %v10633_v12, 2 }
 0x65b   : > { %19053 = vst [vmem:[#allocation3 + $0x30] sm:$0xff] %v18880_v25   ;;  %19054 = vst [vmem:[#allocation3 + $0x38] sm:$0xff] %v18885_v58   ;;  %21661 = vmatprep.mubr.bf16.mxu0 %v22835_v15  ;;  %21745 = vmatprep.mubr.bf16.mxu1 %v22835_v15  ;;  %v22863_v50 = vld [vmem:[#allocation10 + $0x110] sm:$0xff]   ;;  %v28172_v12 = vld [vmem:[#allocation99_spill] sm:$0xff] }
 0x65c   : > { %v11402_v29 = vmax.f32 %v11338_v10, 0.0  ;;  %v11403_v8 = vmax.f32 %v11339_v61, 0.0  ;;  %v10427_v47 = vpop.f32.mrf.mxu1  ;;  %21662 = vmatmul.mubr.bf16.gmra.mxu0 %v22836_v37  ;;  %21746 = vmatmul.mubr.bf16.gmra.mxu1 %v22836_v37  ;;  %v11165_v44 = vrot.slane %v10631_v16, 2  ;;  %v8998_v35 = vadd.f32 %v28172_v12, %v28171_v56  ;;  %v28173_v16 = vld [vmem:[#allocation104_spill] sm:$0xff]  ;;  %v28175_v12 = vld [vmem:[#allocation111_spill] sm:$0xff] }
 0x65d   : > { %v10632_v24 = vadd.f32 %v10427_v47, %v8982_v0  ;;  %21806 = vmatpush3.bf16.msra.mxu0 %v22845_v41 }
 0x65e   : > { %v11605_v40 = vrot.slane %v11402_v29, 7  ;;  %v11607_v63 = vrot.slane %v11403_v8, 7  ;;  %v21599_v43 = vpop.f32.mrf.mxu1  ;;  %21807 = vmatprep.subr.bf16.mxu0 %v22851_v21  ;;  %v28174_v29 = vld [vmem:[#allocation105_spill] sm:$0xff] }
 0x65f   : > { %v11167_v62 = vrot.slane %v10632_v24, 2  ;;  %v10637_v37 = vadd.f32 %v21599_v43, %v28173_v16  ;;  %v22869_v43 = vld [vmem:[#allocation10 + $0x108] sm:$0xff]  }
 0x660   : > { %v11606_v52 = vsel %vm6261_vm2, %v28160_v46, %v11605_v40  ;;  %v11608_v25 = vsel %vm6261_vm2, %v11605_v40, %v11607_v63  ;;  %v11610_v58 = vsel %vm6261_vm2, %v11607_v63, %v28160_v46  ;;  %v10440_v23 = vpop.f32.mrf.mxu1 }
 0x661   : > { %v18890_v11 = vpack.c.bf16 %v11608_v25, %v11606_v52  ;;  %v18895_v10 = vpack.c.bf16 %v28160_v46, %v11610_v58  ;;  %v11168_v61 = vsel %vm5684_vm1, %v11165_v44, %v11167_v62  ;;  %v11170_v41 = vsel %vm5684_vm1, %v11167_v62, %v11169_v51  ;;  %21808 = vmatpush3.bf16.msra.mxu0 %v22851_v21 }
 0x662   : > { %v11342_v15 = vadd.f32 %v11168_v61, %v25476_v38  ;;  %v11343_v53 = vadd.f32 %v11170_v41, %v25484_v49  ;;  %v21600_v1 = vpop.f32.mrf.mxu1  ;;  %v22837_v0 = vld [vmem:[#allocation3 + $0x30] sm:$0xff]   ;;  %v10635_v8 = vadd.f32 %v10440_v23, %v28174_v29  ;;  %v22838_v47 = vld [vmem:[#allocation3 + $0x38] sm:$0xff]   ;;  %21809 = vmatprep.subr.bf16.mxu0 %v22857_v60  ;;  %v11177_v44 = vrot.slane %v10637_v37, 2 }
 0x663   : > { %19055 = vst [vmem:[#allocation3 + $0x40] sm:$0xff] %v18890_v11   ;;  %19056 = vst [vmem:[#allocation3 + $0x48] sm:$0xff] %v18895_v10   ;;  %21665 = vmatprep.mubr.bf16.mxu0 %v22837_v0  ;;  %21749 = vmatprep.mubr.bf16.mxu1 %v22837_v0  ;;  %v28177_v37 = vld [vmem:[#allocation109_spill] sm:$0xff] }
 0x664   : > { %v11406_v24 = vmax.f32 %v11342_v15, 0.0  ;;  %v11407_v40 = vmax.f32 %v11343_v53, 0.0  ;;  %v10443_v63 = vpop.f32.mrf.mxu1  ;;  %21666 = vmatmul.mubr.bf16.gmra.mxu0 %v22838_v47  ;;  %21750 = vmatmul.mubr.bf16.gmra.mxu1 %v22838_v47  ;;  %v11173_v62 = vrot.slane %v10635_v8, 2  ;;  %v22875_v15 = vld [vmem:[#allocation10 + $0x100] sm:$0xff]  }
 0x665   : > { %v10636_v38 = vadd.f32 %v10443_v63, %v8998_v35  ;;  %21810 = vmatpush3.bf16.msra.mxu0 %v22857_v60  ;;  %v28176_v35 = vld [vmem:[#allocation108_spill] sm:$0xff]  ;;  %v28178_v8 = vld [vmem:[#allocation110_spill] sm:$0xff] }
 0x666   : > { %v11613_v49 = vrot.slane %v11406_v24, 7  ;;  %v11615_v21 = vrot.slane %v11407_v40, 7  ;;  %v21603_v51 = vpop.f32.mrf.mxu1  ;;  %21811 = vmatprep.subr.bf16.mxu0 %v22863_v50  ;;  %v9014_v16 = vadd.f32 %v28176_v35, %v28175_v12 }
 0x667   : > { %v11175_v52 = vrot.slane %v10636_v38, 2  ;;  %v10641_v29 = vadd.f32 %v21603_v51, %v28177_v37 }
 0x668   : > { %v11614_v25 = vsel %vm6261_vm2, %v28160_v46, %v11613_v49  ;;  %v11616_v58 = vsel %vm6261_vm2, %v11613_v49, %v11615_v21  ;;  %v11618_v23 = vsel %vm6261_vm2, %v11615_v21, %v28160_v46  ;;  %v10456_v11 = vpop.f32.mrf.mxu1 }
 0x669   : > { %v18900_v10 = vpack.c.bf16 %v11616_v58, %v11614_v25  ;;  %v18905_v61 = vpack.c.bf16 %v28160_v46, %v11618_v23  ;;  %v11176_v41 = vsel %vm5684_vm1, %v11173_v62, %v11175_v52  ;;  %v11178_v60 = vsel %vm5684_vm1, %v11175_v52, %v11177_v44  ;;  %21812 = vmatpush3.bf16.msra.mxu0 %v22863_v50  ;;  %v25721_v62 = vld [vmem:[#allocation10 + $0x178] sm:$0xff]  }
 0x66a   : > { %v11346_v53 = vadd.f32 %v11176_v41, %v25495_v55  ;;  %v11347_v1 = vadd.f32 %v11178_v60, %v25505_v34  ;;  %v21604_v0 = vpop.f32.mrf.mxu1  ;;  %v25709_v56 = vld [vmem:[#allocation3 + $0x40] sm:$0xff]   ;;  %v10639_v47 = vadd.f32 %v10456_v11, %v28178_v8  ;;  %v25715_v24 = vld [vmem:[#allocation3 + $0x48] sm:$0xff]   ;;  %21813 = vmatprep.subr.bf16.mxu0 %v22869_v43  ;;  %v11185_v21 = vrot.slane %v10641_v29, 2 }
 0x66b   : > { %19057 = vst [vmem:[#allocation3 + $0x50] sm:$0xff] %v18900_v10   ;;  %19058 = vst [vmem:[#allocation3 + $0x58] sm:$0xff] %v18905_v61   ;;  %21669 = vmatprep.mubr.bf16.mxu0 %v25709_v56  ;;  %21753 = vmatprep.mubr.bf16.mxu1 %v25709_v56  ;;  %v28179_v0 = vld [vmem:[#allocation112_spill] sm:$0xff] }
 0x66c   : > { %v11410_v40 = vmax.f32 %v11346_v53, 0.0  ;;  %v11411_v55 = vmax.f32 %v11347_v1, 0.0  ;;  %v10459_v63 = vpop.f32.mrf.mxu1  ;;  %21670 = vmatmul.mubr.bf16.gmra.mxu0 %v25715_v24  ;;  %21754 = vmatmul.mubr.bf16.gmra.mxu1 %v25715_v24  ;;  %v11181_v51 = vrot.slane %v10639_v47, 2  ;;  %v9030_v12 = vadd.f32 %v28179_v0, %v25317_v19 }
 0x66d   : > { %v10640_v34 = vadd.f32 %v10459_v63, %v9014_v16  ;;  %21814 = vmatpush3.bf16.msra.mxu0 %v22869_v43 }
 0x66e   : > { %v11621_v50 = vrot.slane %v11410_v40, 7  ;;  %v11623_v38 = vrot.slane %v11411_v55, 7  ;;  %v21607_v49 = vpop.f32.mrf.mxu1  ;;  %21815 = vmatprep.subr.bf16.mxu0 %v22875_v15 }
 0x66f   : > { %v11183_v44 = vrot.slane %v10640_v34, 2  ;;  %v10645_v35 = vadd.f32 %v21607_v49, %v25312_v18 }
 0x670   : > { %v11622_v52 = vsel %vm6261_vm2, %v28160_v46, %v11621_v50  ;;  %v11624_v25 = vsel %vm6261_vm2, %v11621_v50, %v11623_v38  ;;  %v11626_v58 = vsel %vm6261_vm2, %v11623_v38, %v28160_v46  ;;  %v10472_v23 = vpop.f32.mrf.mxu1 }
 0x671   : > { %v18910_v11 = vpack.c.bf16 %v11624_v25, %v11622_v52  ;;  %v18915_v10 = vpack.c.bf16 %v28160_v46, %v11626_v58  ;;  %v11184_v43 = vsel %vm5684_vm1, %v11181_v51, %v11183_v44  ;;  %v11186_v61 = vsel %vm5684_vm1, %v11183_v44, %v11185_v21  ;;  %21816 = vmatpush3.bf16.msra.mxu0 %v22875_v15 }
 0x672   : > { %v11350_v41 = vadd.f32 %v11184_v43, %v25512_v45  ;;  %v11351_v60 = vadd.f32 %v11186_v61, %v25519_v14  ;;  %v21608_v53 = vpop.f32.mrf.mxu1  ;;  %v25733_v1 = vld [vmem:[#allocation3 + $0x50] sm:$0xff]   ;;  %v10643_v16 = vadd.f32 %v10472_v23, %v25315_v20  ;;  %v25739_v37 = vld [vmem:[#allocation3 + $0x58] sm:$0xff]   ;;  %21961 = vmatprep.subr.bf16.mxu0 %v25721_v62  ;;  %v11193_v20 = vrot.slane %v10645_v35, 2  ;;  %v28181_v43 = vld [vmem:[#allocation114_spill] sm:$0xff] }
 0x673   : > { %19059 = vst [vmem:[#allocation3 + $0x60] sm:$0xff] %v18910_v11   ;;  %19060 = vst [vmem:[#allocation3 + $0x68] sm:$0xff] %v18915_v10   ;;  %21673 = vmatprep.mubr.bf16.mxu0 %v25733_v1  ;;  %21757 = vmatprep.mubr.bf16.mxu1 %v25733_v1  ;;  %v28180_v23 = vld [vmem:[#allocation113_spill] sm:$0xff] }
 0x674   : > { %v11414_v45 = vmax.f32 %v11350_v41, 0.0  ;;  %v11415_v29 = vmax.f32 %v11351_v60, 0.0  ;;  %v10475_v14 = vpop.f32.mrf.mxu1  ;;  %21674 = vmatmul.mubr.bf16.gmra.mxu0 %v25739_v37  ;;  %21758 = vmatmul.mubr.bf16.gmra.mxu1 %v25739_v37  ;;  %v11189_v47 = vrot.slane %v10643_v16, 2  ;;  %v9046_v11 = vadd.f32 %v28180_v23, %v25327_v9 }
 0x675   : > { %v10644_v15 = vadd.f32 %v10475_v14, %v9030_v12 }
 0x676   : > { %v11629_v19 = vrot.slane %v11414_v45, 7  ;;  %v11631_v18 = vrot.slane %v11415_v29, 7  ;;  %v21611_v8 = vpop.f32.mrf.mxu1 }
 0x677   : > { %v11191_v40 = vrot.slane %v10644_v15, 2  ;;  %v10649_v10 = vadd.f32 %v21611_v8, %v25322_v22 }
 0x678   : > { %v11630_v55 = vsel %vm6261_vm2, %v28160_v46, %v11629_v19  ;;  %v11632_v63 = vsel %vm6261_vm2, %v11629_v19, %v11631_v18  ;;  %v11634_v34 = vsel %vm6261_vm2, %v11631_v18, %v28160_v46  ;;  %v10488_v50 = vpop.f32.mrf.mxu1 }
 0x679   : > { %v18920_v38 = vpack.c.bf16 %v11632_v63, %v11630_v55  ;;  %v18925_v49 = vpack.c.bf16 %v28160_v46, %v11634_v34  ;;  %v11192_v21 = vsel %vm5684_vm1, %v11189_v47, %v11191_v40  ;;  %v11194_v51 = vsel %vm5684_vm1, %v11191_v40, %v11193_v20  ;;  %v28182_v34 = vld [vmem:[#allocation117_spill] sm:$0xff] }
 0x67a   : > { %v11354_v44 = vadd.f32 %v11192_v21, %v25526_v31  ;;  %v11355_v52 = vadd.f32 %v11194_v51, %v25533_v4  ;;  %v21612_v25 = vpop.f32.mrf.mxu1  ;;  %v25756_v58 = vld [vmem:[#allocation3 + $0x60] sm:$0xff]   ;;  %v10647_v61 = vadd.f32 %v10488_v50, %v28181_v43  ;;  %v25762_v41 = vld [vmem:[#allocation3 + $0x68] sm:$0xff]   ;;  %v11201_v22 = vrot.slane %v10649_v10, 2 }
 0x67b   : > { %19061 = vst [vmem:[#allocation3 + $0x70] sm:$0xff] %v18920_v38   ;;  %19062 = vst [vmem:[#allocation3 + $0x78] sm:$0xff] %v18925_v49   ;;  %21677 = vmatprep.mubr.bf16.mxu0 %v25756_v58  ;;  %21761 = vmatprep.mubr.bf16.mxu1 %v25756_v58  ;;  %v9062_v50 = vadd.f32 %v28182_v34, %v25337_v42  ;;  %v28183_v49 = vld [vmem:[#allocation118_spill] sm:$0xff] }
 0x67c   : > { %v11418_v60 = vmax.f32 %v11354_v44, 0.0  ;;  %v11419_v53 = vmax.f32 %v11355_v52, 0.0  ;;  %v10491_v0 = vpop.f32.mrf.mxu1  ;;  %21678 = vmatmul.mubr.bf16.gmra.mxu0 %v25762_v41  ;;  %21762 = vmatmul.mubr.bf16.gmra.mxu1 %v25762_v41  ;;  %v11197_v35 = vrot.slane %v10647_v61, 2 }
 0x67d   : > { %v10648_v31 = vadd.f32 %v10491_v0, %v9046_v11 }
 0x67e   : > { %v11637_v9 = vrot.slane %v11418_v60, 7  ;;  %v11639_v4 = vrot.slane %v11419_v53, 7  ;;  %v21615_v12 = vpop.f32.mrf.mxu1 }
 0x67f   : > { %v11199_v16 = vrot.slane %v10648_v31, 2  ;;  %v10653_v38 = vadd.f32 %v21615_v12, %v25332_v36 }
 0x680   : > { %v11638_v45 = vsel %vm6261_vm2, %v28160_v46, %v11637_v9  ;;  %v11640_v29 = vsel %vm6261_vm2, %v11637_v9, %v11639_v4  ;;  %v11642_v14 = vsel %vm6261_vm2, %v11639_v4, %v28160_v46  ;;  %v10504_v15 = vpop.f32.mrf.mxu1 }
 0x681   : > { %v18930_v19 = vpack.c.bf16 %v11640_v29, %v11638_v45  ;;  %v18935_v18 = vpack.c.bf16 %v28160_v46, %v11642_v14  ;;  %v11200_v8 = vsel %vm5684_vm1, %v11197_v35, %v11199_v16  ;;  %v11202_v20 = vsel %vm5684_vm1, %v11199_v16, %v11201_v22  ;;  %v28184_v45 = vld [vmem:[#allocation115_spill] sm:$0xff] }
 0x682   : > { %v11358_v47 = vadd.f32 %v11200_v8, %v25540_v48  ;;  %v11359_v40 = vadd.f32 %v11202_v20, %v25546_v3  ;;  %v21616_v55 = vpop.f32.mrf.mxu1  ;;  %v25778_v63 = vld [vmem:[#allocation3 + $0x70] sm:$0xff]   ;;  %v10651_v21 = vadd.f32 %v10504_v15, %v28183_v49  ;;  %v25784_v51 = vld [vmem:[#allocation3 + $0x78] sm:$0xff]   ;;  %v11209_v36 = vrot.slane %v10653_v38, 2 }
 0x683   : > { %19063 = vst [vmem:[#allocation3 + $0x80] sm:$0xff] %v18930_v19   ;;  %19064 = vst [vmem:[#allocation3 + $0x88] sm:$0xff] %v18935_v18   ;;  %21681 = vmatprep.mubr.bf16.mxu0 %v25778_v63  ;;  %21765 = vmatprep.mubr.bf16.mxu1 %v25778_v63  ;;  %v9078_v29 = vadd.f32 %v28184_v45, %v25347_v28  ;;  %v28185_v15 = vld [vmem:[#allocation116_spill] sm:$0xff] }
 0x684   : > { %v11422_v44 = vmax.f32 %v11358_v47, 0.0  ;;  %v11423_v52 = vmax.f32 %v11359_v40, 0.0  ;;  %v10507_v25 = vpop.f32.mrf.mxu1  ;;  %21682 = vmatmul.mubr.bf16.gmra.mxu0 %v25784_v51  ;;  %21766 = vmatmul.mubr.bf16.gmra.mxu1 %v25784_v51  ;;  %v11205_v11 = vrot.slane %v10651_v21, 2 }
 0x685   : > { %v10652_v48 = vadd.f32 %v10507_v25, %v9062_v50 }
 0x686   : > { %v11645_v42 = vrot.slane %v11422_v44, 7  ;;  %v11647_v3 = vrot.slane %v11423_v52, 7  ;;  %v21619_v23 = vpop.f32.mrf.mxu1 }
 0x687   : > { %v11207_v10 = vrot.slane %v10652_v48, 2  ;;  %v10657_v14 = vadd.f32 %v21619_v23, %v25342_v33 }
 0x688   : > { %v11646_v43 = vsel %vm6261_vm2, %v28160_v46, %v11645_v42  ;;  %v11648_v61 = vsel %vm6261_vm2, %v11645_v42, %v11647_v3  ;;  %v11650_v60 = vsel %vm6261_vm2, %v11647_v3, %v28160_v46  ;;  %v10520_v53 = vpop.f32.mrf.mxu1 }
 0x689   : > { %v18940_v0 = vpack.c.bf16 %v11648_v61, %v11646_v43  ;;  %v18945_v31 = vpack.c.bf16 %v28160_v46, %v11650_v60  ;;  %v11208_v9 = vsel %vm5684_vm1, %v11205_v11, %v11207_v10  ;;  %v11210_v4 = vsel %vm5684_vm1, %v11207_v10, %v11209_v36  ;;  %v28186_v11 = vld [vmem:[#allocation18_spill] sm:$0xff]  ;;  %v28187_v61 = vld [vmem:[#allocation41_spill] sm:$0xff] }
 0x68a   : > { %v11362_v12 = vadd.f32 %v11208_v9, %v25553_v26  ;;  %v11363_v22 = vadd.f32 %v11210_v4, %v25559_v57  ;;  %v21620_v35 = vpop.f32.mrf.mxu1  ;;  %v25800_v16 = vld [vmem:[#allocation3 + $0x80] sm:$0xff]   ;;  %v10655_v19 = vadd.f32 %v10520_v53, %v28185_v15  ;;  %v25806_v18 = vld [vmem:[#allocation3 + $0x88] sm:$0xff]   ;;  %v11217_v33 = vrot.slane %v10657_v14, 2 }
 0x68b   : > { %19065 = vst [vmem:[#allocation3 + $0x90] sm:$0xff] %v18940_v0   ;;  %19066 = vst [vmem:[#allocation3 + $0x98] sm:$0xff] %v18945_v31   ;;  %21685 = vmatprep.mubr.bf16.mxu0 %v25800_v16  ;;  %21769 = vmatprep.mubr.bf16.mxu1 %v25800_v16  ;;  %v9094_v10 = vadd.f32 %v28186_v11, %v25357_v30 }
 0x68c   : > { %v11426_v8 = vmax.f32 %v11362_v12, 0.0  ;;  %v11427_v20 = vmax.f32 %v11363_v22, 0.0  ;;  %v10523_v47 = vpop.f32.mrf.mxu1  ;;  %21686 = vmatmul.mubr.bf16.gmra.mxu0 %v25806_v18  ;;  %21770 = vmatmul.mubr.bf16.gmra.mxu1 %v25806_v18  ;;  %v11213_v55 = vrot.slane %v10655_v19, 2 }
 0x68d   : > { %v10656_v26 = vadd.f32 %v10523_v47, %v9078_v29 }
 0x68e   : > { %v11653_v28 = vrot.slane %v11426_v8, 7  ;;  %v11655_v57 = vrot.slane %v11427_v20, 7  ;;  %v21623_v40 = vpop.f32.mrf.mxu1 }
 0x68f   : > { %v11215_v34 = vrot.slane %v10656_v26, 2  ;;  %v10661_v43 = vadd.f32 %v21623_v40, %v25352_v17  ;;  %v28188_v40 = vld [vmem:[#allocation121_spill] sm:$0xff] }
 0x690   : > { %v11654_v50 = vsel %vm6261_vm2, %v28160_v46, %v11653_v28  ;;  %v11656_v38 = vsel %vm6261_vm2, %v11653_v28, %v11655_v57  ;;  %v11658_v49 = vsel %vm6261_vm2, %v11655_v57, %v28160_v46  ;;  %v10536_v21 = vpop.f32.mrf.mxu1 }
 0x691   : > { %v18950_v44 = vpack.c.bf16 %v11656_v38, %v11654_v50  ;;  %v18955_v52 = vpack.c.bf16 %v28160_v46, %v11658_v49  ;;  %v11216_v25 = vsel %vm5684_vm1, %v11213_v55, %v11215_v34  ;;  %v11218_v48 = vsel %vm5684_vm1, %v11215_v34, %v11217_v33  ;;  %v28189_v34 = vld [vmem:[#allocation122_spill] sm:$0xff] }
 0x692   : > { %v11366_v42 = vadd.f32 %v11216_v25, %v25566_v32  ;;  %v11367_v3 = vadd.f32 %v11218_v48, %v25572_v13  ;;  %v21624_v23 = vpop.f32.mrf.mxu1  ;;  %v25822_v36 = vld [vmem:[#allocation3 + $0x90] sm:$0xff]   ;;  %v10659_v60 = vadd.f32 %v10536_v21, %v28187_v61  ;;  %v25828_v53 = vld [vmem:[#allocation3 + $0x98] sm:$0xff]   ;;  %v11225_v17 = vrot.slane %v10661_v43, 2 }
 0x693   : > { %19067 = vst [vmem:[#allocation3 + $0xa0] sm:$0xff] %v18950_v44   ;;  %19068 = vst [vmem:[#allocation3 + $0xa8] sm:$0xff] %v18955_v52   ;;  %21689 = vmatprep.mubr.bf16.mxu0 %v25822_v36  ;;  %21773 = vmatprep.mubr.bf16.mxu1 %v25822_v36  ;;  %v9110_v33 = vadd.f32 %v28188_v40, %v25367_v59 }
 0x694   : > { %v11430_v0 = vmax.f32 %v11366_v42, 0.0  ;;  %v11431_v31 = vmax.f32 %v11367_v3, 0.0  ;;  %v10539_v9 = vpop.f32.mrf.mxu1  ;;  %21690 = vmatmul.mubr.bf16.gmra.mxu0 %v25828_v53  ;;  %21774 = vmatmul.mubr.bf16.gmra.mxu1 %v25828_v53  ;;  %v11221_v12 = vrot.slane %v10659_v60, 2 }
 0x695   : > { %v10660_v32 = vadd.f32 %v10539_v9, %v9094_v10 }
 0x696   : > { %v11661_v30 = vrot.slane %v11430_v0, 7  ;;  %v11663_v13 = vrot.slane %v11431_v31, 7  ;;  %v21627_v4 = vpop.f32.mrf.mxu1  ;;  %v28190_v31 = vld [vmem:[#allocation28_spill] sm:$0xff] }
 0x697   : > { %v11223_v22 = vrot.slane %v10660_v32, 2  ;;  %v10665_v55 = vadd.f32 %v21627_v4, %v25362_v27  ;;  %v28192_v4 = vld [vmem:[#allocation119_spill] sm:$0xff] }
 0x698   : > { %v11662_v35 = vsel %vm6261_vm2, %v28160_v46, %v11661_v30  ;;  %v11664_v45 = vsel %vm6261_vm2, %v11661_v30, %v11663_v13  ;;  %v11666_v29 = vsel %vm6261_vm2, %v11663_v13, %v28160_v46  ;;  %v10552_v14 = vpop.f32.mrf.mxu1  ;;  %v28191_v13 = vld [vmem:[#allocation126_spill] sm:$0xff] }
 0x699   : > { %v18960_v15 = vpack.c.bf16 %v11664_v45, %v11662_v35  ;;  %v18965_v19 = vpack.c.bf16 %v28160_v46, %v11666_v29  ;;  %v11224_v8 = vsel %vm5684_vm1, %v11221_v12, %v11223_v22  ;;  %v11226_v20 = vsel %vm5684_vm1, %v11223_v22, %v11225_v17  ;;  %v28193_v12 = vld [vmem:[#allocation120_spill] sm:$0xff]  ;;  %v28194_v35 = vld [vmem:[#allocation125_spill] sm:$0xff] }
 0x69a   : > { %v11370_v47 = vadd.f32 %v11224_v8, %v25579_v2  ;;  %v11371_v26 = vadd.f32 %v11226_v20, %v25585_v6  ;;  %v21628_v28 = vpop.f32.mrf.mxu1  ;;  %v25844_v57 = vld [vmem:[#allocation3 + $0xa0] sm:$0xff]   ;;  %v10663_v50 = vadd.f32 %v10552_v14, %v28189_v34  ;;  %v25850_v38 = vld [vmem:[#allocation3 + $0xa8] sm:$0xff]   ;;  %v11233_v27 = vrot.slane %v10665_v55, 2 }
 0x69b   : > { %19069 = vst [vmem:[#allocation3 + $0xb0] sm:$0xff] %v18960_v15   ;;  %19070 = vst [vmem:[#allocation3 + $0xb8] sm:$0xff] %v18965_v19   ;;  %21693 = vmatprep.mubr.bf16.mxu0 %v25844_v57  ;;  %21777 = vmatprep.mubr.bf16.mxu1 %v25844_v57  ;;  %v9126_v17 = vadd.f32 %v28192_v4, %v28191_v13 }
 0x69c   : > { %v11434_v49 = vmax.f32 %v11370_v47, 0.0  ;;  %v11435_v21 = vmax.f32 %v11371_v26, 0.0  ;;  %v10555_v44 = vpop.f32.mrf.mxu1  ;;  %21694 = vmatmul.mubr.bf16.gmra.mxu0 %v25850_v38  ;;  %21778 = vmatmul.mubr.bf16.gmra.mxu1 %v25850_v38  ;;  %v11229_v25 = vrot.slane %v10663_v50, 2 }
 0x69d   : > { %v10664_v6 = vadd.f32 %v10555_v44, %v9110_v33 }
 0x69e   : > { %v11669_v59 = vrot.slane %v11434_v49, 7  ;;  %v11671_v2 = vrot.slane %v11435_v21, 7  ;;  %v21631_v52 = vpop.f32.mrf.mxu1 }
 0x69f   : > { %v11231_v48 = vrot.slane %v10664_v6, 2  ;;  %v10669_v22 = vadd.f32 %v21631_v52, %v28193_v12 }
 0x6a0   : > { %v11670_v42 = vsel %vm6261_vm2, %v28160_v46, %v11669_v59  ;;  %v11672_v3 = vsel %vm6261_vm2, %v11669_v59, %v11671_v2  ;;  %v11674_v23 = vsel %vm6261_vm2, %v11671_v2, %v28160_v46  ;;  %v10568_v11 = vpop.f32.mrf.mxu1  ;;  %v28195_v2 = vld [vmem:[#allocation42_spill] sm:$0xff] }
 0x6a1   : > { %v18970_v10 = vpack.c.bf16 %v11672_v3, %v11670_v42  ;;  %v18975_v43 = vpack.c.bf16 %v28160_v46, %v11674_v23  ;;  %v11232_v61 = vsel %vm5684_vm1, %v11229_v25, %v11231_v48  ;;  %v11234_v60 = vsel %vm5684_vm1, %v11231_v48, %v11233_v27  ;;  %v28196_v48 = vld [vmem:[#allocation127_spill] sm:$0xff]  ;;  %v28198_v23 = vld [vmem:[#allocation124_spill] sm:$0xff] }
 0x6a2   : > { %v11374_v0 = vadd.f32 %v11232_v61, %v25592_v7  ;;  %v11375_v9 = vadd.f32 %v11234_v60, %v28190_v31  ;;  %v21632_v32 = vpop.f32.mrf.mxu1  ;;  %v25866_v30 = vld [vmem:[#allocation3 + $0xb0] sm:$0xff]   ;;  %v10667_v45 = vadd.f32 %v10568_v11, %v28194_v35  ;;  %v25872_v29 = vld [vmem:[#allocation3 + $0xb8] sm:$0xff]   ;;  %v11241_v26 = vrot.slane %v10669_v22, 2  ;;  %v28197_v42 = vld [vmem:[#allocation123_spill] sm:$0xff] }
 0x6a3   : > { %19071 = vst [vmem:[#allocation3 + $0xc0] sm:$0xff] %v18970_v10   ;;  %19072 = vst [vmem:[#allocation3 + $0xc8] sm:$0xff] %v18975_v43   ;;  %21697 = vmatprep.mubr.bf16.mxu0 %v25866_v30  ;;  %21781 = vmatprep.mubr.bf16.mxu1 %v25866_v30  ;;  %v9142_v3 = vadd.f32 %v28197_v42, %v28196_v48  ;;  %v28199_v10 = vld [vmem:[#allocation89_spill] sm:$0xff] }
 0x6a4   : > { %v11438_v14 = vmax.f32 %v11374_v0, 0.0  ;;  %v11439_v15 = vmax.f32 %v11375_v9, 0.0  ;;  %v10571_v19 = vpop.f32.mrf.mxu1  ;;  %21698 = vmatmul.mubr.bf16.gmra.mxu0 %v25872_v29  ;;  %21782 = vmatmul.mubr.bf16.gmra.mxu1 %v25872_v29  ;;  %v11237_v28 = vrot.slane %v10667_v45, 2 }
 0x6a5   : > { %v10668_v7 = vadd.f32 %v10571_v19, %v9126_v17 }
 0x6a6   : > { %v11677_v8 = vrot.slane %v11438_v14, 7  ;;  %v11679_v20 = vrot.slane %v11439_v15, 7  ;;  %v21635_v47 = vpop.f32.mrf.mxu1 }
 0x6a7   : > { %v11239_v40 = vrot.slane %v10668_v7, 2  ;;  %v10673_v11 = vadd.f32 %v21635_v47, %v28198_v23 }
 0x6a8   : > { %v11678_v33 = vsel %vm6261_vm2, %v28160_v46, %v11677_v8  ;;  %v11680_v55 = vsel %vm6261_vm2, %v11677_v8, %v11679_v20  ;;  %v11682_v34 = vsel %vm6261_vm2, %v11679_v20, %v28160_v46  ;;  %v10584_v50 = vpop.f32.mrf.mxu1 }
 0x6a9   : > { %v18980_v49 = vpack.c.bf16 %v11680_v55, %v11678_v33  ;;  %v18985_v21 = vpack.c.bf16 %v28160_v46, %v11682_v34  ;;  %v11240_v44 = vsel %vm5684_vm1, %v11237_v28, %v11239_v40  ;;  %v11242_v6 = vsel %vm5684_vm1, %v11239_v40, %v11241_v26  ;;  %v28200_v40 = vld [vmem:[#allocation131_spill] sm:$0xff]  ;;  %v28201_v33 = vld [vmem:[#allocation128_spill] sm:$0xff]  ;;  %v28202_v34 = vld [vmem:[#allocation129_spill] sm:$0xff] }
 0x6aa   : > { %v11378_v59 = vadd.f32 %v11240_v44, %v25605_v5  ;;  %v11379_v52 = vadd.f32 %v11242_v6, %v28195_v2  ;;  %v21636_v27 = vpop.f32.mrf.mxu1  ;;  %v25888_v25 = vld [vmem:[#allocation3 + $0xc0] sm:$0xff]   ;;  %v10671_v43 = vadd.f32 %v10584_v50, %v28199_v10  ;;  %v25894_v61 = vld [vmem:[#allocation3 + $0xc8] sm:$0xff]   ;;  %v11249_v4 = vrot.slane %v10673_v11, 2 }
 0x6ab   : > { %19073 = vst [vmem:[#allocation3 + $0xd0] sm:$0xff] %v18980_v49   ;;  %19074 = vst [vmem:[#allocation3 + $0xd8] sm:$0xff] %v18985_v21   ;;  %21701 = vmatprep.mubr.bf16.mxu0 %v25888_v25  ;;  %21785 = vmatprep.mubr.bf16.mxu1 %v25888_v25  ;;  %v9158_v55 = vadd.f32 %v28201_v33, %v28200_v40  ;;  %v28203_v49 = vld [vmem:[#allocation130_spill] sm:$0xff]  ;;  %v22882_v40 = vld [vmem:[#allocation10 + $0xb0] sm:$0xff]  }
 0x6ac   : > { %v11442_v60 = vmax.f32 %v11378_v59, 0.0  ;;  %v11443_v0 = vmax.f32 %v11379_v52, 0.0  ;;  %v10587_v31 = vpop.f32.mrf.mxu1  ;;  %21702 = vmatmul.mubr.bf16.gmra.mxu0 %v25894_v61  ;;  %21786 = vmatmul.mubr.bf16.gmra.mxu1 %v25894_v61  ;;  %v11245_v17 = vrot.slane %v10671_v43, 2  ;;  %v25963_v33 = vld [vmem:[#allocation3 + $0x8] sm:$0xff]  }
 0x6ad   : > { %v10672_v5 = vadd.f32 %v10587_v31, %v9142_v3  ;;  %v28204_v31 = vld [vmem:[#allocation56_spill] sm:$0xff] }
 0x6ae   : > { %v11685_v9 = vrot.slane %v11442_v60, 7  ;;  %v11687_v32 = vrot.slane %v11443_v0, 7  ;;  %v21639_v13 = vpop.f32.mrf.mxu1 }
 0x6af   : > { %v11247_v12 = vrot.slane %v10672_v5, 2  ;;  %v10677_v50 = vadd.f32 %v21639_v13, %v28202_v34  ;;  %v23054_v34 = vld [vmem:[#allocation10 + $0xb8] sm:$0xff]  }
 0x6b0   : > { %v11686_v22 = vsel %vm6261_vm2, %v28160_v46, %v11685_v9  ;;  %v11688_v35 = vsel %vm6261_vm2, %v11685_v9, %v11687_v32  ;;  %v11690_v45 = vsel %vm6261_vm2, %v11687_v32, %v28160_v46  ;;  %v10600_v14 = vpop.f32.mrf.mxu1  ;;  %v28205_v9 = vld [vmem:[#allocation86_spill] sm:$0xff] }
 0x6b1   : > { %v18990_v15 = vpack.c.bf16 %v11688_v35, %v11686_v22  ;;  %v18995_v19 = vpack.c.bf16 %v28160_v46, %v11690_v45  ;;  %v11248_v7 = vsel %vm5684_vm1, %v11245_v17, %v11247_v12  ;;  %v11250_v8 = vsel %vm5684_vm1, %v11247_v12, %v11249_v4 }
 0x6b2   : > { %v11382_v20 = vadd.f32 %v11248_v7, %v25618_v39  ;;  %v11383_v47 = vadd.f32 %v11250_v8, %v25623_v54  ;;  %v21640_v26 = vpop.f32.mrf.mxu1  ;;  %v25910_v28 = vld [vmem:[#allocation3 + $0xd0] sm:$0xff]   ;;  %v10675_v21 = vadd.f32 %v10600_v14, %v28203_v49  ;;  %v25916_v44 = vld [vmem:[#allocation3 + $0xd8] sm:$0xff]   ;;  %v11257_v27 = vrot.slane %v10677_v50, 2  ;;  %v22884_v50 = vld [vmem:[#allocation10 + $0xa8] sm:$0xff]  }
 0x6b3   : > { %19075 = vst [vmem:[#allocation3 + $0xe0] sm:$0xff] %v18990_v15   ;;  %19076 = vst [vmem:[#allocation3 + $0xe8] sm:$0xff] %v18995_v19   ;;  %21705 = vmatprep.mubr.bf16.mxu0 %v25910_v28  ;;  %21789 = vmatprep.mubr.bf16.mxu1 %v25910_v28  ;;  %v22881_v49 = vld [vmem:[#allocation10 + $0x170] sm:$0xff]  }
 0x6b4   : > { %v11446_v6 = vmax.f32 %v11382_v20, 0.0  ;;  %v11447_v59 = vmax.f32 %v11383_v47, 0.0  ;;  %v10603_v2 = vpop.f32.mrf.mxu1  ;;  %21706 = vmatmul.mubr.bf16.gmra.mxu0 %v25916_v44  ;;  %21790 = vmatmul.mubr.bf16.gmra.mxu1 %v25916_v44  ;;  %v11253_v48 = vrot.slane %v10675_v21, 2  ;;  %v25954_v47 = vld [vmem:[#allocation3] sm:$0xff]  }
 0x6b5   : > { %v10676_v39 = vadd.f32 %v10603_v2, %v9158_v55  ;;  %v25966_v55 = vld [vmem:[#allocation3 + $0x10] sm:$0xff]   ;;  %v22886_v21 = vld [vmem:[#allocation10 + $0xa0] sm:$0xff]   ;;  %v22883_v2 = vld [vmem:[#allocation10 + $0x168] sm:$0xff]  }
 0x6b6   : > { %v11693_v54 = vrot.slane %v11446_v6, 7  ;;  %v11695_v52 = vrot.slane %v11447_v59, 7  ;;  %v25970_v6 = vld [vmem:[#allocation3 + $0x18] sm:$0xff]   ;;  %v25974_v59 = vld [vmem:[#allocation3 + $0x20] sm:$0xff]  }
 0x6b7   : > { %v11255_v42 = vrot.slane %v10676_v39, 2  ;;  %v22888_v39 = vld [vmem:[#allocation10 + $0x98] sm:$0xff]  }
 0x6b8   : > { %v11694_v3 = vsel %vm6261_vm2, %v28160_v46, %v11693_v54  ;;  %v11696_v23 = vsel %vm6261_vm2, %v11693_v54, %v11695_v52  ;;  %v11698_v11 = vsel %vm6261_vm2, %v11695_v52, %v28160_v46  ;;  %v22885_v54 = vld [vmem:[#allocation10 + $0x160] sm:$0xff]   ;;  %v22890_v52 = vld [vmem:[#allocation10 + $0x90] sm:$0xff]  }
 0x6b9   : > { %v19000_v10 = vpack.c.bf16 %v11696_v23, %v11694_v3  ;;  %v19005_v43 = vpack.c.bf16 %v28160_v46, %v11698_v11  ;;  %v11256_v60 = vsel %vm5684_vm1, %v11253_v48, %v11255_v42  ;;  %v11258_v0 = vsel %vm5684_vm1, %v11255_v42, %v11257_v27  ;;  %v25979_v27 = vld [vmem:[#allocation3 + $0x28] sm:$0xff]   ;;  %v25983_v48 = vld [vmem:[#allocation3 + $0x30] sm:$0xff]   ;;  %v22894_v23 = vld [vmem:[#allocation10 + $0x80] sm:$0xff]  }
 0x6ba   : > { %v11386_v5 = vadd.f32 %v11256_v60, %v28204_v31  ;;  %v11387_v32 = vadd.f32 %v11258_v0, %v28205_v9  ;;  %v25932_v13 = vld [vmem:[#allocation3 + $0xe0] sm:$0xff]   ;;  %v25934_v4 = vld [vmem:[#allocation3 + $0xe8] sm:$0xff]   ;;  %v22889_v3 = vld [vmem:[#allocation10 + $0x150] sm:$0xff]  }
 0x6bb   : > { %19077 = vst [vmem:[#allocation3 + $0xf0] sm:$0xff] %v19000_v10   ;;  %19078 = vst [vmem:[#allocation3 + $0xf8] sm:$0xff] %v19005_v43   ;;  %21709 = vmatprep.mubr.bf16.mxu0 %v25932_v13  ;;  %21793 = vmatprep.mubr.bf16.mxu1 %v25932_v13  ;;  %v22892_v42 = vld [vmem:[#allocation10 + $0x88] sm:$0xff]   ;;  %v25987_v11 = vld [vmem:[#allocation3 + $0x38] sm:$0xff]  }
 0x6bc   : > { %v11450_v17 = vmax.f32 %v11386_v5, 0.0  ;;  %v11451_v12 = vmax.f32 %v11387_v32, 0.0  ;;  %21710 = vmatmul.mubr.bf16.gmra.mxu0 %v25934_v4  ;;  %21794 = vmatmul.mubr.bf16.gmra.mxu1 %v25934_v4  ;;  %v22891_v10 = vld [vmem:[#allocation10 + $0x148] sm:$0xff]   ;;  %v25993_v43 = vld [vmem:[#allocation10 + $0x1f8] sm:$0xff]   ;;  %v22893_v60 = vld [vmem:[#allocation10 + $0x140] sm:$0xff]  }
 0x6be   : > { %v11701_v22 = vrot.slane %v11450_v17, 7  ;;  %v11703_v35 = vrot.slane %v11451_v12, 7 }
 0x6c0   : > { %v11702_v45 = vsel %vm6261_vm2, %v28160_v46, %v11701_v22  ;;  %v11704_v14 = vsel %vm6261_vm2, %v11701_v22, %v11703_v35  ;;  %v11706_v15 = vsel %vm6261_vm2, %v11703_v35, %v28160_v46 }
 0x6c1   : > { %v19010_v19 = vpack.c.bf16 %v11704_v14, %v11702_v45  ;;  %v19015_v7 = vpack.c.bf16 %v28160_v46, %v11706_v15 }
 0x6c2   : > { %v25946_v8 = vld [vmem:[#allocation3 + $0xf0] sm:$0xff]   ;;  %v25948_v20 = vld [vmem:[#allocation3 + $0xf8] sm:$0xff]  }
 0x6c3   : > { %19079 = vst [vmem:[#allocation3 + $0x100] sm:$0xff] %v19010_v19   ;;  %19080 = vst [vmem:[#allocation3 + $0x108] sm:$0xff] %v19015_v7   ;;  %21713 = vmatprep.mubr.bf16.mxu0 %v25946_v8  ;;  %21797 = vmatprep.mubr.bf16.mxu1 %v25946_v8 }
 0x6c4   : > { %21714 = vmatmul.mubr.bf16.gmra.mxu0 %v25948_v20  ;;  %21798 = vmatmul.mubr.bf16.gmra.mxu1 %v25948_v20 }
 0x6c5   : > { %21897 = vmatprep.mubr.bf16.mxu1 %v25954_v47 }
 0x6ca   : > { %v25957_v26 = vld [vmem:[#allocation3 + $0x100] sm:$0xff]   ;;  %v25959_v46 = vld [vmem:[#allocation3 + $0x108] sm:$0xff]  }
 0x6cb   : > { %21717 = vmatprep.mubr.bf16.mxu0 %v25957_v26 }
 0x6cc   : > { %21718 = vmatmul.mubr.bf16.gmra.mxu0 %v25959_v46  ;;  %21898 = vmatmul.mubr.bf16.vlgmr.msra.gmra.mxu1 %v25963_v33 }
 0x6cd   : > { %21817 = vmatprep.mubr.bf16.mxu0 %v25966_v55  ;;  %21901 = vmatprep.mubr.bf16.mxu1 %v25966_v55 }
 0x6ce   : > { %22042 = vmatpush3.bf16.msra.mxu1 %v23054_v34 }
 0x6cf   : > { %22043 = vmatprep.subr.bf16.mxu1 %v22882_v40 }
 0x6d2   : > { %22044 = vmatpush3.bf16.msra.mxu1 %v22882_v40 }
 0x6d3   : > { %22045 = vmatprep.subr.bf16.mxu1 %v22884_v50 }
 0x6d4   : > { %21818 = vmatmul.mubr.bf16.vlgmr.msra.gmra.mxu0 %v25970_v6  ;;  %21902 = vmatmul.mubr.bf16.gmra.mxu1 %v25970_v6 }
 0x6d5   : > { %21821 = vmatprep.mubr.bf16.mxu0 %v25974_v59  ;;  %21905 = vmatprep.mubr.bf16.mxu1 %v25974_v59 }
 0x6d6   : > { %21962 = vmatpush3.bf16.msra.mxu0 %v25721_v62  ;;  %22046 = vmatpush3.bf16.msra.mxu1 %v22884_v50  ;;  %v22887_v62 = vld [vmem:[#allocation10 + $0x158] sm:$0xff]  }
 0x6d7   : > { %21963 = vmatprep.subr.bf16.mxu0 %v22881_v49  ;;  %22047 = vmatprep.subr.bf16.mxu1 %v22886_v21 }
 0x6da   : > { %21964 = vmatpush3.bf16.msra.mxu0 %v22881_v49  ;;  %22048 = vmatpush3.bf16.msra.mxu1 %v22886_v21 }
 0x6db   : > { %21965 = vmatprep.subr.bf16.mxu0 %v22883_v2  ;;  %22049 = vmatprep.subr.bf16.mxu1 %v22888_v39 }
 0x6dc   : > { %21822 = vmatmul.mubr.bf16.gmra.mxu0 %v25979_v27  ;;  %21906 = vmatmul.mubr.bf16.gmra.mxu1 %v25979_v27 }
 0x6dd   : > { %21825 = vmatprep.mubr.bf16.mxu0 %v25983_v48  ;;  %21909 = vmatprep.mubr.bf16.mxu1 %v25983_v48 }
 0x6de   : > { %21966 = vmatpush3.bf16.msra.mxu0 %v22883_v2  ;;  %22050 = vmatpush3.bf16.msra.mxu1 %v22888_v39 }
 0x6df   : > { %21967 = vmatprep.subr.bf16.mxu0 %v22885_v54  ;;  %22051 = vmatprep.subr.bf16.mxu1 %v22890_v52 }
 0x6e2   : > { %21968 = vmatpush3.bf16.msra.mxu0 %v22885_v54  ;;  %22052 = vmatpush3.bf16.msra.mxu1 %v22890_v52 }
 0x6e3   : > { %21969 = vmatprep.subr.bf16.mxu0 %v22887_v62  ;;  %22053 = vmatprep.subr.bf16.mxu1 %v22892_v42 }
 0x6e4   : > { %21826 = vmatmul.mubr.bf16.gmra.mxu0 %v25987_v11  ;;  %21910 = vmatmul.mubr.bf16.gmra.mxu1 %v25987_v11 }
 0x6e5   : > { %21829 = vmatprep.mubr.bf16.mxu0 %v25709_v56  ;;  %21913 = vmatprep.mubr.bf16.mxu1 %v25709_v56  ;;  %v26000_v56 = vld [vmem:[#allocation10 + $0x1b8] sm:$0xff]  }
 0x6e6   : > { %21970 = vmatpush3.bf16.msra.mxu0 %v22887_v62  ;;  %22054 = vmatpush3.bf16.msra.mxu1 %v22892_v42 }
 0x6e7   : > { %21971 = vmatprep.subr.bf16.mxu0 %v22889_v3  ;;  %22055 = vmatprep.subr.bf16.mxu1 %v22894_v23 }
 0x6ea   : > { %21972 = vmatpush3.bf16.msra.mxu0 %v22889_v3  ;;  %22056 = vmatpush3.bf16.msra.mxu1 %v22894_v23 }
 0x6eb   : > { %21973 = vmatprep.subr.bf16.mxu0 %v22891_v10  ;;  %22201 = vmatprep.subr.bf16.mxu1 %v25993_v43 }
 0x6ec   : > { %21830 = vmatmul.mubr.bf16.gmra.mxu0 %v25715_v24  ;;  %21914 = vmatmul.mubr.bf16.gmra.mxu1 %v25715_v24  ;;  %v26013_v24 = vpop.f32.mrf.mxu1 }
 0x6ed   : > { %21833 = vmatprep.mubr.bf16.mxu0 %v25733_v1  ;;  %21917 = vmatprep.mubr.bf16.mxu1 %v25733_v1 }
 0x6ee   : > { %21974 = vmatpush3.bf16.msra.mxu0 %v22891_v10  ;;  %v26017_v1 = vpop.f32.mrf.mxu1 }
 0x6ef   : > { %21975 = vmatprep.subr.bf16.mxu0 %v22893_v60 }
 0x6f2   : > { %21976 = vmatpush3.bf16.msra.mxu0 %v22893_v60 }
 0x6f3   : > { %22121 = vmatprep.subr.bf16.mxu0 %v26000_v56 }
 0x6f4   : > { %21834 = vmatmul.mubr.bf16.gmra.mxu0 %v25739_v37  ;;  %21918 = vmatmul.mubr.bf16.gmra.mxu1 %v25739_v37  ;;  %v26021_v37 = vpop.f32.mrf.mxu1 }
 0x6f5   : > { %21837 = vmatprep.mubr.bf16.mxu0 %v25756_v58  ;;  %21921 = vmatprep.mubr.bf16.mxu1 %v25756_v58 }
 0x6f6   : > { %v12855_v58 = vpop.f32.mrf.mxu1 }
 0x6fc   : > { %21838 = vmatmul.mubr.bf16.gmra.mxu0 %v25762_v41  ;;  %21922 = vmatmul.mubr.bf16.gmra.mxu1 %v25762_v41 }
 0x6fd   : > { %21841 = vmatprep.mubr.bf16.mxu0 %v25778_v63  ;;  %21925 = vmatprep.mubr.bf16.mxu1 %v25778_v63 }
 0x704   : > { %21842 = vmatmul.mubr.bf16.gmra.mxu0 %v25784_v51  ;;  %21926 = vmatmul.mubr.bf16.gmra.mxu1 %v25784_v51 }
 0x705   : > { %21845 = vmatprep.mubr.bf16.mxu0 %v25800_v16  ;;  %21929 = vmatprep.mubr.bf16.mxu1 %v25800_v16 }
 0x70c   : > { %21846 = vmatmul.mubr.bf16.gmra.mxu0 %v25806_v18  ;;  %21930 = vmatmul.mubr.bf16.gmra.mxu1 %v25806_v18 }
 0x70d   : > { %21849 = vmatprep.mubr.bf16.mxu0 %v25822_v36  ;;  %21933 = vmatprep.mubr.bf16.mxu1 %v25822_v36 }
 0x714   : > { %v26025_v41 = vpop.f32.mrf.mxu0  ;;  %v21743_v63 = vpop.f32.mrf.mxu1  ;;  %21850 = vmatmul.mubr.bf16.gmra.mxu0 %v25828_v53  ;;  %21934 = vmatmul.mubr.bf16.gmra.mxu1 %v25828_v53 }
 0x715   : > { %21853 = vmatprep.mubr.bf16.mxu0 %v25844_v57  ;;  %21937 = vmatprep.mubr.bf16.mxu1 %v25844_v57 }
 0x716   : > { %v26031_v51 = vpop.f32.mrf.mxu0  ;;  %v12868_v16 = vpop.f32.mrf.mxu1 }
 0x718   : > { %v26033_v18 = vpop.f32.mrf.mxu0  ;;  %v21744_v0 = vpop.f32.mrf.mxu1 }
 0x71a   : > { %v12506_v31 = vpop.f32.mrf.mxu0  ;;  %v12871_v36 = vpop.f32.mrf.mxu1 }
 0x71b   : > { %v26035_v5 = vadd.f32 %v12855_v58, %v12506_v31 }
 0x71c   : > { %v21663_v9 = vpop.f32.mrf.mxu0  ;;  %v21747_v32 = vpop.f32.mrf.mxu1  ;;  %21854 = vmatmul.mubr.bf16.gmra.mxu0 %v25850_v38  ;;  %21938 = vmatmul.mubr.bf16.gmra.mxu1 %v25850_v38 }
 0x71d   : > { %v26039_v53 = vadd.f32 %v21743_v63, %v21663_v9  ;;  %21857 = vmatprep.mubr.bf16.mxu0 %v25866_v30  ;;  %21941 = vmatprep.mubr.bf16.mxu1 %v25866_v30 }
 0x71e   : > { %v12519_v57 = vpop.f32.mrf.mxu0  ;;  %v12884_v17 = vpop.f32.mrf.mxu1 }
 0x71f   : > { %v26043_v12 = vadd.f32 %v12868_v16, %v12519_v57 }
 0x720   : > { %v21664_v22 = vpop.f32.mrf.mxu0  ;;  %v21748_v35 = vpop.f32.mrf.mxu1 }
 0x721   : > { %v26045_v45 = vadd.f32 %v21744_v0, %v21664_v22 }
 0x722   : > { %v12522_v14 = vpop.f32.mrf.mxu0  ;;  %v12887_v15 = vpop.f32.mrf.mxu1 }
 0x723   : > { %v26047_v19 = vadd.f32 %v12871_v36, %v12522_v14 }
 0x724   : > { %v21667_v7 = vpop.f32.mrf.mxu0  ;;  %v21751_v38 = vpop.f32.mrf.mxu1  ;;  %21858 = vmatmul.mubr.bf16.gmra.mxu0 %v25872_v29  ;;  %21942 = vmatmul.mubr.bf16.gmra.mxu1 %v25872_v29 }
 0x725   : > { %v26051_v40 = vadd.f32 %v21747_v32, %v21667_v7  ;;  %21861 = vmatprep.mubr.bf16.mxu0 %v25888_v25  ;;  %21945 = vmatprep.mubr.bf16.mxu1 %v25888_v25 }
 0x726   : > { %v12535_v30 = vpop.f32.mrf.mxu0  ;;  %v12900_v34 = vpop.f32.mrf.mxu1 }
 0x727   : > { %28206 = vst [vmem:[#allocation57_spill] sm:$0xff] %v26051_v40  ;;  %v26055_v50 = vadd.f32 %v12884_v17, %v12535_v30  ;;  %v26460_v40 = vld [vmem:[#allocation3 + $0xe8] sm:$0xff]  }
 0x728   : > { %v21668_v49 = vpop.f32.mrf.mxu0  ;;  %v21752_v21 = vpop.f32.mrf.mxu1  ;;  %28330 = vst [vmem:[#allocation142_spill] sm:$0xff] %v26460_v40 }
 0x729   : > { %28207 = vst [vmem:[#allocation92_spill] sm:$0xff] %v26055_v50  ;;  %v26057_v2 = vadd.f32 %v21748_v35, %v21668_v49  ;;  %v26444_v50 = vld [vmem:[#allocation3 + $0xd8] sm:$0xff]  }
 0x72a   : > { %v12538_v39 = vpop.f32.mrf.mxu0  ;;  %v12903_v54 = vpop.f32.mrf.mxu1  ;;  %28324 = vst [vmem:[#allocation136_spill] sm:$0xff] %v26444_v50 }
 0x72b   : > { %28208 = vst [vmem:[#allocation19_spill] sm:$0xff] %v26057_v2  ;;  %v26059_v52 = vadd.f32 %v12887_v15, %v12538_v39  ;;  %v26428_v2 = vld [vmem:[#allocation3 + $0xc8] sm:$0xff]  }
 0x72c   : > { %v21671_v62 = vpop.f32.mrf.mxu0  ;;  %v21755_v29 = vpop.f32.mrf.mxu1  ;;  %21862 = vmatmul.mubr.bf16.gmra.mxu0 %v25894_v61  ;;  %21946 = vmatmul.mubr.bf16.gmra.mxu1 %v25894_v61  ;;  %28318 = vst [vmem:[#allocation56_spill] sm:$0xff] %v26428_v2 }
 0x72d   : > { %28209 = vst [vmem:[#allocation29_spill] sm:$0xff] %v26059_v52  ;;  %v26063_v42 = vadd.f32 %v21751_v38, %v21671_v62  ;;  %21865 = vmatprep.mubr.bf16.mxu0 %v25910_v28  ;;  %21949 = vmatprep.mubr.bf16.mxu1 %v25910_v28  ;;  %v26412_v52 = vld [vmem:[#allocation3 + $0xb8] sm:$0xff]  }
 0x72e   : > { %v12551_v25 = vpop.f32.mrf.mxu0  ;;  %v12916_v3 = vpop.f32.mrf.mxu1 }
 0x72f   : > { %28210 = vst [vmem:[#allocation43_spill] sm:$0xff] %v26063_v42  ;;  %v26067_v23 = vadd.f32 %v12900_v34, %v12551_v25  ;;  %v26396_v42 = vld [vmem:[#allocation3 + $0xa8] sm:$0xff]  }
 0x730   : > { %v21672_v10 = vpop.f32.mrf.mxu0  ;;  %v21756_v60 = vpop.f32.mrf.mxu1 }
 0x731   : > { %28211 = vst [vmem:[#allocation58_spill] sm:$0xff] %v26067_v23  ;;  %v26069_v58 = vadd.f32 %v21752_v21, %v21672_v10  ;;  %v26380_v23 = vld [vmem:[#allocation3 + $0x98] sm:$0xff]  }
 0x732   : > { %v12554_v63 = vpop.f32.mrf.mxu0  ;;  %v12919_v16 = vpop.f32.mrf.mxu1 }
 0x733   : > { %28212 = vst [vmem:[#allocation97_spill] sm:$0xff] %v26069_v58  ;;  %v26071_v0 = vadd.f32 %v12903_v54, %v12554_v63  ;;  %v26336_v58 = vld [vmem:[#allocation3 + $0x70] sm:$0xff]  }
 0x734   : > { %v21675_v31 = vpop.f32.mrf.mxu0  ;;  %v21759_v61 = vpop.f32.mrf.mxu1  ;;  %21866 = vmatmul.mubr.bf16.gmra.mxu0 %v25916_v44  ;;  %21950 = vmatmul.mubr.bf16.gmra.mxu1 %v25916_v44 }
 0x735   : > { %28213 = vst [vmem:[#allocation30_spill] sm:$0xff] %v26071_v0  ;;  %v26075_v36 = vadd.f32 %v21755_v29, %v21675_v31  ;;  %21869 = vmatprep.mubr.bf16.mxu0 %v25932_v13  ;;  %21953 = vmatprep.mubr.bf16.mxu1 %v25932_v13 }
 0x736   : > { %v12567_v28 = vpop.f32.mrf.mxu0  ;;  %v12932_v9 = vpop.f32.mrf.mxu1 }
 0x737   : > { %28214 = vst [vmem:[#allocation94_spill] sm:$0xff] %v26075_v36  ;;  %v26079_v32 = vadd.f32 %v12916_v3, %v12567_v28  ;;  %v26304_v36 = vld [vmem:[#allocation3 + $0x50] sm:$0xff]  }
 0x738   : > { %v21676_v57 = vpop.f32.mrf.mxu0  ;;  %v21760_v17 = vpop.f32.mrf.mxu1 }
 0x739   : > { %28215 = vst [vmem:[#allocation20_spill] sm:$0xff] %v26079_v32  ;;  %v26081_v22 = vadd.f32 %v21756_v60, %v21676_v57  ;;  %v22921_v32 = vld [vmem:[#allocation10 + $0x230] sm:$0xff]  }
 0x73a   : > { %v12570_v35 = vpop.f32.mrf.mxu0  ;;  %v12935_v14 = vpop.f32.mrf.mxu1 }
 0x73b   : > { %28216 = vst [vmem:[#allocation59_spill] sm:$0xff] %v26081_v22  ;;  %v26083_v15 = vadd.f32 %v12919_v16, %v12570_v35  ;;  %v22898_v35 = vld [vmem:[#allocation10 + $0x1f0] sm:$0xff]   ;;  %v26255_v22 = vld [vmem:[#allocation3 + $0x20] sm:$0xff]  }
 0x73c   : > { %v21679_v7 = vpop.f32.mrf.mxu0  ;;  %v21763_v44 = vpop.f32.mrf.mxu1  ;;  %21870 = vmatmul.mubr.bf16.gmra.mxu0 %v25934_v4  ;;  %21954 = vmatmul.mubr.bf16.gmra.mxu1 %v25934_v4 }
 0x73d   : > { %28217 = vst [vmem:[#allocation44_spill] sm:$0xff] %v26083_v15  ;;  %v26087_v38 = vadd.f32 %v21759_v61, %v21679_v7  ;;  %21873 = vmatprep.mubr.bf16.mxu0 %v25946_v8  ;;  %21957 = vmatprep.mubr.bf16.mxu1 %v25946_v8 }
 0x73e   : > { %v12583_v30 = vpop.f32.mrf.mxu0  ;;  %v12948_v34 = vpop.f32.mrf.mxu1 }
 0x73f   : > { %28218 = vst [vmem:[#allocation60_spill] sm:$0xff] %v26087_v38  ;;  %v26091_v49 = vadd.f32 %v12932_v9, %v12583_v30 }
 0x740   : > { %v21680_v21 = vpop.f32.mrf.mxu0  ;;  %v21764_v39 = vpop.f32.mrf.mxu1 }
 0x741   : > { %28219 = vst [vmem:[#allocation103_spill] sm:$0xff] %v26091_v49  ;;  %v26093_v54 = vadd.f32 %v21760_v17, %v21680_v21  ;;  %v22900_v21 = vld [vmem:[#allocation10 + $0x1e8] sm:$0xff]  }
 0x742   : > { %v12586_v62 = vpop.f32.mrf.mxu0  ;;  %v12951_v29 = vpop.f32.mrf.mxu1 }
 0x743   : > { %28220 = vst [vmem:[#allocation31_spill] sm:$0xff] %v26093_v54  ;;  %v26095_v25 = vadd.f32 %v12935_v14, %v12586_v62 }
 0x744   : > { %v21683_v3 = vpop.f32.mrf.mxu0  ;;  %v21767_v4 = vpop.f32.mrf.mxu1  ;;  %21874 = vmatmul.mubr.bf16.gmra.mxu0 %v25948_v20  ;;  %21958 = vmatmul.mubr.bf16.gmra.mxu1 %v25948_v20 }
 0x745   : > { %28221 = vst [vmem:[#allocation95_spill] sm:$0xff] %v26095_v25  ;;  %v26099_v10 = vadd.f32 %v21763_v44, %v21683_v3  ;;  %21877 = vmatprep.mubr.bf16.mxu0 %v25957_v26  ;;  %22057 = vmatprep.mubr.bf16.mxu1 %v25954_v47 }
 0x746   : > { %v12599_v60 = vpop.f32.mrf.mxu0  ;;  %v12964_v63 = vpop.f32.mrf.mxu1 }
 0x747   : > { %28222 = vst [vmem:[#allocation61_spill] sm:$0xff] %v26099_v10  ;;  %v26103_v16 = vadd.f32 %v12948_v34, %v12599_v60 }
 0x748   : > { %v21684_v31 = vpop.f32.mrf.mxu0  ;;  %v21768_v61 = vpop.f32.mrf.mxu1 }
 0x749   : > { %28223 = vst [vmem:[#allocation45_spill] sm:$0xff] %v26103_v16  ;;  %v26105_v28 = vadd.f32 %v21764_v39, %v21684_v31 }
 0x74a   : > { %v12602_v9 = vpop.f32.mrf.mxu0  ;;  %v12967_v57 = vpop.f32.mrf.mxu1 }
 0x74b   : > { %28224 = vst [vmem:[#allocation32_spill] sm:$0xff] %v26105_v28  ;;  %v26107_v17 = vadd.f32 %v12951_v29, %v12602_v9 }
 0x74c   : > { %v21687_v14 = vpop.f32.mrf.mxu0  ;;  %v21771_v7 = vpop.f32.mrf.mxu1  ;;  %21878 = vmatmul.mubr.bf16.gmra.mxu0 %v25959_v46  ;;  %22058 = vmatmul.mubr.bf16.vlgmr.msra.gmra.mxu1 %v25963_v33 }
 0x74d   : > { %28225 = vst [vmem:[#allocation106_spill] sm:$0xff] %v26107_v17  ;;  %v26111_v47 = vadd.f32 %v21767_v4, %v21687_v14  ;;  %21977 = vmatprep.mubr.bf16.mxu0 %v25966_v55  ;;  %22061 = vmatprep.mubr.bf16.mxu1 %v25966_v55  ;;  %v22897_v4 = vld [vmem:[#allocation10 + $0x1b0] sm:$0xff]   ;;  %v22902_v55 = vld [vmem:[#allocation10 + $0x1e0] sm:$0xff]  }
 0x74e   : > { %v12615_v44 = vpop.f32.mrf.mxu0  ;;  %v12980_v30 = vpop.f32.mrf.mxu1  ;;  %22202 = vmatpush3.bf16.msra.mxu1 %v25993_v43 }
 0x74f   : > { %28226 = vst [vmem:[#allocation62_spill] sm:$0xff] %v26111_v47  ;;  %v26116_v34 = vadd.f32 %v12964_v63, %v12615_v44  ;;  %22203 = vmatprep.subr.bf16.mxu1 %v22898_v35 }
 0x750   : > { %v21688_v39 = vpop.f32.mrf.mxu0  ;;  %v21772_v62 = vpop.f32.mrf.mxu1 }
 0x751   : > { %28227 = vst [vmem:[#allocation21_spill] sm:$0xff] %v26116_v34  ;;  %v26118_v29 = vadd.f32 %v21768_v61, %v21688_v39 }
 0x752   : > { %v12618_v46 = vpop.f32.mrf.mxu0  ;;  %v12983_v33 = vpop.f32.mrf.mxu1  ;;  %22204 = vmatpush3.bf16.msra.mxu1 %v22898_v35  ;;  %v22904_v35 = vld [vmem:[#allocation10 + $0x1d8] sm:$0xff]  }
 0x753   : > { %28228 = vst [vmem:[#allocation63_spill] sm:$0xff] %v26118_v29  ;;  %v26120_v3 = vadd.f32 %v12967_v57, %v12618_v46  ;;  %22205 = vmatprep.subr.bf16.mxu1 %v22900_v21  ;;  %v22899_v57 = vld [vmem:[#allocation10 + $0x1a8] sm:$0xff]  }
 0x754   : > { %v21691_v60 = vpop.f32.mrf.mxu0  ;;  %v21775_v31 = vpop.f32.mrf.mxu1  ;;  %21978 = vmatmul.mubr.bf16.vlgmr.msra.gmra.mxu0 %v25970_v6  ;;  %22062 = vmatmul.mubr.bf16.gmra.mxu1 %v25970_v6 }
 0x755   : > { %28229 = vst [vmem:[#allocation46_spill] sm:$0xff] %v26120_v3  ;;  %v26124_v43 = vadd.f32 %v21771_v7, %v21691_v60  ;;  %21981 = vmatprep.mubr.bf16.mxu0 %v25974_v59  ;;  %22065 = vmatprep.mubr.bf16.mxu1 %v25974_v59 }
 0x756   : > { %22122 = vmatpush3.bf16.msra.mxu0 %v26000_v56  ;;  %v12631_v63 = vpop.f32.mrf.mxu0  ;;  %v12996_v61 = vpop.f32.mrf.mxu1  ;;  %22206 = vmatpush3.bf16.msra.mxu1 %v22900_v21  ;;  %v22901_v56 = vld [vmem:[#allocation10 + $0x1a0] sm:$0xff]   ;;  %v22906_v21 = vld [vmem:[#allocation10 + $0x1d0] sm:$0xff]  }
 0x757   : > { %28230 = vst [vmem:[#allocation33_spill] sm:$0xff] %v26124_v43  ;;  %v26129_v9 = vadd.f32 %v12980_v30, %v12631_v63  ;;  %22123 = vmatprep.subr.bf16.mxu0 %v22897_v4  ;;  %22207 = vmatprep.subr.bf16.mxu1 %v22902_v55  ;;  %v22908_v63 = vld [vmem:[#allocation10 + $0x1c8] sm:$0xff]  }
 0x758   : > { %v21692_v14 = vpop.f32.mrf.mxu0  ;;  %v21776_v44 = vpop.f32.mrf.mxu1 }
 0x759   : > { %28231 = vst [vmem:[#allocation64_spill] sm:$0xff] %v26129_v9  ;;  %v26131_v6 = vadd.f32 %v21772_v62, %v21692_v14 }
 0x75a   : > { %v12634_v7 = vpop.f32.mrf.mxu0  ;;  %v12999_v39 = vpop.f32.mrf.mxu1  ;;  %22124 = vmatpush3.bf16.msra.mxu0 %v22897_v4  ;;  %22208 = vmatpush3.bf16.msra.mxu1 %v22902_v55  ;;  %v22903_v55 = vld [vmem:[#allocation10 + $0x198] sm:$0xff]  }
 0x75b   : > { %28232 = vst [vmem:[#allocation22_spill] sm:$0xff] %v26131_v6  ;;  %v26133_v59 = vadd.f32 %v12983_v33, %v12634_v7  ;;  %22125 = vmatprep.subr.bf16.mxu0 %v22899_v57  ;;  %22209 = vmatprep.subr.bf16.mxu1 %v22904_v35 }
 0x75c   : > { %v21695_v30 = vpop.f32.mrf.mxu0  ;;  %v21779_v46 = vpop.f32.mrf.mxu1  ;;  %21982 = vmatmul.mubr.bf16.gmra.mxu0 %v25979_v27  ;;  %22066 = vmatmul.mubr.bf16.gmra.mxu1 %v25979_v27 }
 0x75d   : > { %28233 = vst [vmem:[#allocation34_spill] sm:$0xff] %v26133_v59  ;;  %v26137_v60 = vadd.f32 %v21775_v31, %v21695_v30  ;;  %21985 = vmatprep.mubr.bf16.mxu0 %v25983_v48  ;;  %22069 = vmatprep.mubr.bf16.mxu1 %v25983_v48  ;;  %v22905_v48 = vld [vmem:[#allocation10 + $0x190] sm:$0xff]  }
 0x75e   : > { %v12647_v62 = vpop.f32.mrf.mxu0  ;;  %v13012_v4 = vpop.f32.mrf.mxu1  ;;  %22126 = vmatpush3.bf16.msra.mxu0 %v22899_v57  ;;  %22210 = vmatpush3.bf16.msra.mxu1 %v22904_v35  ;;  %v22911_v57 = vld [vmem:[#allocation10 + $0x1c0] sm:$0xff]  }
 0x75f   : > { %28234 = vst [vmem:[#allocation47_spill] sm:$0xff] %v26137_v60  ;;  %v26141_v33 = vadd.f32 %v12996_v61, %v12647_v62  ;;  %22127 = vmatprep.subr.bf16.mxu0 %v22901_v56  ;;  %22211 = vmatprep.subr.bf16.mxu1 %v22906_v21 }
 0x760   : > { %v21696_v14 = vpop.f32.mrf.mxu0  ;;  %v21780_v7 = vpop.f32.mrf.mxu1 }
 0x761   : > { %28235 = vst [vmem:[#allocation65_spill] sm:$0xff] %v26141_v33  ;;  %v26143_v59 = vadd.f32 %v21776_v44, %v21696_v14  ;;  %v23060_v44 = vld [vmem:[#allocation3 + $0x40] sm:$0xff]  }
 0x762   : > { %v12650_v27 = vpop.f32.mrf.mxu0  ;;  %v13015_v31 = vpop.f32.mrf.mxu1  ;;  %22128 = vmatpush3.bf16.msra.mxu0 %v22901_v56  ;;  %22212 = vmatpush3.bf16.msra.mxu1 %v22906_v21  ;;  %v22907_v21 = vld [vmem:[#allocation10 + $0x188] sm:$0xff]  }
 0x763   : > { %28236 = vst [vmem:[#allocation66_spill] sm:$0xff] %v26143_v59  ;;  %v26145_v30 = vadd.f32 %v12999_v39, %v12650_v27  ;;  %22129 = vmatprep.subr.bf16.mxu0 %v22903_v55  ;;  %22213 = vmatprep.subr.bf16.mxu1 %v22908_v63  ;;  %v26153_v27 = vld [vmem:[#allocation12 + $0x38] sm:$0xff]  }
 0x764   : > { %v21699_v61 = vpop.f32.mrf.mxu0  ;;  %v21783_v35 = vpop.f32.mrf.mxu1  ;;  %21986 = vmatmul.mubr.bf16.gmra.mxu0 %v25987_v11  ;;  %22070 = vmatmul.mubr.bf16.gmra.mxu1 %v25987_v11 }
 0x765   : > { %28237 = vst [vmem:[#allocation100_spill] sm:$0xff] %v26145_v30  ;;  %v26149_v62 = vadd.f32 %v21779_v46, %v21699_v61  ;;  %21989 = vmatprep.mubr.bf16.mxu0 %v23060_v44  ;;  %22073 = vmatprep.mubr.bf16.mxu1 %v23060_v44  ;;  %v23061_v44 = vld [vmem:[#allocation3 + $0x48] sm:$0xff]  }
 0x766   : > { %v12663_v14 = vpop.f32.mrf.mxu0  ;;  %v13028_v56 = vpop.f32.mrf.mxu1  ;;  %22130 = vmatpush3.bf16.msra.mxu0 %v22903_v55  ;;  %22214 = vmatpush3.bf16.msra.mxu1 %v22908_v63  ;;  %v22909_v55 = vld [vmem:[#allocation10 + $0x180] sm:$0xff]  }
 0x767   : > { %28238 = vst [vmem:[#allocation35_spill] sm:$0xff] %v26149_v62  ;;  %v26151_v39 = vadd.f32 %v13012_v4, %v12663_v14  ;;  %22131 = vmatprep.subr.bf16.mxu0 %v22905_v48  ;;  %22215 = vmatprep.subr.bf16.mxu1 %v22911_v57 }
 0x768   : > { %v21700_v30 = vpop.f32.mrf.mxu0  ;;  %v21784_v59 = vpop.f32.mrf.mxu1 }
 0x769   : > { %28239 = vst [vmem:[#allocation48_spill] sm:$0xff] %v26151_v39  ;;  %v26155_v33 = vadd.f32 %v21780_v7, %v21700_v30  ;;  %v23062_v39 = vld [vmem:[#allocation3 + $0x50] sm:$0xff]  }
 0x76a   : > { %v12666_v11 = vpop.f32.mrf.mxu0  ;;  %v13031_v46 = vpop.f32.mrf.mxu1  ;;  %22132 = vmatpush3.bf16.msra.mxu0 %v22905_v48  ;;  %22216 = vmatpush3.bf16.msra.mxu1 %v22911_v57 }
 0x76b   : > { %28240 = vst [vmem:[#allocation67_spill] sm:$0xff] %v26155_v33  ;;  %v26157_v61 = vadd.f32 %v13015_v31, %v12666_v11  ;;  %22133 = vmatprep.subr.bf16.mxu0 %v22907_v21  ;;  %22361 = vmatprep.subr.bf16.mxu1 %v26153_v27  ;;  %v26164_v31 = vld [vmem:[#allocation10 + $0x238] sm:$0xff]  }
 0x76c   : > { %v21703_v4 = vpop.f32.mrf.mxu0  ;;  %v21787_v63 = vpop.f32.mrf.mxu1  ;;  %21990 = vmatmul.mubr.bf16.gmra.mxu0 %v23061_v44  ;;  %22074 = vmatmul.mubr.bf16.gmra.mxu1 %v23061_v44  ;;  %v23063_v44 = vld [vmem:[#allocation3 + $0x58] sm:$0xff]  }
 0x76d   : > { %28241 = vst [vmem:[#allocation36_spill] sm:$0xff] %v26157_v61  ;;  %v26160_v14 = vadd.f32 %v21783_v35, %v21703_v4  ;;  %21993 = vmatprep.mubr.bf16.mxu0 %v23062_v39  ;;  %22077 = vmatprep.mubr.bf16.mxu1 %v23062_v39 }
 0x76e   : > { %v12679_v7 = vpop.f32.mrf.mxu0  ;;  %v13044_v30 = vpop.f32.mrf.mxu1  ;;  %22134 = vmatpush3.bf16.msra.mxu0 %v22907_v21  ;;  %v23064_v21 = vld [vmem:[#allocation3 + $0x60] sm:$0xff]  }
 0x76f   : > { %28242 = vst [vmem:[#allocation23_spill] sm:$0xff] %v26160_v14  ;;  %v26162_v48 = vadd.f32 %v13028_v56, %v12679_v7  ;;  %22135 = vmatprep.subr.bf16.mxu0 %v22909_v55 }
 0x770   : > { %v21704_v57 = vpop.f32.mrf.mxu0  ;;  %v21788_v11 = vpop.f32.mrf.mxu1 }
 0x771   : > { %28243 = vst [vmem:[#allocation68_spill] sm:$0xff] %v26162_v48  ;;  %v26166_v61 = vadd.f32 %v21784_v59, %v21704_v57 }
 0x772   : > { %v12682_v33 = vpop.f32.mrf.mxu0  ;;  %v13047_v62 = vpop.f32.mrf.mxu1  ;;  %22136 = vmatpush3.bf16.msra.mxu0 %v22909_v55 }
 0x773   : > { %28244 = vst [vmem:[#allocation49_spill] sm:$0xff] %v26166_v61  ;;  %v26168_v35 = vadd.f32 %v13031_v46, %v12682_v33  ;;  %22281 = vmatprep.subr.bf16.mxu0 %v26164_v31 }
 0x774   : > { %v21707_v39 = vpop.f32.mrf.mxu0  ;;  %v21791_v4 = vpop.f32.mrf.mxu1  ;;  %21994 = vmatmul.mubr.bf16.gmra.mxu0 %v23063_v44  ;;  %22078 = vmatmul.mubr.bf16.gmra.mxu1 %v23063_v44  ;;  %v23065_v44 = vld [vmem:[#allocation3 + $0x68] sm:$0xff]  }
 0x775   : > { %28245 = vst [vmem:[#allocation69_spill] sm:$0xff] %v26168_v35  ;;  %v26171_v56 = vadd.f32 %v21787_v63, %v21707_v39  ;;  %21997 = vmatprep.mubr.bf16.mxu0 %v23064_v21  ;;  %22081 = vmatprep.mubr.bf16.mxu1 %v23064_v21  ;;  %v23066_v39 = vld [vmem:[#allocation3 + $0x70] sm:$0xff]  }
 0x776   : > { %v12695_v7 = vpop.f32.mrf.mxu0  ;;  %v13060_v59 = vpop.f32.mrf.mxu1 }
 0x777   : > { %28246 = vst [vmem:[#allocation37_spill] sm:$0xff] %v26171_v56  ;;  %v26173_v57 = vadd.f32 %v13044_v30, %v12695_v7 }
 0x778   : > { %v21708_v61 = vpop.f32.mrf.mxu0  ;;  %v21792_v55 = vpop.f32.mrf.mxu1 }
 0x779   : > { %28247 = vst [vmem:[#allocation24_spill] sm:$0xff] %v26173_v57  ;;  %v26175_v33 = vadd.f32 %v21788_v11, %v21708_v61 }
 0x77a   : > { %v12698_v46 = vpop.f32.mrf.mxu0  ;;  %v13063_v35 = vpop.f32.mrf.mxu1 }
 0x77b   : > { %28248 = vst [vmem:[#allocation70_spill] sm:$0xff] %v26175_v33  ;;  %v26177_v48 = vadd.f32 %v13047_v62, %v12698_v46 }
 0x77c   : > { %v21711_v14 = vpop.f32.mrf.mxu0  ;;  %v21795_v60 = vpop.f32.mrf.mxu1  ;;  %21998 = vmatmul.mubr.bf16.gmra.mxu0 %v23065_v44  ;;  %22082 = vmatmul.mubr.bf16.gmra.mxu1 %v23065_v44  ;;  %v23067_v44 = vld [vmem:[#allocation3 + $0x78] sm:$0xff]  }
 0x77d   : > { %28249 = vst [vmem:[#allocation50_spill] sm:$0xff] %v26177_v48  ;;  %v26179_v63 = vadd.f32 %v21791_v4, %v21711_v14  ;;  %22001 = vmatprep.mubr.bf16.mxu0 %v23066_v39  ;;  %22085 = vmatprep.mubr.bf16.mxu1 %v23066_v39  ;;  %v23068_v4 = vld [vmem:[#allocation3 + $0x80] sm:$0xff]  }
 0x77e   : > { %v12711_v30 = vpop.f32.mrf.mxu0  ;;  %v13076_v21 = vpop.f32.mrf.mxu1 }
 0x77f   : > { %28250 = vst [vmem:[#allocation38_spill] sm:$0xff] %v26179_v63  ;;  %v26181_v7 = vadd.f32 %v13060_v59, %v12711_v30 }
 0x780   : > { %v21712_v61 = vpop.f32.mrf.mxu0  ;;  %v21796_v11 = vpop.f32.mrf.mxu1 }
 0x781   : > { %28251 = vst [vmem:[#allocation71_spill] sm:$0xff] %v26181_v7  ;;  %v26183_v33 = vadd.f32 %v21792_v55, %v21712_v61 }
 0x782   : > { %v12714_v62 = vpop.f32.mrf.mxu0  ;;  %v13079_v46 = vpop.f32.mrf.mxu1 }
 0x783   : > { %28252 = vst [vmem:[#allocation51_spill] sm:$0xff] %v26183_v33  ;;  %v26185_v48 = vadd.f32 %v13063_v35, %v12714_v62 }
 0x784   : > { %v21715_v57 = vpop.f32.mrf.mxu0  ;;  %v21799_v56 = vpop.f32.mrf.mxu1  ;;  %22002 = vmatmul.mubr.bf16.gmra.mxu0 %v23067_v44  ;;  %22086 = vmatmul.mubr.bf16.gmra.mxu1 %v23067_v44  ;;  %v23069_v44 = vld [vmem:[#allocation3 + $0x88] sm:$0xff]  }
 0x785   : > { %28253 = vst [vmem:[#allocation72_spill] sm:$0xff] %v26185_v48  ;;  %v26187_v14 = vadd.f32 %v21795_v60, %v21715_v57  ;;  %22005 = vmatprep.mubr.bf16.mxu0 %v23068_v4  ;;  %22089 = vmatprep.mubr.bf16.mxu1 %v23068_v4  ;;  %v23070_v57 = vld [vmem:[#allocation3 + $0x90] sm:$0xff]  }
 0x786   : > { %v12727_v59 = vpop.f32.mrf.mxu0  ;;  %v13092_v39 = vpop.f32.mrf.mxu1 }
 0x787   : > { %28254 = vst [vmem:[#allocation25_spill] sm:$0xff] %v26187_v14  ;;  %v26189_v30 = vadd.f32 %v13076_v21, %v12727_v59 }
 0x788   : > { %v21716_v55 = vpop.f32.mrf.mxu0  ;;  %v21800_v61 = vpop.f32.mrf.mxu1 }
 0x789   : > { %28255 = vst [vmem:[#allocation39_spill] sm:$0xff] %v26189_v30  ;;  %v26191_v33 = vadd.f32 %v21796_v11, %v21716_v55 }
 0x78a   : > { %v12730_v35 = vpop.f32.mrf.mxu0  ;;  %v13095_v62 = vpop.f32.mrf.mxu1 }
 0x78b   : > { %28256 = vst [vmem:[#allocation73_spill] sm:$0xff] %v26191_v33  ;;  %v26193_v48 = vadd.f32 %v13079_v46, %v12730_v35 }
 0x78c   : > { %v21719_v7 = vpop.f32.mrf.mxu0  ;;  %v21899_v63 = vpop.f32.mrf.mxu1  ;;  %22006 = vmatmul.mubr.bf16.gmra.mxu0 %v23069_v44  ;;  %22090 = vmatmul.mubr.bf16.gmra.mxu1 %v23069_v44  ;;  %v23071_v44 = vld [vmem:[#allocation3 + $0x98] sm:$0xff]  }
 0x78d   : > { %28257 = vst [vmem:[#allocation52_spill] sm:$0xff] %v26193_v48  ;;  %v26195_v60 = vadd.f32 %v21799_v56, %v21719_v7  ;;  %22009 = vmatprep.mubr.bf16.mxu0 %v23070_v57  ;;  %22093 = vmatprep.mubr.bf16.mxu1 %v23070_v57  ;;  %v23072_v7 = vld [vmem:[#allocation3 + $0xa0] sm:$0xff]  }
 0x78e   : > { %v12743_v21 = vpop.f32.mrf.mxu0  ;;  %v13543_v4 = vpop.f32.mrf.mxu1 }
 0x78f   : > { %28258 = vst [vmem:[#allocation40_spill] sm:$0xff] %v26195_v60  ;;  %v26197_v59 = vadd.f32 %v13092_v39, %v12743_v21 }
 0x790   : > { %v21720_v11 = vpop.f32.mrf.mxu0  ;;  %v21900_v55 = vpop.f32.mrf.mxu1 }
 0x791   : > { %28259 = vst [vmem:[#allocation26_spill] sm:$0xff] %v26197_v59  ;;  %v26199_v33 = vadd.f32 %v21800_v61, %v21720_v11 }
 0x792   : > { %v12746_v46 = vpop.f32.mrf.mxu0  ;;  %v13546_v35 = vpop.f32.mrf.mxu1 }
 0x793   : > { %28260 = vst [vmem:[#allocation74_spill] sm:$0xff] %v26199_v33  ;;  %v26201_v48 = vadd.f32 %v13095_v62, %v12746_v46 }
 0x794   : > { %v21819_v30 = vpop.f32.mrf.mxu0  ;;  %v21903_v14 = vpop.f32.mrf.mxu1  ;;  %22010 = vmatmul.mubr.bf16.gmra.mxu0 %v23071_v44  ;;  %22094 = vmatmul.mubr.bf16.gmra.mxu1 %v23071_v44  ;;  %v23073_v44 = vld [vmem:[#allocation3 + $0xa8] sm:$0xff]  }
 0x795   : > { %28261 = vst [vmem:[#allocation75_spill] sm:$0xff] %v26201_v48  ;;  %v26203_v56 = vadd.f32 %v21899_v63, %v21819_v30  ;;  %22013 = vmatprep.mubr.bf16.mxu0 %v23072_v7  ;;  %22097 = vmatprep.mubr.bf16.mxu1 %v23072_v7  ;;  %v23074_v30 = vld [vmem:[#allocation3 + $0xb0] sm:$0xff]  }
 0x796   : > { %v13206_v39 = vpop.f32.mrf.mxu0  ;;  %v13559_v57 = vpop.f32.mrf.mxu1 }
 0x797   : > { %v26205_v21 = vadd.f32 %v13543_v4, %v13206_v39 }
 0x798   : > { %v21820_v61 = vpop.f32.mrf.mxu0  ;;  %v21904_v11 = vpop.f32.mrf.mxu1 }
 0x799   : > { %v26207_v33 = vadd.f32 %v21900_v55, %v21820_v61 }
 0x79a   : > { %v13209_v62 = vpop.f32.mrf.mxu0  ;;  %v13562_v46 = vpop.f32.mrf.mxu1 }
 0x79b   : > { %v26209_v48 = vadd.f32 %v13546_v35, %v13209_v62 }
 0x79c   : > { %v21823_v59 = vpop.f32.mrf.mxu0  ;;  %v21907_v60 = vpop.f32.mrf.mxu1  ;;  %22014 = vmatmul.mubr.bf16.gmra.mxu0 %v23073_v44  ;;  %22098 = vmatmul.mubr.bf16.gmra.mxu1 %v23073_v44  ;;  %v23075_v44 = vld [vmem:[#allocation3 + $0xb8] sm:$0xff]  }
 0x79d   : > { %v26211_v63 = vadd.f32 %v21903_v14, %v21823_v59  ;;  %22017 = vmatprep.mubr.bf16.mxu0 %v23074_v30  ;;  %22101 = vmatprep.mubr.bf16.mxu1 %v23074_v30  ;;  %v23076_v59 = vld [vmem:[#allocation3 + $0xc0] sm:$0xff]  }
 0x79e   : > { %v13222_v4 = vpop.f32.mrf.mxu0  ;;  %v13575_v7 = vpop.f32.mrf.mxu1 }
 0x79f   : > { %v26213_v39 = vadd.f32 %v13559_v57, %v13222_v4 }
 0x7a0   : > { %v21824_v55 = vpop.f32.mrf.mxu0  ;;  %v21908_v61 = vpop.f32.mrf.mxu1 }
 0x7a1   : > { %v26215_v6 = vadd.f32 %v21904_v11, %v21824_v55 }
 0x7a2   : > { %v13225_v35 = vpop.f32.mrf.mxu0  ;;  %v13578_v62 = vpop.f32.mrf.mxu1 }
 0x7a3   : > { %v26217_v9 = vadd.f32 %v13562_v46, %v13225_v35 }
 0x7a4   : > { %v21827_v43 = vpop.f32.mrf.mxu0  ;;  %v21911_v3 = vpop.f32.mrf.mxu1  ;;  %22018 = vmatmul.mubr.bf16.gmra.mxu0 %v23075_v44  ;;  %22102 = vmatmul.mubr.bf16.gmra.mxu1 %v23075_v44  ;;  %v23077_v44 = vld [vmem:[#allocation3 + $0xc8] sm:$0xff]  }
 0x7a5   : > { %v26219_v14 = vadd.f32 %v21907_v60, %v21827_v43  ;;  %22021 = vmatprep.mubr.bf16.mxu0 %v23076_v59  ;;  %22105 = vmatprep.mubr.bf16.mxu1 %v23076_v59  ;;  %v23078_v60 = vld [vmem:[#allocation3 + $0xd0] sm:$0xff]  }
 0x7a6   : > { %v13238_v57 = vpop.f32.mrf.mxu0  ;;  %v13591_v30 = vpop.f32.mrf.mxu1 }
 0x7a7   : > { %v26221_v4 = vadd.f32 %v13575_v7, %v13238_v57 }
 0x7a8   : > { %v21828_v11 = vpop.f32.mrf.mxu0  ;;  %v21912_v55 = vpop.f32.mrf.mxu1 }
 0x7a9   : > { %v26223_v29 = vadd.f32 %v21908_v61, %v21828_v11 }
 0x7aa   : > { %v13241_v46 = vpop.f32.mrf.mxu0  ;;  %v13594_v35 = vpop.f32.mrf.mxu1 }
 0x7ab   : > { %v26225_v34 = vadd.f32 %v13578_v62, %v13241_v46 }
 0x7ac   : > { %v21831_v47 = vpop.f32.mrf.mxu0  ;;  %v21915_v17 = vpop.f32.mrf.mxu1  ;;  %22022 = vmatmul.mubr.bf16.gmra.mxu0 %v23077_v44  ;;  %22106 = vmatmul.mubr.bf16.gmra.mxu1 %v23077_v44  ;;  %v23079_v44 = vld [vmem:[#allocation3 + $0xd8] sm:$0xff]  }
 0x7ad   : > { %28262 = vst [vmem:[#allocation53_spill] sm:$0xff] %v26225_v34  ;;  %v26227_v43 = vadd.f32 %v21911_v3, %v21831_v47  ;;  %22025 = vmatprep.mubr.bf16.mxu0 %v23078_v60  ;;  %22109 = vmatprep.mubr.bf16.mxu1 %v23078_v60 }
 0x7ae   : > { %v13254_v7 = vpop.f32.mrf.mxu0  ;;  %v13607_v59 = vpop.f32.mrf.mxu1 }
 0x7af   : > { %28263 = vst [vmem:[#allocation76_spill] sm:$0xff] %v26227_v43  ;;  %v26229_v57 = vadd.f32 %v13591_v30, %v13254_v7 }
 0x7b0   : > { %v21832_v61 = vpop.f32.mrf.mxu0  ;;  %v21916_v11 = vpop.f32.mrf.mxu1 }
 0x7b1   : > { %28264 = vst [vmem:[#allocation54_spill] sm:$0xff] %v26229_v57  ;;  %v26231_v28 = vadd.f32 %v21912_v55, %v21832_v61 }
 0x7b2   : > { %v13257_v62 = vpop.f32.mrf.mxu0  ;;  %v13610_v46 = vpop.f32.mrf.mxu1 }
 0x7b3   : > { %28265 = vst [vmem:[#allocation77_spill] sm:$0xff] %v26231_v28  ;;  %v26233_v16 = vadd.f32 %v13594_v35, %v13257_v62 }
 0x7b4   : > { %v21835_v10 = vpop.f32.mrf.mxu0  ;;  %v21919_v25 = vpop.f32.mrf.mxu1  ;;  %22026 = vmatmul.mubr.bf16.gmra.mxu0 %v23079_v44  ;;  %22110 = vmatmul.mubr.bf16.gmra.mxu1 %v23079_v44 }
 0x7b5   : > { %28266 = vst [vmem:[#allocation27_spill] sm:$0xff] %v26233_v16  ;;  %v26235_v47 = vadd.f32 %v21915_v17, %v21835_v10  ;;  %22029 = vmatprep.mubr.bf16.mxu0 %v25932_v13  ;;  %22113 = vmatprep.mubr.bf16.mxu1 %v25932_v13  ;;  %v23080_v10 = vld [vmem:[#allocation3 + $0xe8] sm:$0xff]  }
 0x7b6   : > { %v13270_v3 = vpop.f32.mrf.mxu0  ;;  %v13623_v30 = vpop.f32.mrf.mxu1 }
 0x7b7   : > { %28267 = vst [vmem:[#allocation55_spill] sm:$0xff] %v26235_v47  ;;  %v26239_v60 = vadd.f32 %v13607_v59, %v13270_v3 }
 0x7b8   : > { %v21836_v55 = vpop.f32.mrf.mxu0  ;;  %v21920_v7 = vpop.f32.mrf.mxu1 }
 0x7b9   : > { %28268 = vst [vmem:[#allocation78_spill] sm:$0xff] %v26239_v60  ;;  %v26241_v61 = vadd.f32 %v21916_v11, %v21836_v55 }
 0x7ba   : > { %v13273_v35 = vpop.f32.mrf.mxu0  ;;  %v13626_v62 = vpop.f32.mrf.mxu1 }
 0x7bb   : > { %28269 = vst [vmem:[#allocation79_spill] sm:$0xff] %v26241_v61  ;;  %v26243_v54 = vadd.f32 %v13610_v46, %v13273_v35 }
 0x7bc   : > { %v21839_v49 = vpop.f32.mrf.mxu0  ;;  %v21923_v44 = vpop.f32.mrf.mxu1  ;;  %22030 = vmatmul.mubr.bf16.gmra.mxu0 %v23080_v10  ;;  %22114 = vmatmul.mubr.bf16.gmra.mxu1 %v23080_v10 }
 0x7bd   : > { %28270 = vst [vmem:[#allocation80_spill] sm:$0xff] %v26243_v54  ;;  %v26245_v17 = vadd.f32 %v21919_v25, %v21839_v49  ;;  %22033 = vmatprep.mubr.bf16.mxu0 %v25946_v8  ;;  %22117 = vmatprep.mubr.bf16.mxu1 %v25946_v8 }
 0x7be   : > { %v13286_v13 = vpop.f32.mrf.mxu0  ;;  %v13639_v59 = vpop.f32.mrf.mxu1 }
 0x7bf   : > { %28271 = vst [vmem:[#allocation81_spill] sm:$0xff] %v26245_v17  ;;  %v26249_v3 = vadd.f32 %v13623_v30, %v13286_v13 }
 0x7c0   : > { %v21840_v11 = vpop.f32.mrf.mxu0  ;;  %v21924_v55 = vpop.f32.mrf.mxu1 }
 0x7c1   : > { %28272 = vst [vmem:[#allocation82_spill] sm:$0xff] %v26249_v3  ;;  %v26251_v38 = vadd.f32 %v21920_v7, %v21840_v11 }
 0x7c2   : > { %v13289_v46 = vpop.f32.mrf.mxu0  ;;  %v13642_v35 = vpop.f32.mrf.mxu1 }
 0x7c3   : > { %28273 = vst [vmem:[#allocation83_spill] sm:$0xff] %v26251_v38  ;;  %v26253_v15 = vadd.f32 %v13626_v62, %v13289_v46  ;;  %v26267_v38 = vld [vmem:[#allocation3 + $0x28] sm:$0xff]  }
 0x7c4   : > { %v21843_v49 = vpop.f32.mrf.mxu0  ;;  %v21927_v25 = vpop.f32.mrf.mxu1  ;;  %22034 = vmatmul.mubr.bf16.gmra.mxu0 %v25948_v20  ;;  %22118 = vmatmul.mubr.bf16.gmra.mxu1 %v25948_v20  ;;  %v26271_v20 = vld [vmem:[#allocation3 + $0x30] sm:$0xff]  }
 0x7c5   : > { %28274 = vst [vmem:[#allocation90_spill] sm:$0xff] %v26253_v15  ;;  %v26259_v8 = vadd.f32 %v21923_v44, %v21843_v49  ;;  %22037 = vmatprep.mubr.bf16.mxu0 %v25957_v26  ;;  %22217 = vmatprep.mubr.bf16.mxu1 %v26255_v22  ;;  %v22923_v44 = vld [vmem:[#allocation12 + $0x30] sm:$0xff]  }
 0x7c6   : > { %v13302_v30 = vpop.f32.mrf.mxu0  ;;  %v13655_v7 = vpop.f32.mrf.mxu1 }
 0x7c7   : > { %28275 = vst [vmem:[#allocation84_spill] sm:$0xff] %v26259_v8  ;;  %v26263_v10 = vadd.f32 %v13639_v59, %v13302_v30  ;;  %v23081_v8 = vld [vmem:[#allocation3 + $0x108] sm:$0xff]  }
 0x7c8   : > { %v21844_v62 = vpop.f32.mrf.mxu0  ;;  %v21928_v13 = vpop.f32.mrf.mxu1 }
 0x7c9   : > { %28276 = vst [vmem:[#allocation85_spill] sm:$0xff] %v26263_v10  ;;  %v26265_v11 = vadd.f32 %v21924_v55, %v21844_v62  ;;  %v22929_v62 = vld [vmem:[#allocation12 + $0x28] sm:$0xff]  }
 0x7ca   : > { %v13305_v46 = vpop.f32.mrf.mxu0  ;;  %v13658_v15 = vpop.f32.mrf.mxu1 }
 0x7cb   : > { %28277 = vst [vmem:[#allocation91_spill] sm:$0xff] %v26265_v11  ;;  %v26269_v3 = vadd.f32 %v13642_v35, %v13305_v46 }
 0x7cc   : > { %v21847_v26 = vpop.f32.mrf.mxu0  ;;  %v21931_v49 = vpop.f32.mrf.mxu1  ;;  %22038 = vmatmul.mubr.bf16.gmra.mxu0 %v23081_v8  ;;  %22218 = vmatmul.mubr.bf16.vlgmr.msra.gmra.mxu1 %v26267_v38 }
 0x7cd   : > { %28278 = vst [vmem:[#allocation87_spill] sm:$0xff] %v26269_v3  ;;  %v26274_v59 = vadd.f32 %v21927_v25, %v21847_v26  ;;  %22137 = vmatprep.mubr.bf16.mxu0 %v26255_v22  ;;  %22221 = vmatprep.mubr.bf16.mxu1 %v26271_v20  ;;  %v26283_v25 = vld [vmem:[#allocation3 + $0x38] sm:$0xff]  }
 0x7ce   : > { %v13318_v55 = vpop.f32.mrf.mxu0  ;;  %v13671_v30 = vpop.f32.mrf.mxu1  ;;  %22362 = vmatpush3.bf16.msra.mxu1 %v26153_v27  ;;  %v22935_v27 = vld [vmem:[#allocation12 + $0x20] sm:$0xff]  }
 0x7cf   : > { %28279 = vst [vmem:[#allocation88_spill] sm:$0xff] %v26274_v59  ;;  %v26279_v35 = vadd.f32 %v13655_v7, %v13318_v55  ;;  %22363 = vmatprep.subr.bf16.mxu1 %v22923_v44  ;;  %v26287_v59 = vld [vmem:[#allocation3 + $0x40] sm:$0xff]  }
 0x7d0   : > { %v21848_v46 = vpop.f32.mrf.mxu0  ;;  %v21932_v3 = vpop.f32.mrf.mxu1 }
 0x7d1   : > { %28280 = vst [vmem:[#allocation93_spill] sm:$0xff] %v26279_v35  ;;  %v26281_v11 = vadd.f32 %v21928_v13, %v21848_v46 }
 0x7d2   : > { %v13321_v8 = vpop.f32.mrf.mxu0  ;;  %v13674_v10 = vpop.f32.mrf.mxu1  ;;  %22364 = vmatpush3.bf16.msra.mxu1 %v22923_v44 }
 0x7d3   : > { %28281 = vst [vmem:[#allocation98_spill] sm:$0xff] %v26281_v11  ;;  %v26285_v26 = vadd.f32 %v13658_v15, %v13321_v8  ;;  %22365 = vmatprep.subr.bf16.mxu1 %v22929_v62  ;;  %v22927_v8 = vld [vmem:[#allocation10 + $0x228] sm:$0xff]  }
 0x7d4   : > { %v21851_v7 = vpop.f32.mrf.mxu0  ;;  %v21935_v55 = vpop.f32.mrf.mxu1  ;;  %22138 = vmatmul.mubr.bf16.vlgmr.msra.gmra.mxu0 %v26267_v38  ;;  %22222 = vmatmul.mubr.bf16.gmra.mxu1 %v26283_v25 }
 0x7d5   : > { %28282 = vst [vmem:[#allocation96_spill] sm:$0xff] %v26285_v26  ;;  %v26291_v13 = vadd.f32 %v21931_v49, %v21851_v7  ;;  %22141 = vmatprep.mubr.bf16.mxu0 %v26271_v20  ;;  %22225 = vmatprep.mubr.bf16.mxu1 %v26287_v59  ;;  %v22941_v26 = vld [vmem:[#allocation12 + $0x18] sm:$0xff]  }
 0x7d6   : > { %22282 = vmatpush3.bf16.msra.mxu0 %v26164_v31  ;;  %v13334_v15 = vpop.f32.mrf.mxu0  ;;  %v13687_v44 = vpop.f32.mrf.mxu1  ;;  %22366 = vmatpush3.bf16.msra.mxu1 %v22929_v62  ;;  %v22947_v62 = vld [vmem:[#allocation12 + $0x10] sm:$0xff]  }
 0x7d7   : > { %28283 = vst [vmem:[#allocation101_spill] sm:$0xff] %v26291_v13  ;;  %v26296_v46 = vadd.f32 %v13671_v30, %v13334_v15  ;;  %22283 = vmatprep.subr.bf16.mxu0 %v22921_v32  ;;  %22367 = vmatprep.subr.bf16.mxu1 %v22935_v27  ;;  %v26300_v13 = vld [vmem:[#allocation3 + $0x48] sm:$0xff]   ;;  %v22933_v30 = vld [vmem:[#allocation10 + $0x220] sm:$0xff]  }
 0x7d8   : > { %v21852_v11 = vpop.f32.mrf.mxu0  ;;  %v21936_v35 = vpop.f32.mrf.mxu1 }
 0x7d9   : > { %28284 = vst [vmem:[#allocation102_spill] sm:$0xff] %v26296_v46  ;;  %v26298_v17 = vadd.f32 %v21932_v3, %v21852_v11 }
 0x7da   : > { %v13337_v49 = vpop.f32.mrf.mxu0  ;;  %v13690_v7 = vpop.f32.mrf.mxu1  ;;  %22284 = vmatpush3.bf16.msra.mxu0 %v22921_v32  ;;  %22368 = vmatpush3.bf16.msra.mxu1 %v22935_v27  ;;  %v22939_v27 = vld [vmem:[#allocation10 + $0x218] sm:$0xff]  }
 0x7db   : > { %28285 = vst [vmem:[#allocation107_spill] sm:$0xff] %v26298_v17  ;;  %v26302_v31 = vadd.f32 %v13674_v10, %v13337_v49  ;;  %22285 = vmatprep.subr.bf16.mxu0 %v22927_v8  ;;  %22369 = vmatprep.subr.bf16.mxu1 %v22941_v26  ;;  %v22953_v49 = vld [vmem:[#allocation12 + $0x8] sm:$0xff]  }
 0x7dc   : > { %v21855_v15 = vpop.f32.mrf.mxu0  ;;  %v21939_v46 = vpop.f32.mrf.mxu1  ;;  %22142 = vmatmul.mubr.bf16.gmra.mxu0 %v26283_v25  ;;  %22226 = vmatmul.mubr.bf16.gmra.mxu1 %v26300_v13 }
 0x7dd   : > { %28286 = vst [vmem:[#allocation99_spill] sm:$0xff] %v26302_v31  ;;  %v26308_v3 = vadd.f32 %v21935_v55, %v21855_v15  ;;  %22145 = vmatprep.mubr.bf16.mxu0 %v26287_v59  ;;  %22229 = vmatprep.mubr.bf16.mxu1 %v26304_v36 }
 0x7de   : > { %v13350_v32 = vpop.f32.mrf.mxu0  ;;  %v13703_v10 = vpop.f32.mrf.mxu1  ;;  %22286 = vmatpush3.bf16.msra.mxu0 %v22927_v8  ;;  %22370 = vmatpush3.bf16.msra.mxu1 %v22941_v26  ;;  %v26320_v8 = vld [vmem:[#allocation3 + $0x60] sm:$0xff]   ;;  %v22945_v26 = vld [vmem:[#allocation10 + $0x210] sm:$0xff]  }
 0x7df   : > { %28287 = vst [vmem:[#allocation104_spill] sm:$0xff] %v26308_v3  ;;  %v26312_v11 = vadd.f32 %v13687_v44, %v13350_v32  ;;  %22287 = vmatprep.subr.bf16.mxu0 %v22933_v30  ;;  %22371 = vmatprep.subr.bf16.mxu1 %v22947_v62  ;;  %v26316_v3 = vld [vmem:[#allocation3 + $0x58] sm:$0xff]   ;;  %v22958_v44 = vld [vmem:[#allocation12] sm:$0xff]  }
 0x7e0   : > { %v21856_v31 = vpop.f32.mrf.mxu0  ;;  %v21940_v17 = vpop.f32.mrf.mxu1 }
 0x7e1   : > { %28288 = vst [vmem:[#allocation105_spill] sm:$0xff] %v26312_v11  ;;  %v26314_v54 = vadd.f32 %v21936_v35, %v21856_v31 }
 0x7e2   : > { %v13353_v55 = vpop.f32.mrf.mxu0  ;;  %v13706_v15 = vpop.f32.mrf.mxu1  ;;  %22288 = vmatpush3.bf16.msra.mxu0 %v22933_v30  ;;  %22372 = vmatpush3.bf16.msra.mxu1 %v22947_v62  ;;  %v22951_v62 = vld [vmem:[#allocation10 + $0x208] sm:$0xff]  }
 0x7e3   : > { %28289 = vst [vmem:[#allocation111_spill] sm:$0xff] %v26314_v54  ;;  %v26318_v0 = vadd.f32 %v13690_v7, %v13353_v55  ;;  %22289 = vmatprep.subr.bf16.mxu0 %v22939_v27  ;;  %22373 = vmatprep.subr.bf16.mxu1 %v22953_v49 }
 0x7e4   : > { %v21859_v32 = vpop.f32.mrf.mxu0  ;;  %v21943_v11 = vpop.f32.mrf.mxu1  ;;  %22146 = vmatmul.mubr.bf16.gmra.mxu0 %v26300_v13  ;;  %22230 = vmatmul.mubr.bf16.gmra.mxu1 %v26316_v3 }
 0x7e5   : > { %28290 = vst [vmem:[#allocation108_spill] sm:$0xff] %v26318_v0  ;;  %v26324_v35 = vadd.f32 %v21939_v46, %v21859_v32  ;;  %22149 = vmatprep.mubr.bf16.mxu0 %v26304_v36  ;;  %22233 = vmatprep.mubr.bf16.mxu1 %v26320_v8  ;;  %v26332_v32 = vld [vmem:[#allocation3 + $0x68] sm:$0xff]  }
 0x7e6   : > { %v13366_v7 = vpop.f32.mrf.mxu0  ;;  %v13719_v31 = vpop.f32.mrf.mxu1  ;;  %22290 = vmatpush3.bf16.msra.mxu0 %v22939_v27  ;;  %22374 = vmatpush3.bf16.msra.mxu1 %v22953_v49 }
 0x7e7   : > { %28291 = vst [vmem:[#allocation109_spill] sm:$0xff] %v26324_v35  ;;  %v26328_v30 = vadd.f32 %v13703_v10, %v13366_v7  ;;  %22291 = vmatprep.subr.bf16.mxu0 %v22945_v26  ;;  %22375 = vmatprep.subr.bf16.mxu1 %v22958_v44  ;;  %v22957_v10 = vld [vmem:[#allocation10 + $0x200] sm:$0xff]  }
 0x7e8   : > { %v21860_v55 = vpop.f32.mrf.mxu0  ;;  %v21944_v0 = vpop.f32.mrf.mxu1 }
 0x7e9   : > { %28292 = vst [vmem:[#allocation110_spill] sm:$0xff] %v26328_v30  ;;  %v26330_v54 = vadd.f32 %v21940_v17, %v21860_v55  ;;  %v26348_v30 = vld [vmem:[#allocation3 + $0x78] sm:$0xff]  }
 0x7ea   : > { %v13369_v61 = vpop.f32.mrf.mxu0  ;;  %v13722_v46 = vpop.f32.mrf.mxu1  ;;  %22292 = vmatpush3.bf16.msra.mxu0 %v22945_v26  ;;  %22376 = vmatpush3.bf16.msra.mxu1 %v22958_v44 }
 0x7eb   : > { %28293 = vst [vmem:[#allocation112_spill] sm:$0xff] %v26330_v54  ;;  %v26334_v35 = vadd.f32 %v13706_v15, %v13369_v61  ;;  %22293 = vmatprep.subr.bf16.mxu0 %v22951_v62 }
 0x7ec   : > { %v21863_v27 = vpop.f32.mrf.mxu0  ;;  %v21947_v49 = vpop.f32.mrf.mxu1  ;;  %22150 = vmatmul.mubr.bf16.gmra.mxu0 %v26316_v3  ;;  %22234 = vmatmul.mubr.bf16.gmra.mxu1 %v26332_v32 }
 0x7ed   : > { %28294 = vst [vmem:[#allocation113_spill] sm:$0xff] %v26334_v35  ;;  %v26340_v17 = vadd.f32 %v21943_v11, %v21863_v27  ;;  %22153 = vmatprep.mubr.bf16.mxu0 %v26320_v8  ;;  %22237 = vmatprep.mubr.bf16.mxu1 %v26336_v58  ;;  %v26352_v27 = vld [vmem:[#allocation3 + $0x80] sm:$0xff]  }
 0x7ee   : > { %v13382_v26 = vpop.f32.mrf.mxu0  ;;  %v13735_v44 = vpop.f32.mrf.mxu1  ;;  %22294 = vmatpush3.bf16.msra.mxu0 %v22951_v62 }
 0x7ef   : > { %28295 = vst [vmem:[#allocation114_spill] sm:$0xff] %v26340_v17  ;;  %v26344_v61 = vadd.f32 %v13719_v31, %v13382_v26  ;;  %22295 = vmatprep.subr.bf16.mxu0 %v22957_v10 }
 0x7f0   : > { %v21864_v15 = vpop.f32.mrf.mxu0  ;;  %v21948_v7 = vpop.f32.mrf.mxu1 }
 0x7f1   : > { %28296 = vst [vmem:[#allocation117_spill] sm:$0xff] %v26344_v61  ;;  %v26346_v55 = vadd.f32 %v21944_v0, %v21864_v15 }
 0x7f2   : > { %v13385_v35 = vpop.f32.mrf.mxu0  ;;  %v13738_v54 = vpop.f32.mrf.mxu1  ;;  %22296 = vmatpush3.bf16.msra.mxu0 %v22957_v10 }
 0x7f3   : > { %28297 = vst [vmem:[#allocation118_spill] sm:$0xff] %v26346_v55  ;;  %v26350_v11 = vadd.f32 %v13722_v46, %v13385_v35  ;;  %v26364_v55 = vld [vmem:[#allocation3 + $0x88] sm:$0xff]  }
 0x7f4   : > { %v21867_v17 = vpop.f32.mrf.mxu0  ;;  %v21951_v60 = vpop.f32.mrf.mxu1  ;;  %22154 = vmatmul.mubr.bf16.gmra.mxu0 %v26332_v32  ;;  %22238 = vmatmul.mubr.bf16.gmra.mxu1 %v26348_v30 }
 0x7f5   : > { %28298 = vst [vmem:[#allocation115_spill] sm:$0xff] %v26350_v11  ;;  %v26356_v31 = vadd.f32 %v21947_v49, %v21867_v17  ;;  %22157 = vmatprep.mubr.bf16.mxu0 %v26336_v58  ;;  %22241 = vmatprep.mubr.bf16.mxu1 %v26352_v27  ;;  %v26368_v49 = vld [vmem:[#allocation3 + $0x90] sm:$0xff]  }
 0x7f6   : > { %v13398_v0 = vpop.f32.mrf.mxu0  ;;  %v13751_v62 = vpop.f32.mrf.mxu1 }
 0x7f7   : > { %28299 = vst [vmem:[#allocation116_spill] sm:$0xff] %v26356_v31  ;;  %v26360_v26 = vadd.f32 %v13735_v44, %v13398_v0 }
 0x7f8   : > { %v21868_v35 = vpop.f32.mrf.mxu0  ;;  %v21952_v46 = vpop.f32.mrf.mxu1 }
 0x7f9   : > { %28300 = vst [vmem:[#allocation18_spill] sm:$0xff] %v26360_v26  ;;  %v26362_v10 = vadd.f32 %v21948_v7, %v21868_v35 }
 0x7fa   : > { %v13401_v15 = vpop.f32.mrf.mxu0  ;;  %v13754_v11 = vpop.f32.mrf.mxu1 }
 0x7fb   : > { %28301 = vst [vmem:[#allocation41_spill] sm:$0xff] %v26362_v10  ;;  %v26366_v61 = vadd.f32 %v13738_v54, %v13401_v15 }
 0x7fc   : > { %v21871_v17 = vpop.f32.mrf.mxu0  ;;  %v21955_v31 = vpop.f32.mrf.mxu1  ;;  %22158 = vmatmul.mubr.bf16.gmra.mxu0 %v26348_v30  ;;  %22242 = vmatmul.mubr.bf16.gmra.mxu1 %v26364_v55 }
 0x7fd   : > { %28302 = vst [vmem:[#allocation121_spill] sm:$0xff] %v26366_v61  ;;  %v26372_v44 = vadd.f32 %v21951_v60, %v21871_v17  ;;  %22161 = vmatprep.mubr.bf16.mxu0 %v26352_v27  ;;  %22245 = vmatprep.mubr.bf16.mxu1 %v26368_v49  ;;  %v26384_v60 = vld [vmem:[#allocation3 + $0xa0] sm:$0xff]  }
 0x7fe   : > { %v13414_v7 = vpop.f32.mrf.mxu0  ;;  %v13767_v0 = vpop.f32.mrf.mxu1 }
 0x7ff   : > { %28303 = vst [vmem:[#allocation122_spill] sm:$0xff] %v26372_v44  ;;  %v26376_v35 = vadd.f32 %v13751_v62, %v13414_v7 }
 0x800   : > { %v21872_v54 = vpop.f32.mrf.mxu0  ;;  %v21956_v15 = vpop.f32.mrf.mxu1 }
 0x801   : > { %28304 = vst [vmem:[#allocation28_spill] sm:$0xff] %v26376_v35  ;;  %v26378_v61 = vadd.f32 %v21952_v46, %v21872_v54 }
 0x802   : > { %v13417_v10 = vpop.f32.mrf.mxu0  ;;  %v13770_v26 = vpop.f32.mrf.mxu1 }
 0x803   : > { %28305 = vst [vmem:[#allocation126_spill] sm:$0xff] %v26378_v61  ;;  %v26382_v47 = vadd.f32 %v13754_v11, %v13417_v10 }
 0x804   : > { %v21875_v17 = vpop.f32.mrf.mxu0  ;;  %v21959_v44 = vpop.f32.mrf.mxu1  ;;  %22162 = vmatmul.mubr.bf16.gmra.mxu0 %v26364_v55  ;;  %22246 = vmatmul.mubr.bf16.gmra.mxu1 %v26380_v23 }
 0x805   : > { %28306 = vst [vmem:[#allocation119_spill] sm:$0xff] %v26382_v47  ;;  %v26388_v62 = vadd.f32 %v21955_v31, %v21875_v17  ;;  %22165 = vmatprep.mubr.bf16.mxu0 %v26368_v49  ;;  %22249 = vmatprep.mubr.bf16.mxu1 %v26384_v60  ;;  %v26400_v31 = vld [vmem:[#allocation3 + $0xb0] sm:$0xff]  }
 0x806   : > { %v13430_v46 = vpop.f32.mrf.mxu0  ;;  %v13783_v7 = vpop.f32.mrf.mxu1 }
 0x807   : > { %28307 = vst [vmem:[#allocation120_spill] sm:$0xff] %v26388_v62  ;;  %v26392_v54 = vadd.f32 %v13767_v0, %v13430_v46 }
 0x808   : > { %v21876_v11 = vpop.f32.mrf.mxu0  ;;  %v21960_v10 = vpop.f32.mrf.mxu1 }
 0x809   : > { %28308 = vst [vmem:[#allocation125_spill] sm:$0xff] %v26392_v54  ;;  %v26394_v47 = vadd.f32 %v21956_v15, %v21876_v11 }
 0x80a   : > { %v13433_v61 = vpop.f32.mrf.mxu0  ;;  %v13786_v35 = vpop.f32.mrf.mxu1 }
 0x80b   : > { %28309 = vst [vmem:[#allocation42_spill] sm:$0xff] %v26394_v47  ;;  %v26398_v16 = vadd.f32 %v13770_v26, %v13433_v61 }
 0x80c   : > { %v21879_v17 = vpop.f32.mrf.mxu0  ;;  %v22059_v62 = vpop.f32.mrf.mxu1  ;;  %22166 = vmatmul.mubr.bf16.gmra.mxu0 %v26380_v23  ;;  %22250 = vmatmul.mubr.bf16.gmra.mxu1 %v26396_v42 }
 0x80d   : > { %28310 = vst [vmem:[#allocation127_spill] sm:$0xff] %v26398_v16  ;;  %v26404_v0 = vadd.f32 %v21959_v44, %v21879_v17  ;;  %22169 = vmatprep.mubr.bf16.mxu0 %v26384_v60  ;;  %22253 = vmatprep.mubr.bf16.mxu1 %v26400_v31  ;;  %v26416_v44 = vld [vmem:[#allocation3 + $0xc0] sm:$0xff]  }
 0x80e   : > { %v13446_v15 = vpop.f32.mrf.mxu0  ;;  %v14234_v46 = vpop.f32.mrf.mxu1 }
 0x80f   : > { %28311 = vst [vmem:[#allocation123_spill] sm:$0xff] %v26404_v0  ;;  %v26408_v11 = vadd.f32 %v13783_v7, %v13446_v15 }
 0x810   : > { %v21880_v61 = vpop.f32.mrf.mxu0  ;;  %v22060_v26 = vpop.f32.mrf.mxu1 }
 0x811   : > { %28312 = vst [vmem:[#allocation124_spill] sm:$0xff] %v26408_v11  ;;  %v26410_v16 = vadd.f32 %v21960_v10, %v21880_v61 }
 0x812   : > { %v13449_v47 = vpop.f32.mrf.mxu0  ;;  %v14237_v54 = vpop.f32.mrf.mxu1 }
 0x813   : > { %28313 = vst [vmem:[#allocation89_spill] sm:$0xff] %v26410_v16  ;;  %v26414_v28 = vadd.f32 %v13786_v35, %v13449_v47 }
 0x814   : > { %v21979_v17 = vpop.f32.mrf.mxu0  ;;  %v22063_v0 = vpop.f32.mrf.mxu1  ;;  %22170 = vmatmul.mubr.bf16.gmra.mxu0 %v26396_v42  ;;  %22254 = vmatmul.mubr.bf16.gmra.mxu1 %v26412_v52 }
 0x815   : > { %28314 = vst [vmem:[#allocation131_spill] sm:$0xff] %v26414_v28  ;;  %v26420_v7 = vadd.f32 %v22059_v62, %v21979_v17  ;;  %22173 = vmatprep.mubr.bf16.mxu0 %v26400_v31  ;;  %22257 = vmatprep.mubr.bf16.mxu1 %v26416_v44  ;;  %v26432_v62 = vld [vmem:[#allocation3 + $0xd0] sm:$0xff]  }
 0x816   : > { %v13897_v10 = vpop.f32.mrf.mxu0  ;;  %v14250_v15 = vpop.f32.mrf.mxu1  ;;  %28320 = vst [vmem:[#allocation132_spill] sm:$0xff] %v26432_v62 }
 0x817   : > { %28315 = vst [vmem:[#allocation128_spill] sm:$0xff] %v26420_v7  ;;  %v26424_v61 = vadd.f32 %v14234_v46, %v13897_v10 }
 0x818   : > { %v21980_v47 = vpop.f32.mrf.mxu0  ;;  %v22064_v35 = vpop.f32.mrf.mxu1 }
 0x819   : > { %28316 = vst [vmem:[#allocation129_spill] sm:$0xff] %v26424_v61  ;;  %v26426_v28 = vadd.f32 %v22060_v26, %v21980_v47 }
 0x81a   : > { %v13900_v16 = vpop.f32.mrf.mxu0  ;;  %v14253_v11 = vpop.f32.mrf.mxu1 }
 0x81b   : > { %28317 = vst [vmem:[#allocation130_spill] sm:$0xff] %v26426_v28  ;;  %v26430_v57 = vadd.f32 %v14237_v54, %v13900_v16 }
 0x81c   : > { %v21983_v17 = vpop.f32.mrf.mxu0  ;;  %v22067_v7 = vpop.f32.mrf.mxu1  ;;  %22174 = vmatmul.mubr.bf16.gmra.mxu0 %v26412_v52  ;;  %22258 = vmatmul.mubr.bf16.gmra.mxu1 %v26428_v2 }
 0x81d   : > { %28319 = vst [vmem:[#allocation86_spill] sm:$0xff] %v26430_v57  ;;  %v26436_v46 = vadd.f32 %v22063_v0, %v21983_v17  ;;  %22177 = vmatprep.mubr.bf16.mxu0 %v26416_v44  ;;  %22261 = vmatprep.mubr.bf16.mxu1 %v26432_v62  ;;  %v26448_v0 = vld [vmem:[#allocation3 + $0xe0] sm:$0xff]  }
 0x81e   : > { %v13913_v26 = vpop.f32.mrf.mxu0  ;;  %v14266_v10 = vpop.f32.mrf.mxu1  ;;  %28326 = vst [vmem:[#allocation138_spill] sm:$0xff] %v26448_v0 }
 0x81f   : > { %28321 = vst [vmem:[#allocation133_spill] sm:$0xff] %v26436_v46  ;;  %v26440_v47 = vadd.f32 %v14250_v15, %v13913_v26 }
 0x820   : > { %v21984_v16 = vpop.f32.mrf.mxu0  ;;  %v22068_v54 = vpop.f32.mrf.mxu1 }
 0x821   : > { %28322 = vst [vmem:[#allocation134_spill] sm:$0xff] %v26440_v47  ;;  %v26442_v57 = vadd.f32 %v22064_v35, %v21984_v16 }
 0x822   : > { %v13916_v28 = vpop.f32.mrf.mxu0  ;;  %v14269_v61 = vpop.f32.mrf.mxu1 }
 0x823   : > { %28323 = vst [vmem:[#allocation135_spill] sm:$0xff] %v26442_v57  ;;  %v26446_v43 = vadd.f32 %v14253_v11, %v13916_v28 }
 0x824   : > { %v21987_v17 = vpop.f32.mrf.mxu0  ;;  %v22071_v46 = vpop.f32.mrf.mxu1  ;;  %22178 = vmatmul.mubr.bf16.gmra.mxu0 %v26428_v2  ;;  %22262 = vmatmul.mubr.bf16.gmra.mxu1 %v26444_v50 }
 0x825   : > { %28325 = vst [vmem:[#allocation137_spill] sm:$0xff] %v26446_v43  ;;  %v26452_v15 = vadd.f32 %v22067_v7, %v21987_v17  ;;  %22181 = vmatprep.mubr.bf16.mxu0 %v26432_v62  ;;  %22265 = vmatprep.mubr.bf16.mxu1 %v26448_v0  ;;  %v26464_v7 = vld [vmem:[#allocation3 + $0xf0] sm:$0xff]   ;;  %v26476_v62 = vld [vmem:[#allocation3 + $0xf8] sm:$0xff]  }
 0x826   : > { %v13929_v35 = vpop.f32.mrf.mxu0  ;;  %v14282_v26 = vpop.f32.mrf.mxu1  ;;  %28332 = vst [vmem:[#allocation144_spill] sm:$0xff] %v26464_v7  ;;  %28336 = vst [vmem:[#allocation148_spill] sm:$0xff] %v26476_v62 }
 0x827   : > { %28327 = vst [vmem:[#allocation139_spill] sm:$0xff] %v26452_v15  ;;  %v26456_v16 = vadd.f32 %v14266_v10, %v13929_v35 }
 0x828   : > { %v21988_v28 = vpop.f32.mrf.mxu0  ;;  %v22072_v11 = vpop.f32.mrf.mxu1 }
 0x829   : > { %28328 = vst [vmem:[#allocation140_spill] sm:$0xff] %v26456_v16  ;;  %v26458_v43 = vadd.f32 %v22068_v54, %v21988_v28 }
 0x82a   : > { %v13932_v57 = vpop.f32.mrf.mxu0  ;;  %v14285_v47 = vpop.f32.mrf.mxu1 }
 0x82b   : > { %28329 = vst [vmem:[#allocation141_spill] sm:$0xff] %v26458_v43  ;;  %v26462_v2 = vadd.f32 %v14269_v61, %v13932_v57 }
 0x82c   : > { %v21991_v17 = vpop.f32.mrf.mxu0  ;;  %v22075_v15 = vpop.f32.mrf.mxu1  ;;  %22182 = vmatmul.mubr.bf16.gmra.mxu0 %v26444_v50  ;;  %22266 = vmatmul.mubr.bf16.gmra.mxu1 %v26460_v40 }
 0x82d   : > { %28331 = vst [vmem:[#allocation143_spill] sm:$0xff] %v26462_v2  ;;  %v26468_v10 = vadd.f32 %v22071_v46, %v21991_v17  ;;  %22185 = vmatprep.mubr.bf16.mxu0 %v26448_v0  ;;  %22269 = vmatprep.mubr.bf16.mxu1 %v26464_v7  ;;  %v26480_v46 = vld [vmem:[#allocation3 + $0x100] sm:$0xff]   ;;  %v26494_v0 = vld [vmem:[#allocation3 + $0x108] sm:$0xff]  }
 0x82e   : > { %v13945_v54 = vpop.f32.mrf.mxu0  ;;  %v14298_v35 = vpop.f32.mrf.mxu1  ;;  %28338 = vst [vmem:[#allocation150_spill] sm:$0xff] %v26480_v46  ;;  %28342 = vst [vmem:[#allocation154_spill] sm:$0xff] %v26494_v0 }
 0x82f   : > { %28333 = vst [vmem:[#allocation145_spill] sm:$0xff] %v26468_v10  ;;  %v26472_v28 = vadd.f32 %v14282_v26, %v13945_v54 }
 0x830   : > { %v21992_v57 = vpop.f32.mrf.mxu0  ;;  %v22076_v61 = vpop.f32.mrf.mxu1 }
 0x831   : > { %28334 = vst [vmem:[#allocation146_spill] sm:$0xff] %v26472_v28  ;;  %v26474_v2 = vadd.f32 %v22072_v11, %v21992_v57 }
 0x832   : > { %v13948_v43 = vpop.f32.mrf.mxu0  ;;  %v14301_v16 = vpop.f32.mrf.mxu1 }
 0x833   : > { %28335 = vst [vmem:[#allocation147_spill] sm:$0xff] %v26474_v2  ;;  %v26478_v50 = vadd.f32 %v14285_v47, %v13948_v43  ;;  %v26492_v2 = vld [vmem:[#allocation3 + $0x110] sm:$0xff]  }
 0x834   : > { %v21995_v17 = vpop.f32.mrf.mxu0  ;;  %v22079_v10 = vpop.f32.mrf.mxu1  ;;  %22186 = vmatmul.mubr.bf16.gmra.mxu0 %v26460_v40  ;;  %22270 = vmatmul.mubr.bf16.gmra.mxu1 %v26476_v62 }
 0x835   : > { %28337 = vst [vmem:[#allocation149_spill] sm:$0xff] %v26478_v50  ;;  %v26484_v26 = vadd.f32 %v22075_v15, %v21995_v17  ;;  %22189 = vmatprep.mubr.bf16.mxu0 %v26464_v7  ;;  %22273 = vmatprep.mubr.bf16.mxu1 %v26480_v46 }
 0x836   : > { %v13961_v11 = vpop.f32.mrf.mxu0  ;;  %v14314_v54 = vpop.f32.mrf.mxu1 }
 0x837   : > { %28339 = vst [vmem:[#allocation151_spill] sm:$0xff] %v26484_v26  ;;  %v26488_v57 = vadd.f32 %v14298_v35, %v13961_v11 }
 0x838   : > { %v21996_v43 = vpop.f32.mrf.mxu0  ;;  %v22080_v47 = vpop.f32.mrf.mxu1 }
 0x839   : > { %28340 = vst [vmem:[#allocation152_spill] sm:$0xff] %v26488_v57  ;;  %v26490_v50 = vadd.f32 %v22076_v61, %v21996_v43 }
 0x83a   : > { %v13964_v28 = vpop.f32.mrf.mxu0  ;;  %v14317_v40 = vpop.f32.mrf.mxu1 }
 0x83b   : > { %28341 = vst [vmem:[#allocation153_spill] sm:$0xff] %v26490_v50  ;;  %v26496_v15 = vadd.f32 %v14301_v16, %v13964_v28  ;;  %v26506_v16 = vld [vmem:[#allocation3 + $0x118] sm:$0xff]  }
 0x83c   : > { %v21999_v17 = vpop.f32.mrf.mxu0  ;;  %v22083_v26 = vpop.f32.mrf.mxu1  ;;  %22190 = vmatmul.mubr.bf16.gmra.mxu0 %v26476_v62  ;;  %22274 = vmatmul.mubr.bf16.gmra.mxu1 %v26494_v0 }
 0x83d   : > { %28343 = vst [vmem:[#allocation155_spill] sm:$0xff] %v26496_v15  ;;  %v26500_v35 = vadd.f32 %v22079_v10, %v21999_v17  ;;  %22193 = vmatprep.mubr.bf16.mxu0 %v26480_v46  ;;  %22277 = vmatprep.mubr.bf16.mxu1 %v26492_v2  ;;  %v22959_v15 = vld [vmem:[%s23514_s26 + $0x10] sm:$0xff]   ;;  %v22960_v46 = vld [vmem:[%s23514_s26 + $0x18] sm:$0xff]  }
 0x83e   : > { %v13977_v61 = vpop.f32.mrf.mxu0  ;;  %v14330_v11 = vpop.f32.mrf.mxu1 }
 0x83f   : > { %28344 = vst [vmem:[#allocation156_spill] sm:$0xff] %v26500_v35  ;;  %v26504_v43 = vadd.f32 %v14314_v54, %v13977_v61 }
 0x840   : > { %v22000_v50 = vpop.f32.mrf.mxu0  ;;  %v22084_v57 = vpop.f32.mrf.mxu1 }
 0x841   : > { %28345 = vst [vmem:[#allocation157_spill] sm:$0xff] %v26504_v43  ;;  %v26508_v28 = vadd.f32 %v22080_v47, %v22000_v50 }
 0x842   : > { %v13980_v62 = vpop.f32.mrf.mxu0  ;;  %v14333_v7 = vpop.f32.mrf.mxu1 }
 0x843   : > { %28346 = vst [vmem:[#allocation158_spill] sm:$0xff] %v26508_v28  ;;  %v26511_v10 = vadd.f32 %v14317_v40, %v13980_v62  ;;  %v22961_v62 = vld [vmem:[%s23514_s26 + $0x20] sm:$0xff]  }
 0x844   : > { %v22003_v17 = vpop.f32.mrf.mxu0  ;;  %v22087_v35 = vpop.f32.mrf.mxu1  ;;  %22194 = vmatmul.mubr.bf16.gmra.mxu0 %v26494_v0  ;;  %22278 = vmatmul.mubr.bf16.gmra.mxu1 %v26506_v16 }
 0x845   : > { %28347 = vst [vmem:[#allocation159_spill] sm:$0xff] %v26511_v10  ;;  %v26515_v54 = vadd.f32 %v22083_v26, %v22003_v17  ;;  %22197 = vmatprep.mubr.bf16.mxu0 %v26492_v2  ;;  %22377 = vmatprep.mubr.bf16.mxu1 %v22959_v15 }
 0x846   : > { %v13993_v50 = vpop.f32.mrf.mxu0  ;;  %v14346_v47 = vpop.f32.mrf.mxu1 }
 0x847   : > { %28348 = vst [vmem:[#allocation160_spill] sm:$0xff] %v26515_v54  ;;  %v26518_v61 = vadd.f32 %v14330_v11, %v13993_v50  ;;  %v22962_v54 = vld [vmem:[%s23514_s26 + $0x28] sm:$0xff]  }
 0x848   : > { %v22004_v28 = vpop.f32.mrf.mxu0  ;;  %v22088_v43 = vpop.f32.mrf.mxu1 }
 0x849   : > { %28349 = vst [vmem:[#allocation161_spill] sm:$0xff] %v26518_v61  ;;  %v26521_v40 = vadd.f32 %v22084_v57, %v22004_v28 }
 0x84a   : > { %v13996_v10 = vpop.f32.mrf.mxu0  ;;  %v14349_v0 = vpop.f32.mrf.mxu1 }
 0x84b   : > { %28350 = vst [vmem:[#allocation162_spill] sm:$0xff] %v26521_v40  ;;  %v26524_v34 = vadd.f32 %v14333_v7, %v13996_v10  ;;  %v22963_v7 = vld [vmem:[%s23514_s26 + $0x30] sm:$0xff]  }
 0x84c   : > { %v22007_v26 = vpop.f32.mrf.mxu0  ;;  %v22091_v17 = vpop.f32.mrf.mxu1  ;;  %22198 = vmatmul.mubr.bf16.gmra.mxu0 %v26506_v16  ;;  %22378 = vmatmul.mubr.bf16.vlgmr.msra.gmra.mxu1 %v22960_v46 }
 0x84d   : > { %28351 = vst [vmem:[#allocation163_spill] sm:$0xff] %v26524_v34  ;;  %v26527_v15 = vadd.f32 %v22087_v35, %v22007_v26  ;;  %22297 = vmatprep.mubr.bf16.mxu0 %v26255_v22  ;;  %22381 = vmatprep.mubr.bf16.mxu1 %v22961_v62 }
 0x84e   : > { %v14009_v11 = vpop.f32.mrf.mxu0  ;;  %v14362_v57 = vpop.f32.mrf.mxu1 }
 0x84f   : > { %v26530_v28 = vadd.f32 %v14346_v47, %v14009_v11 }
 0x850   : > { %v22008_v50 = vpop.f32.mrf.mxu0  ;;  %v22092_v40 = vpop.f32.mrf.mxu1 }
 0x851   : > { %28352 = vst [vmem:[#allocation164_spill] sm:$0xff] %v26530_v28  ;;  %v26533_v61 = vadd.f32 %v22088_v43, %v22008_v50 }
 0x852   : > { %v14012_v10 = vpop.f32.mrf.mxu0  ;;  %v14365_v34 = vpop.f32.mrf.mxu1 }
 0x853   : > { %28353 = vst [vmem:[#allocation165_spill] sm:$0xff] %v26533_v61  ;;  %v26536_v46 = vadd.f32 %v14349_v0, %v14012_v10  ;;  %v22964_v61 = vld [vmem:[%s23514_s26 + $0x38] sm:$0xff]   ;;  %v22965_v0 = vld [vmem:[%s23514_s26 + $0x40] sm:$0xff]  }
 0x854   : > { %v22011_v35 = vpop.f32.mrf.mxu0  ;;  %v22095_v26 = vpop.f32.mrf.mxu1  ;;  %22298 = vmatmul.mubr.bf16.vlgmr.msra.gmra.mxu0 %v26267_v38  ;;  %22382 = vmatmul.mubr.bf16.gmra.mxu1 %v22962_v54 }
 0x855   : > { %28354 = vst [vmem:[#allocation166_spill] sm:$0xff] %v26536_v46  ;;  %v26539_v22 = vadd.f32 %v22091_v17, %v22011_v35  ;;  %22301 = vmatprep.mubr.bf16.mxu0 %v26271_v20  ;;  %22385 = vmatprep.mubr.bf16.mxu1 %v22963_v7 }
 0x856   : > { %v14025_v47 = vpop.f32.mrf.mxu0  ;;  %v14378_v43 = vpop.f32.mrf.mxu1 }
 0x857   : > { %28355 = vst [vmem:[#allocation167_spill] sm:$0xff] %v26539_v22  ;;  %v26542_v62 = vadd.f32 %v14362_v57, %v14025_v47 }
 0x858   : > { %v22012_v11 = vpop.f32.mrf.mxu0  ;;  %v22096_v50 = vpop.f32.mrf.mxu1 }
 0x859   : > { %v26545_v28 = vadd.f32 %v22092_v40, %v22012_v11  ;;  %v22966_v11 = vld [vmem:[%s23514_s26 + $0x48] sm:$0xff]  }
 0x85a   : > { %v14028_v10 = vpop.f32.mrf.mxu0  ;;  %v14381_v46 = vpop.f32.mrf.mxu1 }
 0x85b   : > { %28356 = vst [vmem:[#allocation168_spill] sm:$0xff] %v26545_v28  ;;  %v26548_v38 = vadd.f32 %v14365_v34, %v14028_v10  ;;  %v22967_v34 = vld [vmem:[%s23514_s26 + $0x50] sm:$0xff]  }
 0x85c   : > { %v22015_v54 = vpop.f32.mrf.mxu0  ;;  %v22099_v17 = vpop.f32.mrf.mxu1  ;;  %22302 = vmatmul.mubr.bf16.gmra.mxu0 %v26283_v25  ;;  %22386 = vmatmul.mubr.bf16.gmra.mxu1 %v22964_v61 }
 0x85d   : > { %28357 = vst [vmem:[#allocation169_spill] sm:$0xff] %v26548_v38  ;;  %v26551_v20 = vadd.f32 %v22095_v26, %v22015_v54  ;;  %22305 = vmatprep.mubr.bf16.mxu0 %v26287_v59  ;;  %22389 = vmatprep.mubr.bf16.mxu1 %v22965_v0 }
 0x85e   : > { %v14041_v57 = vpop.f32.mrf.mxu0  ;;  %v14394_v40 = vpop.f32.mrf.mxu1 }
 0x85f   : > { %28358 = vst [vmem:[#allocation170_spill] sm:$0xff] %v26551_v20  ;;  %v26554_v7 = vadd.f32 %v14378_v43, %v14041_v57  ;;  %v28543_v20 = vld [vmem:[#allocation133_spill] sm:$0xff] }
 0x860   : > { %v22016_v35 = vpop.f32.mrf.mxu0  ;;  %v22100_v47 = vpop.f32.mrf.mxu1 }
 0x861   : > { %28359 = vst [vmem:[#allocation171_spill] sm:$0xff] %v26554_v7  ;;  %v26557_v28 = vadd.f32 %v22096_v50, %v22016_v35  ;;  %v22968_v35 = vld [vmem:[%s23514_s26 + $0x58] sm:$0xff]  }
 0x862   : > { %v14044_v10 = vpop.f32.mrf.mxu0  ;;  %v14397_v38 = vpop.f32.mrf.mxu1 }
 0x863   : > { %28360 = vst [vmem:[#allocation172_spill] sm:$0xff] %v26557_v28  ;;  %v26560_v25 = vadd.f32 %v14381_v46, %v14044_v10  ;;  %v22969_v46 = vld [vmem:[%s23514_s26 + $0x60] sm:$0xff]  }
 0x864   : > { %v22019_v61 = vpop.f32.mrf.mxu0  ;;  %v22103_v26 = vpop.f32.mrf.mxu1  ;;  %22306 = vmatmul.mubr.bf16.gmra.mxu0 %v26300_v13  ;;  %22390 = vmatmul.mubr.bf16.gmra.mxu1 %v22966_v11 }
 0x865   : > { %28361 = vst [vmem:[#allocation173_spill] sm:$0xff] %v26560_v25  ;;  %v26563_v59 = vadd.f32 %v22099_v17, %v22019_v61  ;;  %22309 = vmatprep.mubr.bf16.mxu0 %v26304_v36  ;;  %22393 = vmatprep.mubr.bf16.mxu1 %v22967_v34 }
 0x866   : > { %v14057_v43 = vpop.f32.mrf.mxu0  ;;  %v14410_v50 = vpop.f32.mrf.mxu1 }
 0x867   : > { %28362 = vst [vmem:[#allocation174_spill] sm:$0xff] %v26563_v59  ;;  %v26566_v0 = vadd.f32 %v14394_v40, %v14057_v43 }
 0x868   : > { %v22020_v54 = vpop.f32.mrf.mxu0  ;;  %v22104_v57 = vpop.f32.mrf.mxu1 }
 0x869   : > { %28363 = vst [vmem:[#allocation175_spill] sm:$0xff] %v26566_v0  ;;  %v26569_v28 = vadd.f32 %v22100_v47, %v22020_v54  ;;  %v22970_v54 = vld [vmem:[%s23514_s26 + $0x68] sm:$0xff]  }
 0x86a   : > { %v14060_v10 = vpop.f32.mrf.mxu0  ;;  %v14413_v25 = vpop.f32.mrf.mxu1 }
 0x86b   : > { %28364 = vst [vmem:[#allocation176_spill] sm:$0xff] %v26569_v28  ;;  %v26572_v13 = vadd.f32 %v14397_v38, %v14060_v10  ;;  %v22971_v38 = vld [vmem:[%s23514_s26 + $0x70] sm:$0xff]  }
 0x86c   : > { %v22023_v17 = vpop.f32.mrf.mxu0  ;;  %v22107_v11 = vpop.f32.mrf.mxu1  ;;  %22310 = vmatmul.mubr.bf16.gmra.mxu0 %v26316_v3  ;;  %22394 = vmatmul.mubr.bf16.gmra.mxu1 %v22968_v35 }
 0x86d   : > { %28365 = vst [vmem:[#allocation177_spill] sm:$0xff] %v26572_v13  ;;  %v26575_v36 = vadd.f32 %v22103_v26, %v22023_v17  ;;  %22313 = vmatprep.mubr.bf16.mxu0 %v26320_v8  ;;  %22397 = vmatprep.mubr.bf16.mxu1 %v22969_v46 }
 0x86e   : > { %v14073_v40 = vpop.f32.mrf.mxu0  ;;  %v14426_v47 = vpop.f32.mrf.mxu1 }
 0x86f   : > { %28366 = vst [vmem:[#allocation178_spill] sm:$0xff] %v26575_v36  ;;  %v26578_v34 = vadd.f32 %v14410_v50, %v14073_v40 }
 0x870   : > { %v22024_v61 = vpop.f32.mrf.mxu0  ;;  %v22108_v43 = vpop.f32.mrf.mxu1 }
 0x871   : > { %28367 = vst [vmem:[#allocation179_spill] sm:$0xff] %v26578_v34  ;;  %v26581_v28 = vadd.f32 %v22104_v57, %v22024_v61  ;;  %v22972_v61 = vld [vmem:[%s23514_s26 + $0x78] sm:$0xff]  }
 0x872   : > { %v14076_v10 = vpop.f32.mrf.mxu0  ;;  %v14429_v13 = vpop.f32.mrf.mxu1 }
 0x873   : > { %28368 = vst [vmem:[#allocation180_spill] sm:$0xff] %v26581_v28  ;;  %v26584_v3 = vadd.f32 %v14413_v25, %v14076_v10  ;;  %v22973_v25 = vld [vmem:[%s23514_s26 + $0x80] sm:$0xff]  }
 0x874   : > { %v22027_v26 = vpop.f32.mrf.mxu0  ;;  %v22111_v35 = vpop.f32.mrf.mxu1  ;;  %22314 = vmatmul.mubr.bf16.gmra.mxu0 %v26332_v32  ;;  %22398 = vmatmul.mubr.bf16.gmra.mxu1 %v22970_v54 }
 0x875   : > { %28369 = vst [vmem:[#allocation181_spill] sm:$0xff] %v26584_v3  ;;  %v26587_v8 = vadd.f32 %v22107_v11, %v22027_v26  ;;  %22317 = vmatprep.mubr.bf16.mxu0 %v26336_v58  ;;  %22401 = vmatprep.mubr.bf16.mxu1 %v22971_v38 }
 0x876   : > { %v14089_v50 = vpop.f32.mrf.mxu0  ;;  %v14442_v57 = vpop.f32.mrf.mxu1 }
 0x877   : > { %28370 = vst [vmem:[#allocation182_spill] sm:$0xff] %v26587_v8  ;;  %v26590_v46 = vadd.f32 %v14426_v47, %v14089_v50 }
 0x878   : > { %v22028_v17 = vpop.f32.mrf.mxu0  ;;  %v22112_v40 = vpop.f32.mrf.mxu1 }
 0x879   : > { %28371 = vst [vmem:[#allocation183_spill] sm:$0xff] %v26590_v46  ;;  %v26593_v28 = vadd.f32 %v22108_v43, %v22028_v17  ;;  %v22974_v17 = vld [vmem:[%s23514_s26 + $0x88] sm:$0xff]  }
 0x87a   : > { %v14092_v10 = vpop.f32.mrf.mxu0  ;;  %v14445_v3 = vpop.f32.mrf.mxu1 }
 0x87b   : > { %28372 = vst [vmem:[#allocation184_spill] sm:$0xff] %v26593_v28  ;;  %v26596_v32 = vadd.f32 %v14429_v13, %v14092_v10  ;;  %v22975_v13 = vld [vmem:[%s23514_s26 + $0x90] sm:$0xff]  }
 0x87c   : > { %v22031_v11 = vpop.f32.mrf.mxu0  ;;  %v22115_v54 = vpop.f32.mrf.mxu1  ;;  %22318 = vmatmul.mubr.bf16.gmra.mxu0 %v26348_v30  ;;  %22402 = vmatmul.mubr.bf16.gmra.mxu1 %v22972_v61 }
 0x87d   : > { %28373 = vst [vmem:[#allocation185_spill] sm:$0xff] %v26596_v32  ;;  %v26599_v58 = vadd.f32 %v22111_v35, %v22031_v11  ;;  %22321 = vmatprep.mubr.bf16.mxu0 %v26352_v27  ;;  %22405 = vmatprep.mubr.bf16.mxu1 %v22973_v25 }
 0x87e   : > { %v14105_v47 = vpop.f32.mrf.mxu0  ;;  %v14458_v43 = vpop.f32.mrf.mxu1 }
 0x87f   : > { %28374 = vst [vmem:[#allocation186_spill] sm:$0xff] %v26599_v58  ;;  %v26602_v38 = vadd.f32 %v14442_v57, %v14105_v47 }
 0x880   : > { %v22032_v26 = vpop.f32.mrf.mxu0  ;;  %v22116_v50 = vpop.f32.mrf.mxu1 }
 0x881   : > { %28375 = vst [vmem:[#allocation187_spill] sm:$0xff] %v26602_v38  ;;  %v26605_v28 = vadd.f32 %v22112_v40, %v22032_v26  ;;  %v22976_v26 = vld [vmem:[%s23514_s26 + $0x98] sm:$0xff]  }
 0x882   : > { %v14108_v10 = vpop.f32.mrf.mxu0  ;;  %v14461_v32 = vpop.f32.mrf.mxu1 }
 0x883   : > { %28376 = vst [vmem:[#allocation188_spill] sm:$0xff] %v26605_v28  ;;  %v26608_v30 = vadd.f32 %v14445_v3, %v14108_v10  ;;  %v22977_v3 = vld [vmem:[%s23514_s26 + $0xa0] sm:$0xff]  }
 0x884   : > { %v22035_v35 = vpop.f32.mrf.mxu0  ;;  %v22119_v61 = vpop.f32.mrf.mxu1  ;;  %22322 = vmatmul.mubr.bf16.gmra.mxu0 %v26364_v55  ;;  %22406 = vmatmul.mubr.bf16.gmra.mxu1 %v22974_v17 }
 0x885   : > { %28377 = vst [vmem:[#allocation189_spill] sm:$0xff] %v26608_v30  ;;  %v26611_v27 = vadd.f32 %v22115_v54, %v22035_v35  ;;  %22325 = vmatprep.mubr.bf16.mxu0 %v26368_v49  ;;  %22409 = vmatprep.mubr.bf16.mxu1 %v22975_v13 }
 0x886   : > { %v14121_v57 = vpop.f32.mrf.mxu0  ;;  %v14474_v40 = vpop.f32.mrf.mxu1 }
 0x887   : > { %28378 = vst [vmem:[#allocation190_spill] sm:$0xff] %v26611_v27  ;;  %v26614_v25 = vadd.f32 %v14458_v43, %v14121_v57 }
 0x888   : > { %v22036_v11 = vpop.f32.mrf.mxu0  ;;  %v22120_v47 = vpop.f32.mrf.mxu1 }
 0x889   : > { %28379 = vst [vmem:[#allocation191_spill] sm:$0xff] %v26614_v25  ;;  %v26617_v28 = vadd.f32 %v22116_v50, %v22036_v11  ;;  %v28427_v25 = vld [vmem:[#allocation154_spill] sm:$0xff] }
 0x88a   : > { %v14124_v10 = vpop.f32.mrf.mxu0  ;;  %v14477_v30 = vpop.f32.mrf.mxu1 }
 0x88b   : > { %28380 = vst [vmem:[#allocation192_spill] sm:$0xff] %v26617_v28  ;;  %v26620_v55 = vadd.f32 %v14461_v32, %v14124_v10  ;;  %v22978_v10 = vld [vmem:[%s23514_s26 + $0xa8] sm:$0xff]  }
 0x88c   : > { %v22039_v54 = vpop.f32.mrf.mxu0  ;;  %v22219_v17 = vpop.f32.mrf.mxu1  ;;  %22326 = vmatmul.mubr.bf16.gmra.mxu0 %v26380_v23  ;;  %22410 = vmatmul.mubr.bf16.gmra.mxu1 %v22976_v26 }
 0x88d   : > { %28381 = vst [vmem:[#allocation193_spill] sm:$0xff] %v26620_v55  ;;  %v26623_v49 = vadd.f32 %v22119_v61, %v22039_v54  ;;  %v15519_v43 = vadd.f32 %v22219_v17, %v26203_v56  ;;  %22329 = vmatprep.mubr.bf16.mxu0 %v26384_v60  ;;  %22413 = vmatprep.mubr.bf16.mxu1 %v22977_v3  ;;  %v22979_v61 = vld [vmem:[%s23514_s26 + $0xb0] sm:$0xff]  }
 0x88e   : > { %v14137_v50 = vpop.f32.mrf.mxu0  ;;  %v15262_v13 = vpop.f32.mrf.mxu1  ;;  %v12861_v56 = vadd.f32 %v26013_v24, %v26025_v41 }
 0x88f   : > { %28382 = vst [vmem:[#allocation194_spill] sm:$0xff] %v26623_v49  ;;  %v26627_v35 = vadd.f32 %v14474_v40, %v14137_v50  ;;  %v15517_v32 = vadd.f32 %v15262_v13, %v26205_v21  ;;  %v16137_v3 = vrot.slane %v15519_v43, 1  ;;  %v12853_v21 = vadd.f32 %v26017_v1, %v26031_v51 }
 0x890   : > { %v22040_v57 = vpop.f32.mrf.mxu0  ;;  %v22220_v11 = vpop.f32.mrf.mxu1  ;;  %v12864_v43 = vadd.f32 %v26021_v37, %v26033_v18 }
 0x891   : > { %28383 = vst [vmem:[#allocation195_spill] sm:$0xff] %v26627_v35  ;;  %v26631_v55 = vadd.f32 %v22120_v47, %v22040_v57  ;;  %v15520_v23 = vadd.f32 %v22220_v11, %v26207_v33  ;;  %v16134_v50 = vrot.slane %v15517_v32, 1  ;;  %v26645_v33 = vld [vmem:[%s27695_s6] ss:$0 sm:$0xff] }
 0x892   : > { %v14140_v26 = vpop.f32.mrf.mxu0  ;;  %v15265_v60 = vpop.f32.mrf.mxu1 }
 0x893   : > { %28384 = vst [vmem:[#allocation196_spill] sm:$0xff] %v26631_v55  ;;  %v16139_v54 = vrot.slane %v15520_v23, 1  ;;  %v26637_v17 = vadd.f32 %v14477_v30, %v14140_v26  ;;  %v15518_v40 = vadd.f32 %v15265_v60, %v26209_v48 }
 0x894   : > { %v22139_v47 = vpop.f32.mrf.mxu0  ;;  %v22223_v13 = vpop.f32.mrf.mxu1  ;;  %22330 = vmatmul.mubr.bf16.gmra.mxu0 %v26396_v42  ;;  %22414 = vmatmul.mubr.bf16.gmra.mxu1 %v22978_v10 }
 0x895   : > { %28385 = vst [vmem:[#allocation197_spill] sm:$0xff] %v26637_v17  ;;  %v16135_v24 = vrot.slane %v15518_v40, 1  ;;  %v15101_v41 = vadd.f32 %v22139_v47, %v12861_v56  ;;  %v16140_v30 = vsel %vm5363_vm0, %v16137_v3, %v16139_v54  ;;  %v15523_v48 = vadd.f32 %v22223_v13, %v26211_v63  ;;  %22333 = vmatprep.mubr.bf16.mxu0 %v26400_v31  ;;  %v22980_v56 = vld [vmem:[%s23514_s26 + $0xb8] sm:$0xff]   ;;  %v22981_v47 = vld [vmem:[%s23514_s26 + $0xc0] sm:$0xff]  }
 0x896   : > { %22417 = vmatprep.mubr.bf16.mxu1 %v22979_v61  ;;  %v14844_v1 = vpop.f32.mrf.mxu0  ;;  %v15278_v51 = vpop.f32.mrf.mxu1 }
 0x897   : > { %v16008_v32 = vadd.f32 %v26645_v33, %v15101_v41  ;;  %v15099_v42 = vadd.f32 %v14844_v1, %v12853_v21  ;;  %v16136_v57 = vsel %vm5363_vm0, %v16134_v50, %v16135_v24  ;;  %v15521_v11 = vadd.f32 %v15278_v51, %v26213_v39 }
 0x898   : > { %v22140_v10 = vpop.f32.mrf.mxu0  ;;  %v22224_v23 = vpop.f32.mrf.mxu1  ;;  %v16138_v63 = vsel %vm5363_vm0, %v16135_v24, %v16137_v3  ;;  %v16145_v18 = vrot.slane %v15523_v48, 1 }
 0x899   : > { %v26658_v31 = vadd.f32 %v16140_v30, %v16008_v32  ;;  %v16006_v61 = vadd.f32 %v26645_v33, %v15099_v42  ;;  %v15102_v26 = vadd.f32 %v22140_v10, %v12864_v43  ;;  %v15524_v37 = vadd.f32 %v22224_v23, %v26215_v6 }
 0x89a   : > { %v16141_v60 = vrot.slane %v15521_v11, 1  ;;  %v14847_v40 = vpop.f32.mrf.mxu0  ;;  %v15281_v21 = vpop.f32.mrf.mxu1 }
 0x89b   : > { %v26663_v50 = vadd.f32 %v16136_v57, %v16006_v61  ;;  %v16009_v39 = vadd.f32 %v26645_v33, %v15102_v26  ;;  %v16147_v13 = vrot.slane %v15524_v37, 1  ;;  %v15100_v3 = vadd.f32 %v14847_v40, %v26035_v5 }
 0x89c   : > { %v16142_v24 = vsel %vm5363_vm0, %v16139_v54, %v16141_v60  ;;  %v15522_v41 = vadd.f32 %v15281_v21, %v26217_v9  ;;  %v22143_v30 = vpop.f32.mrf.mxu0  ;;  %v22227_v1 = vpop.f32.mrf.mxu1  ;;  %22334 = vmatmul.mubr.bf16.gmra.mxu0 %v26412_v52  ;;  %22418 = vmatmul.mubr.bf16.gmra.mxu1 %v22980_v56  ;;  %v22982_v56 = vld [vmem:[%s23514_s26 + $0xc8] sm:$0xff]   ;;  %v22983_v21 = vld [vmem:[%s23514_s26 + $0xd0] sm:$0xff]  }
 0x89d   : > { %v26670_v6 = vadd.f32 %v16142_v24, %v16009_v39  ;;  %v16007_v48 = vadd.f32 %v26645_v33, %v15100_v3  ;;  %v15105_v51 = vadd.f32 %v22143_v30, %v26039_v53  ;;  %v16148_v43 = vsel %vm5363_vm0, %v16145_v18, %v16147_v13  ;;  %22337 = vmatprep.mubr.bf16.mxu0 %v26416_v44  ;;  %v28386_v24 = vld [vmem:[#allocation53_spill] sm:$0xff] }
 0x89e   : > { %v16143_v5 = vrot.slane %v15522_v41, 1  ;;  %v15527_v54 = vadd.f32 %v22227_v1, %v26219_v14  ;;  %v14860_v9 = vpop.f32.mrf.mxu0  ;;  %v15294_v32 = vpop.f32.mrf.mxu1  ;;  %22421 = vmatprep.mubr.bf16.mxu1 %v22981_v47 }
 0x89f   : > { %v26677_v42 = vadd.f32 %v16138_v63, %v16007_v48  ;;  %v16012_v52 = vadd.f32 %v26645_v33, %v15105_v51  ;;  %v15103_v57 = vadd.f32 %v14860_v9, %v26043_v12  ;;  %v15525_v53 = vadd.f32 %v15294_v32, %v26221_v4  ;;  %v28388_v51 = vld [vmem:[#allocation57_spill] sm:$0xff]  ;;  %v28390_v9 = vld [vmem:[#allocation132_spill] sm:$0xff] }
 0x8a0   : > { %v16144_v11 = vsel %vm5363_vm0, %v16141_v60, %v16143_v5  ;;  %v22144_v10 = vpop.f32.mrf.mxu0  ;;  %v22228_v23 = vpop.f32.mrf.mxu1  ;;  %v16146_v44 = vsel %vm5363_vm0, %v16143_v5, %v16145_v18  ;;  %v16153_v39 = vrot.slane %v15527_v54, 1  ;;  %v28389_v5 = vld [vmem:[#allocation76_spill] sm:$0xff] }
 0x8a1   : > { %v26685_v14 = vadd.f32 %v16148_v43, %v16012_v52  ;;  %v16010_v61 = vadd.f32 %v26645_v33, %v15103_v57  ;;  %v16149_v63 = vrot.slane %v15525_v53, 1  ;;  %v15106_v26 = vadd.f32 %v22144_v10, %v26045_v45  ;;  %v28387_v45 = vld [vmem:[#allocation56_spill] sm:$0xff] }
 0x8a2   : > { %v15528_v37 = vadd.f32 %v22228_v23, %v26223_v29  ;;  %v14863_v40 = vpop.f32.mrf.mxu0  ;;  %v15297_v12 = vpop.f32.mrf.mxu1 }
 0x8a3   : > { %v26691_v4 = vadd.f32 %v16144_v11, %v16010_v61  ;;  %v16013_v60 = vadd.f32 %v26645_v33, %v15106_v26  ;;  %v16150_v47 = vsel %vm5363_vm0, %v16147_v13, %v16149_v63  ;;  %v15104_v18 = vadd.f32 %v14863_v40, %v26047_v19  ;;  %v28391_v11 = vld [vmem:[#allocation92_spill] sm:$0xff] }
 0x8a4   : > { %v16155_v3 = vrot.slane %v15528_v37, 1  ;;  %v15526_v41 = vadd.f32 %v15297_v12, %v28386_v24  ;;  %v22147_v30 = vpop.f32.mrf.mxu0  ;;  %v22231_v1 = vpop.f32.mrf.mxu1  ;;  %22338 = vmatmul.mubr.bf16.gmra.mxu0 %v28387_v45  ;;  %22422 = vmatmul.mubr.bf16.gmra.mxu1 %v22982_v56  ;;  %v28392_v56 = vld [vmem:[#allocation54_spill] sm:$0xff]  ;;  %v22984_v12 = vld [vmem:[%s23514_s26 + $0xd8] sm:$0xff]  }
 0x8a5   : > { %v26698_v29 = vadd.f32 %v16150_v47, %v16013_v60  ;;  %v16011_v48 = vadd.f32 %v26645_v33, %v15104_v18  ;;  %v15109_v43 = vadd.f32 %v22147_v30, %v28388_v51  ;;  %v15531_v13 = vadd.f32 %v22231_v1, %v28389_v5  ;;  %22341 = vmatprep.mubr.bf16.mxu0 %v28390_v9  ;;  %v28394_v18 = vld [vmem:[#allocation77_spill] sm:$0xff] }
 0x8a6   : > { %v16151_v19 = vrot.slane %v15526_v41, 1  ;;  %v16156_v54 = vsel %vm5363_vm0, %v16153_v39, %v16155_v3  ;;  %v14876_v32 = vpop.f32.mrf.mxu0  ;;  %v15310_v52 = vpop.f32.mrf.mxu1  ;;  %22425 = vmatprep.mubr.bf16.mxu1 %v22983_v21 }
 0x8a7   : > { %v26705_v57 = vadd.f32 %v16146_v44, %v16011_v48  ;;  %v16016_v53 = vadd.f32 %v26645_v33, %v15109_v43  ;;  %v15107_v10 = vadd.f32 %v14876_v32, %v28391_v11  ;;  %v15529_v61 = vadd.f32 %v15310_v52, %v28392_v56  ;;  %v28393_v44 = vld [vmem:[#allocation19_spill] sm:$0xff] }
 0x8a8   : > { %v16152_v23 = vsel %vm5363_vm0, %v16149_v63, %v16151_v19  ;;  %v22148_v26 = vpop.f32.mrf.mxu0  ;;  %v22232_v37 = vpop.f32.mrf.mxu1  ;;  %v16154_v40 = vsel %vm5363_vm0, %v16151_v19, %v16153_v39  ;;  %v16161_v41 = vrot.slane %v15531_v13, 1  ;;  %v22985_v63 = vld [vmem:[%s23514_s26 + $0xe0] sm:$0xff]   ;;  %v28395_v39 = vld [vmem:[#allocation29_spill] sm:$0xff]  ;;  %v28396_v19 = vld [vmem:[#allocation27_spill] sm:$0xff] }
 0x8a9   : > { %v26713_v60 = vadd.f32 %v16156_v54, %v16016_v53  ;;  %v16014_v21 = vadd.f32 %v26645_v33, %v15107_v10  ;;  %v15110_v47 = vadd.f32 %v22148_v26, %v28393_v44  ;;  %v15532_v24 = vadd.f32 %v22232_v37, %v28394_v18  ;;  %v28397_v53 = vld [vmem:[#allocation136_spill] sm:$0xff]  ;;  %v28398_v10 = vld [vmem:[#allocation43_spill] sm:$0xff]  ;;  %v28401_v18 = vld [vmem:[#allocation58_spill] sm:$0xff] }
 0x8aa   : > { %v16157_v30 = vrot.slane %v15529_v61, 1  ;;  %v14879_v1 = vpop.f32.mrf.mxu0  ;;  %v15313_v45 = vpop.f32.mrf.mxu1  ;;  %v28399_v61 = vld [vmem:[#allocation138_spill] sm:$0xff] }
 0x8ab   : > { %v26719_v48 = vadd.f32 %v16152_v23, %v16014_v21  ;;  %v16017_v51 = vadd.f32 %v26645_v33, %v15110_v47  ;;  %v16163_v43 = vrot.slane %v15532_v24, 1  ;;  %v15108_v5 = vadd.f32 %v14879_v1, %v28395_v39  ;;  %v28402_v1 = vld [vmem:[#allocation78_spill] sm:$0xff] }
 0x8ac   : > { %v16158_v9 = vsel %vm5363_vm0, %v16155_v3, %v16157_v30  ;;  %v15530_v54 = vadd.f32 %v15313_v45, %v28396_v19  ;;  %v22151_v32 = vpop.f32.mrf.mxu0  ;;  %v22235_v52 = vpop.f32.mrf.mxu1  ;;  %22342 = vmatmul.mubr.bf16.gmra.mxu0 %v28397_v53  ;;  %22426 = vmatmul.mubr.bf16.gmra.mxu1 %v22984_v12  ;;  %v28400_v3 = vld [vmem:[#allocation55_spill] sm:$0xff] }
 0x8ad   : > { %v26726_v13 = vadd.f32 %v16158_v9, %v16017_v51  ;;  %v16015_v11 = vadd.f32 %v26645_v33, %v15108_v5  ;;  %v15113_v23 = vadd.f32 %v22151_v32, %v28398_v10  ;;  %v16164_v56 = vsel %vm5363_vm0, %v16161_v41, %v16163_v43  ;;  %22345 = vmatprep.mubr.bf16.mxu0 %v28399_v61  ;;  %v22986_v19 = vld [vmem:[%s23514_s26 + $0xe8] sm:$0xff]   ;;  %v28403_v32 = vld [vmem:[#allocation97_spill] sm:$0xff]  ;;  %v22987_v61 = vld [vmem:[%s23514_s26 + $0xf0] sm:$0xff]  }
 0x8ae   : > { %v16159_v26 = vrot.slane %v15530_v54, 1  ;;  %v15535_v37 = vadd.f32 %v22235_v52, %v28400_v3  ;;  %v14892_v21 = vpop.f32.mrf.mxu0  ;;  %v15326_v44 = vpop.f32.mrf.mxu1  ;;  %22429 = vmatprep.mubr.bf16.mxu1 %v22985_v63  ;;  %v28404_v53 = vld [vmem:[#allocation79_spill] sm:$0xff] }
 0x8af   : > { %v26733_v47 = vadd.f32 %v16154_v40, %v16015_v11  ;;  %v16020_v12 = vadd.f32 %v26645_v33, %v15113_v23  ;;  %v15111_v24 = vadd.f32 %v14892_v21, %v28401_v18  ;;  %v15533_v45 = vadd.f32 %v15326_v44, %v28402_v1 }
 0x8b0   : > { %v16160_v51 = vsel %vm5363_vm0, %v16157_v30, %v16159_v26  ;;  %v22152_v39 = vpop.f32.mrf.mxu0  ;;  %v22236_v5 = vpop.f32.mrf.mxu1  ;;  %v16162_v9 = vsel %vm5363_vm0, %v16159_v26, %v16161_v41  ;;  %v28405_v41 = vld [vmem:[#allocation30_spill] sm:$0xff] }
 0x8b1   : > { %v26741_v54 = vadd.f32 %v16164_v56, %v16020_v12  ;;  %v16018_v63 = vadd.f32 %v26645_v33, %v15111_v24  ;;  %v16165_v40 = vrot.slane %v15533_v45, 1  ;;  %v15114_v52 = vadd.f32 %v22152_v39, %v28403_v32  ;;  %v28406_v12 = vld [vmem:[#allocation80_spill] sm:$0xff]  ;;  %v28407_v45 = vld [vmem:[#allocation142_spill] sm:$0xff]  ;;  %v28409_v32 = vld [vmem:[#allocation81_spill] sm:$0xff] }
 0x8b2   : > { %v15536_v11 = vadd.f32 %v22236_v5, %v28404_v53  ;;  %v14895_v10 = vpop.f32.mrf.mxu0  ;;  %v15329_v23 = vpop.f32.mrf.mxu1  ;;  %v16169_v56 = vrot.slane %v15535_v37, 1  ;;  %v28408_v5 = vld [vmem:[#allocation94_spill] sm:$0xff] }
 0x8b3   : > { %v26747_v3 = vadd.f32 %v16160_v51, %v16018_v63  ;;  %v16021_v30 = vadd.f32 %v26645_v33, %v15114_v52  ;;  %v16166_v21 = vsel %vm5363_vm0, %v16163_v43, %v16165_v40  ;;  %v15112_v26 = vadd.f32 %v14895_v10, %v28405_v41  ;;  %v28410_v52 = vld [vmem:[#allocation144_spill] sm:$0xff] }
 0x8b4   : > { %v16171_v44 = vrot.slane %v15536_v11, 1  ;;  %v15534_v18 = vadd.f32 %v15329_v23, %v28406_v12  ;;  %v22155_v24 = vpop.f32.mrf.mxu0  ;;  %v22239_v1 = vpop.f32.mrf.mxu1  ;;  %22346 = vmatmul.mubr.bf16.gmra.mxu0 %v28407_v45  ;;  %22430 = vmatmul.mubr.bf16.gmra.mxu1 %v22986_v19  ;;  %v22988_v45 = vld [vmem:[%s23514_s26 + $0xf8] sm:$0xff]  }
 0x8b5   : > { %v26754_v39 = vadd.f32 %v16166_v21, %v16021_v30  ;;  %v16019_v51 = vadd.f32 %v26645_v33, %v15112_v26  ;;  %v15117_v63 = vadd.f32 %v22155_v24, %v28408_v5  ;;  %v15539_v43 = vadd.f32 %v22239_v1, %v28409_v32  ;;  %22349 = vmatprep.mubr.bf16.mxu0 %v28410_v52  ;;  %v28411_v30 = vld [vmem:[#allocation20_spill] sm:$0xff]  ;;  %v28412_v26 = vld [vmem:[#allocation82_spill] sm:$0xff]  ;;  %v28414_v32 = vld [vmem:[#allocation83_spill] sm:$0xff] }
 0x8b6   : > { %v16167_v37 = vrot.slane %v15534_v18, 1  ;;  %v16172_v53 = vsel %vm5363_vm0, %v16169_v56, %v16171_v44  ;;  %v14908_v11 = vpop.f32.mrf.mxu0  ;;  %v15342_v10 = vpop.f32.mrf.mxu1  ;;  %22433 = vmatprep.mubr.bf16.mxu1 %v22987_v61 }
 0x8b7   : > { %v26761_v23 = vadd.f32 %v16162_v9, %v16019_v51  ;;  %v16024_v19 = vadd.f32 %v26645_v33, %v15117_v63  ;;  %v15115_v21 = vadd.f32 %v14908_v11, %v28411_v30  ;;  %v15537_v12 = vadd.f32 %v15342_v10, %v28412_v26  ;;  %v28413_v9 = vld [vmem:[#allocation59_spill] sm:$0xff] }
 0x8b8   : > { %v16168_v41 = vsel %vm5363_vm0, %v16165_v40, %v16167_v37  ;;  %v22156_v24 = vpop.f32.mrf.mxu0  ;;  %v22240_v1 = vpop.f32.mrf.mxu1  ;;  %v16170_v18 = vsel %vm5363_vm0, %v16167_v37, %v16169_v56  ;;  %v16177_v52 = vrot.slane %v15539_v43, 1  ;;  %v22989_v40 = vld [vmem:[%s23514_s26 + $0x100] sm:$0xff]   ;;  %v28415_v56 = vld [vmem:[#allocation44_spill] sm:$0xff] }
 0x8b9   : > { %v26769_v5 = vadd.f32 %v16172_v53, %v16024_v19  ;;  %v16022_v61 = vadd.f32 %v26645_v33, %v15115_v21  ;;  %v15118_v51 = vadd.f32 %v22156_v24, %v28413_v9  ;;  %v15540_v63 = vadd.f32 %v22240_v1, %v28414_v32  ;;  %v28416_v19 = vld [vmem:[#allocation90_spill] sm:$0xff]  ;;  %v28417_v9 = vld [vmem:[#allocation148_spill] sm:$0xff] }
 0x8ba   : > { %v16173_v17 = vrot.slane %v15537_v12, 1  ;;  %v14911_v11 = vpop.f32.mrf.mxu0  ;;  %v15345_v30 = vpop.f32.mrf.mxu1 }
 0x8bb   : > { %v26775_v55 = vadd.f32 %v16168_v41, %v16022_v61  ;;  %v16025_v10 = vadd.f32 %v26645_v33, %v15118_v51  ;;  %v16179_v26 = vrot.slane %v15540_v63, 1  ;;  %v15116_v37 = vadd.f32 %v14911_v11, %v28415_v56  ;;  %v28418_v41 = vld [vmem:[#allocation60_spill] sm:$0xff]  ;;  %v28419_v51 = vld [vmem:[#allocation150_spill] sm:$0xff] }
 0x8bc   : > { %v16174_v53 = vsel %vm5363_vm0, %v16171_v44, %v16173_v17  ;;  %v15538_v21 = vadd.f32 %v15345_v30, %v28416_v19  ;;  %v22159_v49 = vpop.f32.mrf.mxu0  ;;  %v22243_v24 = vpop.f32.mrf.mxu1  ;;  %22350 = vmatmul.mubr.bf16.gmra.mxu0 %v28417_v9  ;;  %22434 = vmatmul.mubr.bf16.gmra.mxu1 %v22988_v45  ;;  %v28420_v44 = vld [vmem:[#allocation84_spill] sm:$0xff] }
 0x8bd   : > { %v26782_v43 = vadd.f32 %v16174_v53, %v16025_v10  ;;  %v16023_v12 = vadd.f32 %v26645_v33, %v15116_v37  ;;  %v15121_v1 = vadd.f32 %v22159_v49, %v28418_v41  ;;  %v16180_v61 = vsel %vm5363_vm0, %v16177_v52, %v16179_v26  ;;  %22353 = vmatprep.mubr.bf16.mxu0 %v28419_v51  ;;  %v28421_v10 = vld [vmem:[#allocation103_spill] sm:$0xff]  ;;  %v28422_v37 = vld [vmem:[#allocation85_spill] sm:$0xff] }
 0x8be   : > { %v16175_v32 = vrot.slane %v15538_v21, 1  ;;  %v15543_v63 = vadd.f32 %v22243_v24, %v28420_v44  ;;  %v14924_v11 = vpop.f32.mrf.mxu0  ;;  %v15358_v30 = vpop.f32.mrf.mxu1  ;;  %22437 = vmatprep.mubr.bf16.mxu1 %v22989_v40  ;;  %v22990_v21 = vld [vmem:[%s23514_s26 + $0x108] sm:$0xff]  }
 0x8bf   : > { %v26789_v56 = vadd.f32 %v16170_v18, %v16023_v12  ;;  %v16028_v45 = vadd.f32 %v26645_v33, %v15121_v1  ;;  %v15119_v53 = vadd.f32 %v14924_v11, %v28421_v10  ;;  %v15541_v19 = vadd.f32 %v15358_v30, %v28422_v37  ;;  %v28423_v18 = vld [vmem:[#allocation31_spill] sm:$0xff] }
 0x8c0   : > { %v16176_v49 = vsel %vm5363_vm0, %v16173_v17, %v16175_v32  ;;  %v22160_v9 = vpop.f32.mrf.mxu0  ;;  %v22244_v41 = vpop.f32.mrf.mxu1  ;;  %v16178_v51 = vsel %vm5363_vm0, %v16175_v32, %v16177_v52  ;;  %v28424_v44 = vld [vmem:[#allocation91_spill] sm:$0xff]  ;;  %v16185_v32 = vrot.slane %v15543_v63, 1 }
 0x8c1   : > { %v26797_v35 = vadd.f32 %v16180_v61, %v16028_v45  ;;  %v16026_v24 = vadd.f32 %v26645_v33, %v15119_v53  ;;  %v16181_v40 = vrot.slane %v15541_v19, 1  ;;  %v15122_v12 = vadd.f32 %v22160_v9, %v28423_v18  ;;  %v28425_v37 = vld [vmem:[#allocation95_spill] sm:$0xff]  ;;  %v28429_v18 = vld [vmem:[#allocation88_spill] sm:$0xff] }
 0x8c2   : > { %v15544_v1 = vadd.f32 %v22244_v41, %v28424_v44  ;;  %v14927_v28 = vpop.f32.mrf.mxu0  ;;  %v15361_v11 = vpop.f32.mrf.mxu1  ;;  %v28426_v45 = vld [vmem:[#allocation87_spill] sm:$0xff]  ;;  %v28428_v41 = vld [vmem:[#allocation61_spill] sm:$0xff] }
 0x8c3   : > { %v26802_v10 = vadd.f32 %v16176_v49, %v16026_v24  ;;  %v16029_v17 = vadd.f32 %v26645_v33, %v15122_v12  ;;  %v16182_v30 = vsel %vm5363_vm0, %v16179_v26, %v16181_v40  ;;  %v15120_v52 = vadd.f32 %v14927_v28, %v28425_v37 }
 0x8c4   : > { %v16187_v61 = vrot.slane %v15544_v1, 1  ;;  %v15542_v27 = vadd.f32 %v15361_v11, %v28426_v45  ;;  %v22163_v53 = vpop.f32.mrf.mxu0  ;;  %v22247_v19 = vpop.f32.mrf.mxu1  ;;  %22354 = vmatmul.mubr.bf16.gmra.mxu0 %v28427_v25  ;;  %22438 = vmatmul.mubr.bf16.gmra.mxu1 %v22990_v21  ;;  %v28430_v21 = vld [vmem:[#allocation45_spill] sm:$0xff] }
 0x8c5   : > { %v26809_v9 = vadd.f32 %v16182_v30, %v16029_v17  ;;  %v16027_v49 = vadd.f32 %v26645_v33, %v15120_v52  ;;  %v15125_v24 = vadd.f32 %v22163_v53, %v28428_v41  ;;  %v15547_v12 = vadd.f32 %v22247_v19, %v28429_v18  ;;  %22357 = vmatprep.mubr.bf16.mxu0 %v26492_v2  ;;  %v28431_v30 = vld [vmem:[#allocation93_spill] sm:$0xff]  ;;  %v28432_v19 = vld [vmem:[#allocation32_spill] sm:$0xff] }
 0x8c6   : > { %v16183_v28 = vrot.slane %v15542_v27, 1  ;;  %v16188_v26 = vsel %vm5363_vm0, %v16185_v32, %v16187_v61  ;;  %v14940_v63 = vpop.f32.mrf.mxu0  ;;  %v15374_v44 = vpop.f32.mrf.mxu1 }
 0x8c7   : > { %v26816_v1 = vadd.f32 %v16178_v51, %v16027_v49  ;;  %v16032_v25 = vadd.f32 %v26645_v33, %v15125_v24  ;;  %v15123_v11 = vadd.f32 %v14940_v63, %v28430_v21  ;;  %v15545_v37 = vadd.f32 %v15374_v44, %v28431_v30  ;;  %v28433_v51 = vld [vmem:[#allocation98_spill] sm:$0xff] }
 0x8c8   : > { %v16184_v17 = vsel %vm5363_vm0, %v16181_v40, %v16183_v28  ;;  %v22164_v52 = vpop.f32.mrf.mxu0  ;;  %v22248_v45 = vpop.f32.mrf.mxu1  ;;  %v16186_v53 = vsel %vm5363_vm0, %v16183_v28, %v16185_v32  ;;  %v16193_v18 = vrot.slane %v15547_v12, 1  ;;  %v28434_v30 = vld [vmem:[#allocation106_spill] sm:$0xff]  ;;  %v28435_v28 = vld [vmem:[#allocation96_spill] sm:$0xff] }
 0x8c9   : > { %v26823_v2 = vadd.f32 %v16188_v26, %v16032_v25  ;;  %v16030_v27 = vadd.f32 %v26645_v33, %v15123_v11  ;;  %v15126_v41 = vadd.f32 %v22164_v52, %v28432_v19  ;;  %v15548_v49 = vadd.f32 %v22248_v45, %v28433_v51  ;;  %v28437_v19 = vld [vmem:[#allocation101_spill] sm:$0xff] }
 0x8ca   : > { %v16189_v24 = vrot.slane %v15545_v37, 1  ;;  %v14943_v38 = vpop.f32.mrf.mxu0  ;;  %v15377_v63 = vpop.f32.mrf.mxu1  ;;  %v28436_v37 = vld [vmem:[#allocation62_spill] sm:$0xff] }
 0x8cb   : > { %v26828_v21 = vadd.f32 %v16184_v17, %v16030_v27  ;;  %v16033_v40 = vadd.f32 %v26645_v33, %v15126_v41  ;;  %v16195_v44 = vrot.slane %v15548_v49, 1  ;;  %v15124_v58 = vadd.f32 %v14943_v38, %v28434_v30 }
 0x8cc   : > { %v16190_v32 = vsel %vm5363_vm0, %v16187_v61, %v16189_v24  ;;  %v15546_v26 = vadd.f32 %v15377_v63, %v28435_v28  ;;  %v22167_v25 = vpop.f32.mrf.mxu0  ;;  %v22251_v11 = vpop.f32.mrf.mxu1  ;;  %22358 = vmatmul.mubr.bf16.gmra.mxu0 %v26506_v16  ;;  %v28438_v63 = vld [vmem:[#allocation21_spill] sm:$0xff]  ;;  %v28439_v16 = vld [vmem:[#allocation102_spill] sm:$0xff] }
 0x8cd   : > { %v26835_v52 = vadd.f32 %v16190_v32, %v16033_v40  ;;  %v16031_v12 = vadd.f32 %v26645_v33, %v15124_v58  ;;  %v15129_v17 = vadd.f32 %v22167_v25, %v28436_v37  ;;  %v16196_v45 = vsel %vm5363_vm0, %v16193_v18, %v16195_v44 }
 0x8ce   : > { %v16191_v27 = vrot.slane %v15546_v26, 1  ;;  %v15551_v41 = vadd.f32 %v22251_v11, %v28437_v19  ;;  %v14956_v38 = vpop.f32.mrf.mxu0  ;;  %v15390_v51 = vpop.f32.mrf.mxu1  ;;  %v28440_v19 = vld [vmem:[#allocation63_spill] sm:$0xff] }
 0x8cf   : > { %v26841_v61 = vadd.f32 %v16186_v53, %v16031_v12  ;;  %v16036_v49 = vadd.f32 %v26645_v33, %v15129_v17  ;;  %v15127_v30 = vadd.f32 %v14956_v38, %v28438_v63  ;;  %v15549_v40 = vadd.f32 %v15390_v51, %v28439_v16  ;;  %v28441_v12 = vld [vmem:[#allocation107_spill] sm:$0xff]  ;;  %v28443_v63 = vld [vmem:[#allocation46_spill] sm:$0xff] }
 0x8d0   : > { %v16192_v32 = vsel %vm5363_vm0, %v16189_v24, %v16191_v27  ;;  %v22168_v58 = vpop.f32.mrf.mxu0  ;;  %v22252_v28 = vpop.f32.mrf.mxu1  ;;  %v16194_v25 = vsel %vm5363_vm0, %v16191_v27, %v16193_v18  ;;  %v16201_v18 = vrot.slane %v15551_v41, 1  ;;  %v28444_v27 = vld [vmem:[#allocation99_spill] sm:$0xff] }
 0x8d1   : > { %v26848_v37 = vadd.f32 %v16196_v45, %v16036_v49  ;;  %v16034_v26 = vadd.f32 %v26645_v33, %v15127_v30  ;;  %v16197_v11 = vrot.slane %v15549_v40, 1  ;;  %v15130_v53 = vadd.f32 %v22168_v58, %v28440_v19 }
 0x8d2   : > { %v15552_v8 = vadd.f32 %v22252_v28, %v28441_v12  ;;  %v14959_v17 = vpop.f32.mrf.mxu0  ;;  %v15393_v46 = vpop.f32.mrf.mxu1  ;;  %v28446_v28 = vld [vmem:[#allocation33_spill] sm:$0xff] }
 0x8d3   : > { %v26853_v38 = vadd.f32 %v16192_v32, %v16034_v26  ;;  %v16037_v51 = vadd.f32 %v26645_v33, %v15130_v53  ;;  %v16198_v24 = vsel %vm5363_vm0, %v16195_v44, %v16197_v11  ;;  %v15128_v16 = vadd.f32 %v14959_v17, %v28443_v63  ;;  %v28447_v32 = vld [vmem:[#allocation104_spill] sm:$0xff] }
 0x8d4   : > { %v16203_v45 = vrot.slane %v15552_v8, 1  ;;  %v15550_v49 = vadd.f32 %v15393_v46, %v28444_v27  ;;  %v22171_v30 = vpop.f32.mrf.mxu0  ;;  %v22255_v40 = vpop.f32.mrf.mxu1  ;;  %v28449_v46 = vld [vmem:[#allocation64_spill] sm:$0xff] }
 0x8d5   : > { %28442 = vst [vmem:[#allocation53_spill] sm:$0xff] %v26853_v38  ;;  %v26859_v34 = vadd.f32 %v16198_v24, %v16037_v51  ;;  %v16035_v58 = vadd.f32 %v26645_v33, %v15128_v16  ;;  %v15133_v19 = vadd.f32 %v22171_v30, %v28446_v28  ;;  %v15555_v26 = vadd.f32 %v22255_v40, %v28447_v32  ;;  %v28450_v24 = vld [vmem:[#allocation105_spill] sm:$0xff]  ;;  %v28452_v28 = vld [vmem:[#allocation22_spill] sm:$0xff] }
 0x8d6   : > { %v16199_v12 = vrot.slane %v15550_v49, 1  ;;  %v16204_v53 = vsel %vm5363_vm0, %v16201_v18, %v16203_v45  ;;  %v14972_v44 = vpop.f32.mrf.mxu0  ;;  %v15406_v36 = vpop.f32.mrf.mxu1 }
 0x8d7   : > { %28445 = vst [vmem:[#allocation56_spill] sm:$0xff] %v26859_v34  ;;  %v26865_v17 = vadd.f32 %v16194_v25, %v16035_v58  ;;  %v16040_v8 = vadd.f32 %v26645_v33, %v15133_v19  ;;  %v15131_v41 = vadd.f32 %v14972_v44, %v28449_v46  ;;  %v15553_v63 = vadd.f32 %v15406_v36, %v28450_v24  ;;  %v28453_v25 = vld [vmem:[#allocation111_spill] sm:$0xff]  ;;  %v28455_v24 = vld [vmem:[#allocation34_spill] sm:$0xff] }
 0x8d8   : > { %v16200_v51 = vsel %vm5363_vm0, %v16197_v11, %v16199_v12  ;;  %v22172_v16 = vpop.f32.mrf.mxu0  ;;  %v22256_v27 = vpop.f32.mrf.mxu1  ;;  %v16202_v30 = vsel %vm5363_vm0, %v16199_v12, %v16201_v18  ;;  %v16209_v59 = vrot.slane %v15555_v26, 1  ;;  %v28456_v12 = vld [vmem:[#allocation108_spill] sm:$0xff] }
 0x8d9   : > { %28448 = vst [vmem:[#allocation57_spill] sm:$0xff] %v26865_v17  ;;  %v26872_v40 = vadd.f32 %v16204_v53, %v16040_v8  ;;  %v16038_v49 = vadd.f32 %v26645_v33, %v15131_v41  ;;  %v15134_v32 = vadd.f32 %v22172_v16, %v28452_v28  ;;  %v15556_v58 = vadd.f32 %v22256_v27, %v28453_v25  ;;  %v28459_v28 = vld [vmem:[#allocation109_spill] sm:$0xff] }
 0x8da   : > { %v16205_v19 = vrot.slane %v15553_v63, 1  ;;  %v14975_v0 = vpop.f32.mrf.mxu0  ;;  %v15409_v44 = vpop.f32.mrf.mxu1  ;;  %v28458_v63 = vld [vmem:[#allocation47_spill] sm:$0xff] }
 0x8db   : > { %28451 = vst [vmem:[#allocation76_spill] sm:$0xff] %v26872_v40  ;;  %v26877_v46 = vadd.f32 %v16200_v51, %v16038_v49  ;;  %v16041_v36 = vadd.f32 %v26645_v33, %v15134_v32  ;;  %v16211_v11 = vrot.slane %v15556_v58, 1  ;;  %v15132_v7 = vadd.f32 %v14975_v0, %v28455_v24 }
 0x8dc   : > { %v16206_v18 = vsel %vm5363_vm0, %v16203_v45, %v16205_v19  ;;  %v15554_v53 = vadd.f32 %v15409_v44, %v28456_v12  ;;  %v22175_v8 = vpop.f32.mrf.mxu0  ;;  %v22259_v41 = vpop.f32.mrf.mxu1  ;;  %v28461_v44 = vld [vmem:[#allocation65_spill] sm:$0xff]  ;;  %v28462_v12 = vld [vmem:[#allocation110_spill] sm:$0xff] }
 0x8dd   : > { %28454 = vst [vmem:[#allocation132_spill] sm:$0xff] %v26877_v46  ;;  %v26883_v16 = vadd.f32 %v16206_v18, %v16041_v36  ;;  %v16039_v26 = vadd.f32 %v26645_v33, %v15132_v7  ;;  %v15137_v27 = vadd.f32 %v22175_v8, %v28458_v63  ;;  %v16212_v51 = vsel %vm5363_vm0, %v16209_v59, %v16211_v11 }
 0x8de   : > { %v16207_v49 = vrot.slane %v15554_v53, 1  ;;  %v15559_v32 = vadd.f32 %v22259_v41, %v28459_v28  ;;  %v14988_v25 = vpop.f32.mrf.mxu0  ;;  %v15422_v58 = vpop.f32.mrf.mxu1  ;;  %v28464_v28 = vld [vmem:[#allocation66_spill] sm:$0xff] }
 0x8df   : > { %28457 = vst [vmem:[#allocation92_spill] sm:$0xff] %v26883_v16  ;;  %v26889_v0 = vadd.f32 %v16202_v30, %v16039_v26  ;;  %v16044_v45 = vadd.f32 %v26645_v33, %v15137_v27  ;;  %v15135_v24 = vadd.f32 %v14988_v25, %v28461_v44  ;;  %v15557_v36 = vadd.f32 %v15422_v58, %v28462_v12  ;;  %v28465_v26 = vld [vmem:[#allocation112_spill] sm:$0xff] }
 0x8e0   : > { %v16208_v18 = vsel %vm5363_vm0, %v16205_v19, %v16207_v49  ;;  %v22176_v7 = vpop.f32.mrf.mxu0  ;;  %v22260_v16 = vpop.f32.mrf.mxu1  ;;  %v16210_v8 = vsel %vm5363_vm0, %v16207_v49, %v16209_v59  ;;  %v28467_v44 = vld [vmem:[#allocation100_spill] sm:$0xff]  ;;  %v16217_v59 = vrot.slane %v15559_v32, 1  ;;  %v28468_v49 = vld [vmem:[#allocation113_spill] sm:$0xff] }
 0x8e1   : > { %28460 = vst [vmem:[#allocation54_spill] sm:$0xff] %v26889_v0  ;;  %v26896_v63 = vadd.f32 %v16212_v51, %v16044_v45  ;;  %v16042_v53 = vadd.f32 %v26645_v33, %v15135_v24  ;;  %v16213_v41 = vrot.slane %v15557_v36, 1  ;;  %v15138_v30 = vadd.f32 %v22176_v7, %v28464_v28  ;;  %v28470_v7 = vld [vmem:[#allocation35_spill] sm:$0xff] }
 0x8e2   : > { %v15560_v0 = vadd.f32 %v22260_v16, %v28465_v26  ;;  %v14991_v27 = vpop.f32.mrf.mxu0  ;;  %v15425_v46 = vpop.f32.mrf.mxu1 }
 0x8e3   : > { %28463 = vst [vmem:[#allocation19_spill] sm:$0xff] %v26896_v63  ;;  %v26901_v25 = vadd.f32 %v16208_v18, %v16042_v53  ;;  %v16045_v58 = vadd.f32 %v26645_v33, %v15138_v30  ;;  %v16214_v19 = vsel %vm5363_vm0, %v16211_v11, %v16213_v41  ;;  %v15136_v12 = vadd.f32 %v14991_v27, %v28467_v44  ;;  %v28471_v18 = vld [vmem:[#allocation114_spill] sm:$0xff] }
 0x8e4   : > { %v16219_v51 = vrot.slane %v15560_v0, 1  ;;  %v15558_v45 = vadd.f32 %v15425_v46, %v28468_v49  ;;  %v22179_v24 = vpop.f32.mrf.mxu0  ;;  %v22263_v36 = vpop.f32.mrf.mxu1  ;;  %v28473_v46 = vld [vmem:[#allocation48_spill] sm:$0xff] }
 0x8e5   : > { %28466 = vst [vmem:[#allocation77_spill] sm:$0xff] %v26901_v25  ;;  %v26907_v63 = vadd.f32 %v16214_v19, %v16045_v58  ;;  %v16043_v16 = vadd.f32 %v26645_v33, %v15136_v12  ;;  %v15141_v28 = vadd.f32 %v22179_v24, %v28470_v7  ;;  %v15563_v53 = vadd.f32 %v22263_v36, %v28471_v18  ;;  %v28474_v19 = vld [vmem:[#allocation117_spill] sm:$0xff]  ;;  %v28476_v7 = vld [vmem:[#allocation67_spill] sm:$0xff] }
 0x8e6   : > { %v16215_v26 = vrot.slane %v15558_v45, 1  ;;  %v16220_v30 = vsel %vm5363_vm0, %v16217_v59, %v16219_v51  ;;  %v15004_v11 = vpop.f32.mrf.mxu0  ;;  %v15438_v25 = vpop.f32.mrf.mxu1 }
 0x8e7   : > { %28469 = vst [vmem:[#allocation29_spill] sm:$0xff] %v26907_v63  ;;  %v26913_v27 = vadd.f32 %v16210_v8, %v16043_v16  ;;  %v16048_v32 = vadd.f32 %v26645_v33, %v15141_v28  ;;  %v15139_v0 = vadd.f32 %v15004_v11, %v28473_v46  ;;  %v15561_v44 = vadd.f32 %v15438_v25, %v28474_v19  ;;  %v28477_v8 = vld [vmem:[#allocation118_spill] sm:$0xff]  ;;  %v28479_v19 = vld [vmem:[#allocation36_spill] sm:$0xff] }
 0x8e8   : > { %v16216_v58 = vsel %vm5363_vm0, %v16213_v41, %v16215_v26  ;;  %v22180_v12 = vpop.f32.mrf.mxu0  ;;  %v22264_v49 = vpop.f32.mrf.mxu1  ;;  %v16218_v24 = vsel %vm5363_vm0, %v16215_v26, %v16217_v59  ;;  %v16225_v63 = vrot.slane %v15563_v53, 1  ;;  %v28480_v26 = vld [vmem:[#allocation115_spill] sm:$0xff] }
 0x8e9   : > { %28472 = vst [vmem:[#allocation27_spill] sm:$0xff] %v26913_v27  ;;  %v26920_v36 = vadd.f32 %v16220_v30, %v16048_v32  ;;  %v16046_v45 = vadd.f32 %v26645_v33, %v15139_v0  ;;  %v15142_v18 = vadd.f32 %v22180_v12, %v28476_v7  ;;  %v15564_v16 = vadd.f32 %v22264_v49, %v28477_v8  ;;  %v28483_v7 = vld [vmem:[#allocation116_spill] sm:$0xff] }
 0x8ea   : > { %v16221_v28 = vrot.slane %v15561_v44, 1  ;;  %v15007_v27 = vpop.f32.mrf.mxu0  ;;  %v15441_v11 = vpop.f32.mrf.mxu1  ;;  %v28482_v44 = vld [vmem:[#allocation23_spill] sm:$0xff] }
 0x8eb   : > { %28475 = vst [vmem:[#allocation136_spill] sm:$0xff] %v26920_v36  ;;  %v26925_v46 = vadd.f32 %v16216_v58, %v16046_v45  ;;  %v16049_v41 = vadd.f32 %v26645_v33, %v15142_v18  ;;  %v16227_v25 = vrot.slane %v15564_v16, 1  ;;  %v15140_v40 = vadd.f32 %v15007_v27, %v28479_v19 }
 0x8ec   : > { %v16222_v59 = vsel %vm5363_vm0, %v16219_v51, %v16221_v28  ;;  %v15562_v30 = vadd.f32 %v15441_v11, %v28480_v26  ;;  %v22183_v32 = vpop.f32.mrf.mxu0  ;;  %v22267_v0 = vpop.f32.mrf.mxu1  ;;  %v28485_v11 = vld [vmem:[#allocation68_spill] sm:$0xff]  ;;  %v28486_v26 = vld [vmem:[#allocation18_spill] sm:$0xff] }
 0x8ed   : > { %28478 = vst [vmem:[#allocation43_spill] sm:$0xff] %v26925_v46  ;;  %v26931_v12 = vadd.f32 %v16222_v59, %v16049_v41  ;;  %v16047_v53 = vadd.f32 %v26645_v33, %v15140_v40  ;;  %v15145_v49 = vadd.f32 %v22183_v32, %v28482_v44  ;;  %v16228_v58 = vsel %vm5363_vm0, %v16225_v63, %v16227_v25 }
 0x8ee   : > { %v16223_v45 = vrot.slane %v15562_v30, 1  ;;  %v15567_v18 = vadd.f32 %v22267_v0, %v28483_v7  ;;  %v15020_v8 = vpop.f32.mrf.mxu0  ;;  %v15454_v16 = vpop.f32.mrf.mxu1  ;;  %v28488_v7 = vld [vmem:[#allocation49_spill] sm:$0xff] }
 0x8ef   : > { %28481 = vst [vmem:[#allocation138_spill] sm:$0xff] %v26931_v12  ;;  %v26937_v27 = vadd.f32 %v16218_v24, %v16047_v53  ;;  %v16052_v51 = vadd.f32 %v26645_v33, %v15145_v49  ;;  %v15143_v19 = vadd.f32 %v15020_v8, %v28485_v11  ;;  %v15565_v41 = vadd.f32 %v15454_v16, %v28486_v26  ;;  %v28489_v53 = vld [vmem:[#allocation41_spill] sm:$0xff] }
 0x8f0   : > { %v16224_v59 = vsel %vm5363_vm0, %v16221_v28, %v16223_v45  ;;  %v22184_v40 = vpop.f32.mrf.mxu0  ;;  %v22268_v12 = vpop.f32.mrf.mxu1  ;;  %v16226_v32 = vsel %vm5363_vm0, %v16223_v45, %v16225_v63  ;;  %v28491_v11 = vld [vmem:[#allocation69_spill] sm:$0xff]  ;;  %v16233_v63 = vrot.slane %v15567_v18, 1 }
 0x8f1   : > { %28484 = vst [vmem:[#allocation55_spill] sm:$0xff] %v26937_v27  ;;  %v26944_v44 = vadd.f32 %v16228_v58, %v16052_v51  ;;  %v16050_v30 = vadd.f32 %v26645_v33, %v15143_v19  ;;  %v16229_v0 = vrot.slane %v15565_v41, 1  ;;  %v15146_v24 = vadd.f32 %v22184_v40, %v28488_v7  ;;  %v28492_v45 = vld [vmem:[#allocation121_spill] sm:$0xff] }
 0x8f2   : > { %v15568_v27 = vadd.f32 %v22268_v12, %v28489_v53  ;;  %v15023_v49 = vpop.f32.mrf.mxu0  ;;  %v15457_v46 = vpop.f32.mrf.mxu1  ;;  %v28494_v40 = vld [vmem:[#allocation37_spill] sm:$0xff] }
 0x8f3   : > { %28487 = vst [vmem:[#allocation58_spill] sm:$0xff] %v26944_v44  ;;  %v26949_v8 = vadd.f32 %v16224_v59, %v16050_v30  ;;  %v16053_v16 = vadd.f32 %v26645_v33, %v15146_v24  ;;  %v16230_v28 = vsel %vm5363_vm0, %v16227_v25, %v16229_v0  ;;  %v15144_v26 = vadd.f32 %v15023_v49, %v28491_v11  ;;  %v28495_v59 = vld [vmem:[#allocation122_spill] sm:$0xff] }
 0x8f4   : > { %v16235_v58 = vrot.slane %v15568_v27, 1  ;;  %v15566_v51 = vadd.f32 %v15457_v46, %v28492_v45  ;;  %v22187_v19 = vpop.f32.mrf.mxu0  ;;  %v22271_v41 = vpop.f32.mrf.mxu1  ;;  %v28497_v46 = vld [vmem:[#allocation24_spill] sm:$0xff] }
 0x8f5   : > { %28490 = vst [vmem:[#allocation78_spill] sm:$0xff] %v26949_v8  ;;  %v26955_v44 = vadd.f32 %v16230_v28, %v16053_v16  ;;  %v16051_v12 = vadd.f32 %v26645_v33, %v15144_v26  ;;  %v15149_v7 = vadd.f32 %v22187_v19, %v28494_v40  ;;  %v15571_v30 = vadd.f32 %v22271_v41, %v28495_v59  ;;  %v28498_v28 = vld [vmem:[#allocation28_spill] sm:$0xff]  ;;  %v28500_v40 = vld [vmem:[#allocation70_spill] sm:$0xff] }
 0x8f6   : > { %v16231_v53 = vrot.slane %v15566_v51, 1  ;;  %v16236_v24 = vsel %vm5363_vm0, %v16233_v63, %v16235_v58  ;;  %v15036_v25 = vpop.f32.mrf.mxu0  ;;  %v15470_v8 = vpop.f32.mrf.mxu1 }
 0x8f7   : > { %28493 = vst [vmem:[#allocation97_spill] sm:$0xff] %v26955_v44  ;;  %v26961_v49 = vadd.f32 %v16226_v32, %v16051_v12  ;;  %v16056_v18 = vadd.f32 %v26645_v33, %v15149_v7  ;;  %v15147_v27 = vadd.f32 %v15036_v25, %v28497_v46  ;;  %v15569_v11 = vadd.f32 %v15470_v8, %v28498_v28  ;;  %v28501_v32 = vld [vmem:[#allocation126_spill] sm:$0xff] }
 0x8f8   : > { %v16232_v16 = vsel %vm5363_vm0, %v16229_v0, %v16231_v53  ;;  %v22188_v26 = vpop.f32.mrf.mxu0  ;;  %v22272_v45 = vpop.f32.mrf.mxu1  ;;  %v16234_v19 = vsel %vm5363_vm0, %v16231_v53, %v16233_v63  ;;  %v16241_v44 = vrot.slane %v15571_v30, 1  ;;  %v28503_v28 = vld [vmem:[#allocation50_spill] sm:$0xff]  ;;  %v28504_v53 = vld [vmem:[#allocation119_spill] sm:$0xff] }
 0x8f9   : > { %28496 = vst [vmem:[#allocation79_spill] sm:$0xff] %v26961_v49  ;;  %v26968_v41 = vadd.f32 %v16236_v24, %v16056_v18  ;;  %v16054_v51 = vadd.f32 %v26645_v33, %v15147_v27  ;;  %v15150_v59 = vadd.f32 %v22188_v26, %v28500_v40  ;;  %v15572_v12 = vadd.f32 %v22272_v45, %v28501_v32  ;;  %v28507_v40 = vld [vmem:[#allocation120_spill] sm:$0xff] }
 0x8fa   : > { %v16237_v7 = vrot.slane %v15569_v11, 1  ;;  %v15039_v49 = vpop.f32.mrf.mxu0  ;;  %v15473_v25 = vpop.f32.mrf.mxu1  ;;  %v28506_v11 = vld [vmem:[#allocation38_spill] sm:$0xff] }
 0x8fb   : > { %28499 = vst [vmem:[#allocation30_spill] sm:$0xff] %v26968_v41  ;;  %v26973_v46 = vadd.f32 %v16232_v16, %v16054_v51  ;;  %v16057_v0 = vadd.f32 %v26645_v33, %v15150_v59  ;;  %v16243_v8 = vrot.slane %v15572_v12, 1  ;;  %v15148_v36 = vadd.f32 %v15039_v49, %v28503_v28 }
 0x8fc   : > { %v16238_v63 = vsel %vm5363_vm0, %v16235_v58, %v16237_v7  ;;  %v15570_v24 = vadd.f32 %v15473_v25, %v28504_v53  ;;  %v22191_v18 = vpop.f32.mrf.mxu0  ;;  %v22275_v27 = vpop.f32.mrf.mxu1  ;;  %v28509_v25 = vld [vmem:[#allocation71_spill] sm:$0xff]  ;;  %v28510_v53 = vld [vmem:[#allocation125_spill] sm:$0xff] }
 0x8fd   : > { %28502 = vst [vmem:[#allocation80_spill] sm:$0xff] %v26973_v46  ;;  %v26979_v26 = vadd.f32 %v16238_v63, %v16057_v0  ;;  %v16055_v30 = vadd.f32 %v26645_v33, %v15148_v36  ;;  %v15153_v45 = vadd.f32 %v22191_v18, %v28506_v11  ;;  %v16244_v16 = vsel %vm5363_vm0, %v16241_v44, %v16243_v8 }
 0x8fe   : > { %v16239_v51 = vrot.slane %v15570_v24, 1  ;;  %v15575_v59 = vadd.f32 %v22275_v27, %v28507_v40  ;;  %v15052_v32 = vpop.f32.mrf.mxu0  ;;  %v15486_v12 = vpop.f32.mrf.mxu1  ;;  %v28512_v40 = vld [vmem:[#allocation51_spill] sm:$0xff] }
 0x8ff   : > { %28505 = vst [vmem:[#allocation142_spill] sm:$0xff] %v26979_v26  ;;  %v26985_v49 = vadd.f32 %v16234_v19, %v16055_v30  ;;  %v16060_v58 = vadd.f32 %v26645_v33, %v15153_v45  ;;  %v15151_v28 = vadd.f32 %v15052_v32, %v28509_v25  ;;  %v15573_v0 = vadd.f32 %v15486_v12, %v28510_v53  ;;  %v28513_v30 = vld [vmem:[#allocation42_spill] sm:$0xff]  ;;  %v28515_v25 = vld [vmem:[#allocation72_spill] sm:$0xff] }
 0x900   : > { %v16240_v63 = vsel %vm5363_vm0, %v16237_v7, %v16239_v51  ;;  %v22192_v36 = vpop.f32.mrf.mxu0  ;;  %v22276_v26 = vpop.f32.mrf.mxu1  ;;  %v16242_v18 = vsel %vm5363_vm0, %v16239_v51, %v16241_v44  ;;  %v16249_v44 = vrot.slane %v15575_v59, 1  ;;  %v28516_v51 = vld [vmem:[#allocation127_spill] sm:$0xff] }
 0x901   : > { %28508 = vst [vmem:[#allocation94_spill] sm:$0xff] %v26985_v49  ;;  %v26992_v11 = vadd.f32 %v16244_v16, %v16060_v58  ;;  %v16058_v24 = vadd.f32 %v26645_v33, %v15151_v28  ;;  %v16245_v27 = vrot.slane %v15573_v0, 1  ;;  %v15154_v19 = vadd.f32 %v22192_v36, %v28512_v40  ;;  %v28518_v36 = vld [vmem:[#allocation25_spill] sm:$0xff] }
 0x902   : > { %v15576_v49 = vadd.f32 %v22276_v26, %v28513_v30  ;;  %v15055_v45 = vpop.f32.mrf.mxu0  ;;  %v15489_v46 = vpop.f32.mrf.mxu1 }
 0x903   : > { %28511 = vst [vmem:[#allocation81_spill] sm:$0xff] %v26992_v11  ;;  %v26997_v32 = vadd.f32 %v16240_v63, %v16058_v24  ;;  %v16061_v12 = vadd.f32 %v26645_v33, %v15154_v19  ;;  %v16246_v7 = vsel %vm5363_vm0, %v16243_v8, %v16245_v27  ;;  %v15152_v53 = vadd.f32 %v15055_v45, %v28515_v25  ;;  %v28519_v63 = vld [vmem:[#allocation123_spill] sm:$0xff] }
 0x904   : > { %v16251_v16 = vrot.slane %v15576_v49, 1  ;;  %v15574_v58 = vadd.f32 %v15489_v46, %v28516_v51  ;;  %v22195_v28 = vpop.f32.mrf.mxu0  ;;  %v22279_v0 = vpop.f32.mrf.mxu1  ;;  %v28521_v46 = vld [vmem:[#allocation39_spill] sm:$0xff] }
 0x905   : > { %28514 = vst [vmem:[#allocation144_spill] sm:$0xff] %v26997_v32  ;;  %v27003_v11 = vadd.f32 %v16246_v7, %v16061_v12  ;;  %v16059_v26 = vadd.f32 %v26645_v33, %v15152_v53  ;;  %v15157_v40 = vadd.f32 %v22195_v28, %v28518_v36  ;;  %v15579_v24 = vadd.f32 %v22279_v0, %v28519_v63  ;;  %v28522_v7 = vld [vmem:[#allocation124_spill] sm:$0xff]  ;;  %v28524_v36 = vld [vmem:[#allocation73_spill] sm:$0xff] }
 0x906   : > { %v16247_v30 = vrot.slane %v15574_v58, 1  ;;  %v16252_v19 = vsel %vm5363_vm0, %v16249_v44, %v16251_v16  ;;  %v15068_v8 = vpop.f32.mrf.mxu0  ;;  %v15502_v32 = vpop.f32.mrf.mxu1 }
 0x907   : > { %28517 = vst [vmem:[#allocation20_spill] sm:$0xff] %v27003_v11  ;;  %v27009_v45 = vadd.f32 %v16242_v18, %v16059_v26  ;;  %v16064_v59 = vadd.f32 %v26645_v33, %v15157_v40  ;;  %v15155_v49 = vadd.f32 %v15068_v8, %v28521_v46  ;;  %v15577_v25 = vadd.f32 %v15502_v32, %v28522_v7  ;;  %v28525_v18 = vld [vmem:[#allocation89_spill] sm:$0xff]  ;;  %v28527_v46 = vld [vmem:[#allocation52_spill] sm:$0xff] }
 0x908   : > { %v16248_v12 = vsel %vm5363_vm0, %v16245_v27, %v16247_v30  ;;  %v22196_v53 = vpop.f32.mrf.mxu0  ;;  %v22280_v51 = vpop.f32.mrf.mxu1  ;;  %v16250_v28 = vsel %vm5363_vm0, %v16247_v30, %v16249_v44  ;;  %v16257_v41 = vrot.slane %v15579_v24, 1  ;;  %v28528_v30 = vld [vmem:[#allocation131_spill] sm:$0xff] }
 0x909   : > { %28520 = vst [vmem:[#allocation82_spill] sm:$0xff] %v27009_v45  ;;  %v27016_v0 = vadd.f32 %v16252_v19, %v16064_v59  ;;  %v16062_v58 = vadd.f32 %v26645_v33, %v15155_v49  ;;  %v15158_v63 = vadd.f32 %v22196_v53, %v28524_v36  ;;  %v15580_v26 = vadd.f32 %v22280_v51, %v28525_v18  ;;  %v28530_v51 = vld [vmem:[#allocation40_spill] sm:$0xff] }
 0x90a   : > { %v16253_v11 = vrot.slane %v15577_v25, 1  ;;  %v15071_v40 = vpop.f32.mrf.mxu0  ;;  %v15505_v45 = vpop.f32.mrf.mxu1  ;;  %v23082_v25 = vld [vmem:[%s27695_s6] ss:$0 sm:$0xff] }
 0x90b   : > { %28523 = vst [vmem:[#allocation59_spill] sm:$0xff] %v27016_v0  ;;  %v27021_v8 = vadd.f32 %v16248_v12, %v16062_v58  ;;  %v16065_v27 = vadd.f32 %v26645_v33, %v15158_v63  ;;  %v16259_v32 = vrot.slane %v15580_v26, 1  ;;  %v15156_v7 = vadd.f32 %v15071_v40, %v28527_v46 }
 0x90c   : > { %v16254_v44 = vsel %vm5363_vm0, %v16251_v16, %v16253_v11  ;;  %v15578_v19 = vadd.f32 %v15505_v45, %v28528_v30  ;;  %v22199_v59 = vpop.f32.mrf.mxu0  ;;  %v22379_v49 = vpop.f32.mrf.mxu1  ;;  %v28532_v45 = vld [vmem:[#allocation26_spill] sm:$0xff] }
 0x90d   : > { %28526 = vst [vmem:[#allocation83_spill] sm:$0xff] %v27021_v8  ;;  %v27027_v53 = vadd.f32 %v16254_v44, %v16065_v27  ;;  %v16063_v12 = vadd.f32 %v23082_v25, %v15156_v7  ;;  %v15161_v58 = vadd.f32 %v22199_v59, %v28530_v51  ;;  %v16260_v36 = vsel %vm5363_vm0, %v16257_v41, %v16259_v32  ;;  %v28534_v59 = vld [vmem:[#allocation74_spill] sm:$0xff] }
 0x90e   : > { %v16255_v33 = vrot.slane %v15578_v19, 1  ;;  %v15084_v63 = vpop.f32.mrf.mxu0  ;;  %v17064_v24 = vpop.f32.mrf.mxu1 }
 0x90f   : > { %28529 = vst [vmem:[#allocation44_spill] sm:$0xff] %v27027_v53  ;;  %v27034_v18 = vadd.f32 %v16250_v28, %v16063_v12  ;;  %v16068_v16 = vadd.f32 %v23082_v25, %v15161_v58  ;;  %v15159_v26 = vadd.f32 %v15084_v63, %v28532_v45  ;;  %v28536_v12 = vld [vmem:[#allocation75_spill] sm:$0xff]  ;;  %v16325_v63 = vsel %vm5363_vm0, %v16259_v32, 0.0 }
 0x910   : > { %v16256_v40 = vsel %vm5363_vm0, %v16253_v11, %v16255_v33  ;;  %v22200_v27 = vpop.f32.mrf.mxu0  ;;  %v22380_v46 = vpop.f32.mrf.mxu1  ;;  %v16258_v44 = vsel %vm5363_vm0, %v16255_v33, %v16257_v41 }
 0x911   : > { %28531 = vst [vmem:[#allocation90_spill] sm:$0xff] %v27034_v18  ;;  %v27039_v30 = vadd.f32 %v16260_v36, %v16068_v16  ;;  %v16066_v7 = vadd.f32 %v23082_v25, %v15159_v26  ;;  %v15162_v19 = vadd.f32 %v22200_v27, %v28534_v59  ;;  %v17386_v18 = vrot.slane %v22379_v49, 1  ;;  %v27058_v49 = vld [vmem:[%s27697_s8] ss:$0 sm:$0xff] }
 0x912   : > { %v15087_v51 = vpop.f32.mrf.mxu0  ;;  %v17067_v53 = vpop.f32.mrf.mxu1  ;;  %v17388_v41 = vrot.slane %v22380_v46, 1  ;;  %v17383_v36 = vrot.slane %v17064_v24, 1  ;;  %v28541_v24 = vld [vmem:[#allocation130_spill] sm:$0xff] }
 0x913   : > { %28533 = vst [vmem:[#allocation148_spill] sm:$0xff] %v27039_v30  ;;  %v27042_v8 = vadd.f32 %v16256_v40, %v16066_v7  ;;  %v16069_v28 = vadd.f32 %v23082_v25, %v15162_v19  ;;  %v15160_v58 = vadd.f32 %v15087_v51, %v28536_v12  ;;  %v17384_v16 = vrot.slane %v17067_v53, 1  ;;  %v28539_v40 = vld [vmem:[#allocation128_spill] sm:$0xff] }
 0x914   : > { %v22299_v45 = vpop.f32.mrf.mxu0  ;;  %v27046_v11 = vpop.f32.mrf.mxu1 }
 0x915   : > { %28535 = vst [vmem:[#allocation60_spill] sm:$0xff] %v27042_v8  ;;  %v27048_v0 = vadd.f32 %v16325_v63, %v16069_v28  ;;  %v16067_v33 = vadd.f32 %v23082_v25, %v15160_v58  ;;  %v15937_v7 = vadd.f32 %v22299_v45, %v28539_v40  ;;  %v17394_v19 = vrot.slane %v27046_v11, 1  ;;  %v28540_v25 = vld [vmem:[#allocation129_spill] sm:$0xff]  ;;  %v28542_v40 = vld [vmem:[#allocation86_spill] sm:$0xff] }
 0x916   : > { %v15680_v26 = vpop.f32.mrf.mxu0  ;;  %v17080_v27 = vpop.f32.mrf.mxu1  ;;  %v17389_v8 = vsel %vm5363_vm0, %v17386_v18, %v17388_v41  ;;  %v17385_v28 = vsel %vm5363_vm0, %v17383_v36, %v17384_v16  ;;  %v17387_v58 = vsel %vm5363_vm0, %v17384_v16, %v17386_v18 }
 0x917   : > { %28537 = vst [vmem:[#allocation150_spill] sm:$0xff] %v27048_v0  ;;  %v27050_v59 = vadd.f32 %v16258_v44, %v16067_v33  ;;  %v17390_v51 = vrot.slane %v17080_v27, 1  ;;  %v15935_v53 = vadd.f32 %v15680_v26, %v28540_v25  ;;  %v16457_v11 = vrot.slane %v15937_v7, 2 }
 0x918   : > { %v22300_v32 = vpop.f32.mrf.mxu0  ;;  %v22384_v12 = vpop.f32.mrf.mxu1  ;;  %v17584_v0 = vadd.f32 %v27058_v49, %v17389_v8  ;;  %v17583_v7 = vadd.f32 %v27058_v49, %v17387_v58 }
 0x919   : > { %28538 = vst [vmem:[#allocation84_spill] sm:$0xff] %v27050_v59  ;;  %v15938_v46 = vadd.f32 %v22300_v32, %v28541_v24  ;;  %v17396_v44 = vrot.slane %v22384_v12, 1  ;;  %v17391_v33 = vsel %vm5363_vm0, %v17388_v41, %v17390_v51  ;;  %v16454_v12 = vrot.slane %v15935_v53, 2 }
 0x91a   : > { %v15683_v63 = vpop.f32.mrf.mxu0  ;;  %v17083_v45 = vpop.f32.mrf.mxu1  ;;  %v17582_v24 = vadd.f32 %v27058_v49, %v17385_v28  ;;  %v17585_v41 = vadd.f32 %v27058_v49, %v17391_v33 }
 0x91b   : > { %v16459_v27 = vrot.slane %v15938_v46, 2  ;;  %v15936_v59 = vadd.f32 %v15683_v63, %v28542_v40  ;;  %v17397_v26 = vsel %vm5363_vm0, %v17394_v19, %v17396_v44  ;;  %v17392_v16 = vrot.slane %v17083_v45, 1 }
 0x91c   : > { %v22303_v25 = vpop.f32.mrf.mxu0  ;;  %v27068_v32 = vpop.f32.mrf.mxu1  ;;  %v17588_v40 = vadd.f32 %v27058_v49, %v17397_v26 }
 0x91d   : > { %v16460_v36 = vsel %vm5684_vm1, %v16457_v11, %v16459_v27  ;;  %v16455_v18 = vrot.slane %v15936_v59, 2  ;;  %v15941_v59 = vadd.f32 %v22303_v25, %v28543_v20  ;;  %v17402_v33 = vrot.slane %v27068_v32, 1 }
 0x91e   : > { %v16648_v46 = vadd.f32 %v16460_v36, %v26658_v31  ;;  %v15696_v8 = vpop.f32.mrf.mxu0  ;;  %v17096_v63 = vpop.f32.mrf.mxu1  ;;  %v17393_v31 = vsel %vm5363_vm0, %v17390_v51, %v17392_v16  ;;  %v28544_v36 = vld [vmem:[#allocation134_spill] sm:$0xff] }
 0x91f   : > { %v16456_v30 = vsel %vm5684_vm1, %v16454_v12, %v16455_v18  ;;  %v16458_v53 = vsel %vm5684_vm1, %v16455_v18, %v16457_v11  ;;  %v15939_v26 = vadd.f32 %v15696_v8, %v28544_v36  ;;  %v17398_v17 = vrot.slane %v17096_v63, 1  ;;  %v28545_v12 = vld [vmem:[#allocation135_spill] sm:$0xff] }
 0x920   : > { %v17648_v45 = vadd.f32 %v17584_v0, %v16648_v46  ;;  %v16646_v28 = vadd.f32 %v16456_v30, %v26663_v50  ;;  %v16647_v58 = vadd.f32 %v16458_v53, %v26677_v42  ;;  %v22304_v34 = vpop.f32.mrf.mxu0  ;;  %v27083_v22 = vpop.f32.mrf.mxu1  ;;  %v17395_v42 = vsel %vm5363_vm0, %v17392_v16, %v17394_v19 }
 0x921   : > { %v15942_v38 = vadd.f32 %v22304_v34, %v28545_v12  ;;  %v17404_v0 = vrot.slane %v27083_v22, 1  ;;  %v16465_v25 = vrot.slane %v15941_v59, 2  ;;  %v16461_v32 = vrot.slane %v15939_v26, 2  ;;  %v28547_v26 = vld [vmem:[#allocation139_spill] sm:$0xff] }
 0x922   : > { %v17712_v11 = vmax.f32 %v17648_v45, 0.0  ;;  %v17646_v18 = vadd.f32 %v17582_v24, %v16646_v28  ;;  %v17647_v20 = vadd.f32 %v17583_v7, %v16647_v58  ;;  %v15699_v50 = vpop.f32.mrf.mxu0  ;;  %v17099_v30 = vpop.f32.mrf.mxu1  ;;  %v17586_v24 = vadd.f32 %v27058_v49, %v17393_v31 }
 0x923   : > { %v16467_v46 = vrot.slane %v15942_v38, 2  ;;  %v17399_v7 = vsel %vm5363_vm0, %v17396_v44, %v17398_v17  ;;  %v16462_v19 = vsel %vm5684_vm1, %v16459_v27, %v16461_v32  ;;  %v28546_v38 = vld [vmem:[#allocation137_spill] sm:$0xff]  ;;  %v17400_v53 = vrot.slane %v17099_v30, 1 }
 0x924   : > { %17776 = vst [vmem:[%s27090_s28 + $0x10] sm:$0xff] %v17712_v11  ;;  %v17710_v51 = vmax.f32 %v17646_v18, 0.0  ;;  %v17711_v34 = vmax.f32 %v17647_v20, 0.0  ;;  %v22307_v22 = vpop.f32.mrf.mxu0  ;;  %v27095_v8 = vpop.f32.mrf.mxu1  ;;  %v15940_v63 = vadd.f32 %v15699_v50, %v28546_v38  ;;  %v17587_v59 = vadd.f32 %v27058_v49, %v17395_v42  ;;  %v28548_v11 = vld [vmem:[#allocation140_spill] sm:$0xff] }
 0x925   : > { %v16468_v16 = vsel %vm5684_vm1, %v16465_v25, %v16467_v46  ;;  %v16649_v45 = vadd.f32 %v16462_v19, %v26670_v6  ;;  %v17405_v44 = vsel %vm5363_vm0, %v17402_v33, %v17404_v0  ;;  %v17589_v27 = vadd.f32 %v27058_v49, %v17399_v7 }
 0x926   : > { %17774 = vst [vmem:[%s27090_s28] sm:$0xff] %v17710_v51  ;;  %17775 = vst [vmem:[%s27090_s28 + $0x8] sm:$0xff] %v17711_v34  ;;  %v16652_v28 = vadd.f32 %v16468_v16, %v26685_v14  ;;  %v15712_v58 = vpop.f32.mrf.mxu0  ;;  %v27106_v31 = vpop.f32.mrf.mxu1  ;;  %v16463_v36 = vrot.slane %v15940_v63, 2  ;;  %v15945_v12 = vadd.f32 %v22307_v22, %v28547_v26  ;;  %v17401_v30 = vsel %vm5363_vm0, %v17398_v17, %v17400_v53 }
 0x927   : > { %v15943_v18 = vadd.f32 %v15712_v58, %v28548_v11  ;;  %v17649_v20 = vadd.f32 %v17585_v41, %v16649_v45  ;;  %v17410_v6 = vrot.slane %v27095_v8, 1  ;;  %v17403_v7 = vsel %vm5363_vm0, %v17400_v53, %v17402_v33  ;;  %v28549_v45 = vld [vmem:[#allocation141_spill] sm:$0xff] }
 0x928   : > { %v17652_v50 = vadd.f32 %v17588_v40, %v16652_v28  ;;  %v22308_v42 = vpop.f32.mrf.mxu0  ;;  %v27113_v14 = vpop.f32.mrf.mxu1  ;;  %v16464_v51 = vsel %vm5684_vm1, %v16461_v32, %v16463_v36  ;;  %v16466_v34 = vsel %vm5684_vm1, %v16463_v36, %v16465_v25  ;;  %v17406_v63 = vrot.slane %v27106_v31, 1 }
 0x929   : > { %v16469_v22 = vrot.slane %v15943_v18, 2  ;;  %v17713_v19 = vmax.f32 %v17649_v20, 0.0  ;;  %v16650_v41 = vadd.f32 %v16464_v51, %v26691_v4  ;;  %v16651_v17 = vadd.f32 %v16466_v34, %v26705_v57  ;;  %v28550_v4 = vld [vmem:[#allocation143_spill] sm:$0xff] }
 0x92a   : > { %v17716_v16 = vmax.f32 %v17652_v50, 0.0  ;;  %v15715_v40 = vpop.f32.mrf.mxu0  ;;  %v17115_v8 = vpop.f32.mrf.mxu1  ;;  %v27123_v28 = vadd.f32 %v22308_v42, %v28549_v45  ;;  %v17412_v25 = vrot.slane %v27113_v14, 1  ;;  %v17407_v31 = vsel %vm5363_vm0, %v17404_v0, %v17406_v63 }
 0x92b   : > { %v16470_v38 = vsel %vm5684_vm1, %v16467_v46, %v16469_v22  ;;  %17777 = vst [vmem:[%s27090_s28 + $0x18] sm:$0xff] %v17713_v19  ;;  %v17650_v33 = vadd.f32 %v17586_v24, %v16650_v41  ;;  %v17651_v32 = vadd.f32 %v17587_v59, %v16651_v17  ;;  %v15944_v58 = vadd.f32 %v15715_v40, %v28550_v4  ;;  %v28551_v40 = vld [vmem:[#allocation145_spill] sm:$0xff] }
 0x92c   : > { %17780 = vst [vmem:[%s27090_s28 + $0x30] sm:$0xff] %v17716_v16  ;;  %v16653_v53 = vadd.f32 %v16470_v38, %v26698_v29  ;;  %v22311_v57 = vpop.f32.mrf.mxu0  ;;  %v27130_v36 = vpop.f32.mrf.mxu1  ;;  %v16473_v46 = vrot.slane %v15945_v12, 2  ;;  %v16475_v26 = vrot.slane %v27123_v28, 2  ;;  %v17413_v11 = vsel %vm5363_vm0, %v17410_v6, %v17412_v25 }
 0x92d   : > { %v17714_v18 = vmax.f32 %v17650_v33, 0.0  ;;  %v17715_v20 = vmax.f32 %v17651_v32, 0.0  ;;  %v17408_v59 = vrot.slane %v17115_v8, 1  ;;  %v17592_v42 = vadd.f32 %v27058_v49, %v17405_v44 }
 0x92e   : > { %v17653_v24 = vadd.f32 %v17589_v27, %v16653_v53  ;;  %v15728_v50 = vpop.f32.mrf.mxu0  ;;  %v27135_v29 = vpop.f32.mrf.mxu1  ;;  %v17590_v14 = vadd.f32 %v27058_v49, %v17401_v30  ;;  %v16476_v12 = vsel %vm5684_vm1, %v16473_v46, %v16475_v26  ;;  %v16471_v51 = vrot.slane %v15944_v58, 2  ;;  %v28552_v53 = vld [vmem:[#allocation146_spill] sm:$0xff]  ;;  %v28553_v58 = vld [vmem:[#allocation147_spill] sm:$0xff] }
 0x92f   : > { %17778 = vst [vmem:[%s27090_s28 + $0x20] sm:$0xff] %v17714_v18  ;;  %17779 = vst [vmem:[%s27090_s28 + $0x28] sm:$0xff] %v17715_v20  ;;  %v17591_v0 = vadd.f32 %v27058_v49, %v17403_v7  ;;  %v17593_v19 = vadd.f32 %v27058_v49, %v17407_v31  ;;  %v16656_v27 = vadd.f32 %v16476_v12, %v26713_v60 }
 0x930   : > { %v17717_v34 = vmax.f32 %v17653_v24, 0.0  ;;  %v22312_v16 = vpop.f32.mrf.mxu0  ;;  %v27145_v41 = vpop.f32.mrf.mxu1  ;;  %v17596_v44 = vadd.f32 %v27058_v49, %v17413_v11  ;;  %v16472_v17 = vsel %vm5684_vm1, %v16469_v22, %v16471_v51  ;;  %v16474_v30 = vsel %vm5684_vm1, %v16471_v51, %v16473_v46 }
 0x931   : > { %v15949_v8 = vadd.f32 %v22311_v57, %v28551_v40  ;;  %v17656_v38 = vadd.f32 %v17592_v42, %v16656_v27  ;;  %v16654_v7 = vadd.f32 %v16472_v17, %v26719_v48  ;;  %v16655_v45 = vadd.f32 %v16474_v30, %v26733_v47 }
 0x932   : > { %17781 = vst [vmem:[%s27090_s28 + $0x38] sm:$0xff] %v17717_v34  ;;  %v17409_v28 = vsel %vm5363_vm0, %v17406_v63, %v17408_v59  ;;  %v15731_v60 = vpop.f32.mrf.mxu0  ;;  %v17131_v33 = vpop.f32.mrf.mxu1  ;;  %v17411_v32 = vsel %vm5363_vm0, %v17408_v59, %v17410_v6  ;;  %v15947_v4 = vadd.f32 %v15728_v50, %v28552_v53  ;;  %v17414_v22 = vrot.slane %v27135_v29, 1  ;;  %v28554_v6 = vld [vmem:[#allocation149_spill] sm:$0xff] }
 0x933   : > { %v15950_v46 = vadd.f32 %v22312_v16, %v28553_v58  ;;  %v17720_v57 = vmax.f32 %v17656_v38, 0.0  ;;  %v17654_v31 = vadd.f32 %v17590_v14, %v16654_v7  ;;  %v17655_v11 = vadd.f32 %v17591_v0, %v16655_v45  ;;  %v28556_v58 = vld [vmem:[#allocation151_spill] sm:$0xff] }
 0x934   : > { %v16481_v18 = vrot.slane %v15949_v8, 2  ;;  %v22315_v48 = vpop.f32.mrf.mxu0  ;;  %v27159_v20 = vpop.f32.mrf.mxu1  ;;  %v16477_v47 = vrot.slane %v15947_v4, 2  ;;  %v17415_v63 = vsel %vm5363_vm0, %v17412_v25, %v17414_v22  ;;  %v15948_v59 = vadd.f32 %v15731_v60, %v28554_v6 }
 0x935   : > { %v16483_v24 = vrot.slane %v15950_v46, 2  ;;  %17784 = vst [vmem:[%s27090_s28 + $0x50] sm:$0xff] %v17720_v57  ;;  %v17718_v50 = vmax.f32 %v17654_v31, 0.0  ;;  %v17719_v29 = vmax.f32 %v17655_v11, 0.0  ;;  %v17594_v42 = vadd.f32 %v27058_v49, %v17409_v28 }
 0x936   : > { %v17418_v14 = vrot.slane %v27130_v36, 1  ;;  %v15744_v12 = vpop.f32.mrf.mxu0  ;;  %v27166_v51 = vpop.f32.mrf.mxu1  ;;  %v16478_v0 = vsel %vm5684_vm1, %v16475_v26, %v16477_v47  ;;  %v17420_v27 = vrot.slane %v27145_v41, 1  ;;  %v16479_v25 = vrot.slane %v15948_v59, 2  ;;  %v28555_v41 = vld [vmem:[#allocation152_spill] sm:$0xff] }
 0x937   : > { %v16484_v34 = vsel %vm5684_vm1, %v16481_v18, %v16483_v24  ;;  %17782 = vst [vmem:[%s27090_s28 + $0x40] sm:$0xff] %v17718_v50  ;;  %17783 = vst [vmem:[%s27090_s28 + $0x48] sm:$0xff] %v17719_v29  ;;  %v17595_v16 = vadd.f32 %v27058_v49, %v17411_v32  ;;  %v16657_v17 = vadd.f32 %v16478_v0, %v26726_v13  ;;  %v17416_v7 = vrot.slane %v17131_v33, 1  ;;  %v28557_v50 = vld [vmem:[#allocation153_spill] sm:$0xff]  ;;  %v28558_v0 = vld [vmem:[#allocation155_spill] sm:$0xff] }
 0x938   : > { %v17597_v30 = vadd.f32 %v27058_v49, %v17415_v63  ;;  %v16660_v36 = vadd.f32 %v16484_v34, %v26741_v54  ;;  %v22316_v40 = vpop.f32.mrf.mxu0  ;;  %v27177_v8 = vpop.f32.mrf.mxu1  ;;  %v16480_v26 = vsel %vm5684_vm1, %v16477_v47, %v16479_v25  ;;  %v16482_v38 = vsel %vm5684_vm1, %v16479_v25, %v16481_v18 }
 0x939   : > { %v15951_v45 = vadd.f32 %v15744_v12, %v28555_v41  ;;  %v17657_v28 = vadd.f32 %v17593_v19, %v16657_v17  ;;  %v16658_v32 = vadd.f32 %v16480_v26, %v26747_v3  ;;  %v16659_v13 = vadd.f32 %v16482_v38, %v26761_v23 }
 0x93a   : > { %v17660_v60 = vadd.f32 %v17596_v44, %v16660_v36  ;;  %v15747_v53 = vpop.f32.mrf.mxu0  ;;  %v17147_v4 = vpop.f32.mrf.mxu1  ;;  %v17421_v54 = vsel %vm5363_vm0, %v17418_v14, %v17420_v27  ;;  %v15953_v46 = vadd.f32 %v22315_v48, %v28556_v58  ;;  %v17426_v57 = vrot.slane %v27159_v20, 1 }
 0x93b   : > { %v16485_v31 = vrot.slane %v15951_v45, 2  ;;  %v17721_v33 = vmax.f32 %v17657_v28, 0.0  ;;  %v17658_v18 = vadd.f32 %v17594_v42, %v16658_v32  ;;  %v17659_v19 = vadd.f32 %v17595_v16, %v16659_v13  ;;  %v28559_v45 = vld [vmem:[#allocation156_spill] sm:$0xff] }
 0x93c   : > { %v17724_v11 = vmax.f32 %v17660_v60, 0.0  ;;  %v22319_v44 = vpop.f32.mrf.mxu0  ;;  %v27187_v47 = vpop.f32.mrf.mxu1  ;;  %v17417_v3 = vsel %vm5363_vm0, %v17414_v22, %v17416_v7  ;;  %v17419_v23 = vsel %vm5363_vm0, %v17416_v7, %v17418_v14  ;;  %v17422_v48 = vrot.slane %v27166_v51, 1 }
 0x93d   : > { %v16486_v63 = vsel %vm5684_vm1, %v16483_v24, %v16485_v31  ;;  %17785 = vst [vmem:[%s27090_s28 + $0x58] sm:$0xff] %v17721_v33  ;;  %v17722_v20 = vmax.f32 %v17658_v18, 0.0  ;;  %v17723_v6 = vmax.f32 %v17659_v19, 0.0  ;;  %v15954_v29 = vadd.f32 %v22316_v40, %v28557_v50 }
 0x93e   : > { %17788 = vst [vmem:[%s27090_s28 + $0x70] sm:$0xff] %v17724_v11  ;;  %v16661_v59 = vadd.f32 %v16486_v63, %v26754_v39  ;;  %v15760_v42 = vpop.f32.mrf.mxu0  ;;  %v27197_v12 = vpop.f32.mrf.mxu1  ;;  %v17423_v22 = vsel %vm5363_vm0, %v17420_v27, %v17422_v48  ;;  %v17428_v14 = vrot.slane %v27177_v8, 1  ;;  %v15952_v24 = vadd.f32 %v15747_v53, %v28558_v0 }
 0x93f   : > { %v17424_v34 = vrot.slane %v17147_v4, 1  ;;  %v17600_v51 = vadd.f32 %v27058_v49, %v17421_v54  ;;  %17786 = vst [vmem:[%s27090_s28 + $0x60] sm:$0xff] %v17722_v20  ;;  %17787 = vst [vmem:[%s27090_s28 + $0x68] sm:$0xff] %v17723_v6  ;;  %v16489_v25 = vrot.slane %v15953_v46, 2  ;;  %v16491_v17 = vrot.slane %v15954_v29, 2  ;;  %v28562_v6 = vld [vmem:[#allocation159_spill] sm:$0xff] }
 0x940   : > { %v17661_v16 = vadd.f32 %v17597_v30, %v16661_v59  ;;  %v22320_v39 = vpop.f32.mrf.mxu0  ;;  %v27205_v36 = vpop.f32.mrf.mxu1  ;;  %v17598_v40 = vadd.f32 %v27058_v49, %v17417_v3  ;;  %v17599_v27 = vadd.f32 %v27058_v49, %v17419_v23  ;;  %v17429_v8 = vsel %vm5363_vm0, %v17426_v57, %v17428_v14  ;;  %v28561_v3 = vld [vmem:[#allocation158_spill] sm:$0xff] }
 0x941   : > { %v16487_v26 = vrot.slane %v15952_v24, 2  ;;  %v17601_v7 = vadd.f32 %v27058_v49, %v17423_v22  ;;  %v16492_v41 = vsel %vm5684_vm1, %v16489_v25, %v16491_v17  ;;  %v15957_v28 = vadd.f32 %v22319_v44, %v28559_v45  ;;  %v28563_v45 = vld [vmem:[#allocation161_spill] sm:$0xff] }
 0x942   : > { %v17725_v38 = vmax.f32 %v17661_v16, 0.0  ;;  %v15763_v30 = vpop.f32.mrf.mxu0  ;;  %v27213_v60 = vpop.f32.mrf.mxu1  ;;  %v16664_v32 = vadd.f32 %v16492_v41, %v26769_v5  ;;  %v17425_v4 = vsel %vm5363_vm0, %v17422_v48, %v17424_v34  ;;  %v17604_v54 = vadd.f32 %v27058_v49, %v17429_v8  ;;  %v28560_v5 = vld [vmem:[#allocation157_spill] sm:$0xff] }
 0x943   : > { %v16488_v13 = vsel %vm5684_vm1, %v16485_v31, %v16487_v26  ;;  %v16490_v53 = vsel %vm5684_vm1, %v16487_v26, %v16489_v25  ;;  %v17427_v33 = vsel %vm5363_vm0, %v17424_v34, %v17426_v57  ;;  %v15955_v44 = vadd.f32 %v15760_v42, %v28560_v5 }
 0x944   : > { %17789 = vst [vmem:[%s27090_s28 + $0x78] sm:$0xff] %v17725_v38  ;;  %v16662_v58 = vadd.f32 %v16488_v13, %v26775_v55  ;;  %v16663_v46 = vadd.f32 %v16490_v53, %v26789_v56  ;;  %v22323_v11 = vpop.f32.mrf.mxu0  ;;  %v27224_v18 = vpop.f32.mrf.mxu1  ;;  %v17664_v19 = vadd.f32 %v17600_v51, %v16664_v32  ;;  %v17430_v31 = vrot.slane %v27197_v12, 1 }
 0x945   : > { %v15958_v23 = vadd.f32 %v22320_v39, %v28561_v3  ;;  %v16497_v20 = vrot.slane %v15957_v28, 2  ;;  %v15956_v55 = vadd.f32 %v15763_v30, %v28562_v6  ;;  %v16493_v50 = vrot.slane %v15955_v44, 2 }
 0x946   : > { %v17662_v63 = vadd.f32 %v17598_v40, %v16662_v58  ;;  %v17663_v48 = vadd.f32 %v17599_v27, %v16663_v46  ;;  %v15776_v59 = vpop.f32.mrf.mxu0  ;;  %v27230_v56 = vpop.f32.mrf.mxu1  ;;  %v17728_v57 = vmax.f32 %v17664_v19, 0.0  ;;  %v17431_v29 = vsel %vm5363_vm0, %v17428_v14, %v17430_v31  ;;  %v28564_v58 = vld [vmem:[#allocation160_spill] sm:$0xff] }
 0x947   : > { %v16499_v42 = vrot.slane %v15958_v23, 2  ;;  %v17602_v0 = vadd.f32 %v27058_v49, %v17425_v4  ;;  %v17434_v24 = vrot.slane %v27187_v47, 1  ;;  %v16494_v25 = vsel %vm5684_vm1, %v16491_v17, %v16493_v50 }
 0x948   : > { %v17726_v22 = vmax.f32 %v17662_v63, 0.0  ;;  %v17727_v12 = vmax.f32 %v17663_v48, 0.0  ;;  %v22324_v34 = vpop.f32.mrf.mxu0  ;;  %v27235_v51 = vpop.f32.mrf.mxu1  ;;  %17792 = vst [vmem:[%s27090_s28 + $0x90] sm:$0xff] %v17728_v57  ;;  %v17436_v39 = vrot.slane %v27205_v36, 1  ;;  %v16495_v40 = vrot.slane %v15956_v55, 2 }
 0x949   : > { %v16500_v16 = vsel %vm5684_vm1, %v16497_v20, %v16499_v42  ;;  %v17603_v14 = vadd.f32 %v27058_v49, %v17427_v33  ;;  %v16665_v27 = vadd.f32 %v16494_v25, %v26782_v43  ;;  %v17605_v8 = vadd.f32 %v27058_v49, %v17431_v29 }
 0x94a   : > { %17790 = vst [vmem:[%s27090_s28 + $0x80] sm:$0xff] %v17726_v22  ;;  %17791 = vst [vmem:[%s27090_s28 + $0x88] sm:$0xff] %v17727_v12  ;;  %v16668_v47 = vadd.f32 %v16500_v16, %v26797_v35  ;;  %v15779_v26 = vpop.f32.mrf.mxu0  ;;  %v27247_v38 = vpop.f32.mrf.mxu1  ;;  %v16496_v17 = vsel %vm5684_vm1, %v16493_v50, %v16495_v40  ;;  %v16498_v41 = vsel %vm5684_vm1, %v16495_v40, %v16497_v20  ;;  %v17432_v36 = vrot.slane %v27213_v60, 1  ;;  %v28565_v20 = vld [vmem:[#allocation162_spill] sm:$0xff]  ;;  %v28566_v50 = vld [vmem:[#allocation163_spill] sm:$0xff] }
 0x94b   : > { %v15959_v28 = vadd.f32 %v15776_v59, %v28563_v45  ;;  %v17665_v30 = vadd.f32 %v17601_v7, %v16665_v27  ;;  %v16666_v13 = vadd.f32 %v16496_v17, %v26802_v10  ;;  %v16667_v43 = vadd.f32 %v16498_v41, %v26816_v1 }
 0x94c   : > { %v17668_v32 = vadd.f32 %v17604_v54, %v16668_v47  ;;  %v22327_v53 = vpop.f32.mrf.mxu0  ;;  %v27255_v35 = vpop.f32.mrf.mxu1  ;;  %v17437_v4 = vsel %vm5363_vm0, %v17434_v24, %v17436_v39  ;;  %v15961_v46 = vadd.f32 %v22323_v11, %v28564_v58  ;;  %v17442_v33 = vrot.slane %v27224_v18, 1 }
 0x94d   : > { %v16501_v60 = vrot.slane %v15959_v28, 2  ;;  %v17729_v19 = vmax.f32 %v17665_v30, 0.0  ;;  %v17666_v7 = vadd.f32 %v17602_v0, %v16666_v13  ;;  %v17667_v54 = vadd.f32 %v17603_v14, %v16667_v43 }
 0x94e   : > { %v17732_v5 = vmax.f32 %v17668_v32, 0.0  ;;  %v15792_v44 = vpop.f32.mrf.mxu0  ;;  %v27260_v10 = vpop.f32.mrf.mxu1  ;;  %v17433_v1 = vsel %vm5363_vm0, %v17430_v31, %v17432_v36  ;;  %v17435_v3 = vsel %vm5363_vm0, %v17432_v36, %v17434_v24  ;;  %v17438_v11 = vrot.slane %v27230_v56, 1 }
 0x94f   : > { %v16502_v23 = vsel %vm5684_vm1, %v16499_v42, %v16501_v60  ;;  %17793 = vst [vmem:[%s27090_s28 + $0x98] sm:$0xff] %v17729_v19  ;;  %v17730_v18 = vmax.f32 %v17666_v7, 0.0  ;;  %v17731_v63 = vmax.f32 %v17667_v54, 0.0  ;;  %v15962_v6 = vadd.f32 %v22324_v34, %v28565_v20 }
 0x950   : > { %17796 = vst [vmem:[%s27090_s28 + $0xb0] sm:$0xff] %v17732_v5  ;;  %v16669_v48 = vadd.f32 %v16502_v23, %v26809_v9  ;;  %v22328_v55 = vpop.f32.mrf.mxu0  ;;  %v27270_v59 = vpop.f32.mrf.mxu1  ;;  %v17439_v31 = vsel %vm5363_vm0, %v17436_v39, %v17438_v11  ;;  %v17444_v57 = vrot.slane %v27235_v51, 1  ;;  %v15960_v29 = vadd.f32 %v15779_v26, %v28566_v50  ;;  %v28569_v5 = vld [vmem:[#allocation166_spill] sm:$0xff] }
 0x951   : > { %v17440_v42 = vrot.slane %v27247_v38, 1  ;;  %v17608_v56 = vadd.f32 %v27058_v49, %v17437_v4  ;;  %17794 = vst [vmem:[%s27090_s28 + $0xa0] sm:$0xff] %v17730_v18  ;;  %17795 = vst [vmem:[%s27090_s28 + $0xa8] sm:$0xff] %v17731_v63  ;;  %v16505_v22 = vrot.slane %v15961_v46, 2  ;;  %v16507_v9 = vrot.slane %v15962_v6, 2  ;;  %v28568_v4 = vld [vmem:[#allocation165_spill] sm:$0xff] }
 0x952   : > { %v17669_v12 = vadd.f32 %v17605_v8, %v16669_v48  ;;  %v15795_v0 = vpop.f32.mrf.mxu0  ;;  %v27279_v24 = vpop.f32.mrf.mxu1  ;;  %v17606_v34 = vadd.f32 %v27058_v49, %v17433_v1  ;;  %v17607_v25 = vadd.f32 %v27058_v49, %v17435_v3  ;;  %v17445_v51 = vsel %vm5363_vm0, %v17442_v33, %v17444_v57 }
 0x953   : > { %v16503_v16 = vrot.slane %v15960_v29, 2  ;;  %v17609_v40 = vadd.f32 %v27058_v49, %v17439_v31  ;;  %v16508_v14 = vsel %vm5684_vm1, %v16505_v22, %v16507_v9  ;;  %v15965_v27 = vadd.f32 %v22327_v53, %v26527_v15 }
 0x954   : > { %v17733_v39 = vmax.f32 %v17669_v12, 0.0  ;;  %v22331_v8 = vpop.f32.mrf.mxu0  ;;  %v27287_v47 = vpop.f32.mrf.mxu1  ;;  %v16672_v26 = vadd.f32 %v16508_v14, %v26823_v2  ;;  %v17441_v41 = vsel %vm5363_vm0, %v17438_v11, %v17440_v42  ;;  %v17612_v36 = vadd.f32 %v27058_v49, %v17445_v51  ;;  %v28567_v2 = vld [vmem:[#allocation164_spill] sm:$0xff]  ;;  %v28572_v14 = vld [vmem:[#allocation167_spill] sm:$0xff] }
 0x955   : > { %v16504_v38 = vsel %vm5684_vm1, %v16501_v60, %v16503_v16  ;;  %v16506_v17 = vsel %vm5684_vm1, %v16503_v16, %v16505_v22  ;;  %v17443_v15 = vsel %vm5363_vm0, %v17440_v42, %v17442_v33  ;;  %v15963_v43 = vadd.f32 %v15792_v44, %v28567_v2 }
 0x956   : > { %17797 = vst [vmem:[%s27090_s28 + $0xb8] sm:$0xff] %v17733_v39  ;;  %v16670_v45 = vadd.f32 %v16504_v38, %v26828_v21  ;;  %v16671_v28 = vadd.f32 %v16506_v17, %v26841_v61  ;;  %v15808_v30 = vpop.f32.mrf.mxu0  ;;  %v27298_v32 = vpop.f32.mrf.mxu1  ;;  %v17672_v13 = vadd.f32 %v17608_v56, %v16672_v26  ;;  %v17446_v53 = vrot.slane %v27260_v10, 1 }
 0x957   : > { %v15966_v58 = vadd.f32 %v22328_v55, %v28568_v4  ;;  %v16513_v19 = vrot.slane %v15965_v27, 2  ;;  %v15964_v21 = vadd.f32 %v15795_v0, %v28569_v5  ;;  %v16509_v54 = vrot.slane %v15963_v43, 2  ;;  %v28574_v43 = vld [vmem:[#allocation168_spill] sm:$0xff] }
 0x958   : > { %v17670_v46 = vadd.f32 %v17606_v34, %v16670_v45  ;;  %v17671_v60 = vadd.f32 %v17607_v25, %v16671_v28  ;;  %v22332_v7 = vpop.f32.mrf.mxu0  ;;  %v27304_v61 = vpop.f32.mrf.mxu1  ;;  %v17736_v33 = vmax.f32 %v17672_v13, 0.0  ;;  %v17447_v1 = vsel %vm5363_vm0, %v17444_v57, %v17446_v53  ;;  %v28570_v34 = vld [vmem:[#allocation53_spill] sm:$0xff]  ;;  %v28573_v13 = vld [vmem:[#allocation56_spill] sm:$0xff] }
 0x959   : > { %v16515_v44 = vrot.slane %v15966_v58, 2  ;;  %v17610_v23 = vadd.f32 %v27058_v49, %v17441_v41  ;;  %v17450_v11 = vrot.slane %v27255_v35, 1  ;;  %v16510_v48 = vsel %vm5684_vm1, %v16507_v9, %v16509_v54 }
 0x95a   : > { %v17734_v3 = vmax.f32 %v17670_v46, 0.0  ;;  %v17735_v10 = vmax.f32 %v17671_v60, 0.0  ;;  %v15811_v18 = vpop.f32.mrf.mxu0  ;;  %v27309_v63 = vpop.f32.mrf.mxu1  ;;  %17800 = vst [vmem:[%s27090_s28 + $0xd0] sm:$0xff] %v17736_v33  ;;  %v17452_v6 = vrot.slane %v27270_v59, 1  ;;  %v16511_v55 = vrot.slane %v15964_v21, 2 }
 0x95b   : > { %v16516_v20 = vsel %vm5684_vm1, %v16513_v19, %v16515_v44  ;;  %v17611_v31 = vadd.f32 %v27058_v49, %v17443_v15  ;;  %v16673_v57 = vadd.f32 %v16510_v48, %v26835_v52  ;;  %v17613_v50 = vadd.f32 %v27058_v49, %v17447_v1  ;;  %v28571_v52 = vld [vmem:[#allocation57_spill] sm:$0xff]  ;;  %v28576_v48 = vld [vmem:[#allocation170_spill] sm:$0xff] }
 0x95c   : > { %17798 = vst [vmem:[%s27090_s28 + $0xc0] sm:$0xff] %v17734_v3  ;;  %17799 = vst [vmem:[%s27090_s28 + $0xc8] sm:$0xff] %v17735_v10  ;;  %v16676_v35 = vadd.f32 %v16516_v20, %v26848_v37  ;;  %v22335_v29 = vpop.f32.mrf.mxu0  ;;  %v27321_v42 = vpop.f32.mrf.mxu1  ;;  %v16512_v56 = vsel %vm5684_vm1, %v16509_v54, %v16511_v55  ;;  %v16514_v22 = vsel %vm5684_vm1, %v16511_v55, %v16513_v19  ;;  %v17448_v59 = vrot.slane %v27279_v24, 1  ;;  %v28575_v19 = vld [vmem:[#allocation169_spill] sm:$0xff] }
 0x95d   : > { %v15967_v12 = vadd.f32 %v15808_v30, %v26542_v62  ;;  %v17673_v9 = vadd.f32 %v17609_v40, %v16673_v57  ;;  %v16674_v25 = vadd.f32 %v16512_v56, %v28570_v34  ;;  %v16675_v51 = vadd.f32 %v16514_v22, %v28571_v52 }
 0x95e   : > { %v17676_v0 = vadd.f32 %v17612_v36, %v16676_v35  ;;  %v15824_v16 = vpop.f32.mrf.mxu0  ;;  %v27329_v37 = vpop.f32.mrf.mxu1  ;;  %v17453_v39 = vsel %vm5363_vm0, %v17450_v11, %v17452_v6  ;;  %v15969_v27 = vadd.f32 %v22331_v8, %v28572_v14  ;;  %v17458_v26 = vrot.slane %v27287_v47, 1 }
 0x95f   : > { %v16517_v24 = vrot.slane %v15967_v12, 2  ;;  %v17737_v38 = vmax.f32 %v17673_v9, 0.0  ;;  %v17674_v40 = vadd.f32 %v17610_v23, %v16674_v25  ;;  %v17675_v17 = vadd.f32 %v17611_v31, %v16675_v51  ;;  %v28577_v31 = vld [vmem:[#allocation76_spill] sm:$0xff]  ;;  %v28579_v9 = vld [vmem:[#allocation54_spill] sm:$0xff]  ;;  %v28580_v51 = vld [vmem:[#allocation171_spill] sm:$0xff] }
 0x960   : > { %v17740_v62 = vmax.f32 %v17676_v0, 0.0  ;;  %v22336_v41 = vpop.f32.mrf.mxu0  ;;  %v27334_v36 = vpop.f32.mrf.mxu1  ;;  %v17449_v45 = vsel %vm5363_vm0, %v17446_v53, %v17448_v59  ;;  %v17451_v28 = vsel %vm5363_vm0, %v17448_v59, %v17450_v11  ;;  %v17454_v8 = vrot.slane %v27298_v32, 1  ;;  %v28578_v59 = vld [vmem:[#allocation132_spill] sm:$0xff] }
 0x961   : > { %v16518_v15 = vsel %vm5684_vm1, %v16515_v44, %v16517_v24  ;;  %17801 = vst [vmem:[%s27090_s28 + $0xd8] sm:$0xff] %v17737_v38  ;;  %v17738_v47 = vmax.f32 %v17674_v40, 0.0  ;;  %v17739_v30 = vmax.f32 %v17675_v17, 0.0  ;;  %v15970_v4 = vadd.f32 %v22332_v7, %v28574_v43  ;;  %v28582_v17 = vld [vmem:[#allocation173_spill] sm:$0xff] }
 0x962   : > { %17804 = vst [vmem:[%s27090_s28 + $0xf0] sm:$0xff] %v17740_v62  ;;  %v16677_v2 = vadd.f32 %v16518_v15, %v28573_v13  ;;  %v15827_v58 = vpop.f32.mrf.mxu0  ;;  %v27344_v46 = vpop.f32.mrf.mxu1  ;;  %v17455_v53 = vsel %vm5363_vm0, %v17452_v6, %v17454_v8  ;;  %v17460_v60 = vrot.slane %v27304_v61, 1  ;;  %v15968_v5 = vadd.f32 %v15811_v18, %v28575_v19 }
 0x963   : > { %v17456_v21 = vrot.slane %v27309_v63, 1  ;;  %v17616_v32 = vadd.f32 %v27058_v49, %v17453_v39  ;;  %17802 = vst [vmem:[%s27090_s28 + $0xe0] sm:$0xff] %v17738_v47  ;;  %17803 = vst [vmem:[%s27090_s28 + $0xe8] sm:$0xff] %v17739_v30  ;;  %v16521_v33 = vrot.slane %v15969_v27, 2  ;;  %v16523_v1 = vrot.slane %v15970_v4, 2  ;;  %v28581_v27 = vld [vmem:[#allocation172_spill] sm:$0xff] }
 0x964   : > { %v17677_v54 = vadd.f32 %v17613_v50, %v16677_v2  ;;  %v27353_v44 = vpop.f32.mrf.mxu0  ;;  %v27355_v7 = vpop.f32.mrf.mxu1  ;;  %v17614_v3 = vadd.f32 %v27058_v49, %v17449_v45  ;;  %v17615_v61 = vadd.f32 %v27058_v49, %v17451_v28  ;;  %v17461_v10 = vsel %vm5363_vm0, %v17458_v26, %v17460_v60 }
 0x965   : > { %v16519_v23 = vrot.slane %v15968_v5, 2  ;;  %v17617_v18 = vadd.f32 %v27058_v49, %v17455_v53  ;;  %v16524_v63 = vsel %vm5684_vm1, %v16521_v33, %v16523_v1  ;;  %v15973_v20 = vadd.f32 %v22335_v29, %v28576_v48  ;;  %v28583_v5 = vld [vmem:[#allocation92_spill] sm:$0xff]  ;;  %v28586_v48 = vld [vmem:[#allocation77_spill] sm:$0xff] }
 0x966   : > { %v17741_v11 = vmax.f32 %v17677_v54, 0.0  ;;  %v15840_v6 = vpop.f32.mrf.mxu0  ;;  %v27363_v55 = vpop.f32.mrf.mxu1  ;;  %v16680_v57 = vadd.f32 %v16524_v63, %v28577_v31  ;;  %v17457_v56 = vsel %vm5363_vm0, %v17454_v8, %v17456_v21  ;;  %v17620_v22 = vadd.f32 %v27058_v49, %v17461_v10  ;;  %v28585_v10 = vld [vmem:[#allocation175_spill] sm:$0xff] }
 0x967   : > { %v16520_v50 = vsel %vm5684_vm1, %v16517_v24, %v16519_v23  ;;  %v16522_v35 = vsel %vm5684_vm1, %v16519_v23, %v16521_v33  ;;  %v17459_v29 = vsel %vm5363_vm0, %v17456_v21, %v17458_v26  ;;  %v15971_v39 = vadd.f32 %v15824_v16, %v28580_v51  ;;  %v28587_v31 = vld [vmem:[#allocation27_spill] sm:$0xff] }
 0x968   : > { %17805 = vst [vmem:[%s27090_s28 + $0xf8] sm:$0xff] %v17741_v11  ;;  %v16678_v12 = vadd.f32 %v16520_v50, %v28578_v59  ;;  %v16679_v0 = vadd.f32 %v16522_v35, %v28579_v9  ;;  %v27374_v34 = vpop.f32.mrf.mxu0  ;;  %v27376_v25 = vpop.f32.mrf.mxu1  ;;  %v17680_v52 = vadd.f32 %v17616_v32, %v16680_v57  ;;  %v17462_v14 = vrot.slane %v27329_v37, 1  ;;  %v28584_v32 = vld [vmem:[#allocation19_spill] sm:$0xff]  ;;  %v28588_v59 = vld [vmem:[#allocation174_spill] sm:$0xff] }
 0x969   : > { %v15974_v24 = vadd.f32 %v22336_v41, %v28581_v27  ;;  %v16529_v40 = vrot.slane %v15973_v20, 2  ;;  %v15972_v45 = vadd.f32 %v15827_v58, %v28582_v17  ;;  %v16525_v8 = vrot.slane %v15971_v39, 2 }
 0x96a   : > { %v17678_v38 = vadd.f32 %v17614_v3, %v16678_v12  ;;  %v17679_v62 = vadd.f32 %v17615_v61, %v16679_v0  ;;  %v15843_v28 = vpop.f32.mrf.mxu0  ;;  %v27382_v15 = vpop.f32.mrf.mxu1  ;;  %v17744_v26 = vmax.f32 %v17680_v52, 0.0  ;;  %v17463_v47 = vsel %vm5363_vm0, %v17460_v60, %v17462_v14 }
 0x96b   : > { %v16531_v16 = vrot.slane %v15974_v24, 2  ;;  %v17618_v41 = vadd.f32 %v27058_v49, %v17457_v56  ;;  %v17466_v13 = vrot.slane %v27321_v42, 1  ;;  %v16526_v4 = vsel %vm5684_vm1, %v16523_v1, %v16525_v8 }
 0x96c   : > { %v17742_v30 = vmax.f32 %v17678_v38, 0.0  ;;  %v17743_v37 = vmax.f32 %v17679_v62, 0.0  ;;  %v27387_v2 = vpop.f32.mrf.mxu0  ;;  %v27389_v43 = vpop.f32.mrf.mxu1  ;;  %17808 = vst [vmem:[%s27090_s28 + $0x110] sm:$0xff] %v17744_v26  ;;  %v17468_v53 = vrot.slane %v27334_v36, 1  ;;  %v16527_v19 = vrot.slane %v15972_v45, 2  ;;  %v28589_v38 = vld [vmem:[#allocation29_spill] sm:$0xff] }
 0x96d   : > { %v16532_v58 = vsel %vm5684_vm1, %v16529_v40, %v16531_v16  ;;  %v17619_v60 = vadd.f32 %v27058_v49, %v17459_v29  ;;  %v16681_v21 = vadd.f32 %v16526_v4, %v28583_v5  ;;  %v17621_v42 = vadd.f32 %v27058_v49, %v17463_v47  ;;  %v28591_v47 = vld [vmem:[#allocation177_spill] sm:$0xff] }
 0x96e   : > { %17806 = vst [vmem:[%s27090_s28 + $0x100] sm:$0xff] %v17742_v30  ;;  %17807 = vst [vmem:[%s27090_s28 + $0x108] sm:$0xff] %v17743_v37  ;;  %v16684_v33 = vadd.f32 %v16532_v58, %v28584_v32  ;;  %v27401_v54 = vpop.f32.mrf.mxu0  ;;  %v27403_v3 = vpop.f32.mrf.mxu1  ;;  %v16528_v1 = vsel %vm5684_vm1, %v16525_v8, %v16527_v19  ;;  %v16530_v61 = vsel %vm5684_vm1, %v16527_v19, %v16529_v40  ;;  %v17464_v36 = vrot.slane %v27344_v46, 1  ;;  %v28590_v40 = vld [vmem:[#allocation176_spill] sm:$0xff] }
 0x96f   : > { %v15975_v23 = vadd.f32 %v15840_v6, %v28585_v10  ;;  %v17681_v11 = vadd.f32 %v17617_v18, %v16681_v21  ;;  %v16682_v20 = vadd.f32 %v16528_v1, %v28586_v48  ;;  %v16683_v57 = vadd.f32 %v16530_v61, %v28587_v31  ;;  %v28592_v21 = vld [vmem:[#allocation178_spill] sm:$0xff]  ;;  %v28595_v48 = vld [vmem:[#allocation55_spill] sm:$0xff] }
 0x970   : > { %v17684_v63 = vadd.f32 %v17620_v22, %v16684_v33  ;;  %v22344_v50 = vpop.f32.mrf.mxu0  ;;  %v27411_v35 = vpop.f32.mrf.mxu1  ;;  %v17469_v56 = vsel %vm5363_vm0, %v17466_v13, %v17468_v53  ;;  %v15977_v12 = vadd.f32 %v27353_v44, %v28588_v59  ;;  %v17474_v46 = vrot.slane %v27355_v7, 1 }
 0x971   : > { %v16533_v9 = vrot.slane %v15975_v23, 2  ;;  %v17745_v6 = vmax.f32 %v17681_v11, 0.0  ;;  %v17682_v22 = vadd.f32 %v17618_v41, %v16682_v20  ;;  %v17683_v0 = vadd.f32 %v17619_v60, %v16683_v57  ;;  %v28594_v11 = vld [vmem:[#allocation43_spill] sm:$0xff] }
 0x972   : > { %v17748_v18 = vmax.f32 %v17684_v63, 0.0  ;;  %v15859_v29 = vpop.f32.mrf.mxu0  ;;  %v27417_v52 = vpop.f32.mrf.mxu1  ;;  %v17465_v51 = vsel %vm5363_vm0, %v17462_v14, %v17464_v36  ;;  %v17467_v39 = vsel %vm5363_vm0, %v17464_v36, %v17466_v13  ;;  %v17470_v44 = vrot.slane %v27363_v55, 1 }
 0x973   : > { %v16534_v27 = vsel %vm5684_vm1, %v16531_v16, %v16533_v9  ;;  %17809 = vst [vmem:[%s27090_s28 + $0x118] sm:$0xff] %v17745_v6  ;;  %v17746_v7 = vmax.f32 %v17682_v22, 0.0  ;;  %v17747_v24 = vmax.f32 %v17683_v0, 0.0  ;;  %v15978_v17 = vadd.f32 %v27374_v34, %v28590_v40 }
 0x974   : > { %17812 = vst [vmem:[%s27090_s28 + $0x130] sm:$0xff] %v17748_v18  ;;  %v16685_v62 = vadd.f32 %v16534_v27, %v28589_v38  ;;  %v27428_v45 = vpop.f32.mrf.mxu0  ;;  %v27430_v14 = vpop.f32.mrf.mxu1  ;;  %v17471_v26 = vsel %vm5363_vm0, %v17468_v53, %v17470_v44  ;;  %v17476_v8 = vrot.slane %v27376_v25, 1  ;;  %v15976_v16 = vadd.f32 %v15843_v28, %v28591_v47 }
 0x975   : > { %v17472_v55 = vrot.slane %v27382_v15, 1  ;;  %v17624_v30 = vadd.f32 %v27058_v49, %v17469_v56  ;;  %17810 = vst [vmem:[%s27090_s28 + $0x120] sm:$0xff] %v17746_v7  ;;  %17811 = vst [vmem:[%s27090_s28 + $0x128] sm:$0xff] %v17747_v24  ;;  %v16537_v37 = vrot.slane %v15977_v12, 2  ;;  %v16539_v13 = vrot.slane %v15978_v17, 2  ;;  %v28596_v56 = vld [vmem:[#allocation179_spill] sm:$0xff] }
 0x976   : > { %v17685_v41 = vadd.f32 %v17621_v42, %v16685_v62  ;;  %v15872_v34 = vpop.f32.mrf.mxu0  ;;  %v27439_v4 = vpop.f32.mrf.mxu1  ;;  %v17622_v58 = vadd.f32 %v27058_v49, %v17465_v51  ;;  %v17623_v53 = vadd.f32 %v27058_v49, %v17467_v39  ;;  %v17477_v25 = vsel %vm5363_vm0, %v17474_v46, %v17476_v8  ;;  %v27447_v15 = vld [vmem:[%s27697_s8] ss:$0 sm:$0xff]  ;;  %v28593_v49 = vld [vmem:[#allocation136_spill] sm:$0xff]  ;;  %v28598_v51 = vld [vmem:[#allocation181_spill] sm:$0xff] }
 0x977   : > { %v16535_v28 = vrot.slane %v15976_v16, 2  ;;  %v17625_v60 = vadd.f32 %v27447_v15, %v17471_v26  ;;  %v16540_v5 = vsel %vm5684_vm1, %v16537_v37, %v16539_v13  ;;  %v15981_v42 = vadd.f32 %v27387_v2, %v28592_v21  ;;  %v28599_v16 = vld [vmem:[#allocation138_spill] sm:$0xff] }
 0x978   : > { %v17749_v19 = vmax.f32 %v17685_v41, 0.0  ;;  %v27453_v32 = vpop.f32.mrf.mxu0  ;;  %v27455_v33 = vpop.f32.mrf.mxu1  ;;  %v16688_v1 = vadd.f32 %v16540_v5, %v28593_v49  ;;  %v17473_v10 = vsel %vm5363_vm0, %v17470_v44, %v17472_v55  ;;  %v17628_v23 = vadd.f32 %v27447_v15, %v17477_v25  ;;  %v28601_v25 = vld [vmem:[#allocation183_spill] sm:$0xff]  ;;  %v28602_v21 = vld [vmem:[#allocation78_spill] sm:$0xff] }
 0x979   : > { %v16536_v61 = vsel %vm5684_vm1, %v16533_v9, %v16535_v28  ;;  %v16538_v36 = vsel %vm5684_vm1, %v16535_v28, %v16537_v37  ;;  %v17475_v2 = vsel %vm5363_vm0, %v17472_v55, %v17474_v46  ;;  %v15979_v59 = vadd.f32 %v27401_v54, %v28596_v56  ;;  %v28597_v9 = vld [vmem:[#allocation180_spill] sm:$0xff]  ;;  %v28600_v37 = vld [vmem:[#allocation58_spill] sm:$0xff]  ;;  %v28603_v49 = vld [vmem:[#allocation79_spill] sm:$0xff] }
 0x97a   : > { %17813 = vst [vmem:[%s27090_s28 + $0x138] sm:$0xff] %v17749_v19  ;;  %v16686_v63 = vadd.f32 %v16536_v61, %v28594_v11  ;;  %v16687_v20 = vadd.f32 %v16538_v36, %v28595_v48  ;;  %v27466_v31 = vpop.f32.mrf.mxu0  ;;  %v17688_v57 = vadd.f32 %v17624_v30, %v16688_v1  ;;  %v17478_v12 = vrot.slane %v27403_v3, 1  ;;  %v27473_v27 = vpop.f32.mrf.mxu1 }
 0x97b   : > { %v15982_v6 = vadd.f32 %v22344_v50, %v28597_v9  ;;  %v16545_v0 = vrot.slane %v15981_v42, 2  ;;  %v15980_v39 = vadd.f32 %v15859_v29, %v28598_v51  ;;  %v16541_v7 = vrot.slane %v15979_v59, 2 }
 0x97c   : > { %v17686_v18 = vadd.f32 %v17622_v58, %v16686_v63  ;;  %v17687_v22 = vadd.f32 %v17623_v53, %v16687_v20  ;;  %v27475_v46 = vpop.f32.mrf.mxu0  ;;  %v17752_v44 = vmax.f32 %v17688_v57, 0.0  ;;  %v17479_v54 = vsel %vm5363_vm0, %v17476_v8, %v17478_v12  ;;  %v27492_v41 = vpop.f32.mrf.mxu1 }
 0x97d   : > { %v16547_v24 = vrot.slane %v15982_v6, 2  ;;  %v17626_v50 = vadd.f32 %v27447_v15, %v17473_v10  ;;  %v17482_v62 = vrot.slane %v27389_v43, 1  ;;  %v16542_v29 = vsel %vm5684_vm1, %v16539_v13, %v16541_v7  ;;  %v28604_v10 = vld [vmem:[#allocation182_spill] sm:$0xff]  ;;  %v28605_v6 = vld [vmem:[#allocation97_spill] sm:$0xff] }
 0x97e   : > { %v17750_v3 = vmax.f32 %v17686_v18, 0.0  ;;  %v17751_v38 = vmax.f32 %v17687_v22, 0.0  ;;  %v27480_v40 = vpop.f32.mrf.mxu0  ;;  %17816 = vst [vmem:[%s27090_s28 + $0x150] sm:$0xff] %v17752_v44  ;;  %v17484_v26 = vrot.slane %v27411_v35, 1  ;;  %v16543_v47 = vrot.slane %v15980_v39, 2  ;;  %v28606_v22 = vld [vmem:[#allocation184_spill] sm:$0xff] }
 0x97f   : > { %v16548_v17 = vsel %vm5684_vm1, %v16545_v0, %v16547_v24  ;;  %v17627_v8 = vadd.f32 %v27447_v15, %v17475_v2  ;;  %v16689_v55 = vadd.f32 %v16542_v29, %v28599_v16  ;;  %v17629_v30 = vadd.f32 %v27447_v15, %v17479_v54  ;;  %v28607_v44 = vld [vmem:[#allocation185_spill] sm:$0xff] }
 0x980   : > { %17814 = vst [vmem:[%s27090_s28 + $0x140] sm:$0xff] %v17750_v3  ;;  %17815 = vst [vmem:[%s27090_s28 + $0x148] sm:$0xff] %v17751_v38  ;;  %v16692_v43 = vadd.f32 %v16548_v17, %v28600_v37  ;;  %v27494_v58 = vpop.f32.mrf.mxu0  ;;  %v16544_v13 = vsel %vm5684_vm1, %v16541_v7, %v16543_v47  ;;  %v16546_v53 = vsel %vm5684_vm1, %v16543_v47, %v16545_v0  ;;  %v17480_v35 = vrot.slane %v27417_v52, 1 }
 0x981   : > { %v15983_v28 = vadd.f32 %v15872_v34, %v28601_v25  ;;  %v17689_v19 = vadd.f32 %v17625_v60, %v16689_v55  ;;  %v16690_v42 = vadd.f32 %v16544_v13, %v28602_v21  ;;  %v16691_v1 = vadd.f32 %v16546_v53, %v28603_v49  ;;  %v28611_v53 = vld [vmem:[#allocation94_spill] sm:$0xff]  ;;  %v28612_v49 = vld [vmem:[#allocation187_spill] sm:$0xff] }
 0x982   : > { %v17692_v5 = vadd.f32 %v17628_v23, %v16692_v43  ;;  %v15891_v61 = vpop.f32.mrf.mxu0  ;;  %v17485_v36 = vsel %vm5363_vm0, %v17482_v62, %v17484_v26  ;;  %v15985_v11 = vadd.f32 %v27428_v45, %v28604_v10  ;;  %v17490_v63 = vrot.slane %v27430_v14, 1  ;;  %v27506_v23 = vpop.f32.mrf.mxu1  ;;  %v28610_v43 = vld [vmem:[#allocation80_spill] sm:$0xff] }
 0x983   : > { %v16549_v48 = vrot.slane %v15983_v28, 2  ;;  %v17753_v52 = vmax.f32 %v17689_v19, 0.0  ;;  %v17690_v34 = vadd.f32 %v17626_v50, %v16690_v42  ;;  %v17691_v60 = vadd.f32 %v17627_v8, %v16691_v1  ;;  %v28608_v8 = vld [vmem:[#allocation30_spill] sm:$0xff] }
 0x984   : > { %v17756_v20 = vmax.f32 %v17692_v5, 0.0  ;;  %v27508_v2 = vpop.f32.mrf.mxu0  ;;  %v17481_v57 = vsel %vm5363_vm0, %v17478_v12, %v17480_v35  ;;  %v17483_v56 = vsel %vm5363_vm0, %v17480_v35, %v17482_v62  ;;  %v17486_v45 = vrot.slane %v27439_v4, 1  ;;  %v27528_v38 = vpop.f32.mrf.mxu1 }
 0x985   : > { %v16550_v59 = vsel %vm5684_vm1, %v16547_v24, %v16549_v48  ;;  %17817 = vst [vmem:[%s27090_s28 + $0x158] sm:$0xff] %v17753_v52  ;;  %v17754_v14 = vmax.f32 %v17690_v34, 0.0  ;;  %v17755_v9 = vmax.f32 %v17691_v60, 0.0  ;;  %v15986_v0 = vadd.f32 %v27453_v32, %v28606_v22  ;;  %v28614_v52 = vld [vmem:[#allocation189_spill] sm:$0xff]  ;;  %v28615_v22 = vld [vmem:[#allocation142_spill] sm:$0xff] }
 0x986   : > { %17820 = vst [vmem:[%s27090_s28 + $0x170] sm:$0xff] %v17756_v20  ;;  %v16693_v18 = vadd.f32 %v16550_v59, %v28605_v6  ;;  %v27519_v51 = vpop.f32.mrf.mxu0  ;;  %v17487_v39 = vsel %vm5363_vm0, %v17484_v26, %v17486_v45  ;;  %v17492_v12 = vrot.slane %v27455_v33, 1  ;;  %v15984_v7 = vadd.f32 %v27466_v31, %v28607_v44  ;;  %v17291_v19 = vpop.f32.mrf.mxu1 }
 0x987   : > { %17818 = vst [vmem:[%s27090_s28 + $0x160] sm:$0xff] %v17754_v14  ;;  %17819 = vst [vmem:[%s27090_s28 + $0x168] sm:$0xff] %v17755_v9  ;;  %v16553_v4 = vrot.slane %v15985_v11, 2  ;;  %v16555_v24 = vrot.slane %v15986_v0, 2  ;;  %v17488_v3 = vrot.slane %v27473_v27, 1  ;;  %v17632_v50 = vadd.f32 %v27447_v15, %v17485_v36  ;;  %v28613_v36 = vld [vmem:[#allocation188_spill] sm:$0xff] }
 0x988   : > { %v17693_v54 = vadd.f32 %v17629_v30, %v16693_v18  ;;  %v27530_v32 = vpop.f32.mrf.mxu0  ;;  %v17630_v62 = vadd.f32 %v27447_v15, %v17481_v57  ;;  %v17631_v33 = vadd.f32 %v27447_v15, %v17483_v56  ;;  %v16551_v29 = vrot.slane %v15984_v7, 2  ;;  %v28609_v30 = vld [vmem:[#allocation186_spill] sm:$0xff]  ;;  %v27559_v14 = vpop.f32.mrf.mxu1 }
 0x989   : > { %v17633_v17 = vadd.f32 %v27447_v15, %v17487_v39  ;;  %v16556_v26 = vsel %vm5684_vm1, %v16553_v4, %v16555_v24  ;;  %v17493_v47 = vsel %vm5363_vm0, %v17490_v63, %v17492_v12  ;;  %v15989_v37 = vadd.f32 %v27475_v46, %v28609_v30 }
 0x98a   : > { %v17757_v31 = vmax.f32 %v17693_v54, 0.0  ;;  %v16696_v27 = vadd.f32 %v16556_v26, %v28608_v8  ;;  %v16552_v16 = vsel %vm5684_vm1, %v16549_v48, %v16551_v29  ;;  %v16554_v55 = vsel %vm5684_vm1, %v16551_v29, %v16553_v4  ;;  %v27548_v5 = vpop.f32.mrf.mxu0  ;;  %v28619_v29 = vld [vmem:[#allocation82_spill] sm:$0xff]  ;;  %v27577_v26 = vpop.f32.mrf.mxu1 }
 0x98b   : > { %v16694_v13 = vadd.f32 %v16552_v16, %v28610_v43  ;;  %v16695_v35 = vadd.f32 %v16554_v55, %v28611_v53  ;;  %v17489_v25 = vsel %vm5363_vm0, %v17486_v45, %v17488_v3  ;;  %v17491_v28 = vsel %vm5363_vm0, %v17488_v3, %v17490_v63 }
 0x98c   : > { %17821 = vst [vmem:[%s27090_s28 + $0x178] sm:$0xff] %v17757_v31  ;;  %v17696_v21 = vadd.f32 %v17632_v50, %v16696_v27  ;;  %v17636_v42 = vadd.f32 %v27447_v15, %v17493_v47  ;;  %v15987_v1 = vadd.f32 %v27480_v40, %v28612_v49  ;;  %v15990_v46 = vadd.f32 %v27494_v58, %v28613_v36  ;;  %v22359_v58 = vpop.f32.mrf.mxu0  ;;  %v28620_v27 = vld [vmem:[#allocation190_spill] sm:$0xff] }
 0x98d   : > { %v17694_v10 = vadd.f32 %v17630_v62, %v16694_v13  ;;  %v17695_v11 = vadd.f32 %v17631_v33, %v16695_v35  ;;  %v17494_v48 = vrot.slane %v27506_v23, 1  ;;  %v15988_v20 = vadd.f32 %v15891_v61, %v28614_v52  ;;  %v28618_v62 = vld [vmem:[#allocation144_spill] sm:$0xff] }
 0x98e   : > { %v17760_v63 = vmax.f32 %v17696_v21, 0.0  ;;  %v16561_v34 = vrot.slane %v15989_v37, 2  ;;  %v16557_v60 = vrot.slane %v15987_v1, 2  ;;  %v16563_v57 = vrot.slane %v15990_v46, 2 }
 0x98f   : > { %v17758_v56 = vmax.f32 %v17694_v10, 0.0  ;;  %v17759_v59 = vmax.f32 %v17695_v11, 0.0  ;;  %v17634_v40 = vadd.f32 %v27447_v15, %v17489_v25  ;;  %v17498_v45 = vrot.slane %v27492_v41, 1  ;;  %v28616_v41 = vld [vmem:[#allocation81_spill] sm:$0xff]  ;;  %v22440_v25 = vpop.f32.mrf.mxu1 }
 0x990   : > { %17824 = vst [vmem:[%s27090_s28 + $0x190] sm:$0xff] %v17760_v63  ;;  %v16558_v23 = vsel %vm5684_vm1, %v16555_v24, %v16557_v60  ;;  %v16564_v61 = vsel %vm5684_vm1, %v16561_v34, %v16563_v57  ;;  %v17500_v9 = vrot.slane %v27528_v38, 1  ;;  %v16559_v6 = vrot.slane %v15988_v20, 2  ;;  %v28617_v24 = vld [vmem:[#allocation191_spill] sm:$0xff]  ;;  %v28623_v11 = vld [vmem:[#allocation193_spill] sm:$0xff] }
 0x991   : > { %17822 = vst [vmem:[%s27090_s28 + $0x180] sm:$0xff] %v17758_v56  ;;  %17823 = vst [vmem:[%s27090_s28 + $0x188] sm:$0xff] %v17759_v59  ;;  %v17635_v18 = vadd.f32 %v27447_v15, %v17491_v28  ;;  %v16697_v0 = vadd.f32 %v16558_v23, %v28615_v22  ;;  %v17495_v39 = vsel %vm5363_vm0, %v17492_v12, %v17494_v48  ;;  %v17496_v54 = vrot.slane %v17291_v19, 1  ;;  %v15920_v12 = vpop.f32.mrf.mxu0  ;;  %v28621_v19 = vld [vmem:[#allocation20_spill] sm:$0xff]  ;;  %v28625_v59 = vld [vmem:[#allocation194_spill] sm:$0xff] }
 0x992   : > { %v16700_v44 = vadd.f32 %v16564_v61, %v28616_v41  ;;  %v16560_v7 = vsel %vm5684_vm1, %v16557_v60, %v16559_v6  ;;  %v16562_v4 = vsel %vm5684_vm1, %v16559_v6, %v16561_v34  ;;  %v15991_v3 = vadd.f32 %v27519_v51, %v28617_v24  ;;  %v28624_v34 = vld [vmem:[#allocation195_spill] sm:$0xff] }
 0x993   : > { %v17697_v38 = vadd.f32 %v17633_v17, %v16697_v0  ;;  %v16698_v33 = vadd.f32 %v16560_v7, %v28618_v62  ;;  %v16699_v31 = vadd.f32 %v16562_v4, %v28619_v29  ;;  %v17637_v47 = vadd.f32 %v27447_v15, %v17495_v39  ;;  %v22360_v1 = vpop.f32.mrf.mxu0  ;;  %v28626_v6 = vld [vmem:[#allocation59_spill] sm:$0xff]  ;;  %v28628_v7 = vld [vmem:[#allocation90_spill] sm:$0xff]  ;;  %v28630_v62 = vld [vmem:[#allocation197_spill] sm:$0xff] }
 0x994   : > { %v17700_v50 = vadd.f32 %v17636_v42, %v16700_v44  ;;  %v17501_v8 = vsel %vm5363_vm0, %v17498_v45, %v17500_v9  ;;  %v15993_v16 = vadd.f32 %v27508_v2, %v28620_v27  ;;  %v16565_v55 = vrot.slane %v15991_v3, 2  ;;  %v28622_v42 = vld [vmem:[#allocation192_spill] sm:$0xff]  ;;  %v28627_v41 = vld [vmem:[#allocation83_spill] sm:$0xff] }
 0x995   : > { %v17761_v51 = vmax.f32 %v17697_v38, 0.0  ;;  %v17698_v30 = vadd.f32 %v17634_v40, %v16698_v33  ;;  %v17699_v37 = vadd.f32 %v17635_v18, %v16699_v31  ;;  %v17497_v43 = vsel %vm5363_vm0, %v17494_v48, %v17496_v54 }
 0x996   : > { %v17764_v17 = vmax.f32 %v17700_v50, 0.0  ;;  %v17499_v13 = vsel %vm5363_vm0, %v17496_v54, %v17498_v45  ;;  %v16566_v53 = vsel %vm5684_vm1, %v16563_v57, %v16565_v55  ;;  %v17502_v35 = vrot.slane %v27577_v26, 1  ;;  %v17307_v45 = vpop.f32.mrf.mxu1  ;;  %v28629_v54 = vld [vmem:[#allocation196_spill] sm:$0xff] }
 0x997   : > { %17825 = vst [vmem:[%s27090_s28 + $0x198] sm:$0xff] %v17761_v51  ;;  %v17762_v28 = vmax.f32 %v17698_v30, 0.0  ;;  %v17763_v2 = vmax.f32 %v17699_v37, 0.0  ;;  %v16701_v21 = vadd.f32 %v16566_v53, %v28621_v19  ;;  %v15994_v49 = vadd.f32 %v27530_v32, %v28622_v42 }
 0x998   : > { %17828 = vst [vmem:[%s27090_s28 + $0x1b0] sm:$0xff] %v17764_v17  ;;  %v17640_v36 = vadd.f32 %v27447_v15, %v17501_v8  ;;  %v17506_v46 = vrot.slane %v27559_v14, 1  ;;  %v17503_v10 = vsel %vm5363_vm0, %v17500_v9, %v17502_v35  ;;  %v15992_v48 = vadd.f32 %v27548_v5, %v28623_v11  ;;  %v15923_v9 = vpop.f32.mrf.mxu0 }
 0x999   : > { %17826 = vst [vmem:[%s27090_s28 + $0x1a0] sm:$0xff] %v17762_v28  ;;  %17827 = vst [vmem:[%s27090_s28 + $0x1a8] sm:$0xff] %v17763_v2  ;;  %v16569_v52 = vrot.slane %v15993_v16, 2  ;;  %v17701_v20 = vadd.f32 %v17637_v47, %v16701_v21  ;;  %v16571_v63 = vrot.slane %v15994_v49, 2  ;;  %v15995_v60 = vadd.f32 %v15920_v12, %v28624_v34  ;;  %v28631_v12 = vld [vmem:[#allocation44_spill] sm:$0xff]  ;;  %v28633_v21 = vld [vmem:[#allocation150_spill] sm:$0xff] }
 0x99a   : > { %v17638_v32 = vadd.f32 %v27447_v15, %v17497_v43  ;;  %v17639_v57 = vadd.f32 %v27447_v15, %v17499_v13  ;;  %v16567_v56 = vrot.slane %v15992_v48, 2  ;;  %v15997_v40 = vadd.f32 %v22359_v58, %v28625_v59  ;;  %v28632_v2 = vld [vmem:[#allocation148_spill] sm:$0xff] }
 0x99b   : > { %v17765_v14 = vmax.f32 %v17701_v20, 0.0  ;;  %v17641_v23 = vadd.f32 %v27447_v15, %v17503_v10  ;;  %v16572_v5 = vsel %vm5684_vm1, %v16569_v52, %v16571_v63  ;;  %v17508_v61 = vrot.slane %v22440_v25, 1  ;;  %v28634_v48 = vld [vmem:[#allocation60_spill] sm:$0xff] }
 0x99c   : > { %v16704_v18 = vadd.f32 %v16572_v5, %v28626_v6  ;;  %v16568_v22 = vsel %vm5684_vm1, %v16565_v55, %v16567_v56  ;;  %v16570_v0 = vsel %vm5684_vm1, %v16567_v56, %v16569_v52  ;;  %v16573_v39 = vrot.slane %v15995_v60, 2  ;;  %v28635_v20 = vld [vmem:[#allocation84_spill] sm:$0xff] }
 0x99d   : > { %17829 = vst [vmem:[%s27090_s28 + $0x1b8] sm:$0xff] %v17765_v14  ;;  %v16702_v44 = vadd.f32 %v16568_v22, %v28627_v41  ;;  %v16703_v58 = vadd.f32 %v16570_v0, %v28628_v7  ;;  %v17504_v4 = vrot.slane %v17307_v45, 1  ;;  %v15998_v24 = vadd.f32 %v22360_v1, %v28629_v54 }
 0x99e   : > { %v17704_v3 = vadd.f32 %v17640_v36, %v16704_v18  ;;  %v16577_v38 = vrot.slane %v15997_v40, 2  ;;  %v16574_v50 = vsel %vm5684_vm1, %v16571_v63, %v16573_v39  ;;  %v15996_v33 = vadd.f32 %v15923_v9, %v28630_v62 }
 0x99f   : > { %v17702_v29 = vadd.f32 %v17638_v32, %v16702_v44  ;;  %v17703_v31 = vadd.f32 %v17639_v57, %v16703_v58  ;;  %v17509_v26 = vsel %vm5363_vm0, %v17506_v46, %v17508_v61  ;;  %v16705_v47 = vadd.f32 %v16574_v50, %v28631_v12 }
 0x9a0   : > { %v17768_v8 = vmax.f32 %v17704_v3, 0.0  ;;  %v17574_v27 = vsel %vm5363_vm0, %v17508_v61, 0.0  ;;  %v17505_v16 = vsel %vm5363_vm0, %v17502_v35, %v17504_v4  ;;  %v16579_v55 = vrot.slane %v15998_v24, 2 }
 0x9a1   : > { %v17766_v51 = vmax.f32 %v17702_v29, 0.0  ;;  %v17767_v17 = vmax.f32 %v17703_v31, 0.0  ;;  %v17705_v30 = vadd.f32 %v17641_v23, %v16705_v47  ;;  %v17507_v37 = vsel %vm5363_vm0, %v17504_v4, %v17506_v46 }
 0x9a2   : > { %17832 = vst [vmem:[%s27090_s28 + $0x1d0] sm:$0xff] %v17768_v8  ;;  %v17644_v43 = vadd.f32 %v27447_v15, %v17509_v26  ;;  %v16580_v13 = vsel %vm5684_vm1, %v16577_v38, %v16579_v55  ;;  %v16645_v53 = vsel %vm5684_vm1, %v16579_v55, 0.0  ;;  %v16575_v25 = vrot.slane %v15996_v33, 2 }
 0x9a3   : > { %17830 = vst [vmem:[%s27090_s28 + $0x1c0] sm:$0xff] %v17766_v51  ;;  %17831 = vst [vmem:[%s27090_s28 + $0x1c8] sm:$0xff] %v17767_v17  ;;  %v17645_v35 = vadd.f32 %v27447_v15, %v17574_v27  ;;  %v17769_v28 = vmax.f32 %v17705_v30, 0.0  ;;  %v16708_v19 = vadd.f32 %v16580_v13, %v28632_v2  ;;  %v16709_v42 = vadd.f32 %v16645_v53, %v28633_v21 }
 0x9a4   : > { %v17642_v49 = vadd.f32 %v27447_v15, %v17505_v16  ;;  %v17643_v1 = vadd.f32 %v27447_v15, %v17507_v37  ;;  %v16576_v36 = vsel %vm5684_vm1, %v16573_v39, %v16575_v25  ;;  %v16578_v46 = vsel %vm5684_vm1, %v16575_v25, %v16577_v38 }
 0x9a5   : > { %17833 = vst [vmem:[%s27090_s28 + $0x1d8] sm:$0xff] %v17769_v28  ;;  %v17708_v10 = vadd.f32 %v17644_v43, %v16708_v19  ;;  %v17709_v11 = vadd.f32 %v17645_v35, %v16709_v42  ;;  %v16706_v52 = vadd.f32 %v16576_v36, %v28634_v48  ;;  %v16707_v63 = vadd.f32 %v16578_v46, %v28635_v20 }
 0x9a7   : > { %v17772_v15 = vmax.f32 %v17708_v10, 0.0  ;;  %v17773_v34 = vmax.f32 %v17709_v11, 0.0  ;;  %v17706_v60 = vadd.f32 %v17642_v49, %v16706_v52  ;;  %v17707_v32 = vadd.f32 %v17643_v1, %v16707_v63 }
 0x9a9   : > { %17836 = vst [vmem:[%s27090_s28 + $0x1f0] sm:$0xff] %v17772_v15  ;;  %17837 = vst [vmem:[%s27090_s28 + $0x1f8] sm:$0xff] %v17773_v34  ;;  %v17770_v57 = vmax.f32 %v17706_v60, 0.0  ;;  %v17771_v56 = vmax.f32 %v17707_v32, 0.0 }
 0x9ab   : > { %17834 = vst [vmem:[%s27090_s28 + $0x1e0] sm:$0xff] %v17770_v57  ;;  %17835 = vst [vmem:[%s27090_s28 + $0x1e8] sm:$0xff] %v17771_v56 }
 0x9ac   : > { %23229 = shalt.err (!%p23226_p5)
}
 0x9ad   : > { %s23230_s1 = scalar_lea.hbm %s27640_s21, 8192  ;;  %s23234_s14 = scalar_lea.hbm %s27698_s9, 16384 }
 0x9ae   : > { %p23231_p6 = scmp.ne.s32.totalorder %s27640_s21, %s23230_s1  ;;  %p23235_p9 = scmp.lt.s32.totalorder %s27640_s21, %s27698_s9 }
 0x9af   : > { %p23236_p11 = scmp.lt.s32.totalorder %s23234_s14, %s23230_s1 }
 0x9b0   : > { %p23232_p4 = pnand %p23231_p6, %p28636_p12 }
 0x9b1   : > { %p23237_p3 = por %p23236_p11, %p23235_p9 }
 0x9b2   : > { %p23233_p8 = pneg %p23232_p4 }
 0x9b4   : > { %p23238_p10 = pnand %p23237_p3, %p23233_p8 }
 0x9b6   : > { %23241 = shalt.err (!%p23238_p10)
}
 0x9b7   : > { %s23300_s27 = smov 128   ;;  %s23301_s29 = smov 8  }
 0x9b8   : > { %22462 = dma.vmem_to_hbm [thread:$0]  (%p28636_p12), %s27642_s17, 8192, %s27640_s21, %s17839_s13, %s23300_s27, %s23300_s27, %s23301_s29  }
 0x9b9 PF: > { %s17867_s20 = sand.u32 1, %s23276_s30   ;;  %p28637_p7 = scmp.ne.s32.totalorder %s27730_s16, 0 }
 0x9ba   : > { %p28638_p1 = scmp.ge.s32.totalorder %s23288_s12, 2  ;;  %s17868_s25 = scalar_lea.sflag [#allocation6], %s17867_s20 }
 0x9bc   : > { %p22482_p13 = pnand %p28638_p1, %p28637_p7 }
 0x9be   : > { %p22483_p0 = pneg %p22482_p13 }
 0x9c0   : > { %23271 = dma.done.wait (%p22483_p0), %s17868_s25, 8192  }
 0x9c1   : > { %23273 = vsyncadd (%p22483_p0), %s17868_s25, 4294959104  ;;  %p24_p2 = scmp.ge.s32.totalorder %s23452_s18, 4   ;;  %s28639_s30 = smov %s23280_s10 }
 0x9c2   : > { %s28640_s10 = smov %s23284_s11  ;;  %s28641_s11 = smov %s23468_s23 }
 0x9c3   : > { %s28642_s12 = smov %s23452_s18  ;;  %26 = sbr.rel (!%p24_p2) target bundleno = 11 (0xb), region = 141 }
 0x9c8   :  { %17873 = vsyncpa [#allocation5], 1 }
 0x9c9   :  { %17875 = vsyncpa [#allocation5 + $0x1], 1 }
 0x9ca   :  { %17876 = vsyncpa [#allocation8], 1 }
 0x9cb   :  { %17877 = vsyncpa [#allocation11], 1 }
 0x9cc   :  { %17878 = vsyncpa [#allocation6], 1 }
 0x9cd   :  { %17880 = vsyncpa [#allocation6 + $0x1], 1 }

</bundles_post_ra>
